<compile_context>
chip_gen: v7x
topology: tpu7x:2x2x1
jax: 0.10.0
libtpu: 0.0.40
codegen_flags: <defaults>
</compile_context>

<pallas_src>
import jax
import jax.numpy as jnp
from jax.experimental import pallas as pl
from jax.experimental.pallas import tpu as pltpu

IN_DIM = 2048
HID = 512
N_CLS = 16
DEFAULT_TB = 512  # batch tile size for large batches


def classifier_kernel(obj_ref, sub_ref, uni_ref,
                      wo_ref, ws_ref, wu_ref,
                      bo_ref, bs_ref, bu_ref,
                      wc0_ref, wc1_ref, wc2_ref, bc_ref,
                      out_ref):
    # bf16 inputs pass through unchanged; f32 inputs get cast in-register.
    obj = obj_ref[...].astype(jnp.bfloat16)
    sub = sub_ref[...].astype(jnp.bfloat16)
    uni = uni_ref[...].astype(jnp.bfloat16)

    obj_feat = jnp.maximum(
        jnp.dot(obj, wo_ref[...], preferred_element_type=jnp.float32)
        + bo_ref[...], 0.0)
    sub_feat = jnp.maximum(
        jnp.dot(sub, ws_ref[...], preferred_element_type=jnp.float32)
        + bs_ref[...], 0.0)
    uni_feat = jnp.maximum(
        jnp.dot(uni, wu_ref[...], preferred_element_type=jnp.float32)
        + bu_ref[...], 0.0)

    # cat((obj,sub,union),1) @ Wc^T + bc  ==  sum of three K=512 dots
    # (no concatenated (TB,1536) intermediate is materialized).
    logits = (
        jnp.dot(obj_feat.astype(jnp.bfloat16), wc0_ref[...],
                preferred_element_type=jnp.float32)
        + jnp.dot(sub_feat.astype(jnp.bfloat16), wc1_ref[...],
                  preferred_element_type=jnp.float32)
        + jnp.dot(uni_feat.astype(jnp.bfloat16), wc2_ref[...],
                  preferred_element_type=jnp.float32)
        + bc_ref[...])
    out_ref[...] = logits.astype(out_ref.dtype)


def classifier_forward(obj, sub, union, params, *, tb=DEFAULT_TB):
    B = obj.shape[0]
    # No wrapper-side padding: Pallas masks the partial final block and the
    # [:B] slice below discards any out-of-range rows.
    tb = min(tb, B)
    grid = (pl.cdiv(B, tb),)

    act_spec = pl.BlockSpec((tb, IN_DIM), lambda i: (i, 0))
    # Grid-invariant weights/biases: single-buffer them (saves VMEM on v7x).
    w_spec = pl.BlockSpec((IN_DIM, HID), lambda i: (0, 0),
                          pipeline_mode=pl.Buffered(1))
    b_spec = pl.BlockSpec((1, HID), lambda i: (0, 0),
                          pipeline_mode=pl.Buffered(1))
    wc_spec = pl.BlockSpec((HID, N_CLS), lambda i: (0, 0),
                           pipeline_mode=pl.Buffered(1))
    bc_spec = pl.BlockSpec((1, N_CLS), lambda i: (0, 0),
                           pipeline_mode=pl.Buffered(1))
    out_spec = pl.BlockSpec((tb, N_CLS), lambda i: (i, 0))

    out = pl.pallas_call(
        classifier_kernel,
        out_shape=jax.ShapeDtypeStruct((B, N_CLS), jnp.float32),
        grid=grid,
        in_specs=[act_spec, act_spec, act_spec,
                  w_spec, w_spec, w_spec,
                  b_spec, b_spec, b_spec,
                  wc_spec, wc_spec, wc_spec, bc_spec],
        out_specs=out_spec,
        compiler_params=pltpu.CompilerParams(
            dimension_semantics=("parallel",),
            vmem_limit_bytes=48 << 20,
        ),
    )(obj, sub, union,
      params["wo"], params["ws"], params["wu"],
      params["bo"], params["bs"], params["bu"],
      params["wc0"], params["wc1"], params["wc2"], params["bc"])
    return out[:B]


def _xavier_uniform(key, shape):
    # shape = (out_features, in_features), matching nn.Linear.weight
    fan_out, fan_in = shape
    limit = jnp.sqrt(6.0 / (fan_in + fan_out))
    return jax.random.uniform(key, shape, jnp.float32, -limit, limit)


def _weight_norm_effective(v, g):
    # PyTorch weight_norm(dim=0): w[i, :] = g[i] * v[i, :] / ||v[i, :]||
    norm = jnp.sqrt(jnp.sum(v * v, axis=1, keepdims=True))
    return g * v / norm


def make_params(key):
    keys = jax.random.split(key, 4)
    params = {}
    names = [("wo", "bo"), ("ws", "bs"), ("wu", "bu")]
    for k, (wn, bn) in zip(keys[:3], names):
        v = _xavier_uniform(k, (HID, IN_DIM))                 # weight_v
        g = jnp.sqrt(jnp.sum(v * v, axis=1, keepdims=True))   # weight_g init
        w = _weight_norm_effective(v, g)                      # (512, 2048) f32
        params[wn] = jnp.asarray(w.T, dtype=jnp.bfloat16)     # (2048, 512) bf16
        params[bn] = jnp.full((1, HID), 0.1, jnp.float32)
    wc = _xavier_uniform(keys[3], (N_CLS, HID * 3))           # (16, 1536)
    wc_t = jnp.asarray(wc.T, dtype=jnp.bfloat16)              # (1536, 16) bf16
    params["wc0"] = wc_t[0 * HID:1 * HID, :]                  # (512, 16)
    params["wc1"] = wc_t[1 * HID:2 * HID, :]
    params["wc2"] = wc_t[2 * HID:3 * HID, :]
    params["bc"] = jnp.full((1, N_CLS), 0.1, jnp.float32)
    return params


def reference_forward(obj, sub, union, params):
    # Pure-JAX reference using the same numerics as the kernel
    # (bf16 operands, f32 accumulation).
    def lin(x, w, b):
        return jnp.dot(x.astype(jnp.bfloat16), w,
                       preferred_element_type=jnp.float32) + b

    of = jax.nn.relu(lin(obj, params["wo"], params["bo"]))
    sf = jax.nn.relu(lin(sub, params["ws"], params["bs"]))
    uf = jax.nn.relu(lin(union, params["wu"], params["bu"]))
    return (jnp.dot(of.astype(jnp.bfloat16), params["wc0"],
                    preferred_element_type=jnp.float32)
            + jnp.dot(sf.astype(jnp.bfloat16), params["wc1"],
                      preferred_element_type=jnp.float32)
            + jnp.dot(uf.astype(jnp.bfloat16), params["wc2"],
                      preferred_element_type=jnp.float32)
            + params["bc"])


if __name__ == "__main__":
    key = jax.random.PRNGKey(0)
    k_p, k_o, k_s, k_u = jax.random.split(key, 4)
    params = make_params(k_p)

    # Small batch (single block).  Activations produced directly in bf16 so
    # the kernel-side cast is a no-op and activation DMA is halved.
    B = 8
    obj = jax.random.normal(k_o, (B, IN_DIM), jnp.bfloat16)
    sub = jax.random.normal(k_s, (B, IN_DIM), jnp.bfloat16)
    union = jax.random.normal(k_u, (B, IN_DIM), jnp.bfloat16)

    out = jax.block_until_ready(classifier_forward(obj, sub, union, params))
    ref = reference_forward(obj, sub, union, params)
    assert out.shape == (B, N_CLS)
    assert jnp.allclose(out, ref, atol=2e-2, rtol=2e-2)

    # Larger batch exercising the batch grid (2 tiles of 512, last partial,
    # no wrapper-side padding).
    B2 = 520
    k_o2, k_s2, k_u2 = jax.random.split(jax.random.PRNGKey(1), 3)
    obj2 = jax.random.normal(k_o2, (B2, IN_DIM), jnp.bfloat16)
    sub2 = jax.random.normal(k_s2, (B2, IN_DIM), jnp.bfloat16)
    union2 = jax.random.normal(k_u2, (B2, IN_DIM), jnp.bfloat16)

    out2 = jax.block_until_ready(classifier_forward(obj2, sub2, union2, params))
    ref2 = reference_forward(obj2, sub2, union2, params)
    assert out2.shape == (B2, N_CLS)
    assert jnp.allclose(out2, ref2, atol=2e-2, rtol=2e-2)

    print("KERNEL_OK")
</pallas_src>

<mosaic_0001>
module attributes {stable_mosaic.version = 11 : i64} {
  func.func @classifier_kernel(%arg0: i32, %arg1: memref<8x2048xbf16, #tpu.memory_space<vmem>>, %arg2: memref<8x2048xbf16, #tpu.memory_space<vmem>>, %arg3: memref<8x2048xbf16, #tpu.memory_space<vmem>>, %arg4: memref<2048x512xbf16, #tpu.memory_space<vmem>>, %arg5: memref<2048x512xbf16, #tpu.memory_space<vmem>>, %arg6: memref<2048x512xbf16, #tpu.memory_space<vmem>>, %arg7: memref<1x512xf32, #tpu.memory_space<vmem>>, %arg8: memref<1x512xf32, #tpu.memory_space<vmem>>, %arg9: memref<1x512xf32, #tpu.memory_space<vmem>>, %arg10: memref<512x16xbf16, #tpu.memory_space<vmem>>, %arg11: memref<512x16xbf16, #tpu.memory_space<vmem>>, %arg12: memref<512x16xbf16, #tpu.memory_space<vmem>>, %arg13: memref<1x16xf32, #tpu.memory_space<vmem>>, %arg14: memref<8x16xf32, #tpu.memory_space<vmem>>) attributes {dimension_semantics = [#tpu.dimension_semantics<parallel>], iteration_bounds = array<i64: 1>, scalar_prefetch = 0 : i64, scratch_operands = 0 : i64, tpu.core_type = #tpu.core_type<tc>, window_params = [{transform_indices = @transform_0, window_bounds = array<i64: 8, 2048>}, {transform_indices = @transform_1, window_bounds = array<i64: 8, 2048>}, {transform_indices = @transform_2, window_bounds = array<i64: 8, 2048>}, {pipeline_mode = #tpu.pipeline_mode<synchronous>, transform_indices = @transform_3, window_bounds = array<i64: 2048, 512>}, {pipeline_mode = #tpu.pipeline_mode<synchronous>, transform_indices = @transform_4, window_bounds = array<i64: 2048, 512>}, {pipeline_mode = #tpu.pipeline_mode<synchronous>, transform_indices = @transform_5, window_bounds = array<i64: 2048, 512>}, {pipeline_mode = #tpu.pipeline_mode<synchronous>, transform_indices = @transform_6, window_bounds = array<i64: 1, 512>}, {pipeline_mode = #tpu.pipeline_mode<synchronous>, transform_indices = @transform_7, window_bounds = array<i64: 1, 512>}, {pipeline_mode = #tpu.pipeline_mode<synchronous>, transform_indices = @transform_8, window_bounds = array<i64: 1, 512>}, {pipeline_mode = #tpu.pipeline_mode<synchronous>, transform_indices = @transform_9, window_bounds = array<i64: 512, 16>}, {pipeline_mode = #tpu.pipeline_mode<synchronous>, transform_indices = @transform_10, window_bounds = array<i64: 512, 16>}, {pipeline_mode = #tpu.pipeline_mode<synchronous>, transform_indices = @transform_11, window_bounds = array<i64: 512, 16>}, {pipeline_mode = #tpu.pipeline_mode<synchronous>, transform_indices = @transform_12, window_bounds = array<i64: 1, 16>}, {transform_indices = @transform_13, window_bounds = array<i64: 8, 16>}]} {
    %c0 = arith.constant 0 : index
    %c0_0 = arith.constant 0 : index
    %0 = vector.load %arg1[%c0, %c0_0] : memref<8x2048xbf16, #tpu.memory_space<vmem>>, vector<8x2048xbf16>
    %c0_1 = arith.constant 0 : index
    %c0_2 = arith.constant 0 : index
    %1 = vector.load %arg2[%c0_1, %c0_2] : memref<8x2048xbf16, #tpu.memory_space<vmem>>, vector<8x2048xbf16>
    %c0_3 = arith.constant 0 : index
    %c0_4 = arith.constant 0 : index
    %2 = vector.load %arg3[%c0_3, %c0_4] : memref<8x2048xbf16, #tpu.memory_space<vmem>>, vector<8x2048xbf16>
    %c0_5 = arith.constant 0 : index
    %c0_6 = arith.constant 0 : index
    %3 = vector.load %arg4[%c0_5, %c0_6] : memref<2048x512xbf16, #tpu.memory_space<vmem>>, vector<2048x512xbf16>
    %cst = arith.constant dense<0.000000e+00> : vector<8x512xf32>
    %4 = tpu.matmul %0, %3, %cst {dimension_numbers = #tpu.dot_dimension_numbers<[1], [0], [0], [1], [0, 0, 1, 1], [], []>} : vector<8x2048xbf16>, vector<2048x512xbf16>, vector<8x512xf32> -> vector<8x512xf32>
    %c0_7 = arith.constant 0 : index
    %c0_8 = arith.constant 0 : index
    %5 = vector.load %arg7[%c0_7, %c0_8] : memref<1x512xf32, #tpu.memory_space<vmem>>, vector<1x512xf32>
    %6 = vector.broadcast %5 : vector<1x512xf32> to vector<8x512xf32>
    %7 = arith.addf %4, %6 : vector<8x512xf32>
    %cst_9 = arith.constant 0.000000e+00 : f32
    %8 = vector.broadcast %cst_9 : f32 to vector<8x512xf32>
    %9 = arith.maximumf %7, %8 : vector<8x512xf32>
    %c0_10 = arith.constant 0 : index
    %c0_11 = arith.constant 0 : index
    %10 = vector.load %arg5[%c0_10, %c0_11] : memref<2048x512xbf16, #tpu.memory_space<vmem>>, vector<2048x512xbf16>
    %cst_12 = arith.constant dense<0.000000e+00> : vector<8x512xf32>
    %11 = tpu.matmul %1, %10, %cst_12 {dimension_numbers = #tpu.dot_dimension_numbers<[1], [0], [0], [1], [0, 0, 1, 1], [], []>} : vector<8x2048xbf16>, vector<2048x512xbf16>, vector<8x512xf32> -> vector<8x512xf32>
    %c0_13 = arith.constant 0 : index
    %c0_14 = arith.constant 0 : index
    %12 = vector.load %arg8[%c0_13, %c0_14] : memref<1x512xf32, #tpu.memory_space<vmem>>, vector<1x512xf32>
    %13 = vector.broadcast %12 : vector<1x512xf32> to vector<8x512xf32>
    %14 = arith.addf %11, %13 : vector<8x512xf32>
    %cst_15 = arith.constant 0.000000e+00 : f32
    %15 = vector.broadcast %cst_15 : f32 to vector<8x512xf32>
    %16 = arith.maximumf %14, %15 : vector<8x512xf32>
    %c0_16 = arith.constant 0 : index
    %c0_17 = arith.constant 0 : index
    %17 = vector.load %arg6[%c0_16, %c0_17] : memref<2048x512xbf16, #tpu.memory_space<vmem>>, vector<2048x512xbf16>
    %cst_18 = arith.constant dense<0.000000e+00> : vector<8x512xf32>
    %18 = tpu.matmul %2, %17, %cst_18 {dimension_numbers = #tpu.dot_dimension_numbers<[1], [0], [0], [1], [0, 0, 1, 1], [], []>} : vector<8x2048xbf16>, vector<2048x512xbf16>, vector<8x512xf32> -> vector<8x512xf32>
    %c0_19 = arith.constant 0 : index
    %c0_20 = arith.constant 0 : index
    %19 = vector.load %arg9[%c0_19, %c0_20] : memref<1x512xf32, #tpu.memory_space<vmem>>, vector<1x512xf32>
    %20 = vector.broadcast %19 : vector<1x512xf32> to vector<8x512xf32>
    %21 = arith.addf %18, %20 : vector<8x512xf32>
    %cst_21 = arith.constant 0.000000e+00 : f32
    %22 = vector.broadcast %cst_21 : f32 to vector<8x512xf32>
    %23 = arith.maximumf %21, %22 : vector<8x512xf32>
    %24 = arith.truncf %9 : vector<8x512xf32> to vector<8x512xbf16>
    %c0_22 = arith.constant 0 : index
    %c0_23 = arith.constant 0 : index
    %25 = vector.load %arg10[%c0_22, %c0_23] : memref<512x16xbf16, #tpu.memory_space<vmem>>, vector<512x16xbf16>
    %cst_24 = arith.constant dense<0.000000e+00> : vector<8x16xf32>
    %26 = tpu.matmul %24, %25, %cst_24 {dimension_numbers = #tpu.dot_dimension_numbers<[1], [0], [0], [1], [0, 0, 1, 1], [], []>} : vector<8x512xbf16>, vector<512x16xbf16>, vector<8x16xf32> -> vector<8x16xf32>
    %27 = arith.truncf %16 : vector<8x512xf32> to vector<8x512xbf16>
    %c0_25 = arith.constant 0 : index
    %c0_26 = arith.constant 0 : index
    %28 = vector.load %arg11[%c0_25, %c0_26] : memref<512x16xbf16, #tpu.memory_space<vmem>>, vector<512x16xbf16>
    %cst_27 = arith.constant dense<0.000000e+00> : vector<8x16xf32>
    %29 = tpu.matmul %27, %28, %cst_27 {dimension_numbers = #tpu.dot_dimension_numbers<[1], [0], [0], [1], [0, 0, 1, 1], [], []>} : vector<8x512xbf16>, vector<512x16xbf16>, vector<8x16xf32> -> vector<8x16xf32>
    %30 = arith.addf %26, %29 : vector<8x16xf32>
    %31 = arith.truncf %23 : vector<8x512xf32> to vector<8x512xbf16>
    %c0_28 = arith.constant 0 : index
    %c0_29 = arith.constant 0 : index
    %32 = vector.load %arg12[%c0_28, %c0_29] : memref<512x16xbf16, #tpu.memory_space<vmem>>, vector<512x16xbf16>
    %cst_30 = arith.constant dense<0.000000e+00> : vector<8x16xf32>
    %33 = tpu.matmul %31, %32, %cst_30 {dimension_numbers = #tpu.dot_dimension_numbers<[1], [0], [0], [1], [0, 0, 1, 1], [], []>} : vector<8x512xbf16>, vector<512x16xbf16>, vector<8x16xf32> -> vector<8x16xf32>
    %34 = arith.addf %30, %33 : vector<8x16xf32>
    %c0_31 = arith.constant 0 : index
    %c0_32 = arith.constant 0 : index
    %35 = vector.load %arg13[%c0_31, %c0_32] : memref<1x16xf32, #tpu.memory_space<vmem>>, vector<1x16xf32>
    %36 = vector.broadcast %35 : vector<1x16xf32> to vector<8x16xf32>
    %37 = arith.addf %34, %36 : vector<8x16xf32>
    %c0_33 = arith.constant 0 : index
    %c0_34 = arith.constant 0 : index
    %38 = vector.load %arg14[%c0_33, %c0_34] : memref<8x16xf32, #tpu.memory_space<vmem>>, vector<8x16xf32>
    tpu.vector_store %arg14[%c0_33, %c0_34], %37 {strides = array<i32>} : memref<8x16xf32, #tpu.memory_space<vmem>>, vector<8x16xf32>,
    return
  }
  func.func @transform_0(%arg0: i32) -> (i32, i32) {
    %c0_i32 = arith.constant 0 : i32
    %c0_i32_0 = arith.constant 0 : i32
    return %arg0, %c0_i32 : i32, i32
  }
  func.func @transform_1(%arg0: i32) -> (i32, i32) {
    %c0_i32 = arith.constant 0 : i32
    %c0_i32_0 = arith.constant 0 : i32
    return %arg0, %c0_i32 : i32, i32
  }
  func.func @transform_2(%arg0: i32) -> (i32, i32) {
    %c0_i32 = arith.constant 0 : i32
    %c0_i32_0 = arith.constant 0 : i32
    return %arg0, %c0_i32 : i32, i32
  }
  func.func @transform_3(%arg0: i32) -> (i32, i32) {
    %c0_i32 = arith.constant 0 : i32
    %c0_i32_0 = arith.constant 0 : i32
    %c0_i32_1 = arith.constant 0 : i32
    return %c0_i32, %c0_i32_0 : i32, i32
  }
  func.func @transform_4(%arg0: i32) -> (i32, i32) {
    %c0_i32 = arith.constant 0 : i32
    %c0_i32_0 = arith.constant 0 : i32
    %c0_i32_1 = arith.constant 0 : i32
    return %c0_i32, %c0_i32_0 : i32, i32
  }
  func.func @transform_5(%arg0: i32) -> (i32, i32) {
    %c0_i32 = arith.constant 0 : i32
    %c0_i32_0 = arith.constant 0 : i32
    %c0_i32_1 = arith.constant 0 : i32
    return %c0_i32, %c0_i32_0 : i32, i32
  }
  func.func @transform_6(%arg0: i32) -> (i32, i32) {
    %c0_i32 = arith.constant 0 : i32
    %c0_i32_0 = arith.constant 0 : i32
    %c0_i32_1 = arith.constant 0 : i32
    return %c0_i32, %c0_i32_0 : i32, i32
  }
  func.func @transform_7(%arg0: i32) -> (i32, i32) {
    %c0_i32 = arith.constant 0 : i32
    %c0_i32_0 = arith.constant 0 : i32
    %c0_i32_1 = arith.constant 0 : i32
    return %c0_i32, %c0_i32_0 : i32, i32
  }
  func.func @transform_8(%arg0: i32) -> (i32, i32) {
    %c0_i32 = arith.constant 0 : i32
    %c0_i32_0 = arith.constant 0 : i32
    %c0_i32_1 = arith.constant 0 : i32
    return %c0_i32, %c0_i32_0 : i32, i32
  }
  func.func @transform_9(%arg0: i32) -> (i32, i32) {
    %c0_i32 = arith.constant 0 : i32
    %c0_i32_0 = arith.constant 0 : i32
    %c0_i32_1 = arith.constant 0 : i32
    return %c0_i32, %c0_i32_0 : i32, i32
  }
  func.func @transform_10(%arg0: i32) -> (i32, i32) {
    %c0_i32 = arith.constant 0 : i32
    %c0_i32_0 = arith.constant 0 : i32
    %c0_i32_1 = arith.constant 0 : i32
    return %c0_i32, %c0_i32_0 : i32, i32
  }
  func.func @transform_11(%arg0: i32) -> (i32, i32) {
    %c0_i32 = arith.constant 0 : i32
    %c0_i32_0 = arith.constant 0 : i32
    %c0_i32_1 = arith.constant 0 : i32
    return %c0_i32, %c0_i32_0 : i32, i32
  }
  func.func @transform_12(%arg0: i32) -> (i32, i32) {
    %c0_i32 = arith.constant 0 : i32
    %c0_i32_0 = arith.constant 0 : i32
    %c0_i32_1 = arith.constant 0 : i32
    return %c0_i32, %c0_i32_0 : i32, i32
  }
  func.func @transform_13(%arg0: i32) -> (i32, i32) {
    %c0_i32 = arith.constant 0 : i32
    %c0_i32_0 = arith.constant 0 : i32
    return %arg0, %c0_i32 : i32, i32
  }
}

</mosaic_0001>

<bundles_post_ra>
// kernel: tpu_custom_call.1
= control target key start
LH: loop header
LB: loop body
LE: loop exit
PB: predicated region body
PF: predicated region fallthrough
CT: control target
= control target key end

     0   :  { %18 = vsyncpa [#allocation3], 0  ;;  %s18102_s0 = inlined_call_operand.hbm [shape: bf16[8,2048], index: 0, kind: input, shape index: {}]   ;;  %s18103_s1 = inlined_call_operand.hbm [shape: bf16[8,2048], index: 1, kind: input, shape index: {}]   ;;  %s18104_s2 = inlined_call_operand.hbm [shape: bf16[8,2048], index: 2, kind: input, shape index: {}]   ;;  %s18105_s3 = inlined_call_operand.hbm [shape: bf16[2048,512], index: 3, kind: input, shape index: {}]   ;;  %s18106_s4 = inlined_call_operand.hbm [shape: bf16[2048,512], index: 4, kind: input, shape index: {}]   ;;  %s18107_s5 = inlined_call_operand.hbm [shape: bf16[2048,512], index: 5, kind: input, shape index: {}]   ;;  %s18108_s6 = inlined_call_operand.hbm [shape: f32[1,512], index: 6, kind: input, shape index: {}]   ;;  %s18109_s7 = inlined_call_operand.hbm [shape: f32[1,512], index: 7, kind: input, shape index: {}]   ;;  %s18110_s8 = inlined_call_operand.hbm [shape: f32[1,512], index: 8, kind: input, shape index: {}]   ;;  %s18111_s9 = inlined_call_operand.vmem [shape: bf16[512,16], index: 9, kind: input, shape index: {}]   ;;  %s18112_s10 = inlined_call_operand.vmem [shape: bf16[512,16], index: 10, kind: input, shape index: {}]   ;;  %s18113_s11 = inlined_call_operand.vmem [shape: bf16[512,16], index: 11, kind: input, shape index: {}]   ;;  %s18114_s12 = inlined_call_operand.hbm [shape: f32[1,16], index: 12, kind: input, shape index: {}]   ;;  %s18115_s13 = inlined_call_operand.hbm [shape: f32[8,16], index: 13, kind: output, shape index: {}]  }
   0x1   :  { %19 = vsyncpa [#allocation6], 0 }
   0x2   :  { %20 = vsyncpa [#allocation9], 0 }
   0x3   :  { %21 = vsyncpa [#allocation12], 0 }
   0x4   :  { %22 = vsyncpa [#allocation15], 0 }
   0x5   :  { %23 = vsyncpa [#allocation18], 0 }
   0x6   :  { %24 = vsyncpa [#allocation4], 0  ;;  %s17383_s25 = smov [#allocation5]   ;;  %s17384_s27 = smov [#allocation8]  }
   0x7   :  { %s41_s26 = sshll.u32 %s17383_s25, 4  ;;  %s60_s28 = sshll.u32 %s17384_s27, 4  ;;  %s42_s26 = int_to_ptr.vmem [resolvable:$true] %s41_s26  ;;  %s17466_s28 = int_to_ptr.vmem [resolvable:$true] %s60_s28 }
   0x8   :  { %s17127_s14 = scalar_lea.hbm %s18103_s1, 1024 }
   0x9   :  { %p17128_p0 = scmp.ne.s32.totalorder %s18103_s1, %s17127_s14  ;;  %p17131_p1 = scmp.lt.u32.totalorder %s17127_s14, %s18103_s1 }
   0xb   :  { %p17133_p2 = pnand %p17131_p1, %p17128_p0 }
   0xd   :  { %17136 = shalt.err (!%p17133_p2)
}
   0xe   :  { %s17137_s19 = scalar_lea.vmem %s42_s26, 1024  ;;  %p17142_p4 = scmp.lt.s32.totalorder %s42_s26, %s42_s26 }
   0xf   :  { %p17138_p3 = scmp.ne.s32.totalorder %s42_s26, %s17137_s19  ;;  %p17143_p5 = scmp.lt.s32.totalorder %s17137_s19, %s17137_s19 }
  0x11   :  { %p17144_p6 = por %p17143_p5, %p17142_p4 }
  0x13   :  { %p17145_p7 = pnand %p17144_p6, %p17138_p3 }
  0x15   :  { %17148 = shalt.err (!%p17145_p7)
}
  0x16   :  { %44 = dma.hbm_to_vmem [thread:$0]  %s18103_s1, 1024, %s42_s26, [#allocation6]  }
  0x17   :  { %s17149_s24 = scalar_lea.hbm %s18105_s3, 65536 }
  0x18   :  { %p17150_p8 = scmp.ne.s32.totalorder %s18105_s3, %s17149_s24  ;;  %p17153_p9 = scmp.lt.u32.totalorder %s17149_s24, %s18105_s3 }
  0x1a   :  { %p17155_p10 = pnand %p17153_p9, %p17150_p8 }
  0x1c   :  { %17158 = shalt.err (!%p17155_p10)
}
  0x1d   :  { %s17159_s14 = scalar_lea.vmem %s17466_s28, 65536  ;;  %p17164_p12 = scmp.lt.s32.totalorder %s17466_s28, %s17466_s28 }
  0x1e   :  { %p17160_p11 = scmp.ne.s32.totalorder %s17466_s28, %s17159_s14  ;;  %p17165_p13 = scmp.lt.s32.totalorder %s17159_s14, %s17159_s14 }
  0x20   :  { %p17166_p0 = por %p17165_p13, %p17164_p12 }
  0x22   :  { %p17167_p1 = pnand %p17166_p0, %p17160_p11 }
  0x24   :  { %17170 = shalt.err (!%p17167_p1)
}
  0x25   :  { %s17385_s1 = smov 256   ;;  %s17386_s26 = smov 16  }
  0x26   :  { %66 = dma.hbm_to_vmem [thread:$0]  %s18105_s3, 65536, %s17466_s28, [#allocation9], %s17385_s1, %s17385_s1, %s17386_s26  }
  0x27   :  { %s17387_s17 = smov [#allocation11]   ;;  %s17388_s19 = smov [#allocation14]  }
  0x28   :  { %s84_s18 = sshll.u32 %s17387_s17, 4  ;;  %s107_s20 = sshll.u32 %s17388_s19, 4  ;;  %s85_s18 = int_to_ptr.vmem [resolvable:$true] %s84_s18  ;;  %s108_s20 = int_to_ptr.vmem [resolvable:$true] %s107_s20 }
  0x29   :  { %s17171_s23 = scalar_lea.hbm %s18107_s5, 65536 }
  0x2a   :  { %p17172_p2 = scmp.ne.s32.totalorder %s18107_s5, %s17171_s23  ;;  %p17175_p3 = scmp.lt.u32.totalorder %s17171_s23, %s18107_s5 }
  0x2c   :  { %p17177_p4 = pnand %p17175_p3, %p17172_p2 }
  0x2e   :  { %17180 = shalt.err (!%p17177_p4)
}
  0x2f   :  { %s17181_s3 = scalar_lea.vmem %s85_s18, 65536  ;;  %p17186_p6 = scmp.lt.s32.totalorder %s85_s18, %s85_s18 }
  0x30   :  { %p17182_p5 = scmp.ne.s32.totalorder %s85_s18, %s17181_s3  ;;  %p17187_p7 = scmp.lt.s32.totalorder %s17181_s3, %s17181_s3 }
  0x32   :  { %p17188_p8 = por %p17187_p7, %p17186_p6 }
  0x34   :  { %p17189_p9 = pnand %p17188_p8, %p17182_p5 }
  0x36   :  { %17192 = shalt.err (!%p17189_p9)
}
  0x37   :  { %90 = dma.hbm_to_vmem [thread:$0]  %s18107_s5, 65536, %s85_s18, [#allocation12], %s17385_s1, %s17385_s1, %s17386_s26  }
  0x38   :  { %s17193_s16 = scalar_lea.hbm %s18109_s7, 64 }
  0x39   :  { %p17194_p10 = scmp.ne.s32.totalorder %s18109_s7, %s17193_s16  ;;  %p17197_p11 = scmp.lt.u32.totalorder %s17193_s16, %s18109_s7 }
  0x3b   :  { %p17199_p12 = pnand %p17197_p11, %p17194_p10 }
  0x3d   :  { %17202 = shalt.err (!%p17199_p12)
}
  0x3e   :  { %s17203_s23 = scalar_lea.vmem %s108_s20, 64  ;;  %p17208_p0 = scmp.lt.s32.totalorder %s108_s20, %s108_s20 }
  0x3f   :  { %p17204_p13 = scmp.ne.s32.totalorder %s108_s20, %s17203_s23  ;;  %p17209_p1 = scmp.lt.s32.totalorder %s17203_s23, %s17203_s23 }
  0x41   :  { %p17210_p2 = por %p17209_p1, %p17208_p0 }
  0x43   :  { %p17211_p3 = pnand %p17210_p2, %p17204_p13 }
  0x45   :  { %17214 = shalt.err (!%p17211_p3)
}
  0x46   :  { %110 = dma.hbm_to_vmem [thread:$0]  %s18109_s7, 64, %s108_s20, [#allocation15]  }
  0x47   :  { %s17389_s24 = smov [#allocation2]   ;;  %s17390_s27 = smov [#allocation7]  }
  0x48   :  { %s31_s25 = sshll.u32 %s17389_s24, 4  ;;  %s51_s29 = sshll.u32 %s17390_s27, 4  ;;  %s32_s25 = int_to_ptr.vmem [resolvable:$true] %s31_s25  ;;  %s52_s29 = int_to_ptr.vmem [resolvable:$true] %s51_s29 }
  0x49   :  { %s17215_s30 = scalar_lea.hbm %s18102_s0, 1024 }
  0x4a   :  { %p17216_p4 = scmp.ne.s32.totalorder %s18102_s0, %s17215_s30  ;;  %p17219_p5 = scmp.lt.u32.totalorder %s17215_s30, %s18102_s0 }
  0x4c   :  { %p17221_p6 = pnand %p17219_p5, %p17216_p4 }
  0x4e   :  { %17224 = shalt.err (!%p17221_p6)
}
  0x4f   :  { %s17225_s7 = scalar_lea.vmem %s32_s25, 1024  ;;  %p17230_p8 = scmp.lt.s32.totalorder %s32_s25, %s32_s25 }
  0x50   :  { %p17226_p7 = scmp.ne.s32.totalorder %s32_s25, %s17225_s7  ;;  %p17231_p9 = scmp.lt.s32.totalorder %s17225_s7, %s17225_s7 }
  0x52   :  { %p17232_p10 = por %p17231_p9, %p17230_p8 }
  0x54   :  { %p17233_p11 = pnand %p17232_p10, %p17226_p7 }
  0x56   :  { %17236 = shalt.err (!%p17233_p11)
}
  0x57   :  { %34 = dma.hbm_to_vmem [thread:$0]  %s18102_s0, 1024, %s32_s25, [#allocation3]  }
  0x58   :  { %s17237_s23 = scalar_lea.hbm %s18104_s2, 1024 }
  0x59   :  { %p17238_p12 = scmp.ne.s32.totalorder %s18104_s2, %s17237_s23  ;;  %p17241_p13 = scmp.lt.u32.totalorder %s17237_s23, %s18104_s2 }
  0x5b   :  { %p17243_p0 = pnand %p17241_p13, %p17238_p12 }
  0x5d   :  { %17246 = shalt.err (!%p17243_p0)
}
  0x5e   :  { %s17247_s3 = scalar_lea.vmem %s52_s29, 1024  ;;  %p17252_p2 = scmp.lt.s32.totalorder %s52_s29, %s52_s29 }
  0x5f   :  { %p17248_p1 = scmp.ne.s32.totalorder %s52_s29, %s17247_s3  ;;  %p17253_p3 = scmp.lt.s32.totalorder %s17247_s3, %s17247_s3 }
  0x61   :  { %p17254_p4 = por %p17253_p3, %p17252_p2 }
  0x63   :  { %p17255_p5 = pnand %p17254_p4, %p17248_p1 }
  0x65   :  { %17258 = shalt.err (!%p17255_p5)
}
  0x66   :  { %54 = dma.hbm_to_vmem [thread:$0]  %s18104_s2, 1024, %s52_s29, [#allocation6]  }
  0x67   :  { %s17391_s28 = smov [#allocation10]   ;;  %s17392_s14 = smov [#allocation13]  }
  0x68   :  { %s72_s30 = sshll.u32 %s17391_s28, 4  ;;  %s97_s15 = sshll.u32 %s17392_s14, 4  ;;  %s73_s30 = int_to_ptr.vmem [resolvable:$true] %s72_s30  ;;  %s98_s15 = int_to_ptr.vmem [resolvable:$true] %s97_s15 }
  0x69   :  { %s17259_s7 = scalar_lea.hbm %s18106_s4, 65536 }
  0x6a   :  { %p17260_p6 = scmp.ne.s32.totalorder %s18106_s4, %s17259_s7  ;;  %p17263_p7 = scmp.lt.u32.totalorder %s17259_s7, %s18106_s4 }
  0x6c   :  { %p17265_p8 = pnand %p17263_p7, %p17260_p6 }
  0x6e   :  { %17268 = shalt.err (!%p17265_p8)
}
  0x6f   :  { %s17269_s2 = scalar_lea.vmem %s73_s30, 65536  ;;  %p17274_p10 = scmp.lt.s32.totalorder %s73_s30, %s73_s30 }
  0x70   :  { %p17270_p9 = scmp.ne.s32.totalorder %s73_s30, %s17269_s2  ;;  %p17275_p11 = scmp.lt.s32.totalorder %s17269_s2, %s17269_s2 }
  0x72   :  { %p17276_p12 = por %p17275_p11, %p17274_p10 }
  0x74   :  { %p17277_p13 = pnand %p17276_p12, %p17270_p9 }
  0x76   :  { %17280 = shalt.err (!%p17277_p13)
}
  0x77   :  { %78 = dma.hbm_to_vmem [thread:$0]  %s18106_s4, 65536, %s73_s30, [#allocation9], %s17385_s1, %s17385_s1, %s17386_s26  }
  0x78   :  { %s17281_s24 = scalar_lea.hbm %s18108_s6, 64 }
  0x79   :  { %p17282_p0 = scmp.ne.s32.totalorder %s18108_s6, %s17281_s24  ;;  %p17285_p1 = scmp.lt.u32.totalorder %s17281_s24, %s18108_s6 }
  0x7b   :  { %p17287_p2 = pnand %p17285_p1, %p17282_p0 }
  0x7d   :  { %17290 = shalt.err (!%p17287_p2)
}
  0x7e   :  { %s17291_s28 = scalar_lea.vmem %s98_s15, 64  ;;  %p17296_p4 = scmp.lt.s32.totalorder %s98_s15, %s98_s15 }
  0x7f   :  { %p17292_p3 = scmp.ne.s32.totalorder %s98_s15, %s17291_s28  ;;  %p17297_p5 = scmp.lt.s32.totalorder %s17291_s28, %s17291_s28 }
  0x81   :  { %p17298_p6 = por %p17297_p5, %p17296_p4 }
  0x83   :  { %p17299_p7 = pnand %p17298_p6, %p17292_p3 }
  0x85   :  { %17302 = shalt.err (!%p17299_p7)
}
  0x86   :  { %100 = dma.hbm_to_vmem [thread:$0]  %s18108_s6, 64, %s98_s15, [#allocation12]  }
  0x87   :  { %s17393_s26 = smov [#allocation16]   ;;  %s17394_s14 = smov [#allocation17]  }
  0x88   :  { %s117_s30 = sshll.u32 %s17393_s26, 4  ;;  %s133_s16 = sshll.u32 %s17394_s14, 4  ;;  %s118_s30 = int_to_ptr.vmem [resolvable:$true] %s117_s30  ;;  %s134_s16 = int_to_ptr.vmem [resolvable:$true] %s133_s16 }
  0x89   :  { %s17303_s20 = scalar_lea.hbm %s18110_s8, 64 }
  0x8a   :  { %p17304_p8 = scmp.ne.s32.totalorder %s18110_s8, %s17303_s20  ;;  %p17307_p9 = scmp.lt.u32.totalorder %s17303_s20, %s18110_s8 }
  0x8c   :  { %p17309_p10 = pnand %p17307_p9, %p17304_p8 }
  0x8e   :  { %17312 = shalt.err (!%p17309_p10)
}
  0x8f   :  { %s17313_s6 = scalar_lea.vmem %s118_s30, 64  ;;  %p17318_p12 = scmp.lt.s32.totalorder %s118_s30, %s118_s30 }
  0x90   :  { %p17314_p11 = scmp.ne.s32.totalorder %s118_s30, %s17313_s6  ;;  %p17319_p13 = scmp.lt.s32.totalorder %s17313_s6, %s17313_s6 }
  0x92   :  { %p17320_p0 = por %p17319_p13, %p17318_p12 }
  0x94   :  { %p17321_p1 = pnand %p17320_p0, %p17314_p11 }
  0x96   :  { %17324 = shalt.err (!%p17321_p1)
}
  0x97   :  { %120 = dma.hbm_to_vmem [thread:$0]  %s18110_s8, 64, %s118_s30, [#allocation15]  }
  0x98   :  { %s17325_s18 = scalar_lea.hbm %s18114_s12, 16 }
  0x99   :  { %p17326_p2 = scmp.ne.s32.totalorder %s18114_s12, %s17325_s18  ;;  %p17329_p3 = scmp.lt.u32.totalorder %s17325_s18, %s18114_s12 }
  0x9b   :  { %p17331_p4 = pnand %p17329_p3, %p17326_p2 }
  0x9d   :  { %17334 = shalt.err (!%p17331_p4)
}
  0x9e   :  { %s17335_s25 = scalar_lea.vmem %s134_s16, 16  ;;  %s17339_s28 = scalar_lea.vmem %s134_s16, 32 }
  0x9f   :  { %p17336_p5 = scmp.ne.s32.totalorder %s134_s16, %s17335_s25  ;;  %p17340_p6 = scmp.lt.s32.totalorder %s134_s16, %s134_s16 }
  0xa0   :  { %p17341_p7 = scmp.lt.s32.totalorder %s17339_s28, %s17335_s25 }
  0xa2   :  { %p17342_p8 = por %p17341_p7, %p17340_p6 }
  0xa4   :  { %p17343_p9 = pnand %p17342_p8, %p17336_p5 }
  0xa6   :  { %17346 = shalt.err (!%p17343_p9)
}
  0xa7   :  { %136 = dma.hbm_to_vmem [thread:$0]  %s18114_s12, 16, %s134_s16, [#allocation18]  }
  0xa8   :  { %17369 = dma.done.wait [#allocation3], 1024  }
  0xa9   :  { %17370 = vsyncadd [#allocation3], 4294966272 }
  0xaa   :  { %17371 = dma.done.wait [#allocation6], 2048  }
  0xab   :  { %17372 = vsyncadd [#allocation6], 4294965248 }
  0xac   :  { %17373 = dma.done.wait [#allocation9], 131072  }
  0xad   :  { %17374 = vsyncadd [#allocation9], 4294836224 }
  0xae   :  { %17375 = dma.done.wait [#allocation12], 65600  }
  0xaf   :  { %17376 = vsyncadd [#allocation12], 4294901696 }
  0xb0   :  { %17377 = dma.done.wait [#allocation15], 128  }
  0xb1   :  { %17378 = vsyncadd [#allocation15], 4294967168 }
  0xb2   :  { %17379 = dma.done.wait [#allocation18], 16  }
  0xb3   :  { %17380 = vsyncadd [#allocation18], 4294967280  ;;  %v14679_v0 = vld [vmem:[#allocation8 + $0x4] ss:$16 sps:$4 sm:$0xff]   ;;  %v14681_v1 = vld [vmem:[#allocation8 + $0xc] ss:$16 sps:$4 sm:$0xff]  }
  0xb4   :  { %3342 = vmatprep.subr.bf16.mxu0 %v14679_v0  ;;  %v14683_v2 = vld [vmem:[#allocation8] ss:$16 sps:$4 sm:$0xff]   ;;  %v14684_v3 = vld [vmem:[#allocation8 + $0x8] ss:$16 sps:$4 sm:$0xff]   ;;  %3670 = vmatprep.subr.bf16.mxu1 %v14681_v1  ;;  %v14685_v4 = vld [vmem:[#allocation8 + $0x24] ss:$16 sps:$4 sm:$0xff]  }
  0xb5   :  { %3343 = vmatpush1.bf16.msra.mxu0 %v14683_v2  ;;  %3671 = vmatpush1.bf16.msra.mxu1 %v14684_v3  ;;  %v14687_v5 = vld [vmem:[#allocation8 + $0x2c] ss:$16 sps:$4 sm:$0xff]   ;;  %v14689_v6 = vld [vmem:[#allocation8 + $0x20] ss:$16 sps:$4 sm:$0xff]   ;;  %v14690_v7 = vld [vmem:[#allocation8 + $0x28] ss:$16 sps:$4 sm:$0xff]  }
  0xb6   :  { %3344 = vmatprep.subr.bf16.mxu0 %v14685_v4  ;;  %3672 = vmatprep.subr.bf16.mxu1 %v14687_v5  ;;  %v14691_v8 = vld [vmem:[#allocation8 + $0x44] ss:$16 sps:$4 sm:$0xff]   ;;  %v14693_v9 = vld [vmem:[#allocation8 + $0x4c] ss:$16 sps:$4 sm:$0xff]   ;;  %v14695_v10 = vld [vmem:[#allocation8 + $0x40] ss:$16 sps:$4 sm:$0xff]  }
  0xb7   :  { %v14696_v11 = vld [vmem:[#allocation8 + $0x48] ss:$16 sps:$4 sm:$0xff]   ;;  %v14697_v12 = vld [vmem:[#allocation8 + $0x64] ss:$16 sps:$4 sm:$0xff]   ;;  %v14699_v13 = vld [vmem:[#allocation8 + $0x6c] ss:$16 sps:$4 sm:$0xff]  }
  0xb8   :  { %v14701_v14 = vld [vmem:[#allocation8 + $0x60] ss:$16 sps:$4 sm:$0xff]   ;;  %v14702_v15 = vld [vmem:[#allocation8 + $0x68] ss:$16 sps:$4 sm:$0xff]   ;;  %v14703_v16 = vld [vmem:[#allocation8 + $0x84] ss:$16 sps:$4 sm:$0xff]  }
  0xb9   :  { %3345 = vmatpush1.bf16.msra.mxu0 %v14689_v6  ;;  %3673 = vmatpush1.bf16.msra.mxu1 %v14690_v7  ;;  %v14705_v17 = vld [vmem:[#allocation8 + $0x8c] ss:$16 sps:$4 sm:$0xff]   ;;  %v14707_v18 = vld [vmem:[#allocation8 + $0x80] ss:$16 sps:$4 sm:$0xff]   ;;  %v14708_v19 = vld [vmem:[#allocation8 + $0x88] ss:$16 sps:$4 sm:$0xff]  }
  0xba   :  { %3346 = vmatprep.subr.bf16.mxu0 %v14691_v8  ;;  %3674 = vmatprep.subr.bf16.mxu1 %v14693_v9  ;;  %v14709_v20 = vld [vmem:[#allocation8 + $0xa4] ss:$16 sps:$4 sm:$0xff]   ;;  %v14711_v21 = vld [vmem:[#allocation8 + $0xac] ss:$16 sps:$4 sm:$0xff]   ;;  %v14713_v22 = vld [vmem:[#allocation8 + $0xa0] ss:$16 sps:$4 sm:$0xff]  }
  0xbb   :  { %v14714_v23 = vld [vmem:[#allocation8 + $0xa8] ss:$16 sps:$4 sm:$0xff]   ;;  %v14715_v24 = vld [vmem:[#allocation8 + $0xc4] ss:$16 sps:$4 sm:$0xff]   ;;  %v14717_v25 = vld [vmem:[#allocation8 + $0xcc] ss:$16 sps:$4 sm:$0xff]  }
  0xbc   :  { %v14719_v26 = vld [vmem:[#allocation8 + $0xc0] ss:$16 sps:$4 sm:$0xff]   ;;  %v14720_v27 = vld [vmem:[#allocation8 + $0xc8] ss:$16 sps:$4 sm:$0xff]   ;;  %v14721_v28 = vld [vmem:[#allocation8 + $0xe4] ss:$16 sps:$4 sm:$0xff]  }
  0xbd   :  { %3347 = vmatpush1.bf16.msra.mxu0 %v14695_v10  ;;  %3675 = vmatpush1.bf16.msra.mxu1 %v14696_v11  ;;  %v14723_v29 = vld [vmem:[#allocation8 + $0xec] ss:$16 sps:$4 sm:$0xff]   ;;  %v14725_v30 = vld [vmem:[#allocation8 + $0xe0] ss:$16 sps:$4 sm:$0xff]   ;;  %v14726_v31 = vld [vmem:[#allocation8 + $0xe8] ss:$16 sps:$4 sm:$0xff]  }
  0xbe   :  { %3348 = vmatprep.subr.bf16.mxu0 %v14697_v12  ;;  %3676 = vmatprep.subr.bf16.mxu1 %v14699_v13  ;;  %v14727_v32 = vld [vmem:[#allocation8 + $0x104] ss:$16 sps:$4 sm:$0xff]   ;;  %v14729_v33 = vld [vmem:[#allocation8 + $0x10c] ss:$16 sps:$4 sm:$0xff]   ;;  %v14731_v34 = vld [vmem:[#allocation8 + $0x100] ss:$16 sps:$4 sm:$0xff]  }
  0xbf   :  { %v14732_v35 = vld [vmem:[#allocation8 + $0x108] ss:$16 sps:$4 sm:$0xff]   ;;  %v14733_v36 = vld [vmem:[#allocation8 + $0x124] ss:$16 sps:$4 sm:$0xff]   ;;  %v14735_v37 = vld [vmem:[#allocation8 + $0x12c] ss:$16 sps:$4 sm:$0xff]  }
  0xc0   :  { %v14737_v38 = vld [vmem:[#allocation8 + $0x120] ss:$16 sps:$4 sm:$0xff]   ;;  %v14738_v39 = vld [vmem:[#allocation8 + $0x128] ss:$16 sps:$4 sm:$0xff]   ;;  %v14739_v40 = vld [vmem:[#allocation8 + $0x144] ss:$16 sps:$4 sm:$0xff]  }
  0xc1   :  { %3349 = vmatpush1.bf16.msra.mxu0 %v14701_v14  ;;  %3677 = vmatpush1.bf16.msra.mxu1 %v14702_v15  ;;  %v14741_v41 = vld [vmem:[#allocation8 + $0x14c] ss:$16 sps:$4 sm:$0xff]   ;;  %v14743_v42 = vld [vmem:[#allocation8 + $0x140] ss:$16 sps:$4 sm:$0xff]   ;;  %v14744_v43 = vld [vmem:[#allocation8 + $0x148] ss:$16 sps:$4 sm:$0xff]  }
  0xc2   :  { %3350 = vmatprep.subr.bf16.mxu0 %v14703_v16  ;;  %3678 = vmatprep.subr.bf16.mxu1 %v14705_v17  ;;  %v14745_v44 = vld [vmem:[#allocation8 + $0x164] ss:$16 sps:$4 sm:$0xff]   ;;  %v14747_v45 = vld [vmem:[#allocation8 + $0x16c] ss:$16 sps:$4 sm:$0xff]   ;;  %v14749_v47 = vld [vmem:[#allocation8 + $0x160] ss:$16 sps:$4 sm:$0xff]  }
  0xc3   :  { %v168_v46 = vld [vmem:[#allocation2] sm:$0xff]  ;;  %v14750_v49 = vld [vmem:[#allocation8 + $0x168] ss:$16 sps:$4 sm:$0xff]   ;;  %v14753_v51 = vld [vmem:[#allocation8 + $0x18c] ss:$16 sps:$4 sm:$0xff]   ;;  %vm12651_vm0 = vcmask 130048  }
  0xc4   :  { %v12674_v48 = vcombine.high %v168_v46, %v168_v46  ;;  %v14751_v50 = vld [vmem:[#allocation8 + $0x184] ss:$16 sps:$4 sm:$0xff]   ;;  %v14755_v52 = vld [vmem:[#allocation8 + $0x180] ss:$16 sps:$4 sm:$0xff]   ;;  %v14756_v53 = vld [vmem:[#allocation8 + $0x188] ss:$16 sps:$4 sm:$0xff]   ;;  %v12673_v4 = vcombine.low %v168_v46, %v168_v46 }
  0xc5   :  { %3351 = vmatpush1.bf16.msra.mxu0 %v14707_v18  ;;  %3679 = vmatpush1.bf16.msra.mxu1 %v14708_v19  ;;  %v14757_v54 = vld [vmem:[#allocation8 + $0x1a4] ss:$16 sps:$4 sm:$0xff]   ;;  %v14759_v55 = vld [vmem:[#allocation8 + $0x1ac] ss:$16 sps:$4 sm:$0xff]   ;;  %v14761_v56 = vld [vmem:[#allocation8 + $0x1a0] ss:$16 sps:$4 sm:$0xff]  }
  0xc6   :  { %3352 = vmatprep.subr.bf16.mxu0 %v14709_v20  ;;  %3680 = vmatprep.subr.bf16.mxu1 %v14711_v21  ;;  %v14762_v57 = vld [vmem:[#allocation8 + $0x1a8] ss:$16 sps:$4 sm:$0xff]   ;;  %v14763_v58 = vld [vmem:[#allocation8 + $0x1c4] ss:$16 sps:$4 sm:$0xff]   ;;  %v14765_v59 = vld [vmem:[#allocation8 + $0x1cc] ss:$16 sps:$4 sm:$0xff]  }
  0xc7   :  { %3374 = vmatprep.mubr.bf16.mxu0 %v12674_v48  ;;  %3702 = vmatprep.mubr.bf16.mxu1 %v12674_v48  ;;  %v14767_v60 = vld [vmem:[#allocation8 + $0x1c0] ss:$16 sps:$4 sm:$0xff]   ;;  %v14768_v61 = vld [vmem:[#allocation8 + $0x1c8] ss:$16 sps:$4 sm:$0xff]   ;;  %v14769_v62 = vld [vmem:[#allocation8 + $0x1e4] ss:$16 sps:$4 sm:$0xff]  }
  0xc8   :  { %v14771_v63 = vld [vmem:[#allocation8 + $0x1ec] ss:$16 sps:$4 sm:$0xff]   ;;  %v14773_v0 = vld [vmem:[#allocation8 + $0x1e0] ss:$16 sps:$4 sm:$0xff]   ;;  %v14774_v1 = vld [vmem:[#allocation8 + $0x1e8] ss:$16 sps:$4 sm:$0xff]  }
  0xc9   :  { %3353 = vmatpush1.bf16.msra.mxu0 %v14713_v22  ;;  %3681 = vmatpush1.bf16.msra.mxu1 %v14714_v23  ;;  %v14779_v2 = vld [vmem:[#allocation8 + $0x204] ss:$16 sps:$4 sm:$0xff]   ;;  %v14782_v3 = vld [vmem:[#allocation8 + $0x20c] ss:$16 sps:$4 sm:$0xff]   ;;  %v14777_v5 = vld [vmem:[#allocation8 + $0x200] ss:$16 sps:$4 sm:$0xff]  }
  0xca   :  { %3354 = vmatprep.subr.bf16.mxu0 %v14715_v24  ;;  %3682 = vmatprep.subr.bf16.mxu1 %v14717_v25  ;;  %v14780_v6 = vld [vmem:[#allocation8 + $0x208] ss:$16 sps:$4 sm:$0xff]   ;;  %v14785_v7 = vld [vmem:[#allocation8 + $0x224] ss:$16 sps:$4 sm:$0xff]   ;;  %v14788_v8 = vld [vmem:[#allocation8 + $0x22c] ss:$16 sps:$4 sm:$0xff]  }
  0xcb   :  { %v14783_v9 = vld [vmem:[#allocation8 + $0x220] ss:$16 sps:$4 sm:$0xff]   ;;  %v14786_v10 = vld [vmem:[#allocation8 + $0x228] ss:$16 sps:$4 sm:$0xff]   ;;  %v14791_v11 = vld [vmem:[#allocation8 + $0x244] ss:$16 sps:$4 sm:$0xff]  }
  0xcc   :  { %v14794_v12 = vld [vmem:[#allocation8 + $0x24c] ss:$16 sps:$4 sm:$0xff]   ;;  %v14789_v13 = vld [vmem:[#allocation8 + $0x240] ss:$16 sps:$4 sm:$0xff]   ;;  %v14792_v14 = vld [vmem:[#allocation8 + $0x248] ss:$16 sps:$4 sm:$0xff]  }
  0xcd   :  { %3355 = vmatpush1.bf16.msra.mxu0 %v14719_v26  ;;  %3683 = vmatpush1.bf16.msra.mxu1 %v14720_v27  ;;  %v14797_v15 = vld [vmem:[#allocation8 + $0x264] ss:$16 sps:$4 sm:$0xff]   ;;  %v14800_v16 = vld [vmem:[#allocation8 + $0x26c] ss:$16 sps:$4 sm:$0xff]   ;;  %v14795_v17 = vld [vmem:[#allocation8 + $0x260] ss:$16 sps:$4 sm:$0xff]  }
  0xce   :  { %3356 = vmatprep.subr.bf16.mxu0 %v14721_v28  ;;  %3684 = vmatprep.subr.bf16.mxu1 %v14723_v29  ;;  %v14798_v18 = vld [vmem:[#allocation8 + $0x268] ss:$16 sps:$4 sm:$0xff]   ;;  %v14803_v19 = vld [vmem:[#allocation8 + $0x284] ss:$16 sps:$4 sm:$0xff]   ;;  %v14806_v20 = vld [vmem:[#allocation8 + $0x28c] ss:$16 sps:$4 sm:$0xff]  }
  0xcf   :  { %v14801_v21 = vld [vmem:[#allocation8 + $0x280] ss:$16 sps:$4 sm:$0xff]   ;;  %v14804_v22 = vld [vmem:[#allocation8 + $0x288] ss:$16 sps:$4 sm:$0xff]   ;;  %v14809_v23 = vld [vmem:[#allocation8 + $0x2a4] ss:$16 sps:$4 sm:$0xff]  }
  0xd0   :  { %v14812_v24 = vld [vmem:[#allocation8 + $0x2ac] ss:$16 sps:$4 sm:$0xff]   ;;  %v14807_v25 = vld [vmem:[#allocation8 + $0x2a0] ss:$16 sps:$4 sm:$0xff]   ;;  %v14810_v26 = vld [vmem:[#allocation8 + $0x2a8] ss:$16 sps:$4 sm:$0xff]  }
  0xd1   :  { %3357 = vmatpush1.bf16.msra.mxu0 %v14725_v30  ;;  %3685 = vmatpush1.bf16.msra.mxu1 %v14726_v31  ;;  %v14815_v27 = vld [vmem:[#allocation8 + $0x2c4] ss:$16 sps:$4 sm:$0xff]   ;;  %v14818_v28 = vld [vmem:[#allocation8 + $0x2cc] ss:$16 sps:$4 sm:$0xff]   ;;  %v14813_v31 = vld [vmem:[#allocation8 + $0x2c0] ss:$16 sps:$4 sm:$0xff]  }
  0xd2   :  { %3358 = vmatprep.subr.bf16.mxu0 %v14727_v32  ;;  %3686 = vmatprep.subr.bf16.mxu1 %v14729_v33  ;;  %v17602_v29 = vld [vmem:[#allocation2 + $0x8] sm:$0xff]  ;;  %v14821_v33 = vld [vmem:[#allocation8 + $0x2e4] ss:$16 sps:$4 sm:$0xff]  }
  0xd3   :  { %v12676_v30 = vcombine.high %v17602_v29, %v17602_v29  ;;  %v14816_v32 = vld [vmem:[#allocation8 + $0x2c8] ss:$16 sps:$4 sm:$0xff]   ;;  %v14842_v46 = vld [vmem:[#allocation8 + $0x34c] ss:$16 sps:$4 sm:$0xff]  }
  0xd4   :  { %v14840_v48 = vld [vmem:[#allocation8 + $0x348] ss:$16 sps:$4 sm:$0xff]  }
  0xd5   :  { %3359 = vmatpush1.bf16.msra.mxu0 %v14731_v34  ;;  %3687 = vmatpush1.bf16.msra.mxu1 %v14732_v35  ;;  %v14824_v34 = vld [vmem:[#allocation8 + $0x2ec] ss:$16 sps:$4 sm:$0xff]   ;;  %v14819_v35 = vld [vmem:[#allocation8 + $0x2e0] ss:$16 sps:$4 sm:$0xff]  }
  0xd6   :  { %3360 = vmatprep.subr.bf16.mxu0 %v14733_v36  ;;  %3688 = vmatprep.subr.bf16.mxu1 %v14735_v37  ;;  %v14822_v36 = vld [vmem:[#allocation8 + $0x2e8] ss:$16 sps:$4 sm:$0xff]   ;;  %v14827_v37 = vld [vmem:[#allocation8 + $0x304] ss:$16 sps:$4 sm:$0xff]  }
  0xd9   :  { %3361 = vmatpush1.bf16.msra.mxu0 %v14737_v38  ;;  %3689 = vmatpush1.bf16.msra.mxu1 %v14738_v39  ;;  %v14830_v38 = vld [vmem:[#allocation8 + $0x30c] ss:$16 sps:$4 sm:$0xff]   ;;  %v14825_v39 = vld [vmem:[#allocation8 + $0x300] ss:$16 sps:$4 sm:$0xff]  }
  0xda   :  { %3362 = vmatprep.subr.bf16.mxu0 %v14739_v40  ;;  %3690 = vmatprep.subr.bf16.mxu1 %v14741_v41  ;;  %v14828_v40 = vld [vmem:[#allocation8 + $0x308] ss:$16 sps:$4 sm:$0xff]   ;;  %v14833_v41 = vld [vmem:[#allocation8 + $0x324] ss:$16 sps:$4 sm:$0xff]  }
  0xdd   :  { %3363 = vmatpush1.bf16.msra.mxu0 %v14743_v42  ;;  %3691 = vmatpush1.bf16.msra.mxu1 %v14744_v43  ;;  %v14836_v42 = vld [vmem:[#allocation8 + $0x32c] ss:$16 sps:$4 sm:$0xff]   ;;  %v14831_v43 = vld [vmem:[#allocation8 + $0x320] ss:$16 sps:$4 sm:$0xff]  }
  0xde   :  { %3364 = vmatprep.subr.bf16.mxu0 %v14745_v44  ;;  %3692 = vmatprep.subr.bf16.mxu1 %v14747_v45  ;;  %v14834_v44 = vld [vmem:[#allocation8 + $0x328] ss:$16 sps:$4 sm:$0xff]   ;;  %v14839_v45 = vld [vmem:[#allocation8 + $0x344] ss:$16 sps:$4 sm:$0xff]  }
  0xe1   :  { %3365 = vmatpush1.bf16.msra.mxu0 %v14749_v47  ;;  %3693 = vmatpush1.bf16.msra.mxu1 %v14750_v49  ;;  %v14837_v47 = vld [vmem:[#allocation8 + $0x340] ss:$16 sps:$4 sm:$0xff]   ;;  %v14845_v49 = vld [vmem:[#allocation8 + $0x364] ss:$16 sps:$4 sm:$0xff]  }
  0xe2   :  { %3366 = vmatprep.subr.bf16.mxu0 %v14751_v50  ;;  %3694 = vmatprep.subr.bf16.mxu1 %v14753_v51  ;;  %v14848_v50 = vld [vmem:[#allocation8 + $0x36c] ss:$16 sps:$4 sm:$0xff]   ;;  %v14843_v51 = vld [vmem:[#allocation8 + $0x360] ss:$16 sps:$4 sm:$0xff]  }
  0xe5   :  { %3367 = vmatpush1.bf16.msra.mxu0 %v14755_v52  ;;  %3695 = vmatpush1.bf16.msra.mxu1 %v14756_v53  ;;  %v14846_v52 = vld [vmem:[#allocation8 + $0x368] ss:$16 sps:$4 sm:$0xff]   ;;  %v14851_v53 = vld [vmem:[#allocation8 + $0x384] ss:$16 sps:$4 sm:$0xff]  }
  0xe6   :  { %3368 = vmatprep.subr.bf16.mxu0 %v14757_v54  ;;  %3696 = vmatprep.subr.bf16.mxu1 %v14759_v55  ;;  %v14854_v54 = vld [vmem:[#allocation8 + $0x38c] ss:$16 sps:$4 sm:$0xff]   ;;  %v14849_v55 = vld [vmem:[#allocation8 + $0x380] ss:$16 sps:$4 sm:$0xff]  }
  0xe9   :  { %3369 = vmatpush1.bf16.msra.mxu0 %v14761_v56  ;;  %3697 = vmatpush1.bf16.msra.mxu1 %v14762_v57  ;;  %v14852_v56 = vld [vmem:[#allocation8 + $0x388] ss:$16 sps:$4 sm:$0xff]   ;;  %v14857_v57 = vld [vmem:[#allocation8 + $0x3a4] ss:$16 sps:$4 sm:$0xff]  }
  0xea   :  { %3370 = vmatprep.subr.bf16.mxu0 %v14763_v58  ;;  %3698 = vmatprep.subr.bf16.mxu1 %v14765_v59  ;;  %v14860_v58 = vld [vmem:[#allocation8 + $0x3ac] ss:$16 sps:$4 sm:$0xff]   ;;  %v14855_v59 = vld [vmem:[#allocation8 + $0x3a0] ss:$16 sps:$4 sm:$0xff]  }
  0xed   :  { %3371 = vmatpush1.bf16.msra.mxu0 %v14767_v60  ;;  %3699 = vmatpush1.bf16.msra.mxu1 %v14768_v61  ;;  %v14858_v60 = vld [vmem:[#allocation8 + $0x3a8] ss:$16 sps:$4 sm:$0xff]   ;;  %v14863_v61 = vld [vmem:[#allocation8 + $0x3c4] ss:$16 sps:$4 sm:$0xff]  }
  0xee   :  { %3372 = vmatprep.subr.bf16.mxu0 %v14769_v62  ;;  %3700 = vmatprep.subr.bf16.mxu1 %v14771_v63  ;;  %v14866_v62 = vld [vmem:[#allocation8 + $0x3cc] ss:$16 sps:$4 sm:$0xff]   ;;  %v14861_v63 = vld [vmem:[#allocation8 + $0x3c0] ss:$16 sps:$4 sm:$0xff]  }
  0xf1   :  { %3373 = vmatpush1.bf16.msra.mxu0 %v14773_v0  ;;  %3701 = vmatpush1.bf16.msra.mxu1 %v14774_v1  ;;  %v14864_v0 = vld [vmem:[#allocation8 + $0x3c8] ss:$16 sps:$4 sm:$0xff]   ;;  %v14869_v1 = vld [vmem:[#allocation8 + $0x3e4] ss:$16 sps:$4 sm:$0xff]  }
  0xf2   :  { %3383 = vmatprep.subr.bf16.mxu0 %v14779_v2  ;;  %3711 = vmatprep.subr.bf16.mxu1 %v14782_v3  ;;  %v14872_v2 = vld [vmem:[#allocation8 + $0x3ec] ss:$16 sps:$4 sm:$0xff]   ;;  %v14867_v3 = vld [vmem:[#allocation8 + $0x3e0] ss:$16 sps:$4 sm:$0xff]  }
  0xf4   :  { %3375 = vmatmul.mubr.bf16.vlgmr.msra.gmra.mrb[0].mxu0 %v12673_v4  ;;  %3703 = vmatmul.mubr.bf16.vlgmr.msra.gmra.mrb[0].mxu1 %v12673_v4  ;;  %v14870_v4 = vld [vmem:[#allocation8 + $0x3e8] ss:$16 sps:$4 sm:$0xff]  }
  0xf5   :  { %3384 = vmatpush1.bf16.msra.mxu0 %v14777_v5  ;;  %3712 = vmatpush1.bf16.msra.mxu1 %v14780_v6  ;;  %v14877_v5 = vld [vmem:[#allocation8 + $0x404] ss:$16 sps:$4 sm:$0xff]   ;;  %v14880_v6 = vld [vmem:[#allocation8 + $0x40c] ss:$16 sps:$4 sm:$0xff]  }
  0xf6   :  { %3385 = vmatprep.subr.bf16.mxu0 %v14785_v7  ;;  %3713 = vmatprep.subr.bf16.mxu1 %v14788_v8  ;;  %v12675_v7 = vcombine.low %v17602_v29, %v17602_v29  ;;  %v14875_v8 = vld [vmem:[#allocation8 + $0x400] ss:$16 sps:$4 sm:$0xff]   ;;  %v14910_v29 = vld [vmem:[#allocation8 + $0x4ac] ss:$16 sps:$4 sm:$0xff]  }
  0xf7   :  { %3415 = vmatprep.mubr.bf16.mxu0 %v12676_v30  ;;  %3743 = vmatprep.mubr.bf16.mxu1 %v12676_v30  ;;  %v14905_v30 = vld [vmem:[#allocation8 + $0x4a0] ss:$16 sps:$4 sm:$0xff]  }
  0xf9   :  { %3386 = vmatpush1.bf16.msra.mxu0 %v14783_v9  ;;  %3714 = vmatpush1.bf16.msra.mxu1 %v14786_v10  ;;  %v14878_v9 = vld [vmem:[#allocation8 + $0x408] ss:$16 sps:$4 sm:$0xff]   ;;  %v14883_v10 = vld [vmem:[#allocation8 + $0x424] ss:$16 sps:$4 sm:$0xff]  }
  0xfa   :  { %3387 = vmatprep.subr.bf16.mxu0 %v14791_v11  ;;  %3715 = vmatprep.subr.bf16.mxu1 %v14794_v12  ;;  %v17608_v11 = vld [vmem:[#allocation2 + $0x10] sm:$0xff]  ;;  %v14886_v12 = vld [vmem:[#allocation8 + $0x42c] ss:$16 sps:$4 sm:$0xff]  }
  0xfd   :  { %3388 = vmatpush1.bf16.msra.mxu0 %v14789_v13  ;;  %3716 = vmatpush1.bf16.msra.mxu1 %v14792_v14  ;;  %v12678_v13 = vcombine.high %v17608_v11, %v17608_v11  ;;  %v14881_v14 = vld [vmem:[#allocation8 + $0x420] ss:$16 sps:$4 sm:$0xff]  }
  0xfe   :  { %3389 = vmatprep.subr.bf16.mxu0 %v14797_v15  ;;  %3717 = vmatprep.subr.bf16.mxu1 %v14800_v16  ;;  %v14884_v15 = vld [vmem:[#allocation8 + $0x428] ss:$16 sps:$4 sm:$0xff]   ;;  %v14889_v16 = vld [vmem:[#allocation8 + $0x444] ss:$16 sps:$4 sm:$0xff]  }
 0x101   :  { %3390 = vmatpush1.bf16.msra.mxu0 %v14795_v17  ;;  %3718 = vmatpush1.bf16.msra.mxu1 %v14798_v18  ;;  %v14892_v17 = vld [vmem:[#allocation8 + $0x44c] ss:$16 sps:$4 sm:$0xff]   ;;  %v14887_v18 = vld [vmem:[#allocation8 + $0x440] ss:$16 sps:$4 sm:$0xff]  }
 0x102   :  { %3391 = vmatprep.subr.bf16.mxu0 %v14803_v19  ;;  %3719 = vmatprep.subr.bf16.mxu1 %v14806_v20  ;;  %v14890_v19 = vld [vmem:[#allocation8 + $0x448] ss:$16 sps:$4 sm:$0xff]   ;;  %v14895_v20 = vld [vmem:[#allocation8 + $0x464] ss:$16 sps:$4 sm:$0xff]  }
 0x105   :  { %3392 = vmatpush1.bf16.msra.mxu0 %v14801_v21  ;;  %3720 = vmatpush1.bf16.msra.mxu1 %v14804_v22  ;;  %v14898_v21 = vld [vmem:[#allocation8 + $0x46c] ss:$16 sps:$4 sm:$0xff]   ;;  %v14893_v22 = vld [vmem:[#allocation8 + $0x460] ss:$16 sps:$4 sm:$0xff]  }
 0x106   :  { %3393 = vmatprep.subr.bf16.mxu0 %v14809_v23  ;;  %3721 = vmatprep.subr.bf16.mxu1 %v14812_v24  ;;  %v14896_v23 = vld [vmem:[#allocation8 + $0x468] ss:$16 sps:$4 sm:$0xff]   ;;  %v14901_v24 = vld [vmem:[#allocation8 + $0x484] ss:$16 sps:$4 sm:$0xff]  }
 0x109   :  { %3394 = vmatpush1.bf16.msra.mxu0 %v14807_v25  ;;  %3722 = vmatpush1.bf16.msra.mxu1 %v14810_v26  ;;  %v14904_v25 = vld [vmem:[#allocation8 + $0x48c] ss:$16 sps:$4 sm:$0xff]   ;;  %v14899_v26 = vld [vmem:[#allocation8 + $0x480] ss:$16 sps:$4 sm:$0xff]  }
 0x10a   :  { %3395 = vmatprep.subr.bf16.mxu0 %v14815_v27  ;;  %3723 = vmatprep.subr.bf16.mxu1 %v14818_v28  ;;  %v14902_v27 = vld [vmem:[#allocation8 + $0x488] ss:$16 sps:$4 sm:$0xff]   ;;  %v14907_v28 = vld [vmem:[#allocation8 + $0x4a4] ss:$16 sps:$4 sm:$0xff]  }
 0x10d   :  { %3396 = vmatpush1.bf16.msra.mxu0 %v14813_v31  ;;  %3724 = vmatpush1.bf16.msra.mxu1 %v14816_v32  ;;  %v14908_v31 = vld [vmem:[#allocation8 + $0x4a8] ss:$16 sps:$4 sm:$0xff]   ;;  %v14913_v32 = vld [vmem:[#allocation8 + $0x4c4] ss:$16 sps:$4 sm:$0xff]  }
 0x10e   :  { %3397 = vmatprep.subr.bf16.mxu0 %v14821_v33  ;;  %3725 = vmatprep.subr.bf16.mxu1 %v14824_v34  ;;  %v14916_v33 = vld [vmem:[#allocation8 + $0x4cc] ss:$16 sps:$4 sm:$0xff]   ;;  %v14911_v34 = vld [vmem:[#allocation8 + $0x4c0] ss:$16 sps:$4 sm:$0xff]  }
 0x111   :  { %3398 = vmatpush1.bf16.msra.mxu0 %v14819_v35  ;;  %3726 = vmatpush1.bf16.msra.mxu1 %v14822_v36  ;;  %v14914_v35 = vld [vmem:[#allocation8 + $0x4c8] ss:$16 sps:$4 sm:$0xff]   ;;  %v14919_v36 = vld [vmem:[#allocation8 + $0x4e4] ss:$16 sps:$4 sm:$0xff]  }
 0x112   :  { %3399 = vmatprep.subr.bf16.mxu0 %v14827_v37  ;;  %3727 = vmatprep.subr.bf16.mxu1 %v14830_v38  ;;  %v14922_v37 = vld [vmem:[#allocation8 + $0x4ec] ss:$16 sps:$4 sm:$0xff]   ;;  %v14917_v38 = vld [vmem:[#allocation8 + $0x4e0] ss:$16 sps:$4 sm:$0xff]  }
 0x115   :  { %3400 = vmatpush1.bf16.msra.mxu0 %v14825_v39  ;;  %3728 = vmatpush1.bf16.msra.mxu1 %v14828_v40  ;;  %v14920_v39 = vld [vmem:[#allocation8 + $0x4e8] ss:$16 sps:$4 sm:$0xff]   ;;  %v14925_v40 = vld [vmem:[#allocation8 + $0x504] ss:$16 sps:$4 sm:$0xff]  }
 0x116   :  { %3401 = vmatprep.subr.bf16.mxu0 %v14833_v41  ;;  %3729 = vmatprep.subr.bf16.mxu1 %v14836_v42  ;;  %v14928_v41 = vld [vmem:[#allocation8 + $0x50c] ss:$16 sps:$4 sm:$0xff]   ;;  %v14923_v42 = vld [vmem:[#allocation8 + $0x500] ss:$16 sps:$4 sm:$0xff]  }
 0x119   :  { %3402 = vmatpush1.bf16.msra.mxu0 %v14831_v43  ;;  %3730 = vmatpush1.bf16.msra.mxu1 %v14834_v44  ;;  %v14926_v43 = vld [vmem:[#allocation8 + $0x508] ss:$16 sps:$4 sm:$0xff]   ;;  %v14931_v44 = vld [vmem:[#allocation8 + $0x524] ss:$16 sps:$4 sm:$0xff]  }
 0x11a   :  { %3403 = vmatprep.subr.bf16.mxu0 %v14839_v45  ;;  %3731 = vmatprep.subr.bf16.mxu1 %v14842_v46  ;;  %v14934_v45 = vld [vmem:[#allocation8 + $0x52c] ss:$16 sps:$4 sm:$0xff]   ;;  %v14929_v46 = vld [vmem:[#allocation8 + $0x520] ss:$16 sps:$4 sm:$0xff]  }
 0x11d   :  { %3404 = vmatpush1.bf16.msra.mxu0 %v14837_v47  ;;  %3732 = vmatpush1.bf16.msra.mxu1 %v14840_v48  ;;  %v14932_v47 = vld [vmem:[#allocation8 + $0x528] ss:$16 sps:$4 sm:$0xff]   ;;  %v14937_v48 = vld [vmem:[#allocation8 + $0x544] ss:$16 sps:$4 sm:$0xff]  }
 0x11e   :  { %3405 = vmatprep.subr.bf16.mxu0 %v14845_v49  ;;  %3733 = vmatprep.subr.bf16.mxu1 %v14848_v50  ;;  %v14940_v49 = vld [vmem:[#allocation8 + $0x54c] ss:$16 sps:$4 sm:$0xff]   ;;  %v14935_v50 = vld [vmem:[#allocation8 + $0x540] ss:$16 sps:$4 sm:$0xff]  }
 0x121   :  { %3406 = vmatpush1.bf16.msra.mxu0 %v14843_v51  ;;  %3734 = vmatpush1.bf16.msra.mxu1 %v14846_v52  ;;  %v14938_v51 = vld [vmem:[#allocation8 + $0x548] ss:$16 sps:$4 sm:$0xff]   ;;  %v14943_v52 = vld [vmem:[#allocation8 + $0x564] ss:$16 sps:$4 sm:$0xff]  }
 0x122   :  { %3407 = vmatprep.subr.bf16.mxu0 %v14851_v53  ;;  %3735 = vmatprep.subr.bf16.mxu1 %v14854_v54  ;;  %v14946_v53 = vld [vmem:[#allocation8 + $0x56c] ss:$16 sps:$4 sm:$0xff]   ;;  %v14941_v54 = vld [vmem:[#allocation8 + $0x560] ss:$16 sps:$4 sm:$0xff]  }
 0x125   :  { %3408 = vmatpush1.bf16.msra.mxu0 %v14849_v55  ;;  %3736 = vmatpush1.bf16.msra.mxu1 %v14852_v56  ;;  %v14944_v55 = vld [vmem:[#allocation8 + $0x568] ss:$16 sps:$4 sm:$0xff]   ;;  %v14949_v56 = vld [vmem:[#allocation8 + $0x584] ss:$16 sps:$4 sm:$0xff]  }
 0x126   :  { %3409 = vmatprep.subr.bf16.mxu0 %v14857_v57  ;;  %3737 = vmatprep.subr.bf16.mxu1 %v14860_v58  ;;  %v14952_v57 = vld [vmem:[#allocation8 + $0x58c] ss:$16 sps:$4 sm:$0xff]   ;;  %v14947_v58 = vld [vmem:[#allocation8 + $0x580] ss:$16 sps:$4 sm:$0xff]  }
 0x129   :  { %3410 = vmatpush1.bf16.msra.mxu0 %v14855_v59  ;;  %3738 = vmatpush1.bf16.msra.mxu1 %v14858_v60  ;;  %v14950_v59 = vld [vmem:[#allocation8 + $0x588] ss:$16 sps:$4 sm:$0xff]   ;;  %v14955_v60 = vld [vmem:[#allocation8 + $0x5a4] ss:$16 sps:$4 sm:$0xff]  }
 0x12a   :  { %3411 = vmatprep.subr.bf16.mxu0 %v14863_v61  ;;  %3739 = vmatprep.subr.bf16.mxu1 %v14866_v62  ;;  %v14958_v61 = vld [vmem:[#allocation8 + $0x5ac] ss:$16 sps:$4 sm:$0xff]   ;;  %v14953_v62 = vld [vmem:[#allocation8 + $0x5a0] ss:$16 sps:$4 sm:$0xff]  }
 0x12d   :  { %3412 = vmatpush1.bf16.msra.mxu0 %v14861_v63  ;;  %3740 = vmatpush1.bf16.msra.mxu1 %v14864_v0  ;;  %v14956_v63 = vld [vmem:[#allocation8 + $0x5a8] ss:$16 sps:$4 sm:$0xff]   ;;  %v14961_v0 = vld [vmem:[#allocation8 + $0x5c4] ss:$16 sps:$4 sm:$0xff]  }
 0x12e   :  { %3413 = vmatprep.subr.bf16.mxu0 %v14869_v1  ;;  %3741 = vmatprep.subr.bf16.mxu1 %v14872_v2  ;;  %v14964_v1 = vld [vmem:[#allocation8 + $0x5cc] ss:$16 sps:$4 sm:$0xff]   ;;  %v14959_v2 = vld [vmem:[#allocation8 + $0x5c0] ss:$16 sps:$4 sm:$0xff]  }
 0x131   :  { %3414 = vmatpush1.bf16.msra.mxu0 %v14867_v3  ;;  %3742 = vmatpush1.bf16.msra.mxu1 %v14870_v4  ;;  %v14962_v3 = vld [vmem:[#allocation8 + $0x5c8] ss:$16 sps:$4 sm:$0xff]   ;;  %v14967_v4 = vld [vmem:[#allocation8 + $0x5e4] ss:$16 sps:$4 sm:$0xff]  }
 0x132   :  { %3424 = vmatprep.subr.bf16.mxu0 %v14877_v5  ;;  %3752 = vmatprep.subr.bf16.mxu1 %v14880_v6  ;;  %v14970_v5 = vld [vmem:[#allocation8 + $0x5ec] ss:$16 sps:$4 sm:$0xff]   ;;  %v14965_v6 = vld [vmem:[#allocation8 + $0x5e0] ss:$16 sps:$4 sm:$0xff]  }
 0x134   :  { %3416 = vmatmul.mubr.bf16.vlgmr.msra.gmra.mrb[0].mxu0 %v12675_v7  ;;  %3744 = vmatmul.mubr.bf16.vlgmr.msra.gmra.mrb[0].mxu1 %v12675_v7  ;;  %v14968_v7 = vld [vmem:[#allocation8 + $0x5e8] ss:$16 sps:$4 sm:$0xff]  }
 0x135   :  { %3425 = vmatpush1.bf16.msra.mxu0 %v14875_v8  ;;  %3753 = vmatpush1.bf16.msra.mxu1 %v14878_v9  ;;  %v14975_v8 = vld [vmem:[#allocation8 + $0x604] ss:$16 sps:$4 sm:$0xff]   ;;  %v14978_v9 = vld [vmem:[#allocation8 + $0x60c] ss:$16 sps:$4 sm:$0xff]  }
 0x136   :  { %3426 = vmatprep.subr.bf16.mxu0 %v14883_v10  ;;  %3754 = vmatprep.subr.bf16.mxu1 %v14886_v12  ;;  %v14973_v10 = vld [vmem:[#allocation8 + $0x600] ss:$16 sps:$4 sm:$0xff]   ;;  %v12677_v12 = vcombine.low %v17608_v11, %v17608_v11  ;;  %v14990_v11 = vld [vmem:[#allocation8 + $0x64c] ss:$16 sps:$4 sm:$0xff]  }
 0x137   :  { %3456 = vmatprep.mubr.bf16.mxu0 %v12678_v13  ;;  %3784 = vmatprep.mubr.bf16.mxu1 %v12678_v13  ;;  %v14976_v13 = vld [vmem:[#allocation8 + $0x608] ss:$16 sps:$4 sm:$0xff]  }
 0x139   :  { %3427 = vmatpush1.bf16.msra.mxu0 %v14881_v14  ;;  %3755 = vmatpush1.bf16.msra.mxu1 %v14884_v15  ;;  %v17614_v14 = vld [vmem:[#allocation2 + $0x18] sm:$0xff]  ;;  %v14981_v15 = vld [vmem:[#allocation8 + $0x624] ss:$16 sps:$4 sm:$0xff]  }
 0x13a   :  { %3428 = vmatprep.subr.bf16.mxu0 %v14889_v16  ;;  %3756 = vmatprep.subr.bf16.mxu1 %v14892_v17  ;;  %v14984_v16 = vld [vmem:[#allocation8 + $0x62c] ss:$16 sps:$4 sm:$0xff]   ;;  %v12680_v17 = vcombine.high %v17614_v14, %v17614_v14 }
 0x13d   :  { %3429 = vmatpush1.bf16.msra.mxu0 %v14887_v18  ;;  %3757 = vmatpush1.bf16.msra.mxu1 %v14890_v19  ;;  %v14979_v18 = vld [vmem:[#allocation8 + $0x620] ss:$16 sps:$4 sm:$0xff]   ;;  %v14982_v19 = vld [vmem:[#allocation8 + $0x628] ss:$16 sps:$4 sm:$0xff]  }
 0x13e   :  { %3430 = vmatprep.subr.bf16.mxu0 %v14895_v20  ;;  %3758 = vmatprep.subr.bf16.mxu1 %v14898_v21  ;;  %v14987_v20 = vld [vmem:[#allocation8 + $0x644] ss:$16 sps:$4 sm:$0xff]   ;;  %v14985_v21 = vld [vmem:[#allocation8 + $0x640] ss:$16 sps:$4 sm:$0xff]  }
 0x141   :  { %3431 = vmatpush1.bf16.msra.mxu0 %v14893_v22  ;;  %3759 = vmatpush1.bf16.msra.mxu1 %v14896_v23  ;;  %v14988_v22 = vld [vmem:[#allocation8 + $0x648] ss:$16 sps:$4 sm:$0xff]   ;;  %v14993_v23 = vld [vmem:[#allocation8 + $0x664] ss:$16 sps:$4 sm:$0xff]  }
 0x142   :  { %3432 = vmatprep.subr.bf16.mxu0 %v14901_v24  ;;  %3760 = vmatprep.subr.bf16.mxu1 %v14904_v25  ;;  %v14996_v24 = vld [vmem:[#allocation8 + $0x66c] ss:$16 sps:$4 sm:$0xff]   ;;  %v14991_v25 = vld [vmem:[#allocation8 + $0x660] ss:$16 sps:$4 sm:$0xff]  }
 0x145   :  { %3433 = vmatpush1.bf16.msra.mxu0 %v14899_v26  ;;  %3761 = vmatpush1.bf16.msra.mxu1 %v14902_v27  ;;  %v14994_v26 = vld [vmem:[#allocation8 + $0x668] ss:$16 sps:$4 sm:$0xff]   ;;  %v14999_v27 = vld [vmem:[#allocation8 + $0x684] ss:$16 sps:$4 sm:$0xff]  }
 0x146   :  { %3434 = vmatprep.subr.bf16.mxu0 %v14907_v28  ;;  %3762 = vmatprep.subr.bf16.mxu1 %v14910_v29  ;;  %v15002_v28 = vld [vmem:[#allocation8 + $0x68c] ss:$16 sps:$4 sm:$0xff]   ;;  %v14997_v29 = vld [vmem:[#allocation8 + $0x680] ss:$16 sps:$4 sm:$0xff]  }
 0x149   :  { %3435 = vmatpush1.bf16.msra.mxu0 %v14905_v30  ;;  %3763 = vmatpush1.bf16.msra.mxu1 %v14908_v31  ;;  %v15000_v30 = vld [vmem:[#allocation8 + $0x688] ss:$16 sps:$4 sm:$0xff]   ;;  %v15005_v31 = vld [vmem:[#allocation8 + $0x6a4] ss:$16 sps:$4 sm:$0xff]  }
 0x14a   :  { %3436 = vmatprep.subr.bf16.mxu0 %v14913_v32  ;;  %3764 = vmatprep.subr.bf16.mxu1 %v14916_v33  ;;  %v15008_v32 = vld [vmem:[#allocation8 + $0x6ac] ss:$16 sps:$4 sm:$0xff]   ;;  %v15003_v33 = vld [vmem:[#allocation8 + $0x6a0] ss:$16 sps:$4 sm:$0xff]  }
 0x14d   :  { %3437 = vmatpush1.bf16.msra.mxu0 %v14911_v34  ;;  %3765 = vmatpush1.bf16.msra.mxu1 %v14914_v35  ;;  %v15006_v34 = vld [vmem:[#allocation8 + $0x6a8] ss:$16 sps:$4 sm:$0xff]   ;;  %v15011_v35 = vld [vmem:[#allocation8 + $0x6c4] ss:$16 sps:$4 sm:$0xff]  }
 0x14e   :  { %3438 = vmatprep.subr.bf16.mxu0 %v14919_v36  ;;  %3766 = vmatprep.subr.bf16.mxu1 %v14922_v37  ;;  %v15014_v36 = vld [vmem:[#allocation8 + $0x6cc] ss:$16 sps:$4 sm:$0xff]   ;;  %v15009_v37 = vld [vmem:[#allocation8 + $0x6c0] ss:$16 sps:$4 sm:$0xff]  }
 0x151   :  { %3439 = vmatpush1.bf16.msra.mxu0 %v14917_v38  ;;  %3767 = vmatpush1.bf16.msra.mxu1 %v14920_v39  ;;  %v15012_v38 = vld [vmem:[#allocation8 + $0x6c8] ss:$16 sps:$4 sm:$0xff]   ;;  %v15017_v39 = vld [vmem:[#allocation8 + $0x6e4] ss:$16 sps:$4 sm:$0xff]  }
 0x152   :  { %3440 = vmatprep.subr.bf16.mxu0 %v14925_v40  ;;  %3768 = vmatprep.subr.bf16.mxu1 %v14928_v41  ;;  %v15020_v40 = vld [vmem:[#allocation8 + $0x6ec] ss:$16 sps:$4 sm:$0xff]   ;;  %v15015_v41 = vld [vmem:[#allocation8 + $0x6e0] ss:$16 sps:$4 sm:$0xff]  }
 0x155   :  { %3441 = vmatpush1.bf16.msra.mxu0 %v14923_v42  ;;  %3769 = vmatpush1.bf16.msra.mxu1 %v14926_v43  ;;  %v15018_v42 = vld [vmem:[#allocation8 + $0x6e8] ss:$16 sps:$4 sm:$0xff]   ;;  %v15023_v43 = vld [vmem:[#allocation8 + $0x704] ss:$16 sps:$4 sm:$0xff]  }
 0x156   :  { %3442 = vmatprep.subr.bf16.mxu0 %v14931_v44  ;;  %3770 = vmatprep.subr.bf16.mxu1 %v14934_v45  ;;  %v15026_v44 = vld [vmem:[#allocation8 + $0x70c] ss:$16 sps:$4 sm:$0xff]   ;;  %v15021_v45 = vld [vmem:[#allocation8 + $0x700] ss:$16 sps:$4 sm:$0xff]  }
 0x159   :  { %3443 = vmatpush1.bf16.msra.mxu0 %v14929_v46  ;;  %3771 = vmatpush1.bf16.msra.mxu1 %v14932_v47  ;;  %v15024_v46 = vld [vmem:[#allocation8 + $0x708] ss:$16 sps:$4 sm:$0xff]   ;;  %v15029_v47 = vld [vmem:[#allocation8 + $0x724] ss:$16 sps:$4 sm:$0xff]  }
 0x15a   :  { %3444 = vmatprep.subr.bf16.mxu0 %v14937_v48  ;;  %3772 = vmatprep.subr.bf16.mxu1 %v14940_v49  ;;  %v15032_v48 = vld [vmem:[#allocation8 + $0x72c] ss:$16 sps:$4 sm:$0xff]   ;;  %v15027_v49 = vld [vmem:[#allocation8 + $0x720] ss:$16 sps:$4 sm:$0xff]  }
 0x15d   :  { %3445 = vmatpush1.bf16.msra.mxu0 %v14935_v50  ;;  %3773 = vmatpush1.bf16.msra.mxu1 %v14938_v51  ;;  %v15030_v50 = vld [vmem:[#allocation8 + $0x728] ss:$16 sps:$4 sm:$0xff]   ;;  %v15035_v51 = vld [vmem:[#allocation8 + $0x744] ss:$16 sps:$4 sm:$0xff]  }
 0x15e   :  { %3446 = vmatprep.subr.bf16.mxu0 %v14943_v52  ;;  %3774 = vmatprep.subr.bf16.mxu1 %v14946_v53  ;;  %v15038_v52 = vld [vmem:[#allocation8 + $0x74c] ss:$16 sps:$4 sm:$0xff]   ;;  %v15033_v53 = vld [vmem:[#allocation8 + $0x740] ss:$16 sps:$4 sm:$0xff]  }
 0x161   :  { %3447 = vmatpush1.bf16.msra.mxu0 %v14941_v54  ;;  %3775 = vmatpush1.bf16.msra.mxu1 %v14944_v55  ;;  %v15036_v54 = vld [vmem:[#allocation8 + $0x748] ss:$16 sps:$4 sm:$0xff]   ;;  %v15041_v55 = vld [vmem:[#allocation8 + $0x764] ss:$16 sps:$4 sm:$0xff]  }
 0x162   :  { %3448 = vmatprep.subr.bf16.mxu0 %v14949_v56  ;;  %3776 = vmatprep.subr.bf16.mxu1 %v14952_v57  ;;  %v15044_v56 = vld [vmem:[#allocation8 + $0x76c] ss:$16 sps:$4 sm:$0xff]   ;;  %v15039_v57 = vld [vmem:[#allocation8 + $0x760] ss:$16 sps:$4 sm:$0xff]  }
 0x165   :  { %3449 = vmatpush1.bf16.msra.mxu0 %v14947_v58  ;;  %3777 = vmatpush1.bf16.msra.mxu1 %v14950_v59  ;;  %v15042_v58 = vld [vmem:[#allocation8 + $0x768] ss:$16 sps:$4 sm:$0xff]   ;;  %v15047_v59 = vld [vmem:[#allocation8 + $0x784] ss:$16 sps:$4 sm:$0xff]  }
 0x166   :  { %3450 = vmatprep.subr.bf16.mxu0 %v14955_v60  ;;  %3778 = vmatprep.subr.bf16.mxu1 %v14958_v61  ;;  %v15050_v60 = vld [vmem:[#allocation8 + $0x78c] ss:$16 sps:$4 sm:$0xff]   ;;  %v15045_v61 = vld [vmem:[#allocation8 + $0x780] ss:$16 sps:$4 sm:$0xff]  }
 0x169   :  { %3451 = vmatpush1.bf16.msra.mxu0 %v14953_v62  ;;  %3779 = vmatpush1.bf16.msra.mxu1 %v14956_v63  ;;  %v15048_v62 = vld [vmem:[#allocation8 + $0x788] ss:$16 sps:$4 sm:$0xff]   ;;  %v15053_v63 = vld [vmem:[#allocation8 + $0x7a4] ss:$16 sps:$4 sm:$0xff]  }
 0x16a   :  { %3452 = vmatprep.subr.bf16.mxu0 %v14961_v0  ;;  %3780 = vmatprep.subr.bf16.mxu1 %v14964_v1  ;;  %v15056_v0 = vld [vmem:[#allocation8 + $0x7ac] ss:$16 sps:$4 sm:$0xff]   ;;  %v15051_v1 = vld [vmem:[#allocation8 + $0x7a0] ss:$16 sps:$4 sm:$0xff]  }
 0x16d   :  { %3453 = vmatpush1.bf16.msra.mxu0 %v14959_v2  ;;  %3781 = vmatpush1.bf16.msra.mxu1 %v14962_v3  ;;  %v15054_v2 = vld [vmem:[#allocation8 + $0x7a8] ss:$16 sps:$4 sm:$0xff]   ;;  %v15059_v3 = vld [vmem:[#allocation8 + $0x7c4] ss:$16 sps:$4 sm:$0xff]  }
 0x16e   :  { %3454 = vmatprep.subr.bf16.mxu0 %v14967_v4  ;;  %3782 = vmatprep.subr.bf16.mxu1 %v14970_v5  ;;  %v15062_v4 = vld [vmem:[#allocation8 + $0x7cc] ss:$16 sps:$4 sm:$0xff]   ;;  %v15057_v5 = vld [vmem:[#allocation8 + $0x7c0] ss:$16 sps:$4 sm:$0xff]  }
 0x171   :  { %3455 = vmatpush1.bf16.msra.mxu0 %v14965_v6  ;;  %3783 = vmatpush1.bf16.msra.mxu1 %v14968_v7  ;;  %v15060_v6 = vld [vmem:[#allocation8 + $0x7c8] ss:$16 sps:$4 sm:$0xff]   ;;  %v15065_v7 = vld [vmem:[#allocation8 + $0x7e4] ss:$16 sps:$4 sm:$0xff]  }
 0x172   :  { %3465 = vmatprep.subr.bf16.mxu0 %v14975_v8  ;;  %3793 = vmatprep.subr.bf16.mxu1 %v14978_v9  ;;  %v15068_v8 = vld [vmem:[#allocation8 + $0x7ec] ss:$16 sps:$4 sm:$0xff]   ;;  %v15063_v9 = vld [vmem:[#allocation8 + $0x7e0] ss:$16 sps:$4 sm:$0xff]  }
 0x174   :  { %3457 = vmatmul.mubr.bf16.vlgmr.msra.gmra.mrb[0].mxu0 %v12677_v12  ;;  %3785 = vmatmul.mubr.bf16.vlgmr.msra.gmra.mrb[0].mxu1 %v12677_v12  ;;  %v15073_v12 = vld [vmem:[#allocation8 + $0x804] ss:$16 sps:$4 sm:$0xff]  }
 0x175   :  { %3466 = vmatpush1.bf16.msra.mxu0 %v14973_v10  ;;  %3794 = vmatpush1.bf16.msra.mxu1 %v14976_v13  ;;  %v15066_v10 = vld [vmem:[#allocation8 + $0x7e8] ss:$16 sps:$4 sm:$0xff]   ;;  %v15076_v13 = vld [vmem:[#allocation8 + $0x80c] ss:$16 sps:$4 sm:$0xff]  }
 0x176   :  { %3467 = vmatprep.subr.bf16.mxu0 %v14981_v15  ;;  %3795 = vmatprep.subr.bf16.mxu1 %v14984_v16  ;;  %v15071_v15 = vld [vmem:[#allocation8 + $0x800] ss:$16 sps:$4 sm:$0xff]   ;;  %v12679_v16 = vcombine.low %v17614_v14, %v17614_v14  ;;  %v15085_v14 = vld [vmem:[#allocation8 + $0x844] ss:$16 sps:$4 sm:$0xff]  }
 0x177   :  { %3497 = vmatprep.mubr.bf16.mxu0 %v12680_v17  ;;  %3825 = vmatprep.mubr.bf16.mxu1 %v12680_v17  ;;  %v17620_v17 = vld [vmem:[#allocation2 + $0x20] sm:$0xff] }
 0x179   :  { %3468 = vmatpush1.bf16.msra.mxu0 %v14979_v18  ;;  %3796 = vmatpush1.bf16.msra.mxu1 %v14982_v19  ;;  %v15074_v18 = vld [vmem:[#allocation8 + $0x808] ss:$16 sps:$4 sm:$0xff]   ;;  %v15079_v19 = vld [vmem:[#allocation8 + $0x824] ss:$16 sps:$4 sm:$0xff]  }
 0x17a   :  { %3469 = vmatprep.subr.bf16.mxu0 %v14987_v20  ;;  %3797 = vmatprep.subr.bf16.mxu1 %v14990_v11  ;;  %v15082_v20 = vld [vmem:[#allocation8 + $0x82c] ss:$16 sps:$4 sm:$0xff]   ;;  %v12682_v11 = vcombine.high %v17620_v17, %v17620_v17 }
 0x17d   :  { %3470 = vmatpush1.bf16.msra.mxu0 %v14985_v21  ;;  %3798 = vmatpush1.bf16.msra.mxu1 %v14988_v22  ;;  %v15077_v21 = vld [vmem:[#allocation8 + $0x820] ss:$16 sps:$4 sm:$0xff]   ;;  %v15080_v22 = vld [vmem:[#allocation8 + $0x828] ss:$16 sps:$4 sm:$0xff]  }
 0x17e   :  { %3471 = vmatprep.subr.bf16.mxu0 %v14993_v23  ;;  %3799 = vmatprep.subr.bf16.mxu1 %v14996_v24  ;;  %v15088_v23 = vld [vmem:[#allocation8 + $0x84c] ss:$16 sps:$4 sm:$0xff]   ;;  %v15083_v24 = vld [vmem:[#allocation8 + $0x840] ss:$16 sps:$4 sm:$0xff]  }
 0x181   :  { %3472 = vmatpush1.bf16.msra.mxu0 %v14991_v25  ;;  %3800 = vmatpush1.bf16.msra.mxu1 %v14994_v26  ;;  %v15086_v25 = vld [vmem:[#allocation8 + $0x848] ss:$16 sps:$4 sm:$0xff]   ;;  %v15091_v26 = vld [vmem:[#allocation8 + $0x864] ss:$16 sps:$4 sm:$0xff]  }
 0x182   :  { %3473 = vmatprep.subr.bf16.mxu0 %v14999_v27  ;;  %3801 = vmatprep.subr.bf16.mxu1 %v15002_v28  ;;  %v15094_v27 = vld [vmem:[#allocation8 + $0x86c] ss:$16 sps:$4 sm:$0xff]   ;;  %v15089_v28 = vld [vmem:[#allocation8 + $0x860] ss:$16 sps:$4 sm:$0xff]  }
 0x185   :  { %3474 = vmatpush1.bf16.msra.mxu0 %v14997_v29  ;;  %3802 = vmatpush1.bf16.msra.mxu1 %v15000_v30  ;;  %v15092_v29 = vld [vmem:[#allocation8 + $0x868] ss:$16 sps:$4 sm:$0xff]   ;;  %v15097_v30 = vld [vmem:[#allocation8 + $0x884] ss:$16 sps:$4 sm:$0xff]  }
 0x186   :  { %3475 = vmatprep.subr.bf16.mxu0 %v15005_v31  ;;  %3803 = vmatprep.subr.bf16.mxu1 %v15008_v32  ;;  %v15100_v31 = vld [vmem:[#allocation8 + $0x88c] ss:$16 sps:$4 sm:$0xff]   ;;  %v15095_v32 = vld [vmem:[#allocation8 + $0x880] ss:$16 sps:$4 sm:$0xff]  }
 0x189   :  { %3476 = vmatpush1.bf16.msra.mxu0 %v15003_v33  ;;  %3804 = vmatpush1.bf16.msra.mxu1 %v15006_v34  ;;  %v15098_v33 = vld [vmem:[#allocation8 + $0x888] ss:$16 sps:$4 sm:$0xff]   ;;  %v15103_v34 = vld [vmem:[#allocation8 + $0x8a4] ss:$16 sps:$4 sm:$0xff]  }
 0x18a   :  { %3477 = vmatprep.subr.bf16.mxu0 %v15011_v35  ;;  %3805 = vmatprep.subr.bf16.mxu1 %v15014_v36  ;;  %v15106_v35 = vld [vmem:[#allocation8 + $0x8ac] ss:$16 sps:$4 sm:$0xff]   ;;  %v15101_v36 = vld [vmem:[#allocation8 + $0x8a0] ss:$16 sps:$4 sm:$0xff]  }
 0x18d   :  { %3478 = vmatpush1.bf16.msra.mxu0 %v15009_v37  ;;  %3806 = vmatpush1.bf16.msra.mxu1 %v15012_v38  ;;  %v15104_v37 = vld [vmem:[#allocation8 + $0x8a8] ss:$16 sps:$4 sm:$0xff]   ;;  %v15109_v38 = vld [vmem:[#allocation8 + $0x8c4] ss:$16 sps:$4 sm:$0xff]  }
 0x18e   :  { %3479 = vmatprep.subr.bf16.mxu0 %v15017_v39  ;;  %3807 = vmatprep.subr.bf16.mxu1 %v15020_v40  ;;  %v15112_v39 = vld [vmem:[#allocation8 + $0x8cc] ss:$16 sps:$4 sm:$0xff]   ;;  %v15107_v40 = vld [vmem:[#allocation8 + $0x8c0] ss:$16 sps:$4 sm:$0xff]  }
 0x191   :  { %3480 = vmatpush1.bf16.msra.mxu0 %v15015_v41  ;;  %3808 = vmatpush1.bf16.msra.mxu1 %v15018_v42  ;;  %v15110_v41 = vld [vmem:[#allocation8 + $0x8c8] ss:$16 sps:$4 sm:$0xff]   ;;  %v15115_v42 = vld [vmem:[#allocation8 + $0x8e4] ss:$16 sps:$4 sm:$0xff]  }
 0x192   :  { %3481 = vmatprep.subr.bf16.mxu0 %v15023_v43  ;;  %3809 = vmatprep.subr.bf16.mxu1 %v15026_v44  ;;  %v15118_v43 = vld [vmem:[#allocation8 + $0x8ec] ss:$16 sps:$4 sm:$0xff]   ;;  %v15113_v44 = vld [vmem:[#allocation8 + $0x8e0] ss:$16 sps:$4 sm:$0xff]  }
 0x195   :  { %3482 = vmatpush1.bf16.msra.mxu0 %v15021_v45  ;;  %3810 = vmatpush1.bf16.msra.mxu1 %v15024_v46  ;;  %v15116_v45 = vld [vmem:[#allocation8 + $0x8e8] ss:$16 sps:$4 sm:$0xff]   ;;  %v15121_v46 = vld [vmem:[#allocation8 + $0x904] ss:$16 sps:$4 sm:$0xff]  }
 0x196   :  { %3483 = vmatprep.subr.bf16.mxu0 %v15029_v47  ;;  %3811 = vmatprep.subr.bf16.mxu1 %v15032_v48  ;;  %v15124_v47 = vld [vmem:[#allocation8 + $0x90c] ss:$16 sps:$4 sm:$0xff]   ;;  %v15119_v48 = vld [vmem:[#allocation8 + $0x900] ss:$16 sps:$4 sm:$0xff]  }
 0x199   :  { %3484 = vmatpush1.bf16.msra.mxu0 %v15027_v49  ;;  %3812 = vmatpush1.bf16.msra.mxu1 %v15030_v50  ;;  %v15122_v49 = vld [vmem:[#allocation8 + $0x908] ss:$16 sps:$4 sm:$0xff]   ;;  %v15127_v50 = vld [vmem:[#allocation8 + $0x924] ss:$16 sps:$4 sm:$0xff]  }
 0x19a   :  { %3485 = vmatprep.subr.bf16.mxu0 %v15035_v51  ;;  %3813 = vmatprep.subr.bf16.mxu1 %v15038_v52  ;;  %v15130_v51 = vld [vmem:[#allocation8 + $0x92c] ss:$16 sps:$4 sm:$0xff]   ;;  %v15125_v52 = vld [vmem:[#allocation8 + $0x920] ss:$16 sps:$4 sm:$0xff]  }
 0x19d   :  { %3486 = vmatpush1.bf16.msra.mxu0 %v15033_v53  ;;  %3814 = vmatpush1.bf16.msra.mxu1 %v15036_v54  ;;  %v15128_v53 = vld [vmem:[#allocation8 + $0x928] ss:$16 sps:$4 sm:$0xff]   ;;  %v15133_v54 = vld [vmem:[#allocation8 + $0x944] ss:$16 sps:$4 sm:$0xff]  }
 0x19e   :  { %3487 = vmatprep.subr.bf16.mxu0 %v15041_v55  ;;  %3815 = vmatprep.subr.bf16.mxu1 %v15044_v56  ;;  %v15136_v55 = vld [vmem:[#allocation8 + $0x94c] ss:$16 sps:$4 sm:$0xff]   ;;  %v15131_v56 = vld [vmem:[#allocation8 + $0x940] ss:$16 sps:$4 sm:$0xff]  }
 0x1a1   :  { %3488 = vmatpush1.bf16.msra.mxu0 %v15039_v57  ;;  %3816 = vmatpush1.bf16.msra.mxu1 %v15042_v58  ;;  %v15134_v57 = vld [vmem:[#allocation8 + $0x948] ss:$16 sps:$4 sm:$0xff]   ;;  %v15139_v58 = vld [vmem:[#allocation8 + $0x964] ss:$16 sps:$4 sm:$0xff]  }
 0x1a2   :  { %3489 = vmatprep.subr.bf16.mxu0 %v15047_v59  ;;  %3817 = vmatprep.subr.bf16.mxu1 %v15050_v60  ;;  %v15142_v59 = vld [vmem:[#allocation8 + $0x96c] ss:$16 sps:$4 sm:$0xff]   ;;  %v15137_v60 = vld [vmem:[#allocation8 + $0x960] ss:$16 sps:$4 sm:$0xff]  }
 0x1a5   :  { %3490 = vmatpush1.bf16.msra.mxu0 %v15045_v61  ;;  %3818 = vmatpush1.bf16.msra.mxu1 %v15048_v62  ;;  %v15140_v61 = vld [vmem:[#allocation8 + $0x968] ss:$16 sps:$4 sm:$0xff]   ;;  %v15145_v62 = vld [vmem:[#allocation8 + $0x984] ss:$16 sps:$4 sm:$0xff]  }
 0x1a6   :  { %3491 = vmatprep.subr.bf16.mxu0 %v15053_v63  ;;  %3819 = vmatprep.subr.bf16.mxu1 %v15056_v0  ;;  %v15148_v63 = vld [vmem:[#allocation8 + $0x98c] ss:$16 sps:$4 sm:$0xff]   ;;  %v15143_v0 = vld [vmem:[#allocation8 + $0x980] ss:$16 sps:$4 sm:$0xff]  }
 0x1a9   :  { %3492 = vmatpush1.bf16.msra.mxu0 %v15051_v1  ;;  %3820 = vmatpush1.bf16.msra.mxu1 %v15054_v2  ;;  %v15146_v1 = vld [vmem:[#allocation8 + $0x988] ss:$16 sps:$4 sm:$0xff]   ;;  %v15151_v2 = vld [vmem:[#allocation8 + $0x9a4] ss:$16 sps:$4 sm:$0xff]  }
 0x1aa   :  { %3493 = vmatprep.subr.bf16.mxu0 %v15059_v3  ;;  %3821 = vmatprep.subr.bf16.mxu1 %v15062_v4  ;;  %v15154_v3 = vld [vmem:[#allocation8 + $0x9ac] ss:$16 sps:$4 sm:$0xff]   ;;  %v15149_v4 = vld [vmem:[#allocation8 + $0x9a0] ss:$16 sps:$4 sm:$0xff]  }
 0x1ad   :  { %3494 = vmatpush1.bf16.msra.mxu0 %v15057_v5  ;;  %3822 = vmatpush1.bf16.msra.mxu1 %v15060_v6  ;;  %v15152_v5 = vld [vmem:[#allocation8 + $0x9a8] ss:$16 sps:$4 sm:$0xff]   ;;  %v15157_v6 = vld [vmem:[#allocation8 + $0x9c4] ss:$16 sps:$4 sm:$0xff]  }
 0x1ae   :  { %3495 = vmatprep.subr.bf16.mxu0 %v15065_v7  ;;  %3823 = vmatprep.subr.bf16.mxu1 %v15068_v8  ;;  %v15160_v7 = vld [vmem:[#allocation8 + $0x9cc] ss:$16 sps:$4 sm:$0xff]   ;;  %v15155_v8 = vld [vmem:[#allocation8 + $0x9c0] ss:$16 sps:$4 sm:$0xff]  }
 0x1b1   :  { %3496 = vmatpush1.bf16.msra.mxu0 %v15063_v9  ;;  %3824 = vmatpush1.bf16.msra.mxu1 %v15066_v10  ;;  %v15158_v9 = vld [vmem:[#allocation8 + $0x9c8] ss:$16 sps:$4 sm:$0xff]   ;;  %v15163_v10 = vld [vmem:[#allocation8 + $0x9e4] ss:$16 sps:$4 sm:$0xff]  }
 0x1b2   :  { %3506 = vmatprep.subr.bf16.mxu0 %v15073_v12  ;;  %3834 = vmatprep.subr.bf16.mxu1 %v15076_v13  ;;  %v15166_v12 = vld [vmem:[#allocation8 + $0x9ec] ss:$16 sps:$4 sm:$0xff]   ;;  %v15161_v13 = vld [vmem:[#allocation8 + $0x9e0] ss:$16 sps:$4 sm:$0xff]  }
 0x1b4   :  { %3498 = vmatmul.mubr.bf16.vlgmr.msra.gmra.mrb[0].mxu0 %v12679_v16  ;;  %3826 = vmatmul.mubr.bf16.vlgmr.msra.gmra.mrb[0].mxu1 %v12679_v16  ;;  %v15171_v16 = vld [vmem:[#allocation8 + $0xa04] ss:$16 sps:$4 sm:$0xff]  }
 0x1b5   :  { %3507 = vmatpush1.bf16.msra.mxu0 %v15071_v15  ;;  %3835 = vmatpush1.bf16.msra.mxu1 %v15074_v18  ;;  %v15164_v15 = vld [vmem:[#allocation8 + $0x9e8] ss:$16 sps:$4 sm:$0xff]   ;;  %v15174_v18 = vld [vmem:[#allocation8 + $0xa0c] ss:$16 sps:$4 sm:$0xff]  }
 0x1b6   :  { %3508 = vmatprep.subr.bf16.mxu0 %v15079_v19  ;;  %3836 = vmatprep.subr.bf16.mxu1 %v15082_v20  ;;  %v17624_v19 = vld [vmem:[#allocation2 + $0x28] sm:$0xff]  ;;  %v12681_v20 = vcombine.low %v17620_v17, %v17620_v17  ;;  %v15183_v17 = vld [vmem:[#allocation8 + $0xa44] ss:$16 sps:$4 sm:$0xff]  }
 0x1b7   :  { %3538 = vmatprep.mubr.bf16.mxu0 %v12682_v11  ;;  %3866 = vmatprep.mubr.bf16.mxu1 %v12682_v11  ;;  %v15169_v11 = vld [vmem:[#allocation8 + $0xa00] ss:$16 sps:$4 sm:$0xff]  }
 0x1b9   :  { %3509 = vmatpush1.bf16.msra.mxu0 %v15077_v21  ;;  %3837 = vmatpush1.bf16.msra.mxu1 %v15080_v22  ;;  %v15172_v21 = vld [vmem:[#allocation8 + $0xa08] ss:$16 sps:$4 sm:$0xff]   ;;  %v15177_v22 = vld [vmem:[#allocation8 + $0xa24] ss:$16 sps:$4 sm:$0xff]  }
 0x1ba   :  { %3510 = vmatprep.subr.bf16.mxu0 %v15085_v14  ;;  %3838 = vmatprep.subr.bf16.mxu1 %v15088_v23  ;;  %v15180_v14 = vld [vmem:[#allocation8 + $0xa2c] ss:$16 sps:$4 sm:$0xff]   ;;  %v12684_v23 = vcombine.high %v17624_v19, %v17624_v19 }
 0x1bd   :  { %3511 = vmatpush1.bf16.msra.mxu0 %v15083_v24  ;;  %3839 = vmatpush1.bf16.msra.mxu1 %v15086_v25  ;;  %v15175_v24 = vld [vmem:[#allocation8 + $0xa20] ss:$16 sps:$4 sm:$0xff]   ;;  %v15178_v25 = vld [vmem:[#allocation8 + $0xa28] ss:$16 sps:$4 sm:$0xff]  }
 0x1be   :  { %3512 = vmatprep.subr.bf16.mxu0 %v15091_v26  ;;  %3840 = vmatprep.subr.bf16.mxu1 %v15094_v27  ;;  %v15186_v26 = vld [vmem:[#allocation8 + $0xa4c] ss:$16 sps:$4 sm:$0xff]   ;;  %v15181_v27 = vld [vmem:[#allocation8 + $0xa40] ss:$16 sps:$4 sm:$0xff]  }
 0x1c1   :  { %3513 = vmatpush1.bf16.msra.mxu0 %v15089_v28  ;;  %3841 = vmatpush1.bf16.msra.mxu1 %v15092_v29  ;;  %v15184_v28 = vld [vmem:[#allocation8 + $0xa48] ss:$16 sps:$4 sm:$0xff]   ;;  %v15189_v29 = vld [vmem:[#allocation8 + $0xa64] ss:$16 sps:$4 sm:$0xff]  }
 0x1c2   :  { %3514 = vmatprep.subr.bf16.mxu0 %v15097_v30  ;;  %3842 = vmatprep.subr.bf16.mxu1 %v15100_v31  ;;  %v15192_v30 = vld [vmem:[#allocation8 + $0xa6c] ss:$16 sps:$4 sm:$0xff]   ;;  %v15187_v31 = vld [vmem:[#allocation8 + $0xa60] ss:$16 sps:$4 sm:$0xff]  }
 0x1c5   :  { %3515 = vmatpush1.bf16.msra.mxu0 %v15095_v32  ;;  %3843 = vmatpush1.bf16.msra.mxu1 %v15098_v33  ;;  %v15190_v32 = vld [vmem:[#allocation8 + $0xa68] ss:$16 sps:$4 sm:$0xff]   ;;  %v15195_v33 = vld [vmem:[#allocation8 + $0xa84] ss:$16 sps:$4 sm:$0xff]  }
 0x1c6   :  { %3516 = vmatprep.subr.bf16.mxu0 %v15103_v34  ;;  %3844 = vmatprep.subr.bf16.mxu1 %v15106_v35  ;;  %v15198_v34 = vld [vmem:[#allocation8 + $0xa8c] ss:$16 sps:$4 sm:$0xff]   ;;  %v15193_v35 = vld [vmem:[#allocation8 + $0xa80] ss:$16 sps:$4 sm:$0xff]  }
 0x1c9   :  { %3517 = vmatpush1.bf16.msra.mxu0 %v15101_v36  ;;  %3845 = vmatpush1.bf16.msra.mxu1 %v15104_v37  ;;  %v15196_v36 = vld [vmem:[#allocation8 + $0xa88] ss:$16 sps:$4 sm:$0xff]   ;;  %v15201_v37 = vld [vmem:[#allocation8 + $0xaa4] ss:$16 sps:$4 sm:$0xff]  }
 0x1ca   :  { %3518 = vmatprep.subr.bf16.mxu0 %v15109_v38  ;;  %3846 = vmatprep.subr.bf16.mxu1 %v15112_v39  ;;  %v15204_v38 = vld [vmem:[#allocation8 + $0xaac] ss:$16 sps:$4 sm:$0xff]   ;;  %v15199_v39 = vld [vmem:[#allocation8 + $0xaa0] ss:$16 sps:$4 sm:$0xff]  }
 0x1cd   :  { %3519 = vmatpush1.bf16.msra.mxu0 %v15107_v40  ;;  %3847 = vmatpush1.bf16.msra.mxu1 %v15110_v41  ;;  %v15202_v40 = vld [vmem:[#allocation8 + $0xaa8] ss:$16 sps:$4 sm:$0xff]   ;;  %v15207_v41 = vld [vmem:[#allocation8 + $0xac4] ss:$16 sps:$4 sm:$0xff]  }
 0x1ce   :  { %3520 = vmatprep.subr.bf16.mxu0 %v15115_v42  ;;  %3848 = vmatprep.subr.bf16.mxu1 %v15118_v43  ;;  %v15210_v42 = vld [vmem:[#allocation8 + $0xacc] ss:$16 sps:$4 sm:$0xff]   ;;  %v15205_v43 = vld [vmem:[#allocation8 + $0xac0] ss:$16 sps:$4 sm:$0xff]  }
 0x1d1   :  { %3521 = vmatpush1.bf16.msra.mxu0 %v15113_v44  ;;  %3849 = vmatpush1.bf16.msra.mxu1 %v15116_v45  ;;  %v15208_v44 = vld [vmem:[#allocation8 + $0xac8] ss:$16 sps:$4 sm:$0xff]   ;;  %v15213_v45 = vld [vmem:[#allocation8 + $0xae4] ss:$16 sps:$4 sm:$0xff]  }
 0x1d2   :  { %3522 = vmatprep.subr.bf16.mxu0 %v15121_v46  ;;  %3850 = vmatprep.subr.bf16.mxu1 %v15124_v47  ;;  %v15216_v46 = vld [vmem:[#allocation8 + $0xaec] ss:$16 sps:$4 sm:$0xff]   ;;  %v15211_v47 = vld [vmem:[#allocation8 + $0xae0] ss:$16 sps:$4 sm:$0xff]  }
 0x1d5   :  { %3523 = vmatpush1.bf16.msra.mxu0 %v15119_v48  ;;  %3851 = vmatpush1.bf16.msra.mxu1 %v15122_v49  ;;  %v15214_v48 = vld [vmem:[#allocation8 + $0xae8] ss:$16 sps:$4 sm:$0xff]   ;;  %v15219_v49 = vld [vmem:[#allocation8 + $0xb04] ss:$16 sps:$4 sm:$0xff]  }
 0x1d6   :  { %3524 = vmatprep.subr.bf16.mxu0 %v15127_v50  ;;  %3852 = vmatprep.subr.bf16.mxu1 %v15130_v51  ;;  %v15222_v50 = vld [vmem:[#allocation8 + $0xb0c] ss:$16 sps:$4 sm:$0xff]   ;;  %v15217_v51 = vld [vmem:[#allocation8 + $0xb00] ss:$16 sps:$4 sm:$0xff]  }
 0x1d9   :  { %3525 = vmatpush1.bf16.msra.mxu0 %v15125_v52  ;;  %3853 = vmatpush1.bf16.msra.mxu1 %v15128_v53  ;;  %v15220_v52 = vld [vmem:[#allocation8 + $0xb08] ss:$16 sps:$4 sm:$0xff]   ;;  %v15225_v53 = vld [vmem:[#allocation8 + $0xb24] ss:$16 sps:$4 sm:$0xff]  }
 0x1da   :  { %3526 = vmatprep.subr.bf16.mxu0 %v15133_v54  ;;  %3854 = vmatprep.subr.bf16.mxu1 %v15136_v55  ;;  %v15228_v54 = vld [vmem:[#allocation8 + $0xb2c] ss:$16 sps:$4 sm:$0xff]   ;;  %v15223_v55 = vld [vmem:[#allocation8 + $0xb20] ss:$16 sps:$4 sm:$0xff]  }
 0x1dd   :  { %3527 = vmatpush1.bf16.msra.mxu0 %v15131_v56  ;;  %3855 = vmatpush1.bf16.msra.mxu1 %v15134_v57  ;;  %v15226_v56 = vld [vmem:[#allocation8 + $0xb28] ss:$16 sps:$4 sm:$0xff]   ;;  %v15231_v57 = vld [vmem:[#allocation8 + $0xb44] ss:$16 sps:$4 sm:$0xff]  }
 0x1de   :  { %3528 = vmatprep.subr.bf16.mxu0 %v15139_v58  ;;  %3856 = vmatprep.subr.bf16.mxu1 %v15142_v59  ;;  %v15234_v58 = vld [vmem:[#allocation8 + $0xb4c] ss:$16 sps:$4 sm:$0xff]   ;;  %v15229_v59 = vld [vmem:[#allocation8 + $0xb40] ss:$16 sps:$4 sm:$0xff]  }
 0x1e1   :  { %3529 = vmatpush1.bf16.msra.mxu0 %v15137_v60  ;;  %3857 = vmatpush1.bf16.msra.mxu1 %v15140_v61  ;;  %v15232_v60 = vld [vmem:[#allocation8 + $0xb48] ss:$16 sps:$4 sm:$0xff]   ;;  %v15237_v61 = vld [vmem:[#allocation8 + $0xb64] ss:$16 sps:$4 sm:$0xff]  }
 0x1e2   :  { %3530 = vmatprep.subr.bf16.mxu0 %v15145_v62  ;;  %3858 = vmatprep.subr.bf16.mxu1 %v15148_v63  ;;  %v15240_v62 = vld [vmem:[#allocation8 + $0xb6c] ss:$16 sps:$4 sm:$0xff]   ;;  %v15235_v63 = vld [vmem:[#allocation8 + $0xb60] ss:$16 sps:$4 sm:$0xff]  }
 0x1e5   :  { %3531 = vmatpush1.bf16.msra.mxu0 %v15143_v0  ;;  %3859 = vmatpush1.bf16.msra.mxu1 %v15146_v1  ;;  %v15238_v0 = vld [vmem:[#allocation8 + $0xb68] ss:$16 sps:$4 sm:$0xff]   ;;  %v15243_v1 = vld [vmem:[#allocation8 + $0xb84] ss:$16 sps:$4 sm:$0xff]  }
 0x1e6   :  { %3532 = vmatprep.subr.bf16.mxu0 %v15151_v2  ;;  %3860 = vmatprep.subr.bf16.mxu1 %v15154_v3  ;;  %v15246_v2 = vld [vmem:[#allocation8 + $0xb8c] ss:$16 sps:$4 sm:$0xff]   ;;  %v15241_v3 = vld [vmem:[#allocation8 + $0xb80] ss:$16 sps:$4 sm:$0xff]  }
 0x1e9   :  { %3533 = vmatpush1.bf16.msra.mxu0 %v15149_v4  ;;  %3861 = vmatpush1.bf16.msra.mxu1 %v15152_v5  ;;  %v15244_v4 = vld [vmem:[#allocation8 + $0xb88] ss:$16 sps:$4 sm:$0xff]   ;;  %v15249_v5 = vld [vmem:[#allocation8 + $0xba4] ss:$16 sps:$4 sm:$0xff]  }
 0x1ea   :  { %3534 = vmatprep.subr.bf16.mxu0 %v15157_v6  ;;  %3862 = vmatprep.subr.bf16.mxu1 %v15160_v7  ;;  %v15252_v6 = vld [vmem:[#allocation8 + $0xbac] ss:$16 sps:$4 sm:$0xff]   ;;  %v15247_v7 = vld [vmem:[#allocation8 + $0xba0] ss:$16 sps:$4 sm:$0xff]  }
 0x1ed   :  { %3535 = vmatpush1.bf16.msra.mxu0 %v15155_v8  ;;  %3863 = vmatpush1.bf16.msra.mxu1 %v15158_v9  ;;  %v15250_v8 = vld [vmem:[#allocation8 + $0xba8] ss:$16 sps:$4 sm:$0xff]   ;;  %v15255_v9 = vld [vmem:[#allocation8 + $0xbc4] ss:$16 sps:$4 sm:$0xff]  }
 0x1ee   :  { %3536 = vmatprep.subr.bf16.mxu0 %v15163_v10  ;;  %3864 = vmatprep.subr.bf16.mxu1 %v15166_v12  ;;  %v15258_v10 = vld [vmem:[#allocation8 + $0xbcc] ss:$16 sps:$4 sm:$0xff]   ;;  %v15253_v12 = vld [vmem:[#allocation8 + $0xbc0] ss:$16 sps:$4 sm:$0xff]  }
 0x1f1   :  { %3537 = vmatpush1.bf16.msra.mxu0 %v15161_v13  ;;  %3865 = vmatpush1.bf16.msra.mxu1 %v15164_v15  ;;  %v15256_v13 = vld [vmem:[#allocation8 + $0xbc8] ss:$16 sps:$4 sm:$0xff]   ;;  %v15261_v15 = vld [vmem:[#allocation8 + $0xbe4] ss:$16 sps:$4 sm:$0xff]  }
 0x1f2   :  { %3547 = vmatprep.subr.bf16.mxu0 %v15171_v16  ;;  %3875 = vmatprep.subr.bf16.mxu1 %v15174_v18  ;;  %v15264_v16 = vld [vmem:[#allocation8 + $0xbec] ss:$16 sps:$4 sm:$0xff]   ;;  %v15259_v18 = vld [vmem:[#allocation8 + $0xbe0] ss:$16 sps:$4 sm:$0xff]  }
 0x1f4   :  { %3539 = vmatmul.mubr.bf16.vlgmr.msra.gmra.mrb[0].mxu0 %v12681_v20  ;;  %3867 = vmatmul.mubr.bf16.vlgmr.msra.gmra.mrb[0].mxu1 %v12681_v20  ;;  %v15262_v20 = vld [vmem:[#allocation8 + $0xbe8] ss:$16 sps:$4 sm:$0xff]  }
 0x1f5   :  { %3548 = vmatpush1.bf16.msra.mxu0 %v15169_v11  ;;  %3876 = vmatpush1.bf16.msra.mxu1 %v15172_v21  ;;  %v15269_v11 = vld [vmem:[#allocation8 + $0xc04] ss:$16 sps:$4 sm:$0xff]   ;;  %v15272_v21 = vld [vmem:[#allocation8 + $0xc0c] ss:$16 sps:$4 sm:$0xff]  }
 0x1f6   :  { %3549 = vmatprep.subr.bf16.mxu0 %v15177_v22  ;;  %3877 = vmatprep.subr.bf16.mxu1 %v15180_v14  ;;  %v15267_v22 = vld [vmem:[#allocation8 + $0xc00] ss:$16 sps:$4 sm:$0xff]   ;;  %v15270_v14 = vld [vmem:[#allocation8 + $0xc08] ss:$16 sps:$4 sm:$0xff]  }
 0x1f7   :  { %3579 = vmatprep.mubr.bf16.mxu0 %v12684_v23  ;;  %3907 = vmatprep.mubr.bf16.mxu1 %v12684_v23  ;;  %v12683_v23 = vcombine.low %v17624_v19, %v17624_v19  ;;  %v15281_v19 = vld [vmem:[#allocation8 + $0xc44] ss:$16 sps:$4 sm:$0xff]  }
 0x1f9   :  { %3550 = vmatpush1.bf16.msra.mxu0 %v15175_v24  ;;  %3878 = vmatpush1.bf16.msra.mxu1 %v15178_v25  ;;  %v17632_v24 = vld [vmem:[#allocation2 + $0x30] sm:$0xff] }
 0x1fa   :  { %3551 = vmatprep.subr.bf16.mxu0 %v15183_v17  ;;  %3879 = vmatprep.subr.bf16.mxu1 %v15186_v26  ;;  %v15275_v25 = vld [vmem:[#allocation8 + $0xc24] ss:$16 sps:$4 sm:$0xff]   ;;  %v15278_v17 = vld [vmem:[#allocation8 + $0xc2c] ss:$16 sps:$4 sm:$0xff]   ;;  %v12686_v26 = vcombine.high %v17632_v24, %v17632_v24 }
 0x1fd   :  { %3552 = vmatpush1.bf16.msra.mxu0 %v15181_v27  ;;  %3880 = vmatpush1.bf16.msra.mxu1 %v15184_v28  ;;  %v15273_v27 = vld [vmem:[#allocation8 + $0xc20] ss:$16 sps:$4 sm:$0xff]   ;;  %v15276_v28 = vld [vmem:[#allocation8 + $0xc28] ss:$16 sps:$4 sm:$0xff]  }
 0x1fe   :  { %3553 = vmatprep.subr.bf16.mxu0 %v15189_v29  ;;  %3881 = vmatprep.subr.bf16.mxu1 %v15192_v30  ;;  %v15284_v29 = vld [vmem:[#allocation8 + $0xc4c] ss:$16 sps:$4 sm:$0xff]   ;;  %v15279_v30 = vld [vmem:[#allocation8 + $0xc40] ss:$16 sps:$4 sm:$0xff]  }
 0x201   :  { %3554 = vmatpush1.bf16.msra.mxu0 %v15187_v31  ;;  %3882 = vmatpush1.bf16.msra.mxu1 %v15190_v32  ;;  %v15282_v31 = vld [vmem:[#allocation8 + $0xc48] ss:$16 sps:$4 sm:$0xff]   ;;  %v15287_v32 = vld [vmem:[#allocation8 + $0xc64] ss:$16 sps:$4 sm:$0xff]  }
 0x202   :  { %3555 = vmatprep.subr.bf16.mxu0 %v15195_v33  ;;  %3883 = vmatprep.subr.bf16.mxu1 %v15198_v34  ;;  %v15290_v33 = vld [vmem:[#allocation8 + $0xc6c] ss:$16 sps:$4 sm:$0xff]   ;;  %v15285_v34 = vld [vmem:[#allocation8 + $0xc60] ss:$16 sps:$4 sm:$0xff]  }
 0x205   :  { %3556 = vmatpush1.bf16.msra.mxu0 %v15193_v35  ;;  %3884 = vmatpush1.bf16.msra.mxu1 %v15196_v36  ;;  %v15288_v35 = vld [vmem:[#allocation8 + $0xc68] ss:$16 sps:$4 sm:$0xff]   ;;  %v15293_v36 = vld [vmem:[#allocation8 + $0xc84] ss:$16 sps:$4 sm:$0xff]  }
 0x206   :  { %3557 = vmatprep.subr.bf16.mxu0 %v15201_v37  ;;  %3885 = vmatprep.subr.bf16.mxu1 %v15204_v38  ;;  %v15296_v37 = vld [vmem:[#allocation8 + $0xc8c] ss:$16 sps:$4 sm:$0xff]   ;;  %v15291_v38 = vld [vmem:[#allocation8 + $0xc80] ss:$16 sps:$4 sm:$0xff]  }
 0x209   :  { %3558 = vmatpush1.bf16.msra.mxu0 %v15199_v39  ;;  %3886 = vmatpush1.bf16.msra.mxu1 %v15202_v40  ;;  %v15294_v39 = vld [vmem:[#allocation8 + $0xc88] ss:$16 sps:$4 sm:$0xff]   ;;  %v15299_v40 = vld [vmem:[#allocation8 + $0xca4] ss:$16 sps:$4 sm:$0xff]  }
 0x20a   :  { %3559 = vmatprep.subr.bf16.mxu0 %v15207_v41  ;;  %3887 = vmatprep.subr.bf16.mxu1 %v15210_v42  ;;  %v15302_v41 = vld [vmem:[#allocation8 + $0xcac] ss:$16 sps:$4 sm:$0xff]   ;;  %v15297_v42 = vld [vmem:[#allocation8 + $0xca0] ss:$16 sps:$4 sm:$0xff]  }
 0x20d   :  { %3560 = vmatpush1.bf16.msra.mxu0 %v15205_v43  ;;  %3888 = vmatpush1.bf16.msra.mxu1 %v15208_v44  ;;  %v15300_v43 = vld [vmem:[#allocation8 + $0xca8] ss:$16 sps:$4 sm:$0xff]   ;;  %v15305_v44 = vld [vmem:[#allocation8 + $0xcc4] ss:$16 sps:$4 sm:$0xff]  }
 0x20e   :  { %3561 = vmatprep.subr.bf16.mxu0 %v15213_v45  ;;  %3889 = vmatprep.subr.bf16.mxu1 %v15216_v46  ;;  %v15308_v45 = vld [vmem:[#allocation8 + $0xccc] ss:$16 sps:$4 sm:$0xff]   ;;  %v15303_v46 = vld [vmem:[#allocation8 + $0xcc0] ss:$16 sps:$4 sm:$0xff]  }
 0x211   :  { %3562 = vmatpush1.bf16.msra.mxu0 %v15211_v47  ;;  %3890 = vmatpush1.bf16.msra.mxu1 %v15214_v48  ;;  %v15306_v47 = vld [vmem:[#allocation8 + $0xcc8] ss:$16 sps:$4 sm:$0xff]   ;;  %v15311_v48 = vld [vmem:[#allocation8 + $0xce4] ss:$16 sps:$4 sm:$0xff]  }
 0x212   :  { %3563 = vmatprep.subr.bf16.mxu0 %v15219_v49  ;;  %3891 = vmatprep.subr.bf16.mxu1 %v15222_v50  ;;  %v15314_v49 = vld [vmem:[#allocation8 + $0xcec] ss:$16 sps:$4 sm:$0xff]   ;;  %v15309_v50 = vld [vmem:[#allocation8 + $0xce0] ss:$16 sps:$4 sm:$0xff]  }
 0x215   :  { %3564 = vmatpush1.bf16.msra.mxu0 %v15217_v51  ;;  %3892 = vmatpush1.bf16.msra.mxu1 %v15220_v52  ;;  %v15312_v51 = vld [vmem:[#allocation8 + $0xce8] ss:$16 sps:$4 sm:$0xff]   ;;  %v15317_v52 = vld [vmem:[#allocation8 + $0xd04] ss:$16 sps:$4 sm:$0xff]  }
 0x216   :  { %3565 = vmatprep.subr.bf16.mxu0 %v15225_v53  ;;  %3893 = vmatprep.subr.bf16.mxu1 %v15228_v54  ;;  %v15320_v53 = vld [vmem:[#allocation8 + $0xd0c] ss:$16 sps:$4 sm:$0xff]   ;;  %v15315_v54 = vld [vmem:[#allocation8 + $0xd00] ss:$16 sps:$4 sm:$0xff]  }
 0x219   :  { %3566 = vmatpush1.bf16.msra.mxu0 %v15223_v55  ;;  %3894 = vmatpush1.bf16.msra.mxu1 %v15226_v56  ;;  %v15318_v55 = vld [vmem:[#allocation8 + $0xd08] ss:$16 sps:$4 sm:$0xff]   ;;  %v15323_v56 = vld [vmem:[#allocation8 + $0xd24] ss:$16 sps:$4 sm:$0xff]  }
 0x21a   :  { %3567 = vmatprep.subr.bf16.mxu0 %v15231_v57  ;;  %3895 = vmatprep.subr.bf16.mxu1 %v15234_v58  ;;  %v15326_v57 = vld [vmem:[#allocation8 + $0xd2c] ss:$16 sps:$4 sm:$0xff]   ;;  %v15321_v58 = vld [vmem:[#allocation8 + $0xd20] ss:$16 sps:$4 sm:$0xff]  }
 0x21d   :  { %3568 = vmatpush1.bf16.msra.mxu0 %v15229_v59  ;;  %3896 = vmatpush1.bf16.msra.mxu1 %v15232_v60  ;;  %v15324_v59 = vld [vmem:[#allocation8 + $0xd28] ss:$16 sps:$4 sm:$0xff]   ;;  %v15329_v60 = vld [vmem:[#allocation8 + $0xd44] ss:$16 sps:$4 sm:$0xff]  }
 0x21e   :  { %3569 = vmatprep.subr.bf16.mxu0 %v15237_v61  ;;  %3897 = vmatprep.subr.bf16.mxu1 %v15240_v62  ;;  %v15332_v61 = vld [vmem:[#allocation8 + $0xd4c] ss:$16 sps:$4 sm:$0xff]   ;;  %v15327_v62 = vld [vmem:[#allocation8 + $0xd40] ss:$16 sps:$4 sm:$0xff]  }
 0x221   :  { %3570 = vmatpush1.bf16.msra.mxu0 %v15235_v63  ;;  %3898 = vmatpush1.bf16.msra.mxu1 %v15238_v0  ;;  %v15330_v63 = vld [vmem:[#allocation8 + $0xd48] ss:$16 sps:$4 sm:$0xff]   ;;  %v15335_v0 = vld [vmem:[#allocation8 + $0xd64] ss:$16 sps:$4 sm:$0xff]  }
 0x222   :  { %3571 = vmatprep.subr.bf16.mxu0 %v15243_v1  ;;  %3899 = vmatprep.subr.bf16.mxu1 %v15246_v2  ;;  %v15338_v1 = vld [vmem:[#allocation8 + $0xd6c] ss:$16 sps:$4 sm:$0xff]   ;;  %v15333_v2 = vld [vmem:[#allocation8 + $0xd60] ss:$16 sps:$4 sm:$0xff]  }
 0x225   :  { %3572 = vmatpush1.bf16.msra.mxu0 %v15241_v3  ;;  %3900 = vmatpush1.bf16.msra.mxu1 %v15244_v4  ;;  %v15336_v3 = vld [vmem:[#allocation8 + $0xd68] ss:$16 sps:$4 sm:$0xff]   ;;  %v15341_v4 = vld [vmem:[#allocation8 + $0xd84] ss:$16 sps:$4 sm:$0xff]  }
 0x226   :  { %3573 = vmatprep.subr.bf16.mxu0 %v15249_v5  ;;  %3901 = vmatprep.subr.bf16.mxu1 %v15252_v6  ;;  %v15344_v5 = vld [vmem:[#allocation8 + $0xd8c] ss:$16 sps:$4 sm:$0xff]   ;;  %v15339_v6 = vld [vmem:[#allocation8 + $0xd80] ss:$16 sps:$4 sm:$0xff]  }
 0x229   :  { %3574 = vmatpush1.bf16.msra.mxu0 %v15247_v7  ;;  %3902 = vmatpush1.bf16.msra.mxu1 %v15250_v8  ;;  %v15342_v7 = vld [vmem:[#allocation8 + $0xd88] ss:$16 sps:$4 sm:$0xff]   ;;  %v15347_v8 = vld [vmem:[#allocation8 + $0xda4] ss:$16 sps:$4 sm:$0xff]  }
 0x22a   :  { %3575 = vmatprep.subr.bf16.mxu0 %v15255_v9  ;;  %3903 = vmatprep.subr.bf16.mxu1 %v15258_v10  ;;  %v15350_v9 = vld [vmem:[#allocation8 + $0xdac] ss:$16 sps:$4 sm:$0xff]   ;;  %v15345_v10 = vld [vmem:[#allocation8 + $0xda0] ss:$16 sps:$4 sm:$0xff]  }
 0x22d   :  { %3576 = vmatpush1.bf16.msra.mxu0 %v15253_v12  ;;  %3904 = vmatpush1.bf16.msra.mxu1 %v15256_v13  ;;  %v15348_v12 = vld [vmem:[#allocation8 + $0xda8] ss:$16 sps:$4 sm:$0xff]   ;;  %v15353_v13 = vld [vmem:[#allocation8 + $0xdc4] ss:$16 sps:$4 sm:$0xff]  }
 0x22e   :  { %3577 = vmatprep.subr.bf16.mxu0 %v15261_v15  ;;  %3905 = vmatprep.subr.bf16.mxu1 %v15264_v16  ;;  %v15356_v15 = vld [vmem:[#allocation8 + $0xdcc] ss:$16 sps:$4 sm:$0xff]   ;;  %v15351_v16 = vld [vmem:[#allocation8 + $0xdc0] ss:$16 sps:$4 sm:$0xff]  }
 0x231   :  { %3578 = vmatpush1.bf16.msra.mxu0 %v15259_v18  ;;  %3906 = vmatpush1.bf16.msra.mxu1 %v15262_v20  ;;  %v15354_v18 = vld [vmem:[#allocation8 + $0xdc8] ss:$16 sps:$4 sm:$0xff]   ;;  %v15359_v20 = vld [vmem:[#allocation8 + $0xde4] ss:$16 sps:$4 sm:$0xff]  }
 0x232   :  { %3588 = vmatprep.subr.bf16.mxu0 %v15269_v11  ;;  %3916 = vmatprep.subr.bf16.mxu1 %v15272_v21  ;;  %v15362_v11 = vld [vmem:[#allocation8 + $0xdec] ss:$16 sps:$4 sm:$0xff]   ;;  %v15357_v21 = vld [vmem:[#allocation8 + $0xde0] ss:$16 sps:$4 sm:$0xff]  }
 0x234   :  { %3580 = vmatmul.mubr.bf16.vlgmr.msra.gmra.mrb[0].mxu0 %v12683_v23  ;;  %3908 = vmatmul.mubr.bf16.vlgmr.msra.gmra.mrb[0].mxu1 %v12683_v23  ;;  %v15370_v23 = vld [vmem:[#allocation8 + $0xe0c] ss:$16 sps:$4 sm:$0xff]  }
 0x235   :  { %3589 = vmatpush1.bf16.msra.mxu0 %v15267_v22  ;;  %3917 = vmatpush1.bf16.msra.mxu1 %v15270_v14  ;;  %v15360_v22 = vld [vmem:[#allocation8 + $0xde8] ss:$16 sps:$4 sm:$0xff]   ;;  %v15367_v14 = vld [vmem:[#allocation8 + $0xe04] ss:$16 sps:$4 sm:$0xff]  }
 0x236   :  { %3590 = vmatprep.subr.bf16.mxu0 %v15275_v25  ;;  %3918 = vmatprep.subr.bf16.mxu1 %v15278_v17  ;;  %v17636_v25 = vld [vmem:[#allocation2 + $0x38] sm:$0xff]  ;;  %v12685_v17 = vcombine.low %v17632_v24, %v17632_v24  ;;  %v15379_v24 = vld [vmem:[#allocation8 + $0xe44] ss:$16 sps:$4 sm:$0xff]  }
 0x237   :  { %3620 = vmatprep.mubr.bf16.mxu0 %v12686_v26  ;;  %3948 = vmatprep.mubr.bf16.mxu1 %v12686_v26  ;;  %v15365_v26 = vld [vmem:[#allocation8 + $0xe00] ss:$16 sps:$4 sm:$0xff]  }
 0x239   :  { %3591 = vmatpush1.bf16.msra.mxu0 %v15273_v27  ;;  %3919 = vmatpush1.bf16.msra.mxu1 %v15276_v28  ;;  %v15368_v27 = vld [vmem:[#allocation8 + $0xe08] ss:$16 sps:$4 sm:$0xff]   ;;  %v15373_v28 = vld [vmem:[#allocation8 + $0xe24] ss:$16 sps:$4 sm:$0xff]  }
 0x23a   :  { %3592 = vmatprep.subr.bf16.mxu0 %v15281_v19  ;;  %3920 = vmatprep.subr.bf16.mxu1 %v15284_v29  ;;  %v15376_v19 = vld [vmem:[#allocation8 + $0xe2c] ss:$16 sps:$4 sm:$0xff]   ;;  %v12688_v29 = vcombine.high %v17636_v25, %v17636_v25 }
 0x23d   :  { %3593 = vmatpush1.bf16.msra.mxu0 %v15279_v30  ;;  %3921 = vmatpush1.bf16.msra.mxu1 %v15282_v31  ;;  %v15371_v30 = vld [vmem:[#allocation8 + $0xe20] ss:$16 sps:$4 sm:$0xff]   ;;  %v15374_v31 = vld [vmem:[#allocation8 + $0xe28] ss:$16 sps:$4 sm:$0xff]  }
 0x23e   :  { %3594 = vmatprep.subr.bf16.mxu0 %v15287_v32  ;;  %3922 = vmatprep.subr.bf16.mxu1 %v15290_v33  ;;  %v15382_v32 = vld [vmem:[#allocation8 + $0xe4c] ss:$16 sps:$4 sm:$0xff]   ;;  %v15377_v33 = vld [vmem:[#allocation8 + $0xe40] ss:$16 sps:$4 sm:$0xff]  }
 0x241   :  { %3595 = vmatpush1.bf16.msra.mxu0 %v15285_v34  ;;  %3923 = vmatpush1.bf16.msra.mxu1 %v15288_v35  ;;  %v15380_v34 = vld [vmem:[#allocation8 + $0xe48] ss:$16 sps:$4 sm:$0xff]   ;;  %v15385_v35 = vld [vmem:[#allocation8 + $0xe64] ss:$16 sps:$4 sm:$0xff]  }
 0x242   :  { %3596 = vmatprep.subr.bf16.mxu0 %v15293_v36  ;;  %3924 = vmatprep.subr.bf16.mxu1 %v15296_v37  ;;  %v15388_v36 = vld [vmem:[#allocation8 + $0xe6c] ss:$16 sps:$4 sm:$0xff]   ;;  %v15383_v37 = vld [vmem:[#allocation8 + $0xe60] ss:$16 sps:$4 sm:$0xff]  }
 0x245   :  { %3597 = vmatpush1.bf16.msra.mxu0 %v15291_v38  ;;  %3925 = vmatpush1.bf16.msra.mxu1 %v15294_v39  ;;  %v15386_v38 = vld [vmem:[#allocation8 + $0xe68] ss:$16 sps:$4 sm:$0xff]   ;;  %v15391_v39 = vld [vmem:[#allocation8 + $0xe84] ss:$16 sps:$4 sm:$0xff]  }
 0x246   :  { %3598 = vmatprep.subr.bf16.mxu0 %v15299_v40  ;;  %3926 = vmatprep.subr.bf16.mxu1 %v15302_v41  ;;  %v15394_v40 = vld [vmem:[#allocation8 + $0xe8c] ss:$16 sps:$4 sm:$0xff]   ;;  %v15389_v41 = vld [vmem:[#allocation8 + $0xe80] ss:$16 sps:$4 sm:$0xff]  }
 0x249   :  { %3599 = vmatpush1.bf16.msra.mxu0 %v15297_v42  ;;  %3927 = vmatpush1.bf16.msra.mxu1 %v15300_v43  ;;  %v15392_v42 = vld [vmem:[#allocation8 + $0xe88] ss:$16 sps:$4 sm:$0xff]   ;;  %v15397_v43 = vld [vmem:[#allocation8 + $0xea4] ss:$16 sps:$4 sm:$0xff]  }
 0x24a   :  { %3600 = vmatprep.subr.bf16.mxu0 %v15305_v44  ;;  %3928 = vmatprep.subr.bf16.mxu1 %v15308_v45  ;;  %v15400_v44 = vld [vmem:[#allocation8 + $0xeac] ss:$16 sps:$4 sm:$0xff]   ;;  %v15395_v45 = vld [vmem:[#allocation8 + $0xea0] ss:$16 sps:$4 sm:$0xff]  }
 0x24d   :  { %3601 = vmatpush1.bf16.msra.mxu0 %v15303_v46  ;;  %3929 = vmatpush1.bf16.msra.mxu1 %v15306_v47  ;;  %v15398_v46 = vld [vmem:[#allocation8 + $0xea8] ss:$16 sps:$4 sm:$0xff]   ;;  %v15403_v47 = vld [vmem:[#allocation8 + $0xec4] ss:$16 sps:$4 sm:$0xff]  }
 0x24e   :  { %3602 = vmatprep.subr.bf16.mxu0 %v15311_v48  ;;  %3930 = vmatprep.subr.bf16.mxu1 %v15314_v49  ;;  %v15406_v48 = vld [vmem:[#allocation8 + $0xecc] ss:$16 sps:$4 sm:$0xff]   ;;  %v15401_v49 = vld [vmem:[#allocation8 + $0xec0] ss:$16 sps:$4 sm:$0xff]  }
 0x251   :  { %3603 = vmatpush1.bf16.msra.mxu0 %v15309_v50  ;;  %3931 = vmatpush1.bf16.msra.mxu1 %v15312_v51  ;;  %v15404_v50 = vld [vmem:[#allocation8 + $0xec8] ss:$16 sps:$4 sm:$0xff]   ;;  %v15409_v51 = vld [vmem:[#allocation8 + $0xee4] ss:$16 sps:$4 sm:$0xff]  }
 0x252   :  { %3604 = vmatprep.subr.bf16.mxu0 %v15317_v52  ;;  %3932 = vmatprep.subr.bf16.mxu1 %v15320_v53  ;;  %v15412_v52 = vld [vmem:[#allocation8 + $0xeec] ss:$16 sps:$4 sm:$0xff]   ;;  %v15407_v53 = vld [vmem:[#allocation8 + $0xee0] ss:$16 sps:$4 sm:$0xff]  }
 0x255   :  { %3605 = vmatpush1.bf16.msra.mxu0 %v15315_v54  ;;  %3933 = vmatpush1.bf16.msra.mxu1 %v15318_v55  ;;  %v15410_v54 = vld [vmem:[#allocation8 + $0xee8] ss:$16 sps:$4 sm:$0xff]   ;;  %v15415_v55 = vld [vmem:[#allocation8 + $0xf04] ss:$16 sps:$4 sm:$0xff]  }
 0x256   :  { %3606 = vmatprep.subr.bf16.mxu0 %v15323_v56  ;;  %3934 = vmatprep.subr.bf16.mxu1 %v15326_v57  ;;  %v15418_v56 = vld [vmem:[#allocation8 + $0xf0c] ss:$16 sps:$4 sm:$0xff]   ;;  %v15413_v57 = vld [vmem:[#allocation8 + $0xf00] ss:$16 sps:$4 sm:$0xff]  }
 0x259   :  { %3607 = vmatpush1.bf16.msra.mxu0 %v15321_v58  ;;  %3935 = vmatpush1.bf16.msra.mxu1 %v15324_v59  ;;  %v15416_v58 = vld [vmem:[#allocation8 + $0xf08] ss:$16 sps:$4 sm:$0xff]   ;;  %v15421_v59 = vld [vmem:[#allocation8 + $0xf24] ss:$16 sps:$4 sm:$0xff]  }
 0x25a   :  { %3608 = vmatprep.subr.bf16.mxu0 %v15329_v60  ;;  %3936 = vmatprep.subr.bf16.mxu1 %v15332_v61  ;;  %v15424_v60 = vld [vmem:[#allocation8 + $0xf2c] ss:$16 sps:$4 sm:$0xff]   ;;  %v15419_v61 = vld [vmem:[#allocation8 + $0xf20] ss:$16 sps:$4 sm:$0xff]  }
 0x25d   :  { %3609 = vmatpush1.bf16.msra.mxu0 %v15327_v62  ;;  %3937 = vmatpush1.bf16.msra.mxu1 %v15330_v63  ;;  %v15422_v62 = vld [vmem:[#allocation8 + $0xf28] ss:$16 sps:$4 sm:$0xff]   ;;  %v15427_v63 = vld [vmem:[#allocation8 + $0xf44] ss:$16 sps:$4 sm:$0xff]  }
 0x25e   :  { %3610 = vmatprep.subr.bf16.mxu0 %v15335_v0  ;;  %3938 = vmatprep.subr.bf16.mxu1 %v15338_v1  ;;  %v15430_v0 = vld [vmem:[#allocation8 + $0xf4c] ss:$16 sps:$4 sm:$0xff]   ;;  %v15425_v1 = vld [vmem:[#allocation8 + $0xf40] ss:$16 sps:$4 sm:$0xff]  }
 0x261   :  { %3611 = vmatpush1.bf16.msra.mxu0 %v15333_v2  ;;  %3939 = vmatpush1.bf16.msra.mxu1 %v15336_v3  ;;  %v15428_v2 = vld [vmem:[#allocation8 + $0xf48] ss:$16 sps:$4 sm:$0xff]   ;;  %v15433_v3 = vld [vmem:[#allocation8 + $0xf64] ss:$16 sps:$4 sm:$0xff]  }
 0x262   :  { %3612 = vmatprep.subr.bf16.mxu0 %v15341_v4  ;;  %3940 = vmatprep.subr.bf16.mxu1 %v15344_v5  ;;  %v15436_v4 = vld [vmem:[#allocation8 + $0xf6c] ss:$16 sps:$4 sm:$0xff]   ;;  %v15431_v5 = vld [vmem:[#allocation8 + $0xf60] ss:$16 sps:$4 sm:$0xff]  }
 0x265   :  { %3613 = vmatpush1.bf16.msra.mxu0 %v15339_v6  ;;  %3941 = vmatpush1.bf16.msra.mxu1 %v15342_v7  ;;  %v15434_v6 = vld [vmem:[#allocation8 + $0xf68] ss:$16 sps:$4 sm:$0xff]   ;;  %v15439_v7 = vld [vmem:[#allocation8 + $0xf84] ss:$16 sps:$4 sm:$0xff]  }
 0x266   :  { %3614 = vmatprep.subr.bf16.mxu0 %v15347_v8  ;;  %3942 = vmatprep.subr.bf16.mxu1 %v15350_v9  ;;  %v15442_v8 = vld [vmem:[#allocation8 + $0xf8c] ss:$16 sps:$4 sm:$0xff]   ;;  %v15437_v9 = vld [vmem:[#allocation8 + $0xf80] ss:$16 sps:$4 sm:$0xff]  }
 0x269   :  { %3615 = vmatpush1.bf16.msra.mxu0 %v15345_v10  ;;  %3943 = vmatpush1.bf16.msra.mxu1 %v15348_v12  ;;  %v15440_v10 = vld [vmem:[#allocation8 + $0xf88] ss:$16 sps:$4 sm:$0xff]   ;;  %v15445_v12 = vld [vmem:[#allocation8 + $0xfa4] ss:$16 sps:$4 sm:$0xff]  }
 0x26a   :  { %3616 = vmatprep.subr.bf16.mxu0 %v15353_v13  ;;  %3944 = vmatprep.subr.bf16.mxu1 %v15356_v15  ;;  %v15448_v13 = vld [vmem:[#allocation8 + $0xfac] ss:$16 sps:$4 sm:$0xff]   ;;  %v15443_v15 = vld [vmem:[#allocation8 + $0xfa0] ss:$16 sps:$4 sm:$0xff]  }
 0x26d   :  { %3617 = vmatpush1.bf16.msra.mxu0 %v15351_v16  ;;  %3945 = vmatpush1.bf16.msra.mxu1 %v15354_v18  ;;  %v15446_v16 = vld [vmem:[#allocation8 + $0xfa8] ss:$16 sps:$4 sm:$0xff]   ;;  %v15451_v18 = vld [vmem:[#allocation8 + $0xfc4] ss:$16 sps:$4 sm:$0xff]  }
 0x26e   :  { %3618 = vmatprep.subr.bf16.mxu0 %v15359_v20  ;;  %3946 = vmatprep.subr.bf16.mxu1 %v15362_v11  ;;  %v15454_v20 = vld [vmem:[#allocation8 + $0xfcc] ss:$16 sps:$4 sm:$0xff]   ;;  %v15449_v11 = vld [vmem:[#allocation8 + $0xfc0] ss:$16 sps:$4 sm:$0xff]  }
 0x271   :  { %3619 = vmatpush1.bf16.msra.mxu0 %v15357_v21  ;;  %3947 = vmatpush1.bf16.msra.mxu1 %v15360_v22  ;;  %v15452_v21 = vld [vmem:[#allocation8 + $0xfc8] ss:$16 sps:$4 sm:$0xff]   ;;  %v15457_v22 = vld [vmem:[#allocation8 + $0xfe4] ss:$16 sps:$4 sm:$0xff]  }
 0x272   :  { %3629 = vmatprep.subr.bf16.mxu0 %v15367_v14  ;;  %3957 = vmatprep.subr.bf16.mxu1 %v15370_v23  ;;  %v15460_v14 = vld [vmem:[#allocation8 + $0xfec] ss:$16 sps:$4 sm:$0xff]   ;;  %v15455_v23 = vld [vmem:[#allocation8 + $0xfe0] ss:$16 sps:$4 sm:$0xff]  }
 0x274   :  { %3621 = vmatmul.mubr.bf16.vlgmr.msra.gmra.mrb[0].mxu0 %v12685_v17  ;;  %3949 = vmatmul.mubr.bf16.vlgmr.msra.gmra.mrb[0].mxu1 %v12685_v17  ;;  %v15458_v17 = vld [vmem:[#allocation8 + $0xfe8] ss:$16 sps:$4 sm:$0xff]  }
 0x275   :  { %3630 = vmatpush1.bf16.msra.mxu0 %v15365_v26  ;;  %3958 = vmatpush1.bf16.msra.mxu1 %v15368_v27  ;;  %v15465_v26 = vld [vmem:[#allocation10 + $0x4] ss:$16 sps:$4 sm:$0xff]   ;;  %v15468_v27 = vld [vmem:[#allocation10 + $0xc] ss:$16 sps:$4 sm:$0xff]  }
 0x276   :  { %3631 = vmatprep.subr.bf16.mxu0 %v15373_v28  ;;  %3959 = vmatprep.subr.bf16.mxu1 %v15376_v19  ;;  %v17642_v28 = vld [vmem:[#allocation5] sm:$0xff]  ;;  %v12687_v19 = vcombine.low %v17636_v25, %v17636_v25 }
 0x277   :  { %3661 = vmatprep.mubr.bf16.mxu0 %v12688_v29  ;;  %3989 = vmatprep.mubr.bf16.mxu1 %v12688_v29  ;;  %v15463_v29 = vld [vmem:[#allocation10] ss:$16 sps:$4 sm:$0xff]   ;;  %v15477_v25 = vld [vmem:[#allocation10 + $0x44] ss:$16 sps:$4 sm:$0xff]  }
 0x279   :  { %3632 = vmatpush1.bf16.msra.mxu0 %v15371_v30  ;;  %3960 = vmatpush1.bf16.msra.mxu1 %v15374_v31  ;;  %v15466_v30 = vld [vmem:[#allocation10 + $0x8] ss:$16 sps:$4 sm:$0xff]   ;;  %v15471_v31 = vld [vmem:[#allocation10 + $0x24] ss:$16 sps:$4 sm:$0xff]  }
 0x27a   :  { %3633 = vmatprep.subr.bf16.mxu0 %v15379_v24  ;;  %3961 = vmatprep.subr.bf16.mxu1 %v15382_v32  ;;  %v15474_v24 = vld [vmem:[#allocation10 + $0x2c] ss:$16 sps:$4 sm:$0xff]   ;;  %v13202_v32 = vcombine.high %v17642_v28, %v17642_v28 }
 0x27d   :  { %3634 = vmatpush1.bf16.msra.mxu0 %v15377_v33  ;;  %3962 = vmatpush1.bf16.msra.mxu1 %v15380_v34  ;;  %v15469_v33 = vld [vmem:[#allocation10 + $0x20] ss:$16 sps:$4 sm:$0xff]   ;;  %v15472_v34 = vld [vmem:[#allocation10 + $0x28] ss:$16 sps:$4 sm:$0xff]  }
 0x27e   :  { %3635 = vmatprep.subr.bf16.mxu0 %v15385_v35  ;;  %3963 = vmatprep.subr.bf16.mxu1 %v15388_v36  ;;  %v15480_v35 = vld [vmem:[#allocation10 + $0x4c] ss:$16 sps:$4 sm:$0xff]   ;;  %v15475_v36 = vld [vmem:[#allocation10 + $0x40] ss:$16 sps:$4 sm:$0xff]  }
 0x281   :  { %3636 = vmatpush1.bf16.msra.mxu0 %v15383_v37  ;;  %3964 = vmatpush1.bf16.msra.mxu1 %v15386_v38  ;;  %v15478_v37 = vld [vmem:[#allocation10 + $0x48] ss:$16 sps:$4 sm:$0xff]   ;;  %v15483_v38 = vld [vmem:[#allocation10 + $0x64] ss:$16 sps:$4 sm:$0xff]  }
 0x282   :  { %3637 = vmatprep.subr.bf16.mxu0 %v15391_v39  ;;  %3965 = vmatprep.subr.bf16.mxu1 %v15394_v40  ;;  %v15486_v39 = vld [vmem:[#allocation10 + $0x6c] ss:$16 sps:$4 sm:$0xff]   ;;  %v15481_v40 = vld [vmem:[#allocation10 + $0x60] ss:$16 sps:$4 sm:$0xff]  }
 0x285   :  { %3638 = vmatpush1.bf16.msra.mxu0 %v15389_v41  ;;  %3966 = vmatpush1.bf16.msra.mxu1 %v15392_v42  ;;  %v15484_v41 = vld [vmem:[#allocation10 + $0x68] ss:$16 sps:$4 sm:$0xff]   ;;  %v15489_v42 = vld [vmem:[#allocation10 + $0x84] ss:$16 sps:$4 sm:$0xff]  }
 0x286   :  { %3639 = vmatprep.subr.bf16.mxu0 %v15397_v43  ;;  %3967 = vmatprep.subr.bf16.mxu1 %v15400_v44  ;;  %v15492_v43 = vld [vmem:[#allocation10 + $0x8c] ss:$16 sps:$4 sm:$0xff]   ;;  %v15487_v44 = vld [vmem:[#allocation10 + $0x80] ss:$16 sps:$4 sm:$0xff]  }
 0x289   :  { %3640 = vmatpush1.bf16.msra.mxu0 %v15395_v45  ;;  %3968 = vmatpush1.bf16.msra.mxu1 %v15398_v46  ;;  %v15490_v45 = vld [vmem:[#allocation10 + $0x88] ss:$16 sps:$4 sm:$0xff]   ;;  %v15495_v46 = vld [vmem:[#allocation10 + $0xa4] ss:$16 sps:$4 sm:$0xff]  }
 0x28a   :  { %3641 = vmatprep.subr.bf16.mxu0 %v15403_v47  ;;  %3969 = vmatprep.subr.bf16.mxu1 %v15406_v48  ;;  %v15498_v47 = vld [vmem:[#allocation10 + $0xac] ss:$16 sps:$4 sm:$0xff]   ;;  %v15493_v48 = vld [vmem:[#allocation10 + $0xa0] ss:$16 sps:$4 sm:$0xff]  }
 0x28d   :  { %3642 = vmatpush1.bf16.msra.mxu0 %v15401_v49  ;;  %3970 = vmatpush1.bf16.msra.mxu1 %v15404_v50  ;;  %v15496_v49 = vld [vmem:[#allocation10 + $0xa8] ss:$16 sps:$4 sm:$0xff]   ;;  %v15501_v50 = vld [vmem:[#allocation10 + $0xc4] ss:$16 sps:$4 sm:$0xff]  }
 0x28e   :  { %3643 = vmatprep.subr.bf16.mxu0 %v15409_v51  ;;  %3971 = vmatprep.subr.bf16.mxu1 %v15412_v52  ;;  %v15504_v51 = vld [vmem:[#allocation10 + $0xcc] ss:$16 sps:$4 sm:$0xff]   ;;  %v15499_v52 = vld [vmem:[#allocation10 + $0xc0] ss:$16 sps:$4 sm:$0xff]  }
 0x291   :  { %3644 = vmatpush1.bf16.msra.mxu0 %v15407_v53  ;;  %3972 = vmatpush1.bf16.msra.mxu1 %v15410_v54  ;;  %v15502_v53 = vld [vmem:[#allocation10 + $0xc8] ss:$16 sps:$4 sm:$0xff]   ;;  %v15507_v54 = vld [vmem:[#allocation10 + $0xe4] ss:$16 sps:$4 sm:$0xff]  }
 0x292   :  { %3645 = vmatprep.subr.bf16.mxu0 %v15415_v55  ;;  %3973 = vmatprep.subr.bf16.mxu1 %v15418_v56  ;;  %v15510_v55 = vld [vmem:[#allocation10 + $0xec] ss:$16 sps:$4 sm:$0xff]   ;;  %v15505_v56 = vld [vmem:[#allocation10 + $0xe0] ss:$16 sps:$4 sm:$0xff]  }
 0x295   :  { %3646 = vmatpush1.bf16.msra.mxu0 %v15413_v57  ;;  %3974 = vmatpush1.bf16.msra.mxu1 %v15416_v58  ;;  %v15508_v57 = vld [vmem:[#allocation10 + $0xe8] ss:$16 sps:$4 sm:$0xff]   ;;  %v15513_v58 = vld [vmem:[#allocation10 + $0x104] ss:$16 sps:$4 sm:$0xff]  }
 0x296   :  { %3647 = vmatprep.subr.bf16.mxu0 %v15421_v59  ;;  %3975 = vmatprep.subr.bf16.mxu1 %v15424_v60  ;;  %v15516_v59 = vld [vmem:[#allocation10 + $0x10c] ss:$16 sps:$4 sm:$0xff]   ;;  %v15511_v60 = vld [vmem:[#allocation10 + $0x100] ss:$16 sps:$4 sm:$0xff]  }
 0x299   :  { %3648 = vmatpush1.bf16.msra.mxu0 %v15419_v61  ;;  %3976 = vmatpush1.bf16.msra.mxu1 %v15422_v62  ;;  %v15514_v61 = vld [vmem:[#allocation10 + $0x108] ss:$16 sps:$4 sm:$0xff]   ;;  %v15519_v62 = vld [vmem:[#allocation10 + $0x124] ss:$16 sps:$4 sm:$0xff]  }
 0x29a   :  { %3649 = vmatprep.subr.bf16.mxu0 %v15427_v63  ;;  %3977 = vmatprep.subr.bf16.mxu1 %v15430_v0  ;;  %v15522_v63 = vld [vmem:[#allocation10 + $0x12c] ss:$16 sps:$4 sm:$0xff]   ;;  %v15517_v0 = vld [vmem:[#allocation10 + $0x120] ss:$16 sps:$4 sm:$0xff]  }
 0x29d   :  { %3650 = vmatpush1.bf16.msra.mxu0 %v15425_v1  ;;  %3978 = vmatpush1.bf16.msra.mxu1 %v15428_v2  ;;  %v15520_v1 = vld [vmem:[#allocation10 + $0x128] ss:$16 sps:$4 sm:$0xff]   ;;  %v15525_v2 = vld [vmem:[#allocation10 + $0x144] ss:$16 sps:$4 sm:$0xff]  }
 0x29e   :  { %3651 = vmatprep.subr.bf16.mxu0 %v15433_v3  ;;  %3979 = vmatprep.subr.bf16.mxu1 %v15436_v4  ;;  %v15528_v3 = vld [vmem:[#allocation10 + $0x14c] ss:$16 sps:$4 sm:$0xff]   ;;  %v15523_v4 = vld [vmem:[#allocation10 + $0x140] ss:$16 sps:$4 sm:$0xff]  }
 0x2a1   :  { %3652 = vmatpush1.bf16.msra.mxu0 %v15431_v5  ;;  %3980 = vmatpush1.bf16.msra.mxu1 %v15434_v6  ;;  %v15526_v5 = vld [vmem:[#allocation10 + $0x148] ss:$16 sps:$4 sm:$0xff]   ;;  %v15531_v6 = vld [vmem:[#allocation10 + $0x164] ss:$16 sps:$4 sm:$0xff]  }
 0x2a2   :  { %3653 = vmatprep.subr.bf16.mxu0 %v15439_v7  ;;  %3981 = vmatprep.subr.bf16.mxu1 %v15442_v8  ;;  %v15534_v7 = vld [vmem:[#allocation10 + $0x16c] ss:$16 sps:$4 sm:$0xff]   ;;  %v15529_v8 = vld [vmem:[#allocation10 + $0x160] ss:$16 sps:$4 sm:$0xff]  }
 0x2a5   :  { %3654 = vmatpush1.bf16.msra.mxu0 %v15437_v9  ;;  %3982 = vmatpush1.bf16.msra.mxu1 %v15440_v10  ;;  %v15532_v9 = vld [vmem:[#allocation10 + $0x168] ss:$16 sps:$4 sm:$0xff]   ;;  %v15537_v10 = vld [vmem:[#allocation10 + $0x184] ss:$16 sps:$4 sm:$0xff]  }
 0x2a6   :  { %3655 = vmatprep.subr.bf16.mxu0 %v15445_v12  ;;  %3983 = vmatprep.subr.bf16.mxu1 %v15448_v13  ;;  %v15540_v12 = vld [vmem:[#allocation10 + $0x18c] ss:$16 sps:$4 sm:$0xff]   ;;  %v15535_v13 = vld [vmem:[#allocation10 + $0x180] ss:$16 sps:$4 sm:$0xff]  }
 0x2a9   :  { %3656 = vmatpush1.bf16.msra.mxu0 %v15443_v15  ;;  %3984 = vmatpush1.bf16.msra.mxu1 %v15446_v16  ;;  %v15538_v15 = vld [vmem:[#allocation10 + $0x188] ss:$16 sps:$4 sm:$0xff]   ;;  %v15543_v16 = vld [vmem:[#allocation10 + $0x1a4] ss:$16 sps:$4 sm:$0xff]  }
 0x2aa   :  { %3657 = vmatprep.subr.bf16.mxu0 %v15451_v18  ;;  %3985 = vmatprep.subr.bf16.mxu1 %v15454_v20  ;;  %v15546_v18 = vld [vmem:[#allocation10 + $0x1ac] ss:$16 sps:$4 sm:$0xff]   ;;  %v15541_v20 = vld [vmem:[#allocation10 + $0x1a0] ss:$16 sps:$4 sm:$0xff]  }
 0x2ad   :  { %3658 = vmatpush1.bf16.msra.mxu0 %v15449_v11  ;;  %3986 = vmatpush1.bf16.msra.mxu1 %v15452_v21  ;;  %v15544_v11 = vld [vmem:[#allocation10 + $0x1a8] ss:$16 sps:$4 sm:$0xff]   ;;  %v15549_v21 = vld [vmem:[#allocation10 + $0x1c4] ss:$16 sps:$4 sm:$0xff]  }
 0x2ae   :  { %3659 = vmatprep.subr.bf16.mxu0 %v15457_v22  ;;  %3987 = vmatprep.subr.bf16.mxu1 %v15460_v14  ;;  %v15552_v22 = vld [vmem:[#allocation10 + $0x1cc] ss:$16 sps:$4 sm:$0xff]   ;;  %v15547_v14 = vld [vmem:[#allocation10 + $0x1c0] ss:$16 sps:$4 sm:$0xff]  }
 0x2b1   :  { %3660 = vmatpush1.bf16.msra.mxu0 %v15455_v23  ;;  %3988 = vmatpush1.bf16.msra.mxu1 %v15458_v17  ;;  %v15550_v23 = vld [vmem:[#allocation10 + $0x1c8] ss:$16 sps:$4 sm:$0xff]   ;;  %v15555_v17 = vld [vmem:[#allocation10 + $0x1e4] ss:$16 sps:$4 sm:$0xff]  }
 0x2b2   :  { %7152 = vmatprep.subr.bf16.mxu0 %v15465_v26  ;;  %7480 = vmatprep.subr.bf16.mxu1 %v15468_v27  ;;  %v15558_v26 = vld [vmem:[#allocation10 + $0x1ec] ss:$16 sps:$4 sm:$0xff]   ;;  %v15553_v27 = vld [vmem:[#allocation10 + $0x1e0] ss:$16 sps:$4 sm:$0xff]  }
 0x2b4   :  { %3662 = vmatmul.mubr.bf16.vlgmr.msra.gmra.mrb[0].mxu0 %v12687_v19  ;;  %3990 = vmatmul.mubr.bf16.vlgmr.msra.gmra.mrb[0].mxu1 %v12687_v19  ;;  %v15556_v19 = vld [vmem:[#allocation10 + $0x1e8] ss:$16 sps:$4 sm:$0xff]  }
 0x2b5   :  { %7153 = vmatpush1.bf16.msra.mxu0 %v15463_v29  ;;  %7481 = vmatpush1.bf16.msra.mxu1 %v15466_v30  ;;  %v15563_v29 = vld [vmem:[#allocation10 + $0x204] ss:$16 sps:$4 sm:$0xff]   ;;  %v15566_v30 = vld [vmem:[#allocation10 + $0x20c] ss:$16 sps:$4 sm:$0xff]  }
 0x2b6   :  { %7154 = vmatprep.subr.bf16.mxu0 %v15471_v31  ;;  %7482 = vmatprep.subr.bf16.mxu1 %v15474_v24  ;;  %v17648_v31 = vld [vmem:[#allocation5 + $0x8] sm:$0xff]  ;;  %v13201_v24 = vcombine.low %v17642_v28, %v17642_v28  ;;  %v15575_v28 = vld [vmem:[#allocation10 + $0x244] ss:$16 sps:$4 sm:$0xff]  }
 0x2b7   :  { %7184 = vmatprep.mubr.bf16.mxu0 %v13202_v32  ;;  %7512 = vmatprep.mubr.bf16.mxu1 %v13202_v32  ;;  %v15561_v32 = vld [vmem:[#allocation10 + $0x200] ss:$16 sps:$4 sm:$0xff]  }
 0x2b9   :  { %7155 = vmatpush1.bf16.msra.mxu0 %v15469_v33  ;;  %7483 = vmatpush1.bf16.msra.mxu1 %v15472_v34  ;;  %v15564_v33 = vld [vmem:[#allocation10 + $0x208] ss:$16 sps:$4 sm:$0xff]   ;;  %v15569_v34 = vld [vmem:[#allocation10 + $0x224] ss:$16 sps:$4 sm:$0xff]  }
 0x2ba   :  { %7156 = vmatprep.subr.bf16.mxu0 %v15477_v25  ;;  %7484 = vmatprep.subr.bf16.mxu1 %v15480_v35  ;;  %v15572_v25 = vld [vmem:[#allocation10 + $0x22c] ss:$16 sps:$4 sm:$0xff]   ;;  %v13204_v35 = vcombine.high %v17648_v31, %v17648_v31 }
 0x2bd   :  { %7157 = vmatpush1.bf16.msra.mxu0 %v15475_v36  ;;  %7485 = vmatpush1.bf16.msra.mxu1 %v15478_v37  ;;  %v15567_v36 = vld [vmem:[#allocation10 + $0x220] ss:$16 sps:$4 sm:$0xff]   ;;  %v15570_v37 = vld [vmem:[#allocation10 + $0x228] ss:$16 sps:$4 sm:$0xff]  }
 0x2be   :  { %7158 = vmatprep.subr.bf16.mxu0 %v15483_v38  ;;  %7486 = vmatprep.subr.bf16.mxu1 %v15486_v39  ;;  %v15578_v38 = vld [vmem:[#allocation10 + $0x24c] ss:$16 sps:$4 sm:$0xff]   ;;  %v15573_v39 = vld [vmem:[#allocation10 + $0x240] ss:$16 sps:$4 sm:$0xff]  }
 0x2c1   :  { %7159 = vmatpush1.bf16.msra.mxu0 %v15481_v40  ;;  %7487 = vmatpush1.bf16.msra.mxu1 %v15484_v41  ;;  %v15576_v40 = vld [vmem:[#allocation10 + $0x248] ss:$16 sps:$4 sm:$0xff]   ;;  %v15581_v41 = vld [vmem:[#allocation10 + $0x264] ss:$16 sps:$4 sm:$0xff]  }
 0x2c2   :  { %7160 = vmatprep.subr.bf16.mxu0 %v15489_v42  ;;  %7488 = vmatprep.subr.bf16.mxu1 %v15492_v43  ;;  %v15584_v42 = vld [vmem:[#allocation10 + $0x26c] ss:$16 sps:$4 sm:$0xff]   ;;  %v15579_v43 = vld [vmem:[#allocation10 + $0x260] ss:$16 sps:$4 sm:$0xff]  }
 0x2c5   :  { %7161 = vmatpush1.bf16.msra.mxu0 %v15487_v44  ;;  %7489 = vmatpush1.bf16.msra.mxu1 %v15490_v45  ;;  %v15582_v44 = vld [vmem:[#allocation10 + $0x268] ss:$16 sps:$4 sm:$0xff]   ;;  %v15587_v45 = vld [vmem:[#allocation10 + $0x284] ss:$16 sps:$4 sm:$0xff]  }
 0x2c6   :  { %7162 = vmatprep.subr.bf16.mxu0 %v15495_v46  ;;  %7490 = vmatprep.subr.bf16.mxu1 %v15498_v47  ;;  %v15590_v46 = vld [vmem:[#allocation10 + $0x28c] ss:$16 sps:$4 sm:$0xff]   ;;  %v15585_v47 = vld [vmem:[#allocation10 + $0x280] ss:$16 sps:$4 sm:$0xff]  }
 0x2c9   :  { %7163 = vmatpush1.bf16.msra.mxu0 %v15493_v48  ;;  %7491 = vmatpush1.bf16.msra.mxu1 %v15496_v49  ;;  %v15588_v48 = vld [vmem:[#allocation10 + $0x288] ss:$16 sps:$4 sm:$0xff]   ;;  %v15593_v49 = vld [vmem:[#allocation10 + $0x2a4] ss:$16 sps:$4 sm:$0xff]  }
 0x2ca   :  { %7164 = vmatprep.subr.bf16.mxu0 %v15501_v50  ;;  %7492 = vmatprep.subr.bf16.mxu1 %v15504_v51  ;;  %v15596_v50 = vld [vmem:[#allocation10 + $0x2ac] ss:$16 sps:$4 sm:$0xff]   ;;  %v15591_v51 = vld [vmem:[#allocation10 + $0x2a0] ss:$16 sps:$4 sm:$0xff]  }
 0x2cd   :  { %7165 = vmatpush1.bf16.msra.mxu0 %v15499_v52  ;;  %7493 = vmatpush1.bf16.msra.mxu1 %v15502_v53  ;;  %v15594_v52 = vld [vmem:[#allocation10 + $0x2a8] ss:$16 sps:$4 sm:$0xff]   ;;  %v15599_v53 = vld [vmem:[#allocation10 + $0x2c4] ss:$16 sps:$4 sm:$0xff]  }
 0x2ce   :  { %7166 = vmatprep.subr.bf16.mxu0 %v15507_v54  ;;  %7494 = vmatprep.subr.bf16.mxu1 %v15510_v55  ;;  %v15602_v54 = vld [vmem:[#allocation10 + $0x2cc] ss:$16 sps:$4 sm:$0xff]   ;;  %v15597_v55 = vld [vmem:[#allocation10 + $0x2c0] ss:$16 sps:$4 sm:$0xff]  }
 0x2d1   :  { %7167 = vmatpush1.bf16.msra.mxu0 %v15505_v56  ;;  %7495 = vmatpush1.bf16.msra.mxu1 %v15508_v57  ;;  %v15600_v56 = vld [vmem:[#allocation10 + $0x2c8] ss:$16 sps:$4 sm:$0xff]   ;;  %v15605_v57 = vld [vmem:[#allocation10 + $0x2e4] ss:$16 sps:$4 sm:$0xff]  }
 0x2d2   :  { %7168 = vmatprep.subr.bf16.mxu0 %v15513_v58  ;;  %7496 = vmatprep.subr.bf16.mxu1 %v15516_v59  ;;  %v15608_v58 = vld [vmem:[#allocation10 + $0x2ec] ss:$16 sps:$4 sm:$0xff]   ;;  %v15603_v59 = vld [vmem:[#allocation10 + $0x2e0] ss:$16 sps:$4 sm:$0xff]  }
 0x2d5   :  { %7169 = vmatpush1.bf16.msra.mxu0 %v15511_v60  ;;  %7497 = vmatpush1.bf16.msra.mxu1 %v15514_v61  ;;  %v15606_v60 = vld [vmem:[#allocation10 + $0x2e8] ss:$16 sps:$4 sm:$0xff]   ;;  %v15611_v61 = vld [vmem:[#allocation10 + $0x304] ss:$16 sps:$4 sm:$0xff]  }
 0x2d6   :  { %7170 = vmatprep.subr.bf16.mxu0 %v15519_v62  ;;  %7498 = vmatprep.subr.bf16.mxu1 %v15522_v63  ;;  %v15614_v62 = vld [vmem:[#allocation10 + $0x30c] ss:$16 sps:$4 sm:$0xff]   ;;  %v15609_v63 = vld [vmem:[#allocation10 + $0x300] ss:$16 sps:$4 sm:$0xff]  }
 0x2d9   :  { %7171 = vmatpush1.bf16.msra.mxu0 %v15517_v0  ;;  %7499 = vmatpush1.bf16.msra.mxu1 %v15520_v1  ;;  %v15612_v0 = vld [vmem:[#allocation10 + $0x308] ss:$16 sps:$4 sm:$0xff]   ;;  %v15617_v1 = vld [vmem:[#allocation10 + $0x324] ss:$16 sps:$4 sm:$0xff]  }
 0x2da   :  { %7172 = vmatprep.subr.bf16.mxu0 %v15525_v2  ;;  %7500 = vmatprep.subr.bf16.mxu1 %v15528_v3  ;;  %v15620_v2 = vld [vmem:[#allocation10 + $0x32c] ss:$16 sps:$4 sm:$0xff]   ;;  %v15615_v3 = vld [vmem:[#allocation10 + $0x320] ss:$16 sps:$4 sm:$0xff]  }
 0x2dd   :  { %7173 = vmatpush1.bf16.msra.mxu0 %v15523_v4  ;;  %7501 = vmatpush1.bf16.msra.mxu1 %v15526_v5  ;;  %v15618_v4 = vld [vmem:[#allocation10 + $0x328] ss:$16 sps:$4 sm:$0xff]   ;;  %v15623_v5 = vld [vmem:[#allocation10 + $0x344] ss:$16 sps:$4 sm:$0xff]  }
 0x2de   :  { %7174 = vmatprep.subr.bf16.mxu0 %v15531_v6  ;;  %7502 = vmatprep.subr.bf16.mxu1 %v15534_v7  ;;  %v15626_v6 = vld [vmem:[#allocation10 + $0x34c] ss:$16 sps:$4 sm:$0xff]   ;;  %v15621_v7 = vld [vmem:[#allocation10 + $0x340] ss:$16 sps:$4 sm:$0xff]  }
 0x2e1   :  { %7175 = vmatpush1.bf16.msra.mxu0 %v15529_v8  ;;  %7503 = vmatpush1.bf16.msra.mxu1 %v15532_v9  ;;  %v15624_v8 = vld [vmem:[#allocation10 + $0x348] ss:$16 sps:$4 sm:$0xff]   ;;  %v15629_v9 = vld [vmem:[#allocation10 + $0x364] ss:$16 sps:$4 sm:$0xff]  }
 0x2e2   :  { %7176 = vmatprep.subr.bf16.mxu0 %v15537_v10  ;;  %7504 = vmatprep.subr.bf16.mxu1 %v15540_v12  ;;  %v15632_v10 = vld [vmem:[#allocation10 + $0x36c] ss:$16 sps:$4 sm:$0xff]   ;;  %v15627_v12 = vld [vmem:[#allocation10 + $0x360] ss:$16 sps:$4 sm:$0xff]  }
 0x2e5   :  { %7177 = vmatpush1.bf16.msra.mxu0 %v15535_v13  ;;  %7505 = vmatpush1.bf16.msra.mxu1 %v15538_v15  ;;  %v15630_v13 = vld [vmem:[#allocation10 + $0x368] ss:$16 sps:$4 sm:$0xff]   ;;  %v15635_v15 = vld [vmem:[#allocation10 + $0x384] ss:$16 sps:$4 sm:$0xff]  }
 0x2e6   :  { %7178 = vmatprep.subr.bf16.mxu0 %v15543_v16  ;;  %7506 = vmatprep.subr.bf16.mxu1 %v15546_v18  ;;  %v15638_v16 = vld [vmem:[#allocation10 + $0x38c] ss:$16 sps:$4 sm:$0xff]   ;;  %v15633_v18 = vld [vmem:[#allocation10 + $0x380] ss:$16 sps:$4 sm:$0xff]  }
 0x2e9   :  { %7179 = vmatpush1.bf16.msra.mxu0 %v15541_v20  ;;  %7507 = vmatpush1.bf16.msra.mxu1 %v15544_v11  ;;  %v15636_v20 = vld [vmem:[#allocation10 + $0x388] ss:$16 sps:$4 sm:$0xff]   ;;  %v15641_v11 = vld [vmem:[#allocation10 + $0x3a4] ss:$16 sps:$4 sm:$0xff]  }
 0x2ea   :  { %7180 = vmatprep.subr.bf16.mxu0 %v15549_v21  ;;  %7508 = vmatprep.subr.bf16.mxu1 %v15552_v22  ;;  %v15644_v21 = vld [vmem:[#allocation10 + $0x3ac] ss:$16 sps:$4 sm:$0xff]   ;;  %v15639_v22 = vld [vmem:[#allocation10 + $0x3a0] ss:$16 sps:$4 sm:$0xff]  }
 0x2ed   :  { %7181 = vmatpush1.bf16.msra.mxu0 %v15547_v14  ;;  %7509 = vmatpush1.bf16.msra.mxu1 %v15550_v23  ;;  %v15642_v14 = vld [vmem:[#allocation10 + $0x3a8] ss:$16 sps:$4 sm:$0xff]   ;;  %v15647_v23 = vld [vmem:[#allocation10 + $0x3c4] ss:$16 sps:$4 sm:$0xff]  }
 0x2ee   :  { %7182 = vmatprep.subr.bf16.mxu0 %v15555_v17  ;;  %7510 = vmatprep.subr.bf16.mxu1 %v15558_v26  ;;  %v15650_v17 = vld [vmem:[#allocation10 + $0x3cc] ss:$16 sps:$4 sm:$0xff]   ;;  %v15645_v26 = vld [vmem:[#allocation10 + $0x3c0] ss:$16 sps:$4 sm:$0xff]  }
 0x2f1   :  { %7183 = vmatpush1.bf16.msra.mxu0 %v15553_v27  ;;  %7511 = vmatpush1.bf16.msra.mxu1 %v15556_v19  ;;  %v15648_v27 = vld [vmem:[#allocation10 + $0x3c8] ss:$16 sps:$4 sm:$0xff]   ;;  %v15653_v19 = vld [vmem:[#allocation10 + $0x3e4] ss:$16 sps:$4 sm:$0xff]  }
 0x2f2   :  { %7193 = vmatprep.subr.bf16.mxu0 %v15563_v29  ;;  %7521 = vmatprep.subr.bf16.mxu1 %v15566_v30  ;;  %v15656_v29 = vld [vmem:[#allocation10 + $0x3ec] ss:$16 sps:$4 sm:$0xff]   ;;  %v15651_v30 = vld [vmem:[#allocation10 + $0x3e0] ss:$16 sps:$4 sm:$0xff]  }
 0x2f4   :  { %7185 = vmatmul.mubr.bf16.vlgmr.msra.gmra.mrb[4].mxu0 %v13201_v24  ;;  %7513 = vmatmul.mubr.bf16.vlgmr.msra.gmra.mrb[4].mxu1 %v13201_v24  ;;  %v15654_v24 = vld [vmem:[#allocation10 + $0x3e8] ss:$16 sps:$4 sm:$0xff]  }
 0x2f5   :  { %7194 = vmatpush1.bf16.msra.mxu0 %v15561_v32  ;;  %7522 = vmatpush1.bf16.msra.mxu1 %v15564_v33  ;;  %v15661_v32 = vld [vmem:[#allocation10 + $0x404] ss:$16 sps:$4 sm:$0xff]   ;;  %v15664_v33 = vld [vmem:[#allocation10 + $0x40c] ss:$16 sps:$4 sm:$0xff]  }
 0x2f6   :  { %7195 = vmatprep.subr.bf16.mxu0 %v15569_v34  ;;  %7523 = vmatprep.subr.bf16.mxu1 %v15572_v25  ;;  %v17654_v34 = vld [vmem:[#allocation5 + $0x10] sm:$0xff]  ;;  %v13203_v25 = vcombine.low %v17648_v31, %v17648_v31 }
 0x2f7   :  { %7225 = vmatprep.mubr.bf16.mxu0 %v13204_v35  ;;  %7553 = vmatprep.mubr.bf16.mxu1 %v13204_v35  ;;  %v15659_v35 = vld [vmem:[#allocation10 + $0x400] ss:$16 sps:$4 sm:$0xff]   ;;  %v15673_v31 = vld [vmem:[#allocation10 + $0x444] ss:$16 sps:$4 sm:$0xff]  }
 0x2f9   :  { %7196 = vmatpush1.bf16.msra.mxu0 %v15567_v36  ;;  %7524 = vmatpush1.bf16.msra.mxu1 %v15570_v37  ;;  %v15662_v36 = vld [vmem:[#allocation10 + $0x408] ss:$16 sps:$4 sm:$0xff]   ;;  %v15667_v37 = vld [vmem:[#allocation10 + $0x424] ss:$16 sps:$4 sm:$0xff]  }
 0x2fa   :  { %7197 = vmatprep.subr.bf16.mxu0 %v15575_v28  ;;  %7525 = vmatprep.subr.bf16.mxu1 %v15578_v38  ;;  %v15670_v28 = vld [vmem:[#allocation10 + $0x42c] ss:$16 sps:$4 sm:$0xff]   ;;  %v13206_v38 = vcombine.high %v17654_v34, %v17654_v34 }
 0x2fd   :  { %7198 = vmatpush1.bf16.msra.mxu0 %v15573_v39  ;;  %7526 = vmatpush1.bf16.msra.mxu1 %v15576_v40  ;;  %v15665_v39 = vld [vmem:[#allocation10 + $0x420] ss:$16 sps:$4 sm:$0xff]   ;;  %v15668_v40 = vld [vmem:[#allocation10 + $0x428] ss:$16 sps:$4 sm:$0xff]  }
 0x2fe   :  { %7199 = vmatprep.subr.bf16.mxu0 %v15581_v41  ;;  %7527 = vmatprep.subr.bf16.mxu1 %v15584_v42  ;;  %v15676_v41 = vld [vmem:[#allocation10 + $0x44c] ss:$16 sps:$4 sm:$0xff]   ;;  %v15671_v42 = vld [vmem:[#allocation10 + $0x440] ss:$16 sps:$4 sm:$0xff]  }
 0x301   :  { %7200 = vmatpush1.bf16.msra.mxu0 %v15579_v43  ;;  %7528 = vmatpush1.bf16.msra.mxu1 %v15582_v44  ;;  %v15674_v43 = vld [vmem:[#allocation10 + $0x448] ss:$16 sps:$4 sm:$0xff]   ;;  %v15679_v44 = vld [vmem:[#allocation10 + $0x464] ss:$16 sps:$4 sm:$0xff]  }
 0x302   :  { %7201 = vmatprep.subr.bf16.mxu0 %v15587_v45  ;;  %7529 = vmatprep.subr.bf16.mxu1 %v15590_v46  ;;  %v15682_v45 = vld [vmem:[#allocation10 + $0x46c] ss:$16 sps:$4 sm:$0xff]   ;;  %v15677_v46 = vld [vmem:[#allocation10 + $0x460] ss:$16 sps:$4 sm:$0xff]  }
 0x305   :  { %7202 = vmatpush1.bf16.msra.mxu0 %v15585_v47  ;;  %7530 = vmatpush1.bf16.msra.mxu1 %v15588_v48  ;;  %v15680_v47 = vld [vmem:[#allocation10 + $0x468] ss:$16 sps:$4 sm:$0xff]   ;;  %v15685_v48 = vld [vmem:[#allocation10 + $0x484] ss:$16 sps:$4 sm:$0xff]  }
 0x306   :  { %7203 = vmatprep.subr.bf16.mxu0 %v15593_v49  ;;  %7531 = vmatprep.subr.bf16.mxu1 %v15596_v50  ;;  %v15688_v49 = vld [vmem:[#allocation10 + $0x48c] ss:$16 sps:$4 sm:$0xff]   ;;  %v15683_v50 = vld [vmem:[#allocation10 + $0x480] ss:$16 sps:$4 sm:$0xff]  }
 0x309   :  { %7204 = vmatpush1.bf16.msra.mxu0 %v15591_v51  ;;  %7532 = vmatpush1.bf16.msra.mxu1 %v15594_v52  ;;  %v15686_v51 = vld [vmem:[#allocation10 + $0x488] ss:$16 sps:$4 sm:$0xff]   ;;  %v15691_v52 = vld [vmem:[#allocation10 + $0x4a4] ss:$16 sps:$4 sm:$0xff]  }
 0x30a   :  { %7205 = vmatprep.subr.bf16.mxu0 %v15599_v53  ;;  %7533 = vmatprep.subr.bf16.mxu1 %v15602_v54  ;;  %v15694_v53 = vld [vmem:[#allocation10 + $0x4ac] ss:$16 sps:$4 sm:$0xff]   ;;  %v15689_v54 = vld [vmem:[#allocation10 + $0x4a0] ss:$16 sps:$4 sm:$0xff]  }
 0x30d   :  { %7206 = vmatpush1.bf16.msra.mxu0 %v15597_v55  ;;  %7534 = vmatpush1.bf16.msra.mxu1 %v15600_v56  ;;  %v15692_v55 = vld [vmem:[#allocation10 + $0x4a8] ss:$16 sps:$4 sm:$0xff]   ;;  %v15697_v56 = vld [vmem:[#allocation10 + $0x4c4] ss:$16 sps:$4 sm:$0xff]  }
 0x30e   :  { %7207 = vmatprep.subr.bf16.mxu0 %v15605_v57  ;;  %7535 = vmatprep.subr.bf16.mxu1 %v15608_v58  ;;  %v15700_v57 = vld [vmem:[#allocation10 + $0x4cc] ss:$16 sps:$4 sm:$0xff]   ;;  %v15695_v58 = vld [vmem:[#allocation10 + $0x4c0] ss:$16 sps:$4 sm:$0xff]  }
 0x311   :  { %7208 = vmatpush1.bf16.msra.mxu0 %v15603_v59  ;;  %7536 = vmatpush1.bf16.msra.mxu1 %v15606_v60  ;;  %v15698_v59 = vld [vmem:[#allocation10 + $0x4c8] ss:$16 sps:$4 sm:$0xff]   ;;  %v15703_v60 = vld [vmem:[#allocation10 + $0x4e4] ss:$16 sps:$4 sm:$0xff]  }
 0x312   :  { %7209 = vmatprep.subr.bf16.mxu0 %v15611_v61  ;;  %7537 = vmatprep.subr.bf16.mxu1 %v15614_v62  ;;  %v15706_v61 = vld [vmem:[#allocation10 + $0x4ec] ss:$16 sps:$4 sm:$0xff]   ;;  %v15701_v62 = vld [vmem:[#allocation10 + $0x4e0] ss:$16 sps:$4 sm:$0xff]  }
 0x315   :  { %7210 = vmatpush1.bf16.msra.mxu0 %v15609_v63  ;;  %7538 = vmatpush1.bf16.msra.mxu1 %v15612_v0  ;;  %v15704_v63 = vld [vmem:[#allocation10 + $0x4e8] ss:$16 sps:$4 sm:$0xff]   ;;  %v15709_v0 = vld [vmem:[#allocation10 + $0x504] ss:$16 sps:$4 sm:$0xff]  }
 0x316   :  { %7211 = vmatprep.subr.bf16.mxu0 %v15617_v1  ;;  %7539 = vmatprep.subr.bf16.mxu1 %v15620_v2  ;;  %v15712_v1 = vld [vmem:[#allocation10 + $0x50c] ss:$16 sps:$4 sm:$0xff]   ;;  %v15707_v2 = vld [vmem:[#allocation10 + $0x500] ss:$16 sps:$4 sm:$0xff]  }
 0x319   :  { %7212 = vmatpush1.bf16.msra.mxu0 %v15615_v3  ;;  %7540 = vmatpush1.bf16.msra.mxu1 %v15618_v4  ;;  %v15710_v3 = vld [vmem:[#allocation10 + $0x508] ss:$16 sps:$4 sm:$0xff]   ;;  %v15715_v4 = vld [vmem:[#allocation10 + $0x524] ss:$16 sps:$4 sm:$0xff]  }
 0x31a   :  { %7213 = vmatprep.subr.bf16.mxu0 %v15623_v5  ;;  %7541 = vmatprep.subr.bf16.mxu1 %v15626_v6  ;;  %v15718_v5 = vld [vmem:[#allocation10 + $0x52c] ss:$16 sps:$4 sm:$0xff]   ;;  %v15713_v6 = vld [vmem:[#allocation10 + $0x520] ss:$16 sps:$4 sm:$0xff]  }
 0x31d   :  { %7214 = vmatpush1.bf16.msra.mxu0 %v15621_v7  ;;  %7542 = vmatpush1.bf16.msra.mxu1 %v15624_v8  ;;  %v15716_v7 = vld [vmem:[#allocation10 + $0x528] ss:$16 sps:$4 sm:$0xff]   ;;  %v15721_v8 = vld [vmem:[#allocation10 + $0x544] ss:$16 sps:$4 sm:$0xff]  }
 0x31e   :  { %7215 = vmatprep.subr.bf16.mxu0 %v15629_v9  ;;  %7543 = vmatprep.subr.bf16.mxu1 %v15632_v10  ;;  %v15724_v9 = vld [vmem:[#allocation10 + $0x54c] ss:$16 sps:$4 sm:$0xff]   ;;  %v15719_v10 = vld [vmem:[#allocation10 + $0x540] ss:$16 sps:$4 sm:$0xff]  }
 0x321   :  { %7216 = vmatpush1.bf16.msra.mxu0 %v15627_v12  ;;  %7544 = vmatpush1.bf16.msra.mxu1 %v15630_v13  ;;  %v15722_v12 = vld [vmem:[#allocation10 + $0x548] ss:$16 sps:$4 sm:$0xff]   ;;  %v15727_v13 = vld [vmem:[#allocation10 + $0x564] ss:$16 sps:$4 sm:$0xff]  }
 0x322   :  { %7217 = vmatprep.subr.bf16.mxu0 %v15635_v15  ;;  %7545 = vmatprep.subr.bf16.mxu1 %v15638_v16  ;;  %v15730_v15 = vld [vmem:[#allocation10 + $0x56c] ss:$16 sps:$4 sm:$0xff]   ;;  %v15725_v16 = vld [vmem:[#allocation10 + $0x560] ss:$16 sps:$4 sm:$0xff]  }
 0x325   :  { %7218 = vmatpush1.bf16.msra.mxu0 %v15633_v18  ;;  %7546 = vmatpush1.bf16.msra.mxu1 %v15636_v20  ;;  %v15728_v18 = vld [vmem:[#allocation10 + $0x568] ss:$16 sps:$4 sm:$0xff]   ;;  %v15733_v20 = vld [vmem:[#allocation10 + $0x584] ss:$16 sps:$4 sm:$0xff]  }
 0x326   :  { %7219 = vmatprep.subr.bf16.mxu0 %v15641_v11  ;;  %7547 = vmatprep.subr.bf16.mxu1 %v15644_v21  ;;  %v15736_v11 = vld [vmem:[#allocation10 + $0x58c] ss:$16 sps:$4 sm:$0xff]   ;;  %v15731_v21 = vld [vmem:[#allocation10 + $0x580] ss:$16 sps:$4 sm:$0xff]  }
 0x329   :  { %7220 = vmatpush1.bf16.msra.mxu0 %v15639_v22  ;;  %7548 = vmatpush1.bf16.msra.mxu1 %v15642_v14  ;;  %v15734_v22 = vld [vmem:[#allocation10 + $0x588] ss:$16 sps:$4 sm:$0xff]   ;;  %v15739_v14 = vld [vmem:[#allocation10 + $0x5a4] ss:$16 sps:$4 sm:$0xff]  }
 0x32a   :  { %7221 = vmatprep.subr.bf16.mxu0 %v15647_v23  ;;  %7549 = vmatprep.subr.bf16.mxu1 %v15650_v17  ;;  %v15742_v23 = vld [vmem:[#allocation10 + $0x5ac] ss:$16 sps:$4 sm:$0xff]   ;;  %v15737_v17 = vld [vmem:[#allocation10 + $0x5a0] ss:$16 sps:$4 sm:$0xff]  }
 0x32d   :  { %7222 = vmatpush1.bf16.msra.mxu0 %v15645_v26  ;;  %7550 = vmatpush1.bf16.msra.mxu1 %v15648_v27  ;;  %v15740_v26 = vld [vmem:[#allocation10 + $0x5a8] ss:$16 sps:$4 sm:$0xff]   ;;  %v15745_v27 = vld [vmem:[#allocation10 + $0x5c4] ss:$16 sps:$4 sm:$0xff]  }
 0x32e   :  { %7223 = vmatprep.subr.bf16.mxu0 %v15653_v19  ;;  %7551 = vmatprep.subr.bf16.mxu1 %v15656_v29  ;;  %v15748_v19 = vld [vmem:[#allocation10 + $0x5cc] ss:$16 sps:$4 sm:$0xff]   ;;  %v15743_v29 = vld [vmem:[#allocation10 + $0x5c0] ss:$16 sps:$4 sm:$0xff]  }
 0x331   :  { %7224 = vmatpush1.bf16.msra.mxu0 %v15651_v30  ;;  %7552 = vmatpush1.bf16.msra.mxu1 %v15654_v24  ;;  %v15746_v30 = vld [vmem:[#allocation10 + $0x5c8] ss:$16 sps:$4 sm:$0xff]   ;;  %v15751_v24 = vld [vmem:[#allocation10 + $0x5e4] ss:$16 sps:$4 sm:$0xff]  }
 0x332   :  { %7234 = vmatprep.subr.bf16.mxu0 %v15661_v32  ;;  %7562 = vmatprep.subr.bf16.mxu1 %v15664_v33  ;;  %v15754_v32 = vld [vmem:[#allocation10 + $0x5ec] ss:$16 sps:$4 sm:$0xff]   ;;  %v15749_v33 = vld [vmem:[#allocation10 + $0x5e0] ss:$16 sps:$4 sm:$0xff]  }
 0x334   :  { %7226 = vmatmul.mubr.bf16.vlgmr.msra.gmra.mrb[4].mxu0 %v13203_v25  ;;  %7554 = vmatmul.mubr.bf16.vlgmr.msra.gmra.mrb[4].mxu1 %v13203_v25  ;;  %v15752_v25 = vld [vmem:[#allocation10 + $0x5e8] ss:$16 sps:$4 sm:$0xff]  }
 0x335   :  { %7235 = vmatpush1.bf16.msra.mxu0 %v15659_v35  ;;  %7563 = vmatpush1.bf16.msra.mxu1 %v15662_v36  ;;  %v15759_v35 = vld [vmem:[#allocation10 + $0x604] ss:$16 sps:$4 sm:$0xff]   ;;  %v15762_v36 = vld [vmem:[#allocation10 + $0x60c] ss:$16 sps:$4 sm:$0xff]  }
 0x336   :  { %7236 = vmatprep.subr.bf16.mxu0 %v15667_v37  ;;  %7564 = vmatprep.subr.bf16.mxu1 %v15670_v28  ;;  %v17660_v37 = vld [vmem:[#allocation5 + $0x18] sm:$0xff]  ;;  %v13205_v28 = vcombine.low %v17654_v34, %v17654_v34  ;;  %v15771_v34 = vld [vmem:[#allocation10 + $0x644] ss:$16 sps:$4 sm:$0xff]  }
 0x337   :  { %7266 = vmatprep.mubr.bf16.mxu0 %v13206_v38  ;;  %7594 = vmatprep.mubr.bf16.mxu1 %v13206_v38  ;;  %v15757_v38 = vld [vmem:[#allocation10 + $0x600] ss:$16 sps:$4 sm:$0xff]  }
 0x339   :  { %7237 = vmatpush1.bf16.msra.mxu0 %v15665_v39  ;;  %7565 = vmatpush1.bf16.msra.mxu1 %v15668_v40  ;;  %v15760_v39 = vld [vmem:[#allocation10 + $0x608] ss:$16 sps:$4 sm:$0xff]   ;;  %v15765_v40 = vld [vmem:[#allocation10 + $0x624] ss:$16 sps:$4 sm:$0xff]  }
 0x33a   :  { %7238 = vmatprep.subr.bf16.mxu0 %v15673_v31  ;;  %7566 = vmatprep.subr.bf16.mxu1 %v15676_v41  ;;  %v15768_v31 = vld [vmem:[#allocation10 + $0x62c] ss:$16 sps:$4 sm:$0xff]   ;;  %v13208_v41 = vcombine.high %v17660_v37, %v17660_v37 }
 0x33d   :  { %7239 = vmatpush1.bf16.msra.mxu0 %v15671_v42  ;;  %7567 = vmatpush1.bf16.msra.mxu1 %v15674_v43  ;;  %v15763_v42 = vld [vmem:[#allocation10 + $0x620] ss:$16 sps:$4 sm:$0xff]   ;;  %v15766_v43 = vld [vmem:[#allocation10 + $0x628] ss:$16 sps:$4 sm:$0xff]  }
 0x33e   :  { %7240 = vmatprep.subr.bf16.mxu0 %v15679_v44  ;;  %7568 = vmatprep.subr.bf16.mxu1 %v15682_v45  ;;  %v15774_v44 = vld [vmem:[#allocation10 + $0x64c] ss:$16 sps:$4 sm:$0xff]   ;;  %v15769_v45 = vld [vmem:[#allocation10 + $0x640] ss:$16 sps:$4 sm:$0xff]  }
 0x341   :  { %7241 = vmatpush1.bf16.msra.mxu0 %v15677_v46  ;;  %7569 = vmatpush1.bf16.msra.mxu1 %v15680_v47  ;;  %v15772_v46 = vld [vmem:[#allocation10 + $0x648] ss:$16 sps:$4 sm:$0xff]   ;;  %v15777_v47 = vld [vmem:[#allocation10 + $0x664] ss:$16 sps:$4 sm:$0xff]  }
 0x342   :  { %7242 = vmatprep.subr.bf16.mxu0 %v15685_v48  ;;  %7570 = vmatprep.subr.bf16.mxu1 %v15688_v49  ;;  %v15780_v48 = vld [vmem:[#allocation10 + $0x66c] ss:$16 sps:$4 sm:$0xff]   ;;  %v15775_v49 = vld [vmem:[#allocation10 + $0x660] ss:$16 sps:$4 sm:$0xff]  }
 0x345   :  { %7243 = vmatpush1.bf16.msra.mxu0 %v15683_v50  ;;  %7571 = vmatpush1.bf16.msra.mxu1 %v15686_v51  ;;  %v15778_v50 = vld [vmem:[#allocation10 + $0x668] ss:$16 sps:$4 sm:$0xff]   ;;  %v15783_v51 = vld [vmem:[#allocation10 + $0x684] ss:$16 sps:$4 sm:$0xff]  }
 0x346   :  { %7244 = vmatprep.subr.bf16.mxu0 %v15691_v52  ;;  %7572 = vmatprep.subr.bf16.mxu1 %v15694_v53  ;;  %v15786_v52 = vld [vmem:[#allocation10 + $0x68c] ss:$16 sps:$4 sm:$0xff]   ;;  %v15781_v53 = vld [vmem:[#allocation10 + $0x680] ss:$16 sps:$4 sm:$0xff]  }
 0x349   :  { %7245 = vmatpush1.bf16.msra.mxu0 %v15689_v54  ;;  %7573 = vmatpush1.bf16.msra.mxu1 %v15692_v55  ;;  %v15784_v54 = vld [vmem:[#allocation10 + $0x688] ss:$16 sps:$4 sm:$0xff]   ;;  %v15789_v55 = vld [vmem:[#allocation10 + $0x6a4] ss:$16 sps:$4 sm:$0xff]  }
 0x34a   :  { %7246 = vmatprep.subr.bf16.mxu0 %v15697_v56  ;;  %7574 = vmatprep.subr.bf16.mxu1 %v15700_v57  ;;  %v15792_v56 = vld [vmem:[#allocation10 + $0x6ac] ss:$16 sps:$4 sm:$0xff]   ;;  %v15787_v57 = vld [vmem:[#allocation10 + $0x6a0] ss:$16 sps:$4 sm:$0xff]  }
 0x34d   :  { %7247 = vmatpush1.bf16.msra.mxu0 %v15695_v58  ;;  %7575 = vmatpush1.bf16.msra.mxu1 %v15698_v59  ;;  %v15790_v58 = vld [vmem:[#allocation10 + $0x6a8] ss:$16 sps:$4 sm:$0xff]   ;;  %v15795_v59 = vld [vmem:[#allocation10 + $0x6c4] ss:$16 sps:$4 sm:$0xff]  }
 0x34e   :  { %7248 = vmatprep.subr.bf16.mxu0 %v15703_v60  ;;  %7576 = vmatprep.subr.bf16.mxu1 %v15706_v61  ;;  %v15798_v60 = vld [vmem:[#allocation10 + $0x6cc] ss:$16 sps:$4 sm:$0xff]  }
 0x351   :  { %7249 = vmatpush1.bf16.msra.mxu0 %v15701_v62  ;;  %7577 = vmatpush1.bf16.msra.mxu1 %v15704_v63 }
 0x352   :  { %7250 = vmatprep.subr.bf16.mxu0 %v15709_v0  ;;  %7578 = vmatprep.subr.bf16.mxu1 %v15712_v1 }
 0x355   :  { %7251 = vmatpush1.bf16.msra.mxu0 %v15707_v2  ;;  %7579 = vmatpush1.bf16.msra.mxu1 %v15710_v3  ;;  %v15793_v3 = vld [vmem:[#allocation10 + $0x6c0] ss:$16 sps:$4 sm:$0xff]  }
 0x356   :  { %7252 = vmatprep.subr.bf16.mxu0 %v15715_v4  ;;  %7580 = vmatprep.subr.bf16.mxu1 %v15718_v5  ;;  %v15796_v4 = vld [vmem:[#allocation10 + $0x6c8] ss:$16 sps:$4 sm:$0xff]  }
 0x359   :  { %7253 = vmatpush1.bf16.msra.mxu0 %v15713_v6  ;;  %7581 = vmatpush1.bf16.msra.mxu1 %v15716_v7  ;;  %v15801_v7 = vld [vmem:[#allocation10 + $0x6e4] ss:$16 sps:$4 sm:$0xff]  }
 0x35a   :  { %7254 = vmatprep.subr.bf16.mxu0 %v15721_v8  ;;  %7582 = vmatprep.subr.bf16.mxu1 %v15724_v9  ;;  %v15804_v8 = vld [vmem:[#allocation10 + $0x6ec] ss:$16 sps:$4 sm:$0xff]   ;;  %v15799_v9 = vld [vmem:[#allocation10 + $0x6e0] ss:$16 sps:$4 sm:$0xff]  }
 0x35d   :  { %7255 = vmatpush1.bf16.msra.mxu0 %v15719_v10  ;;  %7583 = vmatpush1.bf16.msra.mxu1 %v15722_v12  ;;  %v15802_v10 = vld [vmem:[#allocation10 + $0x6e8] ss:$16 sps:$4 sm:$0xff]   ;;  %v15807_v12 = vld [vmem:[#allocation10 + $0x704] ss:$16 sps:$4 sm:$0xff]  }
 0x35e   :  { %7256 = vmatprep.subr.bf16.mxu0 %v15727_v13  ;;  %7584 = vmatprep.subr.bf16.mxu1 %v15730_v15  ;;  %v15810_v13 = vld [vmem:[#allocation10 + $0x70c] ss:$16 sps:$4 sm:$0xff]   ;;  %v15805_v15 = vld [vmem:[#allocation10 + $0x700] ss:$16 sps:$4 sm:$0xff]  }
 0x361   :  { %7257 = vmatpush1.bf16.msra.mxu0 %v15725_v16  ;;  %7585 = vmatpush1.bf16.msra.mxu1 %v15728_v18  ;;  %v15808_v16 = vld [vmem:[#allocation10 + $0x708] ss:$16 sps:$4 sm:$0xff]   ;;  %v15813_v18 = vld [vmem:[#allocation10 + $0x724] ss:$16 sps:$4 sm:$0xff]  }
 0x362   :  { %7258 = vmatprep.subr.bf16.mxu0 %v15733_v20  ;;  %7586 = vmatprep.subr.bf16.mxu1 %v15736_v11  ;;  %v15816_v20 = vld [vmem:[#allocation10 + $0x72c] ss:$16 sps:$4 sm:$0xff]   ;;  %v15811_v11 = vld [vmem:[#allocation10 + $0x720] ss:$16 sps:$4 sm:$0xff]  }
 0x365   :  { %7259 = vmatpush1.bf16.msra.mxu0 %v15731_v21  ;;  %7587 = vmatpush1.bf16.msra.mxu1 %v15734_v22  ;;  %v15814_v21 = vld [vmem:[#allocation10 + $0x728] ss:$16 sps:$4 sm:$0xff]   ;;  %v15819_v22 = vld [vmem:[#allocation10 + $0x744] ss:$16 sps:$4 sm:$0xff]  }
 0x366   :  { %7260 = vmatprep.subr.bf16.mxu0 %v15739_v14  ;;  %7588 = vmatprep.subr.bf16.mxu1 %v15742_v23  ;;  %v15822_v14 = vld [vmem:[#allocation10 + $0x74c] ss:$16 sps:$4 sm:$0xff]   ;;  %v15817_v23 = vld [vmem:[#allocation10 + $0x740] ss:$16 sps:$4 sm:$0xff]  }
 0x369   :  { %7261 = vmatpush1.bf16.msra.mxu0 %v15737_v17  ;;  %7589 = vmatpush1.bf16.msra.mxu1 %v15740_v26  ;;  %v15820_v17 = vld [vmem:[#allocation10 + $0x748] ss:$16 sps:$4 sm:$0xff]   ;;  %v15825_v26 = vld [vmem:[#allocation10 + $0x764] ss:$16 sps:$4 sm:$0xff]  }
 0x36a   :  { %7262 = vmatprep.subr.bf16.mxu0 %v15745_v27  ;;  %7590 = vmatprep.subr.bf16.mxu1 %v15748_v19  ;;  %v15828_v27 = vld [vmem:[#allocation10 + $0x76c] ss:$16 sps:$4 sm:$0xff]   ;;  %v15823_v19 = vld [vmem:[#allocation10 + $0x760] ss:$16 sps:$4 sm:$0xff]  }
 0x36d   :  { %7263 = vmatpush1.bf16.msra.mxu0 %v15743_v29  ;;  %7591 = vmatpush1.bf16.msra.mxu1 %v15746_v30  ;;  %v15826_v29 = vld [vmem:[#allocation10 + $0x768] ss:$16 sps:$4 sm:$0xff]   ;;  %v15831_v30 = vld [vmem:[#allocation10 + $0x784] ss:$16 sps:$4 sm:$0xff]  }
 0x36e   :  { %7264 = vmatprep.subr.bf16.mxu0 %v15751_v24  ;;  %7592 = vmatprep.subr.bf16.mxu1 %v15754_v32  ;;  %v15834_v24 = vld [vmem:[#allocation10 + $0x78c] ss:$16 sps:$4 sm:$0xff]   ;;  %v15829_v32 = vld [vmem:[#allocation10 + $0x780] ss:$16 sps:$4 sm:$0xff]  }
 0x371   :  { %7265 = vmatpush1.bf16.msra.mxu0 %v15749_v33  ;;  %7593 = vmatpush1.bf16.msra.mxu1 %v15752_v25  ;;  %v15832_v33 = vld [vmem:[#allocation10 + $0x788] ss:$16 sps:$4 sm:$0xff]   ;;  %v15837_v25 = vld [vmem:[#allocation10 + $0x7a4] ss:$16 sps:$4 sm:$0xff]  }
 0x372   :  { %7275 = vmatprep.subr.bf16.mxu0 %v15759_v35  ;;  %7603 = vmatprep.subr.bf16.mxu1 %v15762_v36  ;;  %v15840_v35 = vld [vmem:[#allocation10 + $0x7ac] ss:$16 sps:$4 sm:$0xff]   ;;  %v15835_v36 = vld [vmem:[#allocation10 + $0x7a0] ss:$16 sps:$4 sm:$0xff]  }
 0x374   :  { %7267 = vmatmul.mubr.bf16.vlgmr.msra.gmra.mrb[4].mxu0 %v13205_v28  ;;  %7595 = vmatmul.mubr.bf16.vlgmr.msra.gmra.mrb[4].mxu1 %v13205_v28  ;;  %v15838_v28 = vld [vmem:[#allocation10 + $0x7a8] ss:$16 sps:$4 sm:$0xff]  }
 0x375   :  { %7276 = vmatpush1.bf16.msra.mxu0 %v15757_v38  ;;  %7604 = vmatpush1.bf16.msra.mxu1 %v15760_v39  ;;  %v15843_v38 = vld [vmem:[#allocation10 + $0x7c4] ss:$16 sps:$4 sm:$0xff]   ;;  %v15846_v39 = vld [vmem:[#allocation10 + $0x7cc] ss:$16 sps:$4 sm:$0xff]  }
 0x376   :  { %7277 = vmatprep.subr.bf16.mxu0 %v15765_v40  ;;  %7605 = vmatprep.subr.bf16.mxu1 %v15768_v31  ;;  %v15841_v40 = vld [vmem:[#allocation10 + $0x7c0] ss:$16 sps:$4 sm:$0xff]   ;;  %v15844_v31 = vld [vmem:[#allocation10 + $0x7c8] ss:$16 sps:$4 sm:$0xff]  }
 0x377   :  { %7307 = vmatprep.mubr.bf16.mxu0 %v13208_v41  ;;  %7635 = vmatprep.mubr.bf16.mxu1 %v13208_v41  ;;  %v15849_v41 = vld [vmem:[#allocation10 + $0x7e4] ss:$16 sps:$4 sm:$0xff]  }
 0x379   :  { %7278 = vmatpush1.bf16.msra.mxu0 %v15763_v42  ;;  %7606 = vmatpush1.bf16.msra.mxu1 %v15766_v43  ;;  %v15852_v42 = vld [vmem:[#allocation10 + $0x7ec] ss:$16 sps:$4 sm:$0xff]   ;;  %v15847_v43 = vld [vmem:[#allocation10 + $0x7e0] ss:$16 sps:$4 sm:$0xff]  }
 0x37a   :  { %7279 = vmatprep.subr.bf16.mxu0 %v15771_v34  ;;  %7607 = vmatprep.subr.bf16.mxu1 %v15774_v44  ;;  %v15850_v34 = vld [vmem:[#allocation10 + $0x7e8] ss:$16 sps:$4 sm:$0xff]   ;;  %v15857_v44 = vld [vmem:[#allocation10 + $0x804] ss:$16 sps:$4 sm:$0xff]  }
 0x37d   :  { %7280 = vmatpush1.bf16.msra.mxu0 %v15769_v45  ;;  %7608 = vmatpush1.bf16.msra.mxu1 %v15772_v46  ;;  %v15860_v45 = vld [vmem:[#allocation10 + $0x80c] ss:$16 sps:$4 sm:$0xff]   ;;  %v17674_v46 = vld [vmem:[#allocation5 + $0x20] sm:$0xff] }
 0x37e   :  { %7281 = vmatprep.subr.bf16.mxu0 %v15777_v47  ;;  %7609 = vmatprep.subr.bf16.mxu1 %v15780_v48  ;;  %v13207_v47 = vcombine.low %v17660_v37, %v17660_v37  ;;  %v15855_v48 = vld [vmem:[#allocation10 + $0x800] ss:$16 sps:$4 sm:$0xff]   ;;  %v15869_v37 = vld [vmem:[#allocation10 + $0x844] ss:$16 sps:$4 sm:$0xff]  }
 0x381   :  { %7282 = vmatpush1.bf16.msra.mxu0 %v15775_v49  ;;  %7610 = vmatpush1.bf16.msra.mxu1 %v15778_v50  ;;  %v15858_v49 = vld [vmem:[#allocation10 + $0x808] ss:$16 sps:$4 sm:$0xff]   ;;  %v15863_v50 = vld [vmem:[#allocation10 + $0x824] ss:$16 sps:$4 sm:$0xff]  }
 0x382   :  { %7283 = vmatprep.subr.bf16.mxu0 %v15783_v51  ;;  %7611 = vmatprep.subr.bf16.mxu1 %v15786_v52  ;;  %v15866_v51 = vld [vmem:[#allocation10 + $0x82c] ss:$16 sps:$4 sm:$0xff]   ;;  %v13210_v52 = vcombine.high %v17674_v46, %v17674_v46 }
 0x385   :  { %7284 = vmatpush1.bf16.msra.mxu0 %v15781_v53  ;;  %7612 = vmatpush1.bf16.msra.mxu1 %v15784_v54  ;;  %v15861_v53 = vld [vmem:[#allocation10 + $0x820] ss:$16 sps:$4 sm:$0xff]   ;;  %v15864_v54 = vld [vmem:[#allocation10 + $0x828] ss:$16 sps:$4 sm:$0xff]  }
 0x386   :  { %7285 = vmatprep.subr.bf16.mxu0 %v15789_v55  ;;  %7613 = vmatprep.subr.bf16.mxu1 %v15792_v56  ;;  %v15872_v55 = vld [vmem:[#allocation10 + $0x84c] ss:$16 sps:$4 sm:$0xff]   ;;  %v15867_v56 = vld [vmem:[#allocation10 + $0x840] ss:$16 sps:$4 sm:$0xff]  }
 0x387   :  { %v17666_v61 = vpop.f32.mrb[0].mxu0  ;;  %v17668_v62 = vpop.f32.mrb[0].mxu1 }
 0x388   :  { %v17670_v63 = vpop.f32.mrb[1].mxu0  ;;  %v17672_v0 = vpop.f32.mrb[1].mxu1 }
 0x389   :  { %v3667_v1 = vpop.f32.mrb[2].mxu0  ;;  %v3995_v2 = vpop.f32.mrb[2].mxu1  ;;  %7286 = vmatpush1.bf16.msra.mxu0 %v15787_v57  ;;  %7614 = vmatpush1.bf16.msra.mxu1 %v15790_v58  ;;  %v15870_v57 = vld [vmem:[#allocation10 + $0x848] ss:$16 sps:$4 sm:$0xff]   ;;  %v15875_v58 = vld [vmem:[#allocation10 + $0x864] ss:$16 sps:$4 sm:$0xff]  }
 0x38a   :  { %v3668_v5 = vpop.f32.mrb[3].mxu0  ;;  %v3996_v6 = vpop.f32.mrb[3].mxu1  ;;  %7287 = vmatprep.subr.bf16.mxu0 %v15795_v59  ;;  %7615 = vmatprep.subr.bf16.mxu1 %v15798_v60  ;;  %v15878_v59 = vld [vmem:[#allocation10 + $0x86c] ss:$16 sps:$4 sm:$0xff]   ;;  %v15873_v60 = vld [vmem:[#allocation10 + $0x860] ss:$16 sps:$4 sm:$0xff]  }
 0x38b   :  { %v15876_v1 = vld [vmem:[#allocation10 + $0x868] ss:$16 sps:$4 sm:$0xff]   ;;  %v15881_v2 = vld [vmem:[#allocation10 + $0x884] ss:$16 sps:$4 sm:$0xff]  }
 0x38c   :  { %v15882_v5 = vld [vmem:[#allocation10 + $0x888] ss:$16 sps:$4 sm:$0xff]   ;;  %v15887_v6 = vld [vmem:[#allocation10 + $0x8a4] ss:$16 sps:$4 sm:$0xff]  }
 0x38d   :  { %7288 = vmatpush1.bf16.msra.mxu0 %v15793_v3  ;;  %7616 = vmatpush1.bf16.msra.mxu1 %v15796_v4  ;;  %v15884_v3 = vld [vmem:[#allocation10 + $0x88c] ss:$16 sps:$4 sm:$0xff]   ;;  %v15879_v4 = vld [vmem:[#allocation10 + $0x880] ss:$16 sps:$4 sm:$0xff]  }
 0x38e   :  { %7289 = vmatprep.subr.bf16.mxu0 %v15801_v7  ;;  %7617 = vmatprep.subr.bf16.mxu1 %v15804_v8  ;;  %v15890_v7 = vld [vmem:[#allocation10 + $0x8ac] ss:$16 sps:$4 sm:$0xff]   ;;  %v15885_v8 = vld [vmem:[#allocation10 + $0x8a0] ss:$16 sps:$4 sm:$0xff]  }
 0x391   :  { %7290 = vmatpush1.bf16.msra.mxu0 %v15799_v9  ;;  %7618 = vmatpush1.bf16.msra.mxu1 %v15802_v10  ;;  %v15888_v9 = vld [vmem:[#allocation10 + $0x8a8] ss:$16 sps:$4 sm:$0xff]   ;;  %v15893_v10 = vld [vmem:[#allocation10 + $0x8c4] ss:$16 sps:$4 sm:$0xff]  }
 0x392   :  { %7291 = vmatprep.subr.bf16.mxu0 %v15807_v12  ;;  %7619 = vmatprep.subr.bf16.mxu1 %v15810_v13  ;;  %v15896_v12 = vld [vmem:[#allocation10 + $0x8cc] ss:$16 sps:$4 sm:$0xff]   ;;  %v15891_v13 = vld [vmem:[#allocation10 + $0x8c0] ss:$16 sps:$4 sm:$0xff]  }
 0x395   :  { %7292 = vmatpush1.bf16.msra.mxu0 %v15805_v15  ;;  %7620 = vmatpush1.bf16.msra.mxu1 %v15808_v16  ;;  %v15894_v15 = vld [vmem:[#allocation10 + $0x8c8] ss:$16 sps:$4 sm:$0xff]   ;;  %v15899_v16 = vld [vmem:[#allocation10 + $0x8e4] ss:$16 sps:$4 sm:$0xff]  }
 0x396   :  { %7293 = vmatprep.subr.bf16.mxu0 %v15813_v18  ;;  %7621 = vmatprep.subr.bf16.mxu1 %v15816_v20  ;;  %v15902_v18 = vld [vmem:[#allocation10 + $0x8ec] ss:$16 sps:$4 sm:$0xff]   ;;  %v15897_v20 = vld [vmem:[#allocation10 + $0x8e0] ss:$16 sps:$4 sm:$0xff]  }
 0x399   :  { %7294 = vmatpush1.bf16.msra.mxu0 %v15811_v11  ;;  %7622 = vmatpush1.bf16.msra.mxu1 %v15814_v21  ;;  %v15900_v11 = vld [vmem:[#allocation10 + $0x8e8] ss:$16 sps:$4 sm:$0xff]   ;;  %v15905_v21 = vld [vmem:[#allocation10 + $0x904] ss:$16 sps:$4 sm:$0xff]  }
 0x39a   :  { %7295 = vmatprep.subr.bf16.mxu0 %v15819_v22  ;;  %7623 = vmatprep.subr.bf16.mxu1 %v15822_v14  ;;  %v15908_v22 = vld [vmem:[#allocation10 + $0x90c] ss:$16 sps:$4 sm:$0xff]   ;;  %v15903_v14 = vld [vmem:[#allocation10 + $0x900] ss:$16 sps:$4 sm:$0xff]  }
 0x39d   :  { %7296 = vmatpush1.bf16.msra.mxu0 %v15817_v23  ;;  %7624 = vmatpush1.bf16.msra.mxu1 %v15820_v17  ;;  %v15906_v23 = vld [vmem:[#allocation10 + $0x908] ss:$16 sps:$4 sm:$0xff]   ;;  %v15911_v17 = vld [vmem:[#allocation10 + $0x924] ss:$16 sps:$4 sm:$0xff]  }
 0x39e   :  { %7297 = vmatprep.subr.bf16.mxu0 %v15825_v26  ;;  %7625 = vmatprep.subr.bf16.mxu1 %v15828_v27  ;;  %v15914_v26 = vld [vmem:[#allocation10 + $0x92c] ss:$16 sps:$4 sm:$0xff]   ;;  %v15909_v27 = vld [vmem:[#allocation10 + $0x920] ss:$16 sps:$4 sm:$0xff]  }
 0x3a1   :  { %7298 = vmatpush1.bf16.msra.mxu0 %v15823_v19  ;;  %7626 = vmatpush1.bf16.msra.mxu1 %v15826_v29  ;;  %v15912_v19 = vld [vmem:[#allocation10 + $0x928] ss:$16 sps:$4 sm:$0xff]   ;;  %v15917_v29 = vld [vmem:[#allocation10 + $0x944] ss:$16 sps:$4 sm:$0xff]  }
 0x3a2   :  { %7299 = vmatprep.subr.bf16.mxu0 %v15831_v30  ;;  %7627 = vmatprep.subr.bf16.mxu1 %v15834_v24  ;;  %v15920_v30 = vld [vmem:[#allocation10 + $0x94c] ss:$16 sps:$4 sm:$0xff]   ;;  %v15915_v24 = vld [vmem:[#allocation10 + $0x940] ss:$16 sps:$4 sm:$0xff]  }
 0x3a5   :  { %7300 = vmatpush1.bf16.msra.mxu0 %v15829_v32  ;;  %7628 = vmatpush1.bf16.msra.mxu1 %v15832_v33  ;;  %v15918_v32 = vld [vmem:[#allocation10 + $0x948] ss:$16 sps:$4 sm:$0xff]   ;;  %v15923_v33 = vld [vmem:[#allocation10 + $0x964] ss:$16 sps:$4 sm:$0xff]  }
 0x3a6   :  { %7301 = vmatprep.subr.bf16.mxu0 %v15837_v25  ;;  %7629 = vmatprep.subr.bf16.mxu1 %v15840_v35  ;;  %v15926_v25 = vld [vmem:[#allocation10 + $0x96c] ss:$16 sps:$4 sm:$0xff]   ;;  %v15921_v35 = vld [vmem:[#allocation10 + $0x960] ss:$16 sps:$4 sm:$0xff]  }
 0x3a9   :  { %7302 = vmatpush1.bf16.msra.mxu0 %v15835_v36  ;;  %7630 = vmatpush1.bf16.msra.mxu1 %v15838_v28  ;;  %v15924_v36 = vld [vmem:[#allocation10 + $0x968] ss:$16 sps:$4 sm:$0xff]   ;;  %v15929_v28 = vld [vmem:[#allocation10 + $0x984] ss:$16 sps:$4 sm:$0xff]  }
 0x3aa   :  { %7303 = vmatprep.subr.bf16.mxu0 %v15843_v38  ;;  %7631 = vmatprep.subr.bf16.mxu1 %v15846_v39  ;;  %v15932_v38 = vld [vmem:[#allocation10 + $0x98c] ss:$16 sps:$4 sm:$0xff]   ;;  %v15927_v39 = vld [vmem:[#allocation10 + $0x980] ss:$16 sps:$4 sm:$0xff]  }
 0x3ad   :  { %7304 = vmatpush1.bf16.msra.mxu0 %v15841_v40  ;;  %7632 = vmatpush1.bf16.msra.mxu1 %v15844_v31  ;;  %v15930_v40 = vld [vmem:[#allocation10 + $0x988] ss:$16 sps:$4 sm:$0xff]   ;;  %v15935_v31 = vld [vmem:[#allocation10 + $0x9a4] ss:$16 sps:$4 sm:$0xff]  }
 0x3ae   :  { %7305 = vmatprep.subr.bf16.mxu0 %v15849_v41  ;;  %7633 = vmatprep.subr.bf16.mxu1 %v15852_v42  ;;  %v15938_v41 = vld [vmem:[#allocation10 + $0x9ac] ss:$16 sps:$4 sm:$0xff]   ;;  %v15933_v42 = vld [vmem:[#allocation10 + $0x9a0] ss:$16 sps:$4 sm:$0xff]  }
 0x3b1   :  { %7306 = vmatpush1.bf16.msra.mxu0 %v15847_v43  ;;  %7634 = vmatpush1.bf16.msra.mxu1 %v15850_v34  ;;  %v15936_v43 = vld [vmem:[#allocation10 + $0x9a8] ss:$16 sps:$4 sm:$0xff]   ;;  %v15941_v34 = vld [vmem:[#allocation10 + $0x9c4] ss:$16 sps:$4 sm:$0xff]  }
 0x3b2   :  { %7316 = vmatprep.subr.bf16.mxu0 %v15857_v44  ;;  %7644 = vmatprep.subr.bf16.mxu1 %v15860_v45  ;;  %v15944_v44 = vld [vmem:[#allocation10 + $0x9cc] ss:$16 sps:$4 sm:$0xff]   ;;  %v15939_v45 = vld [vmem:[#allocation10 + $0x9c0] ss:$16 sps:$4 sm:$0xff]  }
 0x3b4   :  { %7308 = vmatmul.mubr.bf16.vlgmr.msra.gmra.mrb[4].mxu0 %v13207_v47  ;;  %7636 = vmatmul.mubr.bf16.vlgmr.msra.gmra.mrb[4].mxu1 %v13207_v47  ;;  %v15942_v47 = vld [vmem:[#allocation10 + $0x9c8] ss:$16 sps:$4 sm:$0xff]  }
 0x3b5   :  { %7317 = vmatpush1.bf16.msra.mxu0 %v15855_v48  ;;  %7645 = vmatpush1.bf16.msra.mxu1 %v15858_v49  ;;  %v15947_v48 = vld [vmem:[#allocation10 + $0x9e4] ss:$16 sps:$4 sm:$0xff]   ;;  %v15950_v49 = vld [vmem:[#allocation10 + $0x9ec] ss:$16 sps:$4 sm:$0xff]  }
 0x3b6   :  { %7318 = vmatprep.subr.bf16.mxu0 %v15863_v50  ;;  %7646 = vmatprep.subr.bf16.mxu1 %v15866_v51  ;;  %v15945_v50 = vld [vmem:[#allocation10 + $0x9e0] ss:$16 sps:$4 sm:$0xff]   ;;  %v15948_v51 = vld [vmem:[#allocation10 + $0x9e8] ss:$16 sps:$4 sm:$0xff]  }
 0x3b7   :  { %7348 = vmatprep.mubr.bf16.mxu0 %v13210_v52  ;;  %7676 = vmatprep.mubr.bf16.mxu1 %v13210_v52  ;;  %v15955_v52 = vld [vmem:[#allocation10 + $0xa04] ss:$16 sps:$4 sm:$0xff]  }
 0x3b9   :  { %7319 = vmatpush1.bf16.msra.mxu0 %v15861_v53  ;;  %7647 = vmatpush1.bf16.msra.mxu1 %v15864_v54  ;;  %v15958_v53 = vld [vmem:[#allocation10 + $0xa0c] ss:$16 sps:$4 sm:$0xff]  }
 0x3ba   :  { %7320 = vmatprep.subr.bf16.mxu0 %v15869_v37  ;;  %7648 = vmatprep.subr.bf16.mxu1 %v15872_v55  ;;  %v17680_v54 = vld [vmem:[#allocation5 + $0x28] sm:$0xff]  ;;  %v13209_v37 = vcombine.low %v17674_v46, %v17674_v46  ;;  %v15953_v55 = vld [vmem:[#allocation10 + $0xa00] ss:$16 sps:$4 sm:$0xff]   ;;  %v15967_v46 = vld [vmem:[#allocation10 + $0xa44] ss:$16 sps:$4 sm:$0xff]  }
 0x3bd   :  { %7321 = vmatpush1.bf16.msra.mxu0 %v15867_v56  ;;  %7649 = vmatpush1.bf16.msra.mxu1 %v15870_v57  ;;  %v15956_v56 = vld [vmem:[#allocation10 + $0xa08] ss:$16 sps:$4 sm:$0xff]   ;;  %v15961_v57 = vld [vmem:[#allocation10 + $0xa24] ss:$16 sps:$4 sm:$0xff]  }
 0x3be   :  { %7322 = vmatprep.subr.bf16.mxu0 %v15875_v58  ;;  %7650 = vmatprep.subr.bf16.mxu1 %v15878_v59  ;;  %v15964_v58 = vld [vmem:[#allocation10 + $0xa2c] ss:$16 sps:$4 sm:$0xff]   ;;  %v13212_v59 = vcombine.high %v17680_v54, %v17680_v54 }
 0x3c1   :  { %7323 = vmatpush1.bf16.msra.mxu0 %v15873_v60  ;;  %7651 = vmatpush1.bf16.msra.mxu1 %v15876_v1  ;;  %v15959_v60 = vld [vmem:[#allocation10 + $0xa20] ss:$16 sps:$4 sm:$0xff]   ;;  %v15962_v1 = vld [vmem:[#allocation10 + $0xa28] ss:$16 sps:$4 sm:$0xff]  }
 0x3c2   :  { %7324 = vmatprep.subr.bf16.mxu0 %v15881_v2  ;;  %7652 = vmatprep.subr.bf16.mxu1 %v15884_v3  ;;  %v15970_v2 = vld [vmem:[#allocation10 + $0xa4c] ss:$16 sps:$4 sm:$0xff]   ;;  %v15965_v3 = vld [vmem:[#allocation10 + $0xa40] ss:$16 sps:$4 sm:$0xff]  }
 0x3c5   :  { %7325 = vmatpush1.bf16.msra.mxu0 %v15879_v4  ;;  %7653 = vmatpush1.bf16.msra.mxu1 %v15882_v5  ;;  %v15968_v4 = vld [vmem:[#allocation10 + $0xa48] ss:$16 sps:$4 sm:$0xff]   ;;  %v15973_v5 = vld [vmem:[#allocation10 + $0xa64] ss:$16 sps:$4 sm:$0xff]  }
 0x3c6   :  { %7326 = vmatprep.subr.bf16.mxu0 %v15887_v6  ;;  %7654 = vmatprep.subr.bf16.mxu1 %v15890_v7  ;;  %v15976_v6 = vld [vmem:[#allocation10 + $0xa6c] ss:$16 sps:$4 sm:$0xff]   ;;  %v15971_v7 = vld [vmem:[#allocation10 + $0xa60] ss:$16 sps:$4 sm:$0xff]  }
 0x3c9   :  { %7327 = vmatpush1.bf16.msra.mxu0 %v15885_v8  ;;  %7655 = vmatpush1.bf16.msra.mxu1 %v15888_v9  ;;  %v15974_v8 = vld [vmem:[#allocation10 + $0xa68] ss:$16 sps:$4 sm:$0xff]   ;;  %v15979_v9 = vld [vmem:[#allocation10 + $0xa84] ss:$16 sps:$4 sm:$0xff]  }
 0x3ca   :  { %7328 = vmatprep.subr.bf16.mxu0 %v15893_v10  ;;  %7656 = vmatprep.subr.bf16.mxu1 %v15896_v12  ;;  %v15982_v10 = vld [vmem:[#allocation10 + $0xa8c] ss:$16 sps:$4 sm:$0xff]   ;;  %v15977_v12 = vld [vmem:[#allocation10 + $0xa80] ss:$16 sps:$4 sm:$0xff]  }
 0x3cd   :  { %7329 = vmatpush1.bf16.msra.mxu0 %v15891_v13  ;;  %7657 = vmatpush1.bf16.msra.mxu1 %v15894_v15  ;;  %v15980_v13 = vld [vmem:[#allocation10 + $0xa88] ss:$16 sps:$4 sm:$0xff]   ;;  %v15985_v15 = vld [vmem:[#allocation10 + $0xaa4] ss:$16 sps:$4 sm:$0xff]  }
 0x3ce   :  { %7330 = vmatprep.subr.bf16.mxu0 %v15899_v16  ;;  %7658 = vmatprep.subr.bf16.mxu1 %v15902_v18  ;;  %v15988_v16 = vld [vmem:[#allocation10 + $0xaac] ss:$16 sps:$4 sm:$0xff]   ;;  %v15983_v18 = vld [vmem:[#allocation10 + $0xaa0] ss:$16 sps:$4 sm:$0xff]  }
 0x3d1   :  { %7331 = vmatpush1.bf16.msra.mxu0 %v15897_v20  ;;  %7659 = vmatpush1.bf16.msra.mxu1 %v15900_v11  ;;  %v15986_v20 = vld [vmem:[#allocation10 + $0xaa8] ss:$16 sps:$4 sm:$0xff]   ;;  %v15991_v11 = vld [vmem:[#allocation10 + $0xac4] ss:$16 sps:$4 sm:$0xff]  }
 0x3d2   :  { %7332 = vmatprep.subr.bf16.mxu0 %v15905_v21  ;;  %7660 = vmatprep.subr.bf16.mxu1 %v15908_v22  ;;  %v15994_v21 = vld [vmem:[#allocation10 + $0xacc] ss:$16 sps:$4 sm:$0xff]   ;;  %v15989_v22 = vld [vmem:[#allocation10 + $0xac0] ss:$16 sps:$4 sm:$0xff]  }
 0x3d5   :  { %7333 = vmatpush1.bf16.msra.mxu0 %v15903_v14  ;;  %7661 = vmatpush1.bf16.msra.mxu1 %v15906_v23  ;;  %v15992_v14 = vld [vmem:[#allocation10 + $0xac8] ss:$16 sps:$4 sm:$0xff]   ;;  %v15997_v23 = vld [vmem:[#allocation10 + $0xae4] ss:$16 sps:$4 sm:$0xff]  }
 0x3d6   :  { %7334 = vmatprep.subr.bf16.mxu0 %v15911_v17  ;;  %7662 = vmatprep.subr.bf16.mxu1 %v15914_v26  ;;  %v16000_v17 = vld [vmem:[#allocation10 + $0xaec] ss:$16 sps:$4 sm:$0xff]   ;;  %v15995_v26 = vld [vmem:[#allocation10 + $0xae0] ss:$16 sps:$4 sm:$0xff]  }
 0x3d9   :  { %7335 = vmatpush1.bf16.msra.mxu0 %v15909_v27  ;;  %7663 = vmatpush1.bf16.msra.mxu1 %v15912_v19  ;;  %v15998_v27 = vld [vmem:[#allocation10 + $0xae8] ss:$16 sps:$4 sm:$0xff]   ;;  %v16003_v19 = vld [vmem:[#allocation10 + $0xb04] ss:$16 sps:$4 sm:$0xff]  }
 0x3da   :  { %7336 = vmatprep.subr.bf16.mxu0 %v15917_v29  ;;  %7664 = vmatprep.subr.bf16.mxu1 %v15920_v30  ;;  %v16006_v29 = vld [vmem:[#allocation10 + $0xb0c] ss:$16 sps:$4 sm:$0xff]   ;;  %v16001_v30 = vld [vmem:[#allocation10 + $0xb00] ss:$16 sps:$4 sm:$0xff]  }
 0x3dd   :  { %7337 = vmatpush1.bf16.msra.mxu0 %v15915_v24  ;;  %7665 = vmatpush1.bf16.msra.mxu1 %v15918_v32  ;;  %v16004_v24 = vld [vmem:[#allocation10 + $0xb08] ss:$16 sps:$4 sm:$0xff]   ;;  %v16009_v32 = vld [vmem:[#allocation10 + $0xb24] ss:$16 sps:$4 sm:$0xff]  }
 0x3de   :  { %7338 = vmatprep.subr.bf16.mxu0 %v15923_v33  ;;  %7666 = vmatprep.subr.bf16.mxu1 %v15926_v25  ;;  %v16012_v33 = vld [vmem:[#allocation10 + $0xb2c] ss:$16 sps:$4 sm:$0xff]   ;;  %v16007_v25 = vld [vmem:[#allocation10 + $0xb20] ss:$16 sps:$4 sm:$0xff]  }
 0x3e1   :  { %7339 = vmatpush1.bf16.msra.mxu0 %v15921_v35  ;;  %7667 = vmatpush1.bf16.msra.mxu1 %v15924_v36  ;;  %v16010_v35 = vld [vmem:[#allocation10 + $0xb28] ss:$16 sps:$4 sm:$0xff]   ;;  %v16015_v36 = vld [vmem:[#allocation10 + $0xb44] ss:$16 sps:$4 sm:$0xff]  }
 0x3e2   :  { %7340 = vmatprep.subr.bf16.mxu0 %v15929_v28  ;;  %7668 = vmatprep.subr.bf16.mxu1 %v15932_v38  ;;  %v16018_v28 = vld [vmem:[#allocation10 + $0xb4c] ss:$16 sps:$4 sm:$0xff]   ;;  %v16013_v38 = vld [vmem:[#allocation10 + $0xb40] ss:$16 sps:$4 sm:$0xff]  }
 0x3e5   :  { %7341 = vmatpush1.bf16.msra.mxu0 %v15927_v39  ;;  %7669 = vmatpush1.bf16.msra.mxu1 %v15930_v40  ;;  %v16016_v39 = vld [vmem:[#allocation10 + $0xb48] ss:$16 sps:$4 sm:$0xff]   ;;  %v16021_v40 = vld [vmem:[#allocation10 + $0xb64] ss:$16 sps:$4 sm:$0xff]  }
 0x3e6   :  { %7342 = vmatprep.subr.bf16.mxu0 %v15935_v31  ;;  %7670 = vmatprep.subr.bf16.mxu1 %v15938_v41  ;;  %v16024_v31 = vld [vmem:[#allocation10 + $0xb6c] ss:$16 sps:$4 sm:$0xff]   ;;  %v16019_v41 = vld [vmem:[#allocation10 + $0xb60] ss:$16 sps:$4 sm:$0xff]  }
 0x3e9   :  { %7343 = vmatpush1.bf16.msra.mxu0 %v15933_v42  ;;  %7671 = vmatpush1.bf16.msra.mxu1 %v15936_v43  ;;  %v16022_v42 = vld [vmem:[#allocation10 + $0xb68] ss:$16 sps:$4 sm:$0xff]   ;;  %v16027_v43 = vld [vmem:[#allocation10 + $0xb84] ss:$16 sps:$4 sm:$0xff]  }
 0x3ea   :  { %7344 = vmatprep.subr.bf16.mxu0 %v15941_v34  ;;  %7672 = vmatprep.subr.bf16.mxu1 %v15944_v44  ;;  %v16030_v34 = vld [vmem:[#allocation10 + $0xb8c] ss:$16 sps:$4 sm:$0xff]   ;;  %v16025_v44 = vld [vmem:[#allocation10 + $0xb80] ss:$16 sps:$4 sm:$0xff]  }
 0x3ed   :  { %7345 = vmatpush1.bf16.msra.mxu0 %v15939_v45  ;;  %7673 = vmatpush1.bf16.msra.mxu1 %v15942_v47  ;;  %v16028_v45 = vld [vmem:[#allocation10 + $0xb88] ss:$16 sps:$4 sm:$0xff]   ;;  %v16033_v47 = vld [vmem:[#allocation10 + $0xba4] ss:$16 sps:$4 sm:$0xff]  }
 0x3ee   :  { %7346 = vmatprep.subr.bf16.mxu0 %v15947_v48  ;;  %7674 = vmatprep.subr.bf16.mxu1 %v15950_v49  ;;  %v16036_v48 = vld [vmem:[#allocation10 + $0xbac] ss:$16 sps:$4 sm:$0xff]   ;;  %v16031_v49 = vld [vmem:[#allocation10 + $0xba0] ss:$16 sps:$4 sm:$0xff]  }
 0x3f1   :  { %7347 = vmatpush1.bf16.msra.mxu0 %v15945_v50  ;;  %7675 = vmatpush1.bf16.msra.mxu1 %v15948_v51  ;;  %v16034_v50 = vld [vmem:[#allocation10 + $0xba8] ss:$16 sps:$4 sm:$0xff]   ;;  %v16039_v51 = vld [vmem:[#allocation10 + $0xbc4] ss:$16 sps:$4 sm:$0xff]  }
 0x3f2   :  { %7357 = vmatprep.subr.bf16.mxu0 %v15955_v52  ;;  %7685 = vmatprep.subr.bf16.mxu1 %v15958_v53  ;;  %v16042_v52 = vld [vmem:[#allocation10 + $0xbcc] ss:$16 sps:$4 sm:$0xff]   ;;  %v16037_v53 = vld [vmem:[#allocation10 + $0xbc0] ss:$16 sps:$4 sm:$0xff]  }
 0x3f4   :  { %7349 = vmatmul.mubr.bf16.vlgmr.msra.gmra.mrb[4].mxu0 %v13209_v37  ;;  %7677 = vmatmul.mubr.bf16.vlgmr.msra.gmra.mrb[4].mxu1 %v13209_v37  ;;  %v16040_v37 = vld [vmem:[#allocation10 + $0xbc8] ss:$16 sps:$4 sm:$0xff]  }
 0x3f5   :  { %7358 = vmatpush1.bf16.msra.mxu0 %v15953_v55  ;;  %7686 = vmatpush1.bf16.msra.mxu1 %v15956_v56  ;;  %v16045_v55 = vld [vmem:[#allocation10 + $0xbe4] ss:$16 sps:$4 sm:$0xff]   ;;  %v16048_v56 = vld [vmem:[#allocation10 + $0xbec] ss:$16 sps:$4 sm:$0xff]  }
 0x3f6   :  { %7359 = vmatprep.subr.bf16.mxu0 %v15961_v57  ;;  %7687 = vmatprep.subr.bf16.mxu1 %v15964_v58  ;;  %v16043_v57 = vld [vmem:[#allocation10 + $0xbe0] ss:$16 sps:$4 sm:$0xff]   ;;  %v16046_v58 = vld [vmem:[#allocation10 + $0xbe8] ss:$16 sps:$4 sm:$0xff]  }
 0x3f7   :  { %7389 = vmatprep.mubr.bf16.mxu0 %v13212_v59  ;;  %7717 = vmatprep.mubr.bf16.mxu1 %v13212_v59  ;;  %v16053_v59 = vld [vmem:[#allocation10 + $0xc04] ss:$16 sps:$4 sm:$0xff]  }
 0x3f9   :  { %7360 = vmatpush1.bf16.msra.mxu0 %v15959_v60  ;;  %7688 = vmatpush1.bf16.msra.mxu1 %v15962_v1  ;;  %v16056_v60 = vld [vmem:[#allocation10 + $0xc0c] ss:$16 sps:$4 sm:$0xff]   ;;  %v16051_v1 = vld [vmem:[#allocation10 + $0xc00] ss:$16 sps:$4 sm:$0xff]  }
 0x3fa   :  { %7361 = vmatprep.subr.bf16.mxu0 %v15967_v46  ;;  %7689 = vmatprep.subr.bf16.mxu1 %v15970_v2  ;;  %v16054_v46 = vld [vmem:[#allocation10 + $0xc08] ss:$16 sps:$4 sm:$0xff]   ;;  %v13211_v2 = vcombine.low %v17680_v54, %v17680_v54  ;;  %v16065_v54 = vld [vmem:[#allocation10 + $0xc44] ss:$16 sps:$4 sm:$0xff]  }
 0x3fd   :  { %7362 = vmatpush1.bf16.msra.mxu0 %v15965_v3  ;;  %7690 = vmatpush1.bf16.msra.mxu1 %v15968_v4  ;;  %v17688_v3 = vld [vmem:[#allocation5 + $0x30] sm:$0xff] }
 0x3fe   :  { %7363 = vmatprep.subr.bf16.mxu0 %v15973_v5  ;;  %7691 = vmatprep.subr.bf16.mxu1 %v15976_v6  ;;  %v16059_v4 = vld [vmem:[#allocation10 + $0xc24] ss:$16 sps:$4 sm:$0xff]   ;;  %v16062_v5 = vld [vmem:[#allocation10 + $0xc2c] ss:$16 sps:$4 sm:$0xff]   ;;  %v13214_v6 = vcombine.high %v17688_v3, %v17688_v3 }
 0x401   :  { %7364 = vmatpush1.bf16.msra.mxu0 %v15971_v7  ;;  %7692 = vmatpush1.bf16.msra.mxu1 %v15974_v8  ;;  %v16057_v7 = vld [vmem:[#allocation10 + $0xc20] ss:$16 sps:$4 sm:$0xff]   ;;  %v16060_v8 = vld [vmem:[#allocation10 + $0xc28] ss:$16 sps:$4 sm:$0xff]  }
 0x402   :  { %7365 = vmatprep.subr.bf16.mxu0 %v15979_v9  ;;  %7693 = vmatprep.subr.bf16.mxu1 %v15982_v10  ;;  %v16068_v9 = vld [vmem:[#allocation10 + $0xc4c] ss:$16 sps:$4 sm:$0xff]   ;;  %v16063_v10 = vld [vmem:[#allocation10 + $0xc40] ss:$16 sps:$4 sm:$0xff]  }
 0x405   :  { %7366 = vmatpush1.bf16.msra.mxu0 %v15977_v12  ;;  %7694 = vmatpush1.bf16.msra.mxu1 %v15980_v13  ;;  %v16066_v12 = vld [vmem:[#allocation10 + $0xc48] ss:$16 sps:$4 sm:$0xff]   ;;  %v16071_v13 = vld [vmem:[#allocation10 + $0xc64] ss:$16 sps:$4 sm:$0xff]  }
 0x406   :  { %7367 = vmatprep.subr.bf16.mxu0 %v15985_v15  ;;  %7695 = vmatprep.subr.bf16.mxu1 %v15988_v16  ;;  %v16074_v15 = vld [vmem:[#allocation10 + $0xc6c] ss:$16 sps:$4 sm:$0xff]   ;;  %v16069_v16 = vld [vmem:[#allocation10 + $0xc60] ss:$16 sps:$4 sm:$0xff]  }
 0x409   :  { %7368 = vmatpush1.bf16.msra.mxu0 %v15983_v18  ;;  %7696 = vmatpush1.bf16.msra.mxu1 %v15986_v20  ;;  %v16072_v18 = vld [vmem:[#allocation10 + $0xc68] ss:$16 sps:$4 sm:$0xff]   ;;  %v16077_v20 = vld [vmem:[#allocation10 + $0xc84] ss:$16 sps:$4 sm:$0xff]  }
 0x40a   :  { %7369 = vmatprep.subr.bf16.mxu0 %v15991_v11  ;;  %7697 = vmatprep.subr.bf16.mxu1 %v15994_v21  ;;  %v16080_v11 = vld [vmem:[#allocation10 + $0xc8c] ss:$16 sps:$4 sm:$0xff]   ;;  %v16075_v21 = vld [vmem:[#allocation10 + $0xc80] ss:$16 sps:$4 sm:$0xff]  }
 0x40d   :  { %7370 = vmatpush1.bf16.msra.mxu0 %v15989_v22  ;;  %7698 = vmatpush1.bf16.msra.mxu1 %v15992_v14  ;;  %v16078_v22 = vld [vmem:[#allocation10 + $0xc88] ss:$16 sps:$4 sm:$0xff]   ;;  %v16083_v14 = vld [vmem:[#allocation10 + $0xca4] ss:$16 sps:$4 sm:$0xff]  }
 0x40e   :  { %7371 = vmatprep.subr.bf16.mxu0 %v15997_v23  ;;  %7699 = vmatprep.subr.bf16.mxu1 %v16000_v17  ;;  %v16086_v23 = vld [vmem:[#allocation10 + $0xcac] ss:$16 sps:$4 sm:$0xff]   ;;  %v16081_v17 = vld [vmem:[#allocation10 + $0xca0] ss:$16 sps:$4 sm:$0xff]  }
 0x411   :  { %7372 = vmatpush1.bf16.msra.mxu0 %v15995_v26  ;;  %7700 = vmatpush1.bf16.msra.mxu1 %v15998_v27  ;;  %v16084_v26 = vld [vmem:[#allocation10 + $0xca8] ss:$16 sps:$4 sm:$0xff]   ;;  %v16089_v27 = vld [vmem:[#allocation10 + $0xcc4] ss:$16 sps:$4 sm:$0xff]  }
 0x412   :  { %7373 = vmatprep.subr.bf16.mxu0 %v16003_v19  ;;  %7701 = vmatprep.subr.bf16.mxu1 %v16006_v29  ;;  %v16092_v19 = vld [vmem:[#allocation10 + $0xccc] ss:$16 sps:$4 sm:$0xff]   ;;  %v16087_v29 = vld [vmem:[#allocation10 + $0xcc0] ss:$16 sps:$4 sm:$0xff]  }
 0x415   :  { %7374 = vmatpush1.bf16.msra.mxu0 %v16001_v30  ;;  %7702 = vmatpush1.bf16.msra.mxu1 %v16004_v24  ;;  %v16090_v30 = vld [vmem:[#allocation10 + $0xcc8] ss:$16 sps:$4 sm:$0xff]   ;;  %v16095_v24 = vld [vmem:[#allocation10 + $0xce4] ss:$16 sps:$4 sm:$0xff]  }
 0x416   :  { %7375 = vmatprep.subr.bf16.mxu0 %v16009_v32  ;;  %7703 = vmatprep.subr.bf16.mxu1 %v16012_v33  ;;  %v16098_v32 = vld [vmem:[#allocation10 + $0xcec] ss:$16 sps:$4 sm:$0xff]   ;;  %v16093_v33 = vld [vmem:[#allocation10 + $0xce0] ss:$16 sps:$4 sm:$0xff]  }
 0x419   :  { %7376 = vmatpush1.bf16.msra.mxu0 %v16007_v25  ;;  %7704 = vmatpush1.bf16.msra.mxu1 %v16010_v35  ;;  %v16096_v25 = vld [vmem:[#allocation10 + $0xce8] ss:$16 sps:$4 sm:$0xff]   ;;  %v16101_v35 = vld [vmem:[#allocation10 + $0xd04] ss:$16 sps:$4 sm:$0xff]  }
 0x41a   :  { %7377 = vmatprep.subr.bf16.mxu0 %v16015_v36  ;;  %7705 = vmatprep.subr.bf16.mxu1 %v16018_v28  ;;  %v16104_v36 = vld [vmem:[#allocation10 + $0xd0c] ss:$16 sps:$4 sm:$0xff]   ;;  %v16099_v28 = vld [vmem:[#allocation10 + $0xd00] ss:$16 sps:$4 sm:$0xff]  }
 0x41d   :  { %7378 = vmatpush1.bf16.msra.mxu0 %v16013_v38  ;;  %7706 = vmatpush1.bf16.msra.mxu1 %v16016_v39  ;;  %v16102_v38 = vld [vmem:[#allocation10 + $0xd08] ss:$16 sps:$4 sm:$0xff]   ;;  %v16107_v39 = vld [vmem:[#allocation10 + $0xd24] ss:$16 sps:$4 sm:$0xff]  }
 0x41e   :  { %7379 = vmatprep.subr.bf16.mxu0 %v16021_v40  ;;  %7707 = vmatprep.subr.bf16.mxu1 %v16024_v31  ;;  %v16110_v40 = vld [vmem:[#allocation10 + $0xd2c] ss:$16 sps:$4 sm:$0xff]   ;;  %v16105_v31 = vld [vmem:[#allocation10 + $0xd20] ss:$16 sps:$4 sm:$0xff]  }
 0x421   :  { %7380 = vmatpush1.bf16.msra.mxu0 %v16019_v41  ;;  %7708 = vmatpush1.bf16.msra.mxu1 %v16022_v42  ;;  %v16108_v41 = vld [vmem:[#allocation10 + $0xd28] ss:$16 sps:$4 sm:$0xff]   ;;  %v16113_v42 = vld [vmem:[#allocation10 + $0xd44] ss:$16 sps:$4 sm:$0xff]  }
 0x422   :  { %7381 = vmatprep.subr.bf16.mxu0 %v16027_v43  ;;  %7709 = vmatprep.subr.bf16.mxu1 %v16030_v34  ;;  %v16116_v43 = vld [vmem:[#allocation10 + $0xd4c] ss:$16 sps:$4 sm:$0xff]   ;;  %v16111_v34 = vld [vmem:[#allocation10 + $0xd40] ss:$16 sps:$4 sm:$0xff]  }
 0x425   :  { %7382 = vmatpush1.bf16.msra.mxu0 %v16025_v44  ;;  %7710 = vmatpush1.bf16.msra.mxu1 %v16028_v45  ;;  %v16114_v44 = vld [vmem:[#allocation10 + $0xd48] ss:$16 sps:$4 sm:$0xff]   ;;  %v16119_v45 = vld [vmem:[#allocation10 + $0xd64] ss:$16 sps:$4 sm:$0xff]  }
 0x426   :  { %7383 = vmatprep.subr.bf16.mxu0 %v16033_v47  ;;  %7711 = vmatprep.subr.bf16.mxu1 %v16036_v48  ;;  %v16122_v47 = vld [vmem:[#allocation10 + $0xd6c] ss:$16 sps:$4 sm:$0xff]   ;;  %v16117_v48 = vld [vmem:[#allocation10 + $0xd60] ss:$16 sps:$4 sm:$0xff]  }
 0x429   :  { %7384 = vmatpush1.bf16.msra.mxu0 %v16031_v49  ;;  %7712 = vmatpush1.bf16.msra.mxu1 %v16034_v50  ;;  %v16120_v49 = vld [vmem:[#allocation10 + $0xd68] ss:$16 sps:$4 sm:$0xff]   ;;  %v16125_v50 = vld [vmem:[#allocation10 + $0xd84] ss:$16 sps:$4 sm:$0xff]  }
 0x42a   :  { %7385 = vmatprep.subr.bf16.mxu0 %v16039_v51  ;;  %7713 = vmatprep.subr.bf16.mxu1 %v16042_v52  ;;  %v16128_v51 = vld [vmem:[#allocation10 + $0xd8c] ss:$16 sps:$4 sm:$0xff]   ;;  %v16123_v52 = vld [vmem:[#allocation10 + $0xd80] ss:$16 sps:$4 sm:$0xff]  }
 0x42d   :  { %7386 = vmatpush1.bf16.msra.mxu0 %v16037_v53  ;;  %7714 = vmatpush1.bf16.msra.mxu1 %v16040_v37  ;;  %v16126_v53 = vld [vmem:[#allocation10 + $0xd88] ss:$16 sps:$4 sm:$0xff]   ;;  %v16131_v37 = vld [vmem:[#allocation10 + $0xda4] ss:$16 sps:$4 sm:$0xff]  }
 0x42e   :  { %7387 = vmatprep.subr.bf16.mxu0 %v16045_v55  ;;  %7715 = vmatprep.subr.bf16.mxu1 %v16048_v56  ;;  %v16134_v55 = vld [vmem:[#allocation10 + $0xdac] ss:$16 sps:$4 sm:$0xff]   ;;  %v16129_v56 = vld [vmem:[#allocation10 + $0xda0] ss:$16 sps:$4 sm:$0xff]  }
 0x431   :  { %7388 = vmatpush1.bf16.msra.mxu0 %v16043_v57  ;;  %7716 = vmatpush1.bf16.msra.mxu1 %v16046_v58  ;;  %v16132_v57 = vld [vmem:[#allocation10 + $0xda8] ss:$16 sps:$4 sm:$0xff]   ;;  %v16137_v58 = vld [vmem:[#allocation10 + $0xdc4] ss:$16 sps:$4 sm:$0xff]  }
 0x432   :  { %7398 = vmatprep.subr.bf16.mxu0 %v16053_v59  ;;  %7726 = vmatprep.subr.bf16.mxu1 %v16056_v60  ;;  %v16140_v59 = vld [vmem:[#allocation10 + $0xdcc] ss:$16 sps:$4 sm:$0xff]   ;;  %v16135_v60 = vld [vmem:[#allocation10 + $0xdc0] ss:$16 sps:$4 sm:$0xff]  }
 0x434   :  { %7390 = vmatmul.mubr.bf16.vlgmr.msra.gmra.mrb[4].mxu0 %v13211_v2  ;;  %7718 = vmatmul.mubr.bf16.vlgmr.msra.gmra.mrb[4].mxu1 %v13211_v2  ;;  %v16146_v2 = vld [vmem:[#allocation10 + $0xdec] ss:$16 sps:$4 sm:$0xff]  }
 0x435   :  { %7399 = vmatpush1.bf16.msra.mxu0 %v16051_v1  ;;  %7727 = vmatpush1.bf16.msra.mxu1 %v16054_v46  ;;  %v16138_v1 = vld [vmem:[#allocation10 + $0xdc8] ss:$16 sps:$4 sm:$0xff]   ;;  %v16143_v46 = vld [vmem:[#allocation10 + $0xde4] ss:$16 sps:$4 sm:$0xff]  }
 0x436   :  { %7400 = vmatprep.subr.bf16.mxu0 %v16059_v4  ;;  %7728 = vmatprep.subr.bf16.mxu1 %v16062_v5  ;;  %v16141_v4 = vld [vmem:[#allocation10 + $0xde0] ss:$16 sps:$4 sm:$0xff]   ;;  %v16144_v5 = vld [vmem:[#allocation10 + $0xde8] ss:$16 sps:$4 sm:$0xff]  }
 0x437   :  { %7430 = vmatprep.mubr.bf16.mxu0 %v13214_v6  ;;  %7758 = vmatprep.mubr.bf16.mxu1 %v13214_v6  ;;  %v16151_v6 = vld [vmem:[#allocation10 + $0xe04] ss:$16 sps:$4 sm:$0xff]  }
 0x439   :  { %7401 = vmatpush1.bf16.msra.mxu0 %v16057_v7  ;;  %7729 = vmatpush1.bf16.msra.mxu1 %v16060_v8  ;;  %v16154_v7 = vld [vmem:[#allocation10 + $0xe0c] ss:$16 sps:$4 sm:$0xff]   ;;  %v13213_v8 = vcombine.low %v17688_v3, %v17688_v3  ;;  %v16163_v3 = vld [vmem:[#allocation10 + $0xe44] ss:$16 sps:$4 sm:$0xff]  }
 0x43a   :  { %7402 = vmatprep.subr.bf16.mxu0 %v16065_v54  ;;  %7730 = vmatprep.subr.bf16.mxu1 %v16068_v9  ;;  %v17694_v54 = vld [vmem:[#allocation5 + $0x38] sm:$0xff]  ;;  %v16149_v9 = vld [vmem:[#allocation10 + $0xe00] ss:$16 sps:$4 sm:$0xff]  }
 0x43d   :  { %7403 = vmatpush1.bf16.msra.mxu0 %v16063_v10  ;;  %7731 = vmatpush1.bf16.msra.mxu1 %v16066_v12  ;;  %v16152_v10 = vld [vmem:[#allocation10 + $0xe08] ss:$16 sps:$4 sm:$0xff]   ;;  %v16157_v12 = vld [vmem:[#allocation10 + $0xe24] ss:$16 sps:$4 sm:$0xff]  }
 0x43e   :  { %7404 = vmatprep.subr.bf16.mxu0 %v16071_v13  ;;  %7732 = vmatprep.subr.bf16.mxu1 %v16074_v15  ;;  %v16160_v13 = vld [vmem:[#allocation10 + $0xe2c] ss:$16 sps:$4 sm:$0xff]   ;;  %v13216_v15 = vcombine.high %v17694_v54, %v17694_v54 }
 0x441   :  { %7405 = vmatpush1.bf16.msra.mxu0 %v16069_v16  ;;  %7733 = vmatpush1.bf16.msra.mxu1 %v16072_v18  ;;  %v16155_v16 = vld [vmem:[#allocation10 + $0xe20] ss:$16 sps:$4 sm:$0xff]   ;;  %v16158_v18 = vld [vmem:[#allocation10 + $0xe28] ss:$16 sps:$4 sm:$0xff]  }
 0x442   :  { %7406 = vmatprep.subr.bf16.mxu0 %v16077_v20  ;;  %7734 = vmatprep.subr.bf16.mxu1 %v16080_v11  ;;  %v16166_v20 = vld [vmem:[#allocation10 + $0xe4c] ss:$16 sps:$4 sm:$0xff]   ;;  %v16161_v11 = vld [vmem:[#allocation10 + $0xe40] ss:$16 sps:$4 sm:$0xff]  }
 0x445   :  { %7407 = vmatpush1.bf16.msra.mxu0 %v16075_v21  ;;  %7735 = vmatpush1.bf16.msra.mxu1 %v16078_v22  ;;  %v16164_v21 = vld [vmem:[#allocation10 + $0xe48] ss:$16 sps:$4 sm:$0xff]   ;;  %v16169_v22 = vld [vmem:[#allocation10 + $0xe64] ss:$16 sps:$4 sm:$0xff]  }
 0x446   :  { %7408 = vmatprep.subr.bf16.mxu0 %v16083_v14  ;;  %7736 = vmatprep.subr.bf16.mxu1 %v16086_v23  ;;  %v16172_v14 = vld [vmem:[#allocation10 + $0xe6c] ss:$16 sps:$4 sm:$0xff]   ;;  %v16167_v23 = vld [vmem:[#allocation10 + $0xe60] ss:$16 sps:$4 sm:$0xff]  }
 0x449   :  { %7409 = vmatpush1.bf16.msra.mxu0 %v16081_v17  ;;  %7737 = vmatpush1.bf16.msra.mxu1 %v16084_v26  ;;  %v16170_v17 = vld [vmem:[#allocation10 + $0xe68] ss:$16 sps:$4 sm:$0xff]   ;;  %v16175_v26 = vld [vmem:[#allocation10 + $0xe84] ss:$16 sps:$4 sm:$0xff]  }
 0x44a   :  { %7410 = vmatprep.subr.bf16.mxu0 %v16089_v27  ;;  %7738 = vmatprep.subr.bf16.mxu1 %v16092_v19  ;;  %v16178_v27 = vld [vmem:[#allocation10 + $0xe8c] ss:$16 sps:$4 sm:$0xff]   ;;  %v16173_v19 = vld [vmem:[#allocation10 + $0xe80] ss:$16 sps:$4 sm:$0xff]  }
 0x44d   :  { %7411 = vmatpush1.bf16.msra.mxu0 %v16087_v29  ;;  %7739 = vmatpush1.bf16.msra.mxu1 %v16090_v30  ;;  %v16176_v29 = vld [vmem:[#allocation10 + $0xe88] ss:$16 sps:$4 sm:$0xff]   ;;  %v16181_v30 = vld [vmem:[#allocation10 + $0xea4] ss:$16 sps:$4 sm:$0xff]  }
 0x44e   :  { %7412 = vmatprep.subr.bf16.mxu0 %v16095_v24  ;;  %7740 = vmatprep.subr.bf16.mxu1 %v16098_v32  ;;  %v16184_v24 = vld [vmem:[#allocation10 + $0xeac] ss:$16 sps:$4 sm:$0xff]   ;;  %v16179_v32 = vld [vmem:[#allocation10 + $0xea0] ss:$16 sps:$4 sm:$0xff]  }
 0x451   :  { %7413 = vmatpush1.bf16.msra.mxu0 %v16093_v33  ;;  %7741 = vmatpush1.bf16.msra.mxu1 %v16096_v25  ;;  %v16182_v33 = vld [vmem:[#allocation10 + $0xea8] ss:$16 sps:$4 sm:$0xff]   ;;  %v16187_v25 = vld [vmem:[#allocation10 + $0xec4] ss:$16 sps:$4 sm:$0xff]  }
 0x452   :  { %7414 = vmatprep.subr.bf16.mxu0 %v16101_v35  ;;  %7742 = vmatprep.subr.bf16.mxu1 %v16104_v36  ;;  %v16190_v35 = vld [vmem:[#allocation10 + $0xecc] ss:$16 sps:$4 sm:$0xff]   ;;  %v16185_v36 = vld [vmem:[#allocation10 + $0xec0] ss:$16 sps:$4 sm:$0xff]  }
 0x455   :  { %7415 = vmatpush1.bf16.msra.mxu0 %v16099_v28  ;;  %7743 = vmatpush1.bf16.msra.mxu1 %v16102_v38  ;;  %v16188_v28 = vld [vmem:[#allocation10 + $0xec8] ss:$16 sps:$4 sm:$0xff]   ;;  %v16193_v38 = vld [vmem:[#allocation10 + $0xee4] ss:$16 sps:$4 sm:$0xff]  }
 0x456   :  { %7416 = vmatprep.subr.bf16.mxu0 %v16107_v39  ;;  %7744 = vmatprep.subr.bf16.mxu1 %v16110_v40  ;;  %v16196_v39 = vld [vmem:[#allocation10 + $0xeec] ss:$16 sps:$4 sm:$0xff]   ;;  %v16191_v40 = vld [vmem:[#allocation10 + $0xee0] ss:$16 sps:$4 sm:$0xff]  }
 0x459   :  { %7417 = vmatpush1.bf16.msra.mxu0 %v16105_v31  ;;  %7745 = vmatpush1.bf16.msra.mxu1 %v16108_v41  ;;  %v16194_v31 = vld [vmem:[#allocation10 + $0xee8] ss:$16 sps:$4 sm:$0xff]   ;;  %v16199_v41 = vld [vmem:[#allocation10 + $0xf04] ss:$16 sps:$4 sm:$0xff]  }
 0x45a   :  { %7418 = vmatprep.subr.bf16.mxu0 %v16113_v42  ;;  %7746 = vmatprep.subr.bf16.mxu1 %v16116_v43  ;;  %v16202_v42 = vld [vmem:[#allocation10 + $0xf0c] ss:$16 sps:$4 sm:$0xff]   ;;  %v16197_v43 = vld [vmem:[#allocation10 + $0xf00] ss:$16 sps:$4 sm:$0xff]  }
 0x45d   :  { %7419 = vmatpush1.bf16.msra.mxu0 %v16111_v34  ;;  %7747 = vmatpush1.bf16.msra.mxu1 %v16114_v44  ;;  %v16200_v34 = vld [vmem:[#allocation10 + $0xf08] ss:$16 sps:$4 sm:$0xff]   ;;  %v16205_v44 = vld [vmem:[#allocation10 + $0xf24] ss:$16 sps:$4 sm:$0xff]  }
 0x45e   :  { %7420 = vmatprep.subr.bf16.mxu0 %v16119_v45  ;;  %7748 = vmatprep.subr.bf16.mxu1 %v16122_v47  ;;  %v16208_v45 = vld [vmem:[#allocation10 + $0xf2c] ss:$16 sps:$4 sm:$0xff]   ;;  %v16203_v47 = vld [vmem:[#allocation10 + $0xf20] ss:$16 sps:$4 sm:$0xff]  }
 0x461   :  { %7421 = vmatpush1.bf16.msra.mxu0 %v16117_v48  ;;  %7749 = vmatpush1.bf16.msra.mxu1 %v16120_v49  ;;  %v16206_v48 = vld [vmem:[#allocation10 + $0xf28] ss:$16 sps:$4 sm:$0xff]   ;;  %v16211_v49 = vld [vmem:[#allocation10 + $0xf44] ss:$16 sps:$4 sm:$0xff]  }
 0x462   :  { %7422 = vmatprep.subr.bf16.mxu0 %v16125_v50  ;;  %7750 = vmatprep.subr.bf16.mxu1 %v16128_v51  ;;  %v16214_v50 = vld [vmem:[#allocation10 + $0xf4c] ss:$16 sps:$4 sm:$0xff]   ;;  %v16209_v51 = vld [vmem:[#allocation10 + $0xf40] ss:$16 sps:$4 sm:$0xff]  }
 0x465   :  { %7423 = vmatpush1.bf16.msra.mxu0 %v16123_v52  ;;  %7751 = vmatpush1.bf16.msra.mxu1 %v16126_v53  ;;  %v16212_v52 = vld [vmem:[#allocation10 + $0xf48] ss:$16 sps:$4 sm:$0xff]   ;;  %v16217_v53 = vld [vmem:[#allocation10 + $0xf64] ss:$16 sps:$4 sm:$0xff]  }
 0x466   :  { %7424 = vmatprep.subr.bf16.mxu0 %v16131_v37  ;;  %7752 = vmatprep.subr.bf16.mxu1 %v16134_v55  ;;  %v16220_v37 = vld [vmem:[#allocation10 + $0xf6c] ss:$16 sps:$4 sm:$0xff]   ;;  %v16215_v55 = vld [vmem:[#allocation10 + $0xf60] ss:$16 sps:$4 sm:$0xff]  }
 0x469   :  { %7425 = vmatpush1.bf16.msra.mxu0 %v16129_v56  ;;  %7753 = vmatpush1.bf16.msra.mxu1 %v16132_v57  ;;  %v16218_v56 = vld [vmem:[#allocation10 + $0xf68] ss:$16 sps:$4 sm:$0xff]   ;;  %v16223_v57 = vld [vmem:[#allocation10 + $0xf84] ss:$16 sps:$4 sm:$0xff]  }
 0x46a   :  { %7426 = vmatprep.subr.bf16.mxu0 %v16137_v58  ;;  %7754 = vmatprep.subr.bf16.mxu1 %v16140_v59  ;;  %v16226_v58 = vld [vmem:[#allocation10 + $0xf8c] ss:$16 sps:$4 sm:$0xff]   ;;  %v16221_v59 = vld [vmem:[#allocation10 + $0xf80] ss:$16 sps:$4 sm:$0xff]  }
 0x46d   :  { %7427 = vmatpush1.bf16.msra.mxu0 %v16135_v60  ;;  %7755 = vmatpush1.bf16.msra.mxu1 %v16138_v1  ;;  %v16224_v60 = vld [vmem:[#allocation10 + $0xf88] ss:$16 sps:$4 sm:$0xff]   ;;  %v16229_v1 = vld [vmem:[#allocation10 + $0xfa4] ss:$16 sps:$4 sm:$0xff]  }
 0x46e   :  { %7428 = vmatprep.subr.bf16.mxu0 %v16143_v46  ;;  %7756 = vmatprep.subr.bf16.mxu1 %v16146_v2  ;;  %v16232_v46 = vld [vmem:[#allocation10 + $0xfac] ss:$16 sps:$4 sm:$0xff]   ;;  %v16227_v2 = vld [vmem:[#allocation10 + $0xfa0] ss:$16 sps:$4 sm:$0xff]  }
 0x471   :  { %7429 = vmatpush1.bf16.msra.mxu0 %v16141_v4  ;;  %7757 = vmatpush1.bf16.msra.mxu1 %v16144_v5  ;;  %v16230_v4 = vld [vmem:[#allocation10 + $0xfa8] ss:$16 sps:$4 sm:$0xff]   ;;  %v16235_v5 = vld [vmem:[#allocation10 + $0xfc4] ss:$16 sps:$4 sm:$0xff]  }
 0x472   :  { %7439 = vmatprep.subr.bf16.mxu0 %v16151_v6  ;;  %7767 = vmatprep.subr.bf16.mxu1 %v16154_v7  ;;  %v16238_v6 = vld [vmem:[#allocation10 + $0xfcc] ss:$16 sps:$4 sm:$0xff]   ;;  %v16233_v7 = vld [vmem:[#allocation10 + $0xfc0] ss:$16 sps:$4 sm:$0xff]  }
 0x474   :  { %7431 = vmatmul.mubr.bf16.vlgmr.msra.gmra.mrb[4].mxu0 %v13213_v8  ;;  %7759 = vmatmul.mubr.bf16.vlgmr.msra.gmra.mrb[4].mxu1 %v13213_v8  ;;  %v16236_v8 = vld [vmem:[#allocation10 + $0xfc8] ss:$16 sps:$4 sm:$0xff]  }
 0x475   :  { %7440 = vmatpush1.bf16.msra.mxu0 %v16149_v9  ;;  %7768 = vmatpush1.bf16.msra.mxu1 %v16152_v10  ;;  %v16241_v9 = vld [vmem:[#allocation10 + $0xfe4] ss:$16 sps:$4 sm:$0xff]   ;;  %v16244_v10 = vld [vmem:[#allocation10 + $0xfec] ss:$16 sps:$4 sm:$0xff]  }
 0x476   :  { %7441 = vmatprep.subr.bf16.mxu0 %v16157_v12  ;;  %7769 = vmatprep.subr.bf16.mxu1 %v16160_v13  ;;  %v16239_v12 = vld [vmem:[#allocation10 + $0xfe0] ss:$16 sps:$4 sm:$0xff]   ;;  %v16242_v13 = vld [vmem:[#allocation10 + $0xfe8] ss:$16 sps:$4 sm:$0xff]  }
 0x477   :  { %7471 = vmatprep.mubr.bf16.mxu0 %v13216_v15  ;;  %7799 = vmatprep.mubr.bf16.mxu1 %v13216_v15  ;;  %v16249_v15 = vld [vmem:[#allocation11 + $0x4] ss:$16 sps:$4 sm:$0xff]  }
 0x479   :  { %7442 = vmatpush1.bf16.msra.mxu0 %v16155_v16  ;;  %7770 = vmatpush1.bf16.msra.mxu1 %v16158_v18  ;;  %v16252_v16 = vld [vmem:[#allocation11 + $0xc] ss:$16 sps:$4 sm:$0xff]   ;;  %v13215_v18 = vcombine.low %v17694_v54, %v17694_v54  ;;  %v16261_v54 = vld [vmem:[#allocation11 + $0x44] ss:$16 sps:$4 sm:$0xff]  }
 0x47a   :  { %7443 = vmatprep.subr.bf16.mxu0 %v16163_v3  ;;  %7771 = vmatprep.subr.bf16.mxu1 %v16166_v20  ;;  %v17700_v3 = vld [vmem:[#allocation7] sm:$0xff] }
 0x47b   :  { %v16247_v20 = vld [vmem:[#allocation11] ss:$16 sps:$4 sm:$0xff]  }
 0x47d   :  { %7444 = vmatpush1.bf16.msra.mxu0 %v16161_v11  ;;  %7772 = vmatpush1.bf16.msra.mxu1 %v16164_v21  ;;  %v16250_v11 = vld [vmem:[#allocation11 + $0x8] ss:$16 sps:$4 sm:$0xff]   ;;  %v16255_v21 = vld [vmem:[#allocation11 + $0x24] ss:$16 sps:$4 sm:$0xff]  }
 0x47e   :  { %7445 = vmatprep.subr.bf16.mxu0 %v16169_v22  ;;  %7773 = vmatprep.subr.bf16.mxu1 %v16172_v14  ;;  %v16258_v22 = vld [vmem:[#allocation11 + $0x2c] ss:$16 sps:$4 sm:$0xff]   ;;  %v13730_v14 = vcombine.high %v17700_v3, %v17700_v3 }
 0x481   :  { %7446 = vmatpush1.bf16.msra.mxu0 %v16167_v23  ;;  %7774 = vmatpush1.bf16.msra.mxu1 %v16170_v17  ;;  %v16253_v23 = vld [vmem:[#allocation11 + $0x20] ss:$16 sps:$4 sm:$0xff]   ;;  %v16256_v17 = vld [vmem:[#allocation11 + $0x28] ss:$16 sps:$4 sm:$0xff]  }
 0x482   :  { %7447 = vmatprep.subr.bf16.mxu0 %v16175_v26  ;;  %7775 = vmatprep.subr.bf16.mxu1 %v16178_v27  ;;  %v16264_v26 = vld [vmem:[#allocation11 + $0x4c] ss:$16 sps:$4 sm:$0xff]   ;;  %v16259_v27 = vld [vmem:[#allocation11 + $0x40] ss:$16 sps:$4 sm:$0xff]  }
 0x485   :  { %7448 = vmatpush1.bf16.msra.mxu0 %v16173_v19  ;;  %7776 = vmatpush1.bf16.msra.mxu1 %v16176_v29  ;;  %v16262_v19 = vld [vmem:[#allocation11 + $0x48] ss:$16 sps:$4 sm:$0xff]   ;;  %v16267_v29 = vld [vmem:[#allocation11 + $0x64] ss:$16 sps:$4 sm:$0xff]  }
 0x486   :  { %7449 = vmatprep.subr.bf16.mxu0 %v16181_v30  ;;  %7777 = vmatprep.subr.bf16.mxu1 %v16184_v24  ;;  %v16270_v30 = vld [vmem:[#allocation11 + $0x6c] ss:$16 sps:$4 sm:$0xff]   ;;  %v16265_v24 = vld [vmem:[#allocation11 + $0x60] ss:$16 sps:$4 sm:$0xff]  }
 0x489   :  { %7450 = vmatpush1.bf16.msra.mxu0 %v16179_v32  ;;  %7778 = vmatpush1.bf16.msra.mxu1 %v16182_v33  ;;  %v16268_v32 = vld [vmem:[#allocation11 + $0x68] ss:$16 sps:$4 sm:$0xff]   ;;  %v16273_v33 = vld [vmem:[#allocation11 + $0x84] ss:$16 sps:$4 sm:$0xff]  }
 0x48a   :  { %7451 = vmatprep.subr.bf16.mxu0 %v16187_v25  ;;  %7779 = vmatprep.subr.bf16.mxu1 %v16190_v35  ;;  %v16276_v25 = vld [vmem:[#allocation11 + $0x8c] ss:$16 sps:$4 sm:$0xff]   ;;  %v16271_v35 = vld [vmem:[#allocation11 + $0x80] ss:$16 sps:$4 sm:$0xff]  }
 0x48d   :  { %7452 = vmatpush1.bf16.msra.mxu0 %v16185_v36  ;;  %7780 = vmatpush1.bf16.msra.mxu1 %v16188_v28  ;;  %v16274_v36 = vld [vmem:[#allocation11 + $0x88] ss:$16 sps:$4 sm:$0xff]   ;;  %v16279_v28 = vld [vmem:[#allocation11 + $0xa4] ss:$16 sps:$4 sm:$0xff]  }
 0x48e   :  { %7453 = vmatprep.subr.bf16.mxu0 %v16193_v38  ;;  %7781 = vmatprep.subr.bf16.mxu1 %v16196_v39  ;;  %v16282_v38 = vld [vmem:[#allocation11 + $0xac] ss:$16 sps:$4 sm:$0xff]   ;;  %v16277_v39 = vld [vmem:[#allocation11 + $0xa0] ss:$16 sps:$4 sm:$0xff]  }
 0x491   :  { %7454 = vmatpush1.bf16.msra.mxu0 %v16191_v40  ;;  %7782 = vmatpush1.bf16.msra.mxu1 %v16194_v31  ;;  %v16280_v40 = vld [vmem:[#allocation11 + $0xa8] ss:$16 sps:$4 sm:$0xff]   ;;  %v16285_v31 = vld [vmem:[#allocation11 + $0xc4] ss:$16 sps:$4 sm:$0xff]  }
 0x492   :  { %7455 = vmatprep.subr.bf16.mxu0 %v16199_v41  ;;  %7783 = vmatprep.subr.bf16.mxu1 %v16202_v42  ;;  %v16288_v41 = vld [vmem:[#allocation11 + $0xcc] ss:$16 sps:$4 sm:$0xff]   ;;  %v16283_v42 = vld [vmem:[#allocation11 + $0xc0] ss:$16 sps:$4 sm:$0xff]  }
 0x495   :  { %7456 = vmatpush1.bf16.msra.mxu0 %v16197_v43  ;;  %7784 = vmatpush1.bf16.msra.mxu1 %v16200_v34  ;;  %v16286_v43 = vld [vmem:[#allocation11 + $0xc8] ss:$16 sps:$4 sm:$0xff]   ;;  %v16291_v34 = vld [vmem:[#allocation11 + $0xe4] ss:$16 sps:$4 sm:$0xff]  }
 0x496   :  { %7457 = vmatprep.subr.bf16.mxu0 %v16205_v44  ;;  %7785 = vmatprep.subr.bf16.mxu1 %v16208_v45  ;;  %v16294_v44 = vld [vmem:[#allocation11 + $0xec] ss:$16 sps:$4 sm:$0xff]   ;;  %v16289_v45 = vld [vmem:[#allocation11 + $0xe0] ss:$16 sps:$4 sm:$0xff]  }
 0x499   :  { %7458 = vmatpush1.bf16.msra.mxu0 %v16203_v47  ;;  %7786 = vmatpush1.bf16.msra.mxu1 %v16206_v48  ;;  %v16292_v47 = vld [vmem:[#allocation11 + $0xe8] ss:$16 sps:$4 sm:$0xff]   ;;  %v16297_v48 = vld [vmem:[#allocation11 + $0x104] ss:$16 sps:$4 sm:$0xff]  }
 0x49a   :  { %7459 = vmatprep.subr.bf16.mxu0 %v16211_v49  ;;  %7787 = vmatprep.subr.bf16.mxu1 %v16214_v50  ;;  %v16300_v49 = vld [vmem:[#allocation11 + $0x10c] ss:$16 sps:$4 sm:$0xff]   ;;  %v16295_v50 = vld [vmem:[#allocation11 + $0x100] ss:$16 sps:$4 sm:$0xff]  }
 0x49d   :  { %7460 = vmatpush1.bf16.msra.mxu0 %v16209_v51  ;;  %7788 = vmatpush1.bf16.msra.mxu1 %v16212_v52  ;;  %v16298_v51 = vld [vmem:[#allocation11 + $0x108] ss:$16 sps:$4 sm:$0xff]   ;;  %v16303_v52 = vld [vmem:[#allocation11 + $0x124] ss:$16 sps:$4 sm:$0xff]  }
 0x49e   :  { %7461 = vmatprep.subr.bf16.mxu0 %v16217_v53  ;;  %7789 = vmatprep.subr.bf16.mxu1 %v16220_v37  ;;  %v16306_v53 = vld [vmem:[#allocation11 + $0x12c] ss:$16 sps:$4 sm:$0xff]   ;;  %v16301_v37 = vld [vmem:[#allocation11 + $0x120] ss:$16 sps:$4 sm:$0xff]  }
 0x4a1   :  { %7462 = vmatpush1.bf16.msra.mxu0 %v16215_v55  ;;  %7790 = vmatpush1.bf16.msra.mxu1 %v16218_v56  ;;  %v16304_v55 = vld [vmem:[#allocation11 + $0x128] ss:$16 sps:$4 sm:$0xff]   ;;  %v16309_v56 = vld [vmem:[#allocation11 + $0x144] ss:$16 sps:$4 sm:$0xff]  }
 0x4a2   :  { %7463 = vmatprep.subr.bf16.mxu0 %v16223_v57  ;;  %7791 = vmatprep.subr.bf16.mxu1 %v16226_v58  ;;  %v16312_v57 = vld [vmem:[#allocation11 + $0x14c] ss:$16 sps:$4 sm:$0xff]   ;;  %v16307_v58 = vld [vmem:[#allocation11 + $0x140] ss:$16 sps:$4 sm:$0xff]  }
 0x4a5   :  { %7464 = vmatpush1.bf16.msra.mxu0 %v16221_v59  ;;  %7792 = vmatpush1.bf16.msra.mxu1 %v16224_v60  ;;  %v16310_v59 = vld [vmem:[#allocation11 + $0x148] ss:$16 sps:$4 sm:$0xff]   ;;  %v16315_v60 = vld [vmem:[#allocation11 + $0x164] ss:$16 sps:$4 sm:$0xff]  }
 0x4a6   :  { %7465 = vmatprep.subr.bf16.mxu0 %v16229_v1  ;;  %7793 = vmatprep.subr.bf16.mxu1 %v16232_v46  ;;  %v16318_v1 = vld [vmem:[#allocation11 + $0x16c] ss:$16 sps:$4 sm:$0xff]   ;;  %v16313_v46 = vld [vmem:[#allocation11 + $0x160] ss:$16 sps:$4 sm:$0xff]  }
 0x4a9   :  { %7466 = vmatpush1.bf16.msra.mxu0 %v16227_v2  ;;  %7794 = vmatpush1.bf16.msra.mxu1 %v16230_v4  ;;  %v16316_v2 = vld [vmem:[#allocation11 + $0x168] ss:$16 sps:$4 sm:$0xff]   ;;  %v16321_v4 = vld [vmem:[#allocation11 + $0x184] ss:$16 sps:$4 sm:$0xff]  }
 0x4aa   :  { %7467 = vmatprep.subr.bf16.mxu0 %v16235_v5  ;;  %7795 = vmatprep.subr.bf16.mxu1 %v16238_v6  ;;  %v16324_v5 = vld [vmem:[#allocation11 + $0x18c] ss:$16 sps:$4 sm:$0xff]   ;;  %v16319_v6 = vld [vmem:[#allocation11 + $0x180] ss:$16 sps:$4 sm:$0xff]  }
 0x4ad   :  { %7468 = vmatpush1.bf16.msra.mxu0 %v16233_v7  ;;  %7796 = vmatpush1.bf16.msra.mxu1 %v16236_v8  ;;  %v16322_v7 = vld [vmem:[#allocation11 + $0x188] ss:$16 sps:$4 sm:$0xff]   ;;  %v16327_v8 = vld [vmem:[#allocation11 + $0x1a4] ss:$16 sps:$4 sm:$0xff]  }
 0x4ae   :  { %7469 = vmatprep.subr.bf16.mxu0 %v16241_v9  ;;  %7797 = vmatprep.subr.bf16.mxu1 %v16244_v10  ;;  %v16330_v9 = vld [vmem:[#allocation11 + $0x1ac] ss:$16 sps:$4 sm:$0xff]   ;;  %v16325_v10 = vld [vmem:[#allocation11 + $0x1a0] ss:$16 sps:$4 sm:$0xff]  }
 0x4b1   :  { %7470 = vmatpush1.bf16.msra.mxu0 %v16239_v12  ;;  %7798 = vmatpush1.bf16.msra.mxu1 %v16242_v13  ;;  %v16328_v12 = vld [vmem:[#allocation11 + $0x1a8] ss:$16 sps:$4 sm:$0xff]   ;;  %v16333_v13 = vld [vmem:[#allocation11 + $0x1c4] ss:$16 sps:$4 sm:$0xff]  }
 0x4b2   :  { %10962 = vmatprep.subr.bf16.mxu0 %v16249_v15  ;;  %11290 = vmatprep.subr.bf16.mxu1 %v16252_v16  ;;  %v16336_v15 = vld [vmem:[#allocation11 + $0x1cc] ss:$16 sps:$4 sm:$0xff]   ;;  %v16331_v16 = vld [vmem:[#allocation11 + $0x1c0] ss:$16 sps:$4 sm:$0xff]  }
 0x4b4   :  { %7472 = vmatmul.mubr.bf16.vlgmr.msra.gmra.mrb[4].mxu0 %v13215_v18  ;;  %7800 = vmatmul.mubr.bf16.vlgmr.msra.gmra.mrb[4].mxu1 %v13215_v18  ;;  %v16334_v18 = vld [vmem:[#allocation11 + $0x1c8] ss:$16 sps:$4 sm:$0xff]  }
 0x4b5   :  { %10963 = vmatpush1.bf16.msra.mxu0 %v16247_v20  ;;  %11291 = vmatpush1.bf16.msra.mxu1 %v16250_v11  ;;  %v16339_v20 = vld [vmem:[#allocation11 + $0x1e4] ss:$16 sps:$4 sm:$0xff]   ;;  %v16342_v11 = vld [vmem:[#allocation11 + $0x1ec] ss:$16 sps:$4 sm:$0xff]  }
 0x4b6   :  { %10964 = vmatprep.subr.bf16.mxu0 %v16255_v21  ;;  %11292 = vmatprep.subr.bf16.mxu1 %v16258_v22  ;;  %v16337_v21 = vld [vmem:[#allocation11 + $0x1e0] ss:$16 sps:$4 sm:$0xff]   ;;  %v16340_v22 = vld [vmem:[#allocation11 + $0x1e8] ss:$16 sps:$4 sm:$0xff]  }
 0x4b7   :  { %10994 = vmatprep.mubr.bf16.mxu0 %v13730_v14  ;;  %11322 = vmatprep.mubr.bf16.mxu1 %v13730_v14  ;;  %v16347_v14 = vld [vmem:[#allocation11 + $0x204] ss:$16 sps:$4 sm:$0xff]  }
 0x4b9   :  { %10965 = vmatpush1.bf16.msra.mxu0 %v16253_v23  ;;  %11293 = vmatpush1.bf16.msra.mxu1 %v16256_v17  ;;  %v16350_v23 = vld [vmem:[#allocation11 + $0x20c] ss:$16 sps:$4 sm:$0xff]   ;;  %v13729_v17 = vcombine.low %v17700_v3, %v17700_v3  ;;  %v16359_v3 = vld [vmem:[#allocation11 + $0x244] ss:$16 sps:$4 sm:$0xff]  }
 0x4ba   :  { %10966 = vmatprep.subr.bf16.mxu0 %v16261_v54  ;;  %11294 = vmatprep.subr.bf16.mxu1 %v16264_v26  ;;  %v17706_v54 = vld [vmem:[#allocation7 + $0x8] sm:$0xff]  ;;  %v16345_v26 = vld [vmem:[#allocation11 + $0x200] ss:$16 sps:$4 sm:$0xff]  }
 0x4bd   :  { %10967 = vmatpush1.bf16.msra.mxu0 %v16259_v27  ;;  %11295 = vmatpush1.bf16.msra.mxu1 %v16262_v19  ;;  %v16348_v27 = vld [vmem:[#allocation11 + $0x208] ss:$16 sps:$4 sm:$0xff]   ;;  %v16353_v19 = vld [vmem:[#allocation11 + $0x224] ss:$16 sps:$4 sm:$0xff]  }
 0x4be   :  { %10968 = vmatprep.subr.bf16.mxu0 %v16267_v29  ;;  %11296 = vmatprep.subr.bf16.mxu1 %v16270_v30  ;;  %v16356_v29 = vld [vmem:[#allocation11 + $0x22c] ss:$16 sps:$4 sm:$0xff]   ;;  %v13732_v30 = vcombine.high %v17706_v54, %v17706_v54 }
 0x4c1   :  { %10969 = vmatpush1.bf16.msra.mxu0 %v16265_v24  ;;  %11297 = vmatpush1.bf16.msra.mxu1 %v16268_v32  ;;  %v16351_v24 = vld [vmem:[#allocation11 + $0x220] ss:$16 sps:$4 sm:$0xff]   ;;  %v16354_v32 = vld [vmem:[#allocation11 + $0x228] ss:$16 sps:$4 sm:$0xff]  }
 0x4c2   :  { %10970 = vmatprep.subr.bf16.mxu0 %v16273_v33  ;;  %11298 = vmatprep.subr.bf16.mxu1 %v16276_v25  ;;  %v16362_v33 = vld [vmem:[#allocation11 + $0x24c] ss:$16 sps:$4 sm:$0xff]   ;;  %v16357_v25 = vld [vmem:[#allocation11 + $0x240] ss:$16 sps:$4 sm:$0xff]  }
 0x4c5   :  { %10971 = vmatpush1.bf16.msra.mxu0 %v16271_v35  ;;  %11299 = vmatpush1.bf16.msra.mxu1 %v16274_v36  ;;  %v16360_v35 = vld [vmem:[#allocation11 + $0x248] ss:$16 sps:$4 sm:$0xff]   ;;  %v16365_v36 = vld [vmem:[#allocation11 + $0x264] ss:$16 sps:$4 sm:$0xff]  }
 0x4c6   :  { %10972 = vmatprep.subr.bf16.mxu0 %v16279_v28  ;;  %11300 = vmatprep.subr.bf16.mxu1 %v16282_v38  ;;  %v16368_v28 = vld [vmem:[#allocation11 + $0x26c] ss:$16 sps:$4 sm:$0xff]   ;;  %v16363_v38 = vld [vmem:[#allocation11 + $0x260] ss:$16 sps:$4 sm:$0xff]  }
 0x4c9   :  { %10973 = vmatpush1.bf16.msra.mxu0 %v16277_v39  ;;  %11301 = vmatpush1.bf16.msra.mxu1 %v16280_v40  ;;  %v16366_v39 = vld [vmem:[#allocation11 + $0x268] ss:$16 sps:$4 sm:$0xff]   ;;  %v16371_v40 = vld [vmem:[#allocation11 + $0x284] ss:$16 sps:$4 sm:$0xff]  }
 0x4ca   :  { %10974 = vmatprep.subr.bf16.mxu0 %v16285_v31  ;;  %11302 = vmatprep.subr.bf16.mxu1 %v16288_v41  ;;  %v16374_v31 = vld [vmem:[#allocation11 + $0x28c] ss:$16 sps:$4 sm:$0xff]   ;;  %v16369_v41 = vld [vmem:[#allocation11 + $0x280] ss:$16 sps:$4 sm:$0xff]  }
 0x4cd   :  { %10975 = vmatpush1.bf16.msra.mxu0 %v16283_v42  ;;  %11303 = vmatpush1.bf16.msra.mxu1 %v16286_v43  ;;  %v16372_v42 = vld [vmem:[#allocation11 + $0x288] ss:$16 sps:$4 sm:$0xff]   ;;  %v16377_v43 = vld [vmem:[#allocation11 + $0x2a4] ss:$16 sps:$4 sm:$0xff]  }
 0x4ce   :  { %10976 = vmatprep.subr.bf16.mxu0 %v16291_v34  ;;  %11304 = vmatprep.subr.bf16.mxu1 %v16294_v44  ;;  %v16380_v34 = vld [vmem:[#allocation11 + $0x2ac] ss:$16 sps:$4 sm:$0xff]   ;;  %v16375_v44 = vld [vmem:[#allocation11 + $0x2a0] ss:$16 sps:$4 sm:$0xff]  }
 0x4d1   :  { %10977 = vmatpush1.bf16.msra.mxu0 %v16289_v45  ;;  %11305 = vmatpush1.bf16.msra.mxu1 %v16292_v47  ;;  %v16378_v45 = vld [vmem:[#allocation11 + $0x2a8] ss:$16 sps:$4 sm:$0xff]   ;;  %v16383_v47 = vld [vmem:[#allocation11 + $0x2c4] ss:$16 sps:$4 sm:$0xff]  }
 0x4d2   :  { %10978 = vmatprep.subr.bf16.mxu0 %v16297_v48  ;;  %11306 = vmatprep.subr.bf16.mxu1 %v16300_v49  ;;  %v16386_v48 = vld [vmem:[#allocation11 + $0x2cc] ss:$16 sps:$4 sm:$0xff]   ;;  %v16381_v49 = vld [vmem:[#allocation11 + $0x2c0] ss:$16 sps:$4 sm:$0xff]  }
 0x4d5   :  { %10979 = vmatpush1.bf16.msra.mxu0 %v16295_v50  ;;  %11307 = vmatpush1.bf16.msra.mxu1 %v16298_v51  ;;  %v16384_v50 = vld [vmem:[#allocation11 + $0x2c8] ss:$16 sps:$4 sm:$0xff]   ;;  %v16389_v51 = vld [vmem:[#allocation11 + $0x2e4] ss:$16 sps:$4 sm:$0xff]  }
 0x4d6   :  { %10980 = vmatprep.subr.bf16.mxu0 %v16303_v52  ;;  %11308 = vmatprep.subr.bf16.mxu1 %v16306_v53  ;;  %v16392_v52 = vld [vmem:[#allocation11 + $0x2ec] ss:$16 sps:$4 sm:$0xff]   ;;  %v16387_v53 = vld [vmem:[#allocation11 + $0x2e0] ss:$16 sps:$4 sm:$0xff]  }
 0x4d9   :  { %10981 = vmatpush1.bf16.msra.mxu0 %v16301_v37  ;;  %11309 = vmatpush1.bf16.msra.mxu1 %v16304_v55  ;;  %v16390_v37 = vld [vmem:[#allocation11 + $0x2e8] ss:$16 sps:$4 sm:$0xff]   ;;  %v16395_v55 = vld [vmem:[#allocation11 + $0x304] ss:$16 sps:$4 sm:$0xff]  }
 0x4da   :  { %10982 = vmatprep.subr.bf16.mxu0 %v16309_v56  ;;  %11310 = vmatprep.subr.bf16.mxu1 %v16312_v57  ;;  %v16398_v56 = vld [vmem:[#allocation11 + $0x30c] ss:$16 sps:$4 sm:$0xff]   ;;  %v16393_v57 = vld [vmem:[#allocation11 + $0x300] ss:$16 sps:$4 sm:$0xff]  }
 0x4dd   :  { %10983 = vmatpush1.bf16.msra.mxu0 %v16307_v58  ;;  %11311 = vmatpush1.bf16.msra.mxu1 %v16310_v59  ;;  %v16396_v58 = vld [vmem:[#allocation11 + $0x308] ss:$16 sps:$4 sm:$0xff]   ;;  %v16401_v59 = vld [vmem:[#allocation11 + $0x324] ss:$16 sps:$4 sm:$0xff]  }
 0x4de   :  { %10984 = vmatprep.subr.bf16.mxu0 %v16315_v60  ;;  %11312 = vmatprep.subr.bf16.mxu1 %v16318_v1  ;;  %v16404_v60 = vld [vmem:[#allocation11 + $0x32c] ss:$16 sps:$4 sm:$0xff]   ;;  %v16399_v1 = vld [vmem:[#allocation11 + $0x320] ss:$16 sps:$4 sm:$0xff]  }
 0x4e1   :  { %10985 = vmatpush1.bf16.msra.mxu0 %v16313_v46  ;;  %11313 = vmatpush1.bf16.msra.mxu1 %v16316_v2  ;;  %v16402_v46 = vld [vmem:[#allocation11 + $0x328] ss:$16 sps:$4 sm:$0xff]   ;;  %v16407_v2 = vld [vmem:[#allocation11 + $0x344] ss:$16 sps:$4 sm:$0xff]  }
 0x4e2   :  { %10986 = vmatprep.subr.bf16.mxu0 %v16321_v4  ;;  %11314 = vmatprep.subr.bf16.mxu1 %v16324_v5  ;;  %v16410_v4 = vld [vmem:[#allocation11 + $0x34c] ss:$16 sps:$4 sm:$0xff]   ;;  %v16405_v5 = vld [vmem:[#allocation11 + $0x340] ss:$16 sps:$4 sm:$0xff]  }
 0x4e5   :  { %10987 = vmatpush1.bf16.msra.mxu0 %v16319_v6  ;;  %11315 = vmatpush1.bf16.msra.mxu1 %v16322_v7  ;;  %v16408_v6 = vld [vmem:[#allocation11 + $0x348] ss:$16 sps:$4 sm:$0xff]   ;;  %v16413_v7 = vld [vmem:[#allocation11 + $0x364] ss:$16 sps:$4 sm:$0xff]  }
 0x4e6   :  { %10988 = vmatprep.subr.bf16.mxu0 %v16327_v8  ;;  %11316 = vmatprep.subr.bf16.mxu1 %v16330_v9  ;;  %v16416_v8 = vld [vmem:[#allocation11 + $0x36c] ss:$16 sps:$4 sm:$0xff]   ;;  %v16411_v9 = vld [vmem:[#allocation11 + $0x360] ss:$16 sps:$4 sm:$0xff]  }
 0x4e9   :  { %10989 = vmatpush1.bf16.msra.mxu0 %v16325_v10  ;;  %11317 = vmatpush1.bf16.msra.mxu1 %v16328_v12  ;;  %v16414_v10 = vld [vmem:[#allocation11 + $0x368] ss:$16 sps:$4 sm:$0xff]   ;;  %v16419_v12 = vld [vmem:[#allocation11 + $0x384] ss:$16 sps:$4 sm:$0xff]  }
 0x4ea   :  { %10990 = vmatprep.subr.bf16.mxu0 %v16333_v13  ;;  %11318 = vmatprep.subr.bf16.mxu1 %v16336_v15  ;;  %v16422_v13 = vld [vmem:[#allocation11 + $0x38c] ss:$16 sps:$4 sm:$0xff]   ;;  %v16417_v15 = vld [vmem:[#allocation11 + $0x380] ss:$16 sps:$4 sm:$0xff]  }
 0x4ed   :  { %10991 = vmatpush1.bf16.msra.mxu0 %v16331_v16  ;;  %11319 = vmatpush1.bf16.msra.mxu1 %v16334_v18  ;;  %v16420_v16 = vld [vmem:[#allocation11 + $0x388] ss:$16 sps:$4 sm:$0xff]   ;;  %v16425_v18 = vld [vmem:[#allocation11 + $0x3a4] ss:$16 sps:$4 sm:$0xff]  }
 0x4ee   :  { %10992 = vmatprep.subr.bf16.mxu0 %v16339_v20  ;;  %11320 = vmatprep.subr.bf16.mxu1 %v16342_v11  ;;  %v16428_v20 = vld [vmem:[#allocation11 + $0x3ac] ss:$16 sps:$4 sm:$0xff]   ;;  %v16423_v11 = vld [vmem:[#allocation11 + $0x3a0] ss:$16 sps:$4 sm:$0xff]  }
 0x4f1   :  { %10993 = vmatpush1.bf16.msra.mxu0 %v16337_v21  ;;  %11321 = vmatpush1.bf16.msra.mxu1 %v16340_v22  ;;  %v16426_v21 = vld [vmem:[#allocation11 + $0x3a8] ss:$16 sps:$4 sm:$0xff]   ;;  %v16431_v22 = vld [vmem:[#allocation11 + $0x3c4] ss:$16 sps:$4 sm:$0xff]  }
 0x4f2   :  { %11003 = vmatprep.subr.bf16.mxu0 %v16347_v14  ;;  %11331 = vmatprep.subr.bf16.mxu1 %v16350_v23  ;;  %v16434_v14 = vld [vmem:[#allocation11 + $0x3cc] ss:$16 sps:$4 sm:$0xff]   ;;  %v16429_v23 = vld [vmem:[#allocation11 + $0x3c0] ss:$16 sps:$4 sm:$0xff]  }
 0x4f4   :  { %10995 = vmatmul.mubr.bf16.vlgmr.msra.gmra.mrb[8].mxu0 %v13729_v17  ;;  %11323 = vmatmul.mubr.bf16.vlgmr.msra.gmra.mrb[8].mxu1 %v13729_v17  ;;  %v16432_v17 = vld [vmem:[#allocation11 + $0x3c8] ss:$16 sps:$4 sm:$0xff]  }
 0x4f5   :  { %11004 = vmatpush1.bf16.msra.mxu0 %v16345_v26  ;;  %11332 = vmatpush1.bf16.msra.mxu1 %v16348_v27  ;;  %v16437_v26 = vld [vmem:[#allocation11 + $0x3e4] ss:$16 sps:$4 sm:$0xff]   ;;  %v16440_v27 = vld [vmem:[#allocation11 + $0x3ec] ss:$16 sps:$4 sm:$0xff]  }
 0x4f6   :  { %11005 = vmatprep.subr.bf16.mxu0 %v16353_v19  ;;  %11333 = vmatprep.subr.bf16.mxu1 %v16356_v29  ;;  %v16435_v19 = vld [vmem:[#allocation11 + $0x3e0] ss:$16 sps:$4 sm:$0xff]   ;;  %v16438_v29 = vld [vmem:[#allocation11 + $0x3e8] ss:$16 sps:$4 sm:$0xff]  }
 0x4f7   :  { %11035 = vmatprep.mubr.bf16.mxu0 %v13732_v30  ;;  %11363 = vmatprep.mubr.bf16.mxu1 %v13732_v30  ;;  %v16445_v30 = vld [vmem:[#allocation11 + $0x404] ss:$16 sps:$4 sm:$0xff]  }
 0x4f9   :  { %11006 = vmatpush1.bf16.msra.mxu0 %v16351_v24  ;;  %11334 = vmatpush1.bf16.msra.mxu1 %v16354_v32  ;;  %v16448_v24 = vld [vmem:[#allocation11 + $0x40c] ss:$16 sps:$4 sm:$0xff]   ;;  %v13731_v32 = vcombine.low %v17706_v54, %v17706_v54  ;;  %v16457_v54 = vld [vmem:[#allocation11 + $0x444] ss:$16 sps:$4 sm:$0xff]  }
 0x4fa   :  { %11007 = vmatprep.subr.bf16.mxu0 %v16359_v3  ;;  %11335 = vmatprep.subr.bf16.mxu1 %v16362_v33  ;;  %v17712_v3 = vld [vmem:[#allocation7 + $0x10] sm:$0xff] }
 0x4fb   :  { %v16443_v33 = vld [vmem:[#allocation11 + $0x400] ss:$16 sps:$4 sm:$0xff]  }
 0x4fd   :  { %11008 = vmatpush1.bf16.msra.mxu0 %v16357_v25  ;;  %11336 = vmatpush1.bf16.msra.mxu1 %v16360_v35  ;;  %v16446_v25 = vld [vmem:[#allocation11 + $0x408] ss:$16 sps:$4 sm:$0xff]   ;;  %v16451_v35 = vld [vmem:[#allocation11 + $0x424] ss:$16 sps:$4 sm:$0xff]  }
 0x4fe   :  { %11009 = vmatprep.subr.bf16.mxu0 %v16365_v36  ;;  %11337 = vmatprep.subr.bf16.mxu1 %v16368_v28  ;;  %v16454_v36 = vld [vmem:[#allocation11 + $0x42c] ss:$16 sps:$4 sm:$0xff]   ;;  %v13734_v28 = vcombine.high %v17712_v3, %v17712_v3 }
 0x501   :  { %11010 = vmatpush1.bf16.msra.mxu0 %v16363_v38  ;;  %11338 = vmatpush1.bf16.msra.mxu1 %v16366_v39  ;;  %v16449_v38 = vld [vmem:[#allocation11 + $0x420] ss:$16 sps:$4 sm:$0xff]   ;;  %v16452_v39 = vld [vmem:[#allocation11 + $0x428] ss:$16 sps:$4 sm:$0xff]  }
 0x502   :  { %11011 = vmatprep.subr.bf16.mxu0 %v16371_v40  ;;  %11339 = vmatprep.subr.bf16.mxu1 %v16374_v31  ;;  %v16460_v40 = vld [vmem:[#allocation11 + $0x44c] ss:$16 sps:$4 sm:$0xff]   ;;  %v16455_v31 = vld [vmem:[#allocation11 + $0x440] ss:$16 sps:$4 sm:$0xff]  }
 0x505   :  { %11012 = vmatpush1.bf16.msra.mxu0 %v16369_v41  ;;  %11340 = vmatpush1.bf16.msra.mxu1 %v16372_v42  ;;  %v16458_v41 = vld [vmem:[#allocation11 + $0x448] ss:$16 sps:$4 sm:$0xff]   ;;  %v16463_v42 = vld [vmem:[#allocation11 + $0x464] ss:$16 sps:$4 sm:$0xff]  }
 0x506   :  { %11013 = vmatprep.subr.bf16.mxu0 %v16377_v43  ;;  %11341 = vmatprep.subr.bf16.mxu1 %v16380_v34  ;;  %v16466_v43 = vld [vmem:[#allocation11 + $0x46c] ss:$16 sps:$4 sm:$0xff]   ;;  %v16461_v34 = vld [vmem:[#allocation11 + $0x460] ss:$16 sps:$4 sm:$0xff]  }
 0x509   :  { %11014 = vmatpush1.bf16.msra.mxu0 %v16375_v44  ;;  %11342 = vmatpush1.bf16.msra.mxu1 %v16378_v45  ;;  %v16464_v44 = vld [vmem:[#allocation11 + $0x468] ss:$16 sps:$4 sm:$0xff]   ;;  %v16469_v45 = vld [vmem:[#allocation11 + $0x484] ss:$16 sps:$4 sm:$0xff]  }
 0x50a   :  { %11015 = vmatprep.subr.bf16.mxu0 %v16383_v47  ;;  %11343 = vmatprep.subr.bf16.mxu1 %v16386_v48  ;;  %v16472_v47 = vld [vmem:[#allocation11 + $0x48c] ss:$16 sps:$4 sm:$0xff]   ;;  %v16467_v48 = vld [vmem:[#allocation11 + $0x480] ss:$16 sps:$4 sm:$0xff]  }
 0x50d   :  { %11016 = vmatpush1.bf16.msra.mxu0 %v16381_v49  ;;  %11344 = vmatpush1.bf16.msra.mxu1 %v16384_v50  ;;  %v16470_v49 = vld [vmem:[#allocation11 + $0x488] ss:$16 sps:$4 sm:$0xff]   ;;  %v16475_v50 = vld [vmem:[#allocation11 + $0x4a4] ss:$16 sps:$4 sm:$0xff]  }
 0x50e   :  { %11017 = vmatprep.subr.bf16.mxu0 %v16389_v51  ;;  %11345 = vmatprep.subr.bf16.mxu1 %v16392_v52  ;;  %v16478_v51 = vld [vmem:[#allocation11 + $0x4ac] ss:$16 sps:$4 sm:$0xff]   ;;  %v16473_v52 = vld [vmem:[#allocation11 + $0x4a0] ss:$16 sps:$4 sm:$0xff]  }
 0x511   :  { %11018 = vmatpush1.bf16.msra.mxu0 %v16387_v53  ;;  %11346 = vmatpush1.bf16.msra.mxu1 %v16390_v37  ;;  %v16476_v53 = vld [vmem:[#allocation11 + $0x4a8] ss:$16 sps:$4 sm:$0xff]   ;;  %v16481_v37 = vld [vmem:[#allocation11 + $0x4c4] ss:$16 sps:$4 sm:$0xff]  }
 0x512   :  { %11019 = vmatprep.subr.bf16.mxu0 %v16395_v55  ;;  %11347 = vmatprep.subr.bf16.mxu1 %v16398_v56  ;;  %v16484_v55 = vld [vmem:[#allocation11 + $0x4cc] ss:$16 sps:$4 sm:$0xff]   ;;  %v16479_v56 = vld [vmem:[#allocation11 + $0x4c0] ss:$16 sps:$4 sm:$0xff]  }
 0x515   :  { %11020 = vmatpush1.bf16.msra.mxu0 %v16393_v57  ;;  %11348 = vmatpush1.bf16.msra.mxu1 %v16396_v58  ;;  %v16482_v57 = vld [vmem:[#allocation11 + $0x4c8] ss:$16 sps:$4 sm:$0xff]   ;;  %v16487_v58 = vld [vmem:[#allocation11 + $0x4e4] ss:$16 sps:$4 sm:$0xff]  }
 0x516   :  { %11021 = vmatprep.subr.bf16.mxu0 %v16401_v59  ;;  %11349 = vmatprep.subr.bf16.mxu1 %v16404_v60  ;;  %v16490_v59 = vld [vmem:[#allocation11 + $0x4ec] ss:$16 sps:$4 sm:$0xff]   ;;  %v16485_v60 = vld [vmem:[#allocation11 + $0x4e0] ss:$16 sps:$4 sm:$0xff]  }
 0x519   :  { %11022 = vmatpush1.bf16.msra.mxu0 %v16399_v1  ;;  %11350 = vmatpush1.bf16.msra.mxu1 %v16402_v46  ;;  %v16488_v1 = vld [vmem:[#allocation11 + $0x4e8] ss:$16 sps:$4 sm:$0xff]   ;;  %v16493_v46 = vld [vmem:[#allocation11 + $0x504] ss:$16 sps:$4 sm:$0xff]  }
 0x51a   :  { %11023 = vmatprep.subr.bf16.mxu0 %v16407_v2  ;;  %11351 = vmatprep.subr.bf16.mxu1 %v16410_v4  ;;  %v16496_v2 = vld [vmem:[#allocation11 + $0x50c] ss:$16 sps:$4 sm:$0xff]   ;;  %v16491_v4 = vld [vmem:[#allocation11 + $0x500] ss:$16 sps:$4 sm:$0xff]  }
 0x51d   :  { %11024 = vmatpush1.bf16.msra.mxu0 %v16405_v5  ;;  %11352 = vmatpush1.bf16.msra.mxu1 %v16408_v6  ;;  %v16494_v5 = vld [vmem:[#allocation11 + $0x508] ss:$16 sps:$4 sm:$0xff]   ;;  %v16499_v6 = vld [vmem:[#allocation11 + $0x524] ss:$16 sps:$4 sm:$0xff]  }
 0x51e   :  { %11025 = vmatprep.subr.bf16.mxu0 %v16413_v7  ;;  %11353 = vmatprep.subr.bf16.mxu1 %v16416_v8  ;;  %v16502_v7 = vld [vmem:[#allocation11 + $0x52c] ss:$16 sps:$4 sm:$0xff]   ;;  %v16497_v8 = vld [vmem:[#allocation11 + $0x520] ss:$16 sps:$4 sm:$0xff]  }
 0x521   :  { %11026 = vmatpush1.bf16.msra.mxu0 %v16411_v9  ;;  %11354 = vmatpush1.bf16.msra.mxu1 %v16414_v10  ;;  %v16500_v9 = vld [vmem:[#allocation11 + $0x528] ss:$16 sps:$4 sm:$0xff]   ;;  %v16505_v10 = vld [vmem:[#allocation11 + $0x544] ss:$16 sps:$4 sm:$0xff]  }
 0x522   :  { %11027 = vmatprep.subr.bf16.mxu0 %v16419_v12  ;;  %11355 = vmatprep.subr.bf16.mxu1 %v16422_v13  ;;  %v16508_v12 = vld [vmem:[#allocation11 + $0x54c] ss:$16 sps:$4 sm:$0xff]   ;;  %v16503_v13 = vld [vmem:[#allocation11 + $0x540] ss:$16 sps:$4 sm:$0xff]  }
 0x525   :  { %11028 = vmatpush1.bf16.msra.mxu0 %v16417_v15  ;;  %11356 = vmatpush1.bf16.msra.mxu1 %v16420_v16  ;;  %v16506_v15 = vld [vmem:[#allocation11 + $0x548] ss:$16 sps:$4 sm:$0xff]   ;;  %v16511_v16 = vld [vmem:[#allocation11 + $0x564] ss:$16 sps:$4 sm:$0xff]  }
 0x526   :  { %11029 = vmatprep.subr.bf16.mxu0 %v16425_v18  ;;  %11357 = vmatprep.subr.bf16.mxu1 %v16428_v20  ;;  %v16514_v18 = vld [vmem:[#allocation11 + $0x56c] ss:$16 sps:$4 sm:$0xff]   ;;  %v16509_v20 = vld [vmem:[#allocation11 + $0x560] ss:$16 sps:$4 sm:$0xff]  }
 0x529   :  { %11030 = vmatpush1.bf16.msra.mxu0 %v16423_v11  ;;  %11358 = vmatpush1.bf16.msra.mxu1 %v16426_v21  ;;  %v16512_v11 = vld [vmem:[#allocation11 + $0x568] ss:$16 sps:$4 sm:$0xff]   ;;  %v16517_v21 = vld [vmem:[#allocation11 + $0x584] ss:$16 sps:$4 sm:$0xff]  }
 0x52a   :  { %11031 = vmatprep.subr.bf16.mxu0 %v16431_v22  ;;  %11359 = vmatprep.subr.bf16.mxu1 %v16434_v14  ;;  %v16520_v22 = vld [vmem:[#allocation11 + $0x58c] ss:$16 sps:$4 sm:$0xff]   ;;  %v16515_v14 = vld [vmem:[#allocation11 + $0x580] ss:$16 sps:$4 sm:$0xff]  }
 0x52d   :  { %11032 = vmatpush1.bf16.msra.mxu0 %v16429_v23  ;;  %11360 = vmatpush1.bf16.msra.mxu1 %v16432_v17  ;;  %v16518_v23 = vld [vmem:[#allocation11 + $0x588] ss:$16 sps:$4 sm:$0xff]   ;;  %v16523_v17 = vld [vmem:[#allocation11 + $0x5a4] ss:$16 sps:$4 sm:$0xff]  }
 0x52e   :  { %11033 = vmatprep.subr.bf16.mxu0 %v16437_v26  ;;  %11361 = vmatprep.subr.bf16.mxu1 %v16440_v27  ;;  %v16526_v26 = vld [vmem:[#allocation11 + $0x5ac] ss:$16 sps:$4 sm:$0xff]   ;;  %v16521_v27 = vld [vmem:[#allocation11 + $0x5a0] ss:$16 sps:$4 sm:$0xff]  }
 0x531   :  { %11034 = vmatpush1.bf16.msra.mxu0 %v16435_v19  ;;  %11362 = vmatpush1.bf16.msra.mxu1 %v16438_v29  ;;  %v16524_v19 = vld [vmem:[#allocation11 + $0x5a8] ss:$16 sps:$4 sm:$0xff]   ;;  %v16529_v29 = vld [vmem:[#allocation11 + $0x5c4] ss:$16 sps:$4 sm:$0xff]  }
 0x532   :  { %11044 = vmatprep.subr.bf16.mxu0 %v16445_v30  ;;  %11372 = vmatprep.subr.bf16.mxu1 %v16448_v24  ;;  %v16532_v30 = vld [vmem:[#allocation11 + $0x5cc] ss:$16 sps:$4 sm:$0xff]   ;;  %v16527_v24 = vld [vmem:[#allocation11 + $0x5c0] ss:$16 sps:$4 sm:$0xff]  }
 0x534   :  { %11036 = vmatmul.mubr.bf16.vlgmr.msra.gmra.mrb[8].mxu0 %v13731_v32  ;;  %11364 = vmatmul.mubr.bf16.vlgmr.msra.gmra.mrb[8].mxu1 %v13731_v32  ;;  %v16530_v32 = vld [vmem:[#allocation11 + $0x5c8] ss:$16 sps:$4 sm:$0xff]  }
 0x535   :  { %11045 = vmatpush1.bf16.msra.mxu0 %v16443_v33  ;;  %11373 = vmatpush1.bf16.msra.mxu1 %v16446_v25  ;;  %v16535_v33 = vld [vmem:[#allocation11 + $0x5e4] ss:$16 sps:$4 sm:$0xff]   ;;  %v16538_v25 = vld [vmem:[#allocation11 + $0x5ec] ss:$16 sps:$4 sm:$0xff]  }
 0x536   :  { %11046 = vmatprep.subr.bf16.mxu0 %v16451_v35  ;;  %11374 = vmatprep.subr.bf16.mxu1 %v16454_v36  ;;  %v16533_v35 = vld [vmem:[#allocation11 + $0x5e0] ss:$16 sps:$4 sm:$0xff]   ;;  %v16536_v36 = vld [vmem:[#allocation11 + $0x5e8] ss:$16 sps:$4 sm:$0xff]  }
 0x537   :  { %11076 = vmatprep.mubr.bf16.mxu0 %v13734_v28  ;;  %11404 = vmatprep.mubr.bf16.mxu1 %v13734_v28  ;;  %v16543_v28 = vld [vmem:[#allocation11 + $0x604] ss:$16 sps:$4 sm:$0xff]  }
 0x539   :  { %11047 = vmatpush1.bf16.msra.mxu0 %v16449_v38  ;;  %11375 = vmatpush1.bf16.msra.mxu1 %v16452_v39  ;;  %v16546_v38 = vld [vmem:[#allocation11 + $0x60c] ss:$16 sps:$4 sm:$0xff]   ;;  %v13733_v39 = vcombine.low %v17712_v3, %v17712_v3  ;;  %v16555_v3 = vld [vmem:[#allocation11 + $0x644] ss:$16 sps:$4 sm:$0xff]  }
 0x53a   :  { %11048 = vmatprep.subr.bf16.mxu0 %v16457_v54  ;;  %11376 = vmatprep.subr.bf16.mxu1 %v16460_v40  ;;  %v17718_v54 = vld [vmem:[#allocation7 + $0x18] sm:$0xff]  ;;  %v16541_v40 = vld [vmem:[#allocation11 + $0x600] ss:$16 sps:$4 sm:$0xff]  }
 0x53d   :  { %11049 = vmatpush1.bf16.msra.mxu0 %v16455_v31  ;;  %11377 = vmatpush1.bf16.msra.mxu1 %v16458_v41  ;;  %v16544_v31 = vld [vmem:[#allocation11 + $0x608] ss:$16 sps:$4 sm:$0xff]   ;;  %v16549_v41 = vld [vmem:[#allocation11 + $0x624] ss:$16 sps:$4 sm:$0xff]  }
 0x53e   :  { %11050 = vmatprep.subr.bf16.mxu0 %v16463_v42  ;;  %11378 = vmatprep.subr.bf16.mxu1 %v16466_v43  ;;  %v16552_v42 = vld [vmem:[#allocation11 + $0x62c] ss:$16 sps:$4 sm:$0xff]   ;;  %v13736_v43 = vcombine.high %v17718_v54, %v17718_v54 }
 0x541   :  { %11051 = vmatpush1.bf16.msra.mxu0 %v16461_v34  ;;  %11379 = vmatpush1.bf16.msra.mxu1 %v16464_v44  ;;  %v16547_v34 = vld [vmem:[#allocation11 + $0x620] ss:$16 sps:$4 sm:$0xff]   ;;  %v16550_v44 = vld [vmem:[#allocation11 + $0x628] ss:$16 sps:$4 sm:$0xff]  }
 0x542   :  { %11052 = vmatprep.subr.bf16.mxu0 %v16469_v45  ;;  %11380 = vmatprep.subr.bf16.mxu1 %v16472_v47  ;;  %v16558_v45 = vld [vmem:[#allocation11 + $0x64c] ss:$16 sps:$4 sm:$0xff]   ;;  %v16553_v47 = vld [vmem:[#allocation11 + $0x640] ss:$16 sps:$4 sm:$0xff]  }
 0x545   :  { %11053 = vmatpush1.bf16.msra.mxu0 %v16467_v48  ;;  %11381 = vmatpush1.bf16.msra.mxu1 %v16470_v49  ;;  %v16556_v48 = vld [vmem:[#allocation11 + $0x648] ss:$16 sps:$4 sm:$0xff]   ;;  %v16561_v49 = vld [vmem:[#allocation11 + $0x664] ss:$16 sps:$4 sm:$0xff]  }
 0x546   :  { %11054 = vmatprep.subr.bf16.mxu0 %v16475_v50  ;;  %11382 = vmatprep.subr.bf16.mxu1 %v16478_v51  ;;  %v16564_v50 = vld [vmem:[#allocation11 + $0x66c] ss:$16 sps:$4 sm:$0xff]   ;;  %v16559_v51 = vld [vmem:[#allocation11 + $0x660] ss:$16 sps:$4 sm:$0xff]  }
 0x549   :  { %11055 = vmatpush1.bf16.msra.mxu0 %v16473_v52  ;;  %11383 = vmatpush1.bf16.msra.mxu1 %v16476_v53  ;;  %v16562_v52 = vld [vmem:[#allocation11 + $0x668] ss:$16 sps:$4 sm:$0xff]   ;;  %v16567_v53 = vld [vmem:[#allocation11 + $0x684] ss:$16 sps:$4 sm:$0xff]  }
 0x54a   :  { %11056 = vmatprep.subr.bf16.mxu0 %v16481_v37  ;;  %11384 = vmatprep.subr.bf16.mxu1 %v16484_v55  ;;  %v16570_v37 = vld [vmem:[#allocation11 + $0x68c] ss:$16 sps:$4 sm:$0xff]   ;;  %v16565_v55 = vld [vmem:[#allocation11 + $0x680] ss:$16 sps:$4 sm:$0xff]  }
 0x54d   :  { %11057 = vmatpush1.bf16.msra.mxu0 %v16479_v56  ;;  %11385 = vmatpush1.bf16.msra.mxu1 %v16482_v57  ;;  %v16568_v56 = vld [vmem:[#allocation11 + $0x688] ss:$16 sps:$4 sm:$0xff]   ;;  %v16573_v57 = vld [vmem:[#allocation11 + $0x6a4] ss:$16 sps:$4 sm:$0xff]  }
 0x54e   :  { %11058 = vmatprep.subr.bf16.mxu0 %v16487_v58  ;;  %11386 = vmatprep.subr.bf16.mxu1 %v16490_v59  ;;  %v16576_v58 = vld [vmem:[#allocation11 + $0x6ac] ss:$16 sps:$4 sm:$0xff]   ;;  %v16571_v59 = vld [vmem:[#allocation11 + $0x6a0] ss:$16 sps:$4 sm:$0xff]  }
 0x551   :  { %11059 = vmatpush1.bf16.msra.mxu0 %v16485_v60  ;;  %11387 = vmatpush1.bf16.msra.mxu1 %v16488_v1  ;;  %v16574_v60 = vld [vmem:[#allocation11 + $0x6a8] ss:$16 sps:$4 sm:$0xff]   ;;  %v16579_v1 = vld [vmem:[#allocation11 + $0x6c4] ss:$16 sps:$4 sm:$0xff]  }
 0x552   :  { %11060 = vmatprep.subr.bf16.mxu0 %v16493_v46  ;;  %11388 = vmatprep.subr.bf16.mxu1 %v16496_v2  ;;  %v16582_v46 = vld [vmem:[#allocation11 + $0x6cc] ss:$16 sps:$4 sm:$0xff]  }
 0x555   :  { %11061 = vmatpush1.bf16.msra.mxu0 %v16491_v4  ;;  %11389 = vmatpush1.bf16.msra.mxu1 %v16494_v5 }
 0x556   :  { %11062 = vmatprep.subr.bf16.mxu0 %v16499_v6  ;;  %11390 = vmatprep.subr.bf16.mxu1 %v16502_v7 }
 0x559   :  { %11063 = vmatpush1.bf16.msra.mxu0 %v16497_v8  ;;  %11391 = vmatpush1.bf16.msra.mxu1 %v16500_v9  ;;  %v16577_v9 = vld [vmem:[#allocation11 + $0x6c0] ss:$16 sps:$4 sm:$0xff]  }
 0x55a   :  { %11064 = vmatprep.subr.bf16.mxu0 %v16505_v10  ;;  %11392 = vmatprep.subr.bf16.mxu1 %v16508_v12  ;;  %v16580_v10 = vld [vmem:[#allocation11 + $0x6c8] ss:$16 sps:$4 sm:$0xff]  }
 0x55d   :  { %11065 = vmatpush1.bf16.msra.mxu0 %v16503_v13  ;;  %11393 = vmatpush1.bf16.msra.mxu1 %v16506_v15  ;;  %v16585_v15 = vld [vmem:[#allocation11 + $0x6e4] ss:$16 sps:$4 sm:$0xff]  }
 0x55e   :  { %11066 = vmatprep.subr.bf16.mxu0 %v16511_v16  ;;  %11394 = vmatprep.subr.bf16.mxu1 %v16514_v18  ;;  %v16588_v16 = vld [vmem:[#allocation11 + $0x6ec] ss:$16 sps:$4 sm:$0xff]   ;;  %v16583_v18 = vld [vmem:[#allocation11 + $0x6e0] ss:$16 sps:$4 sm:$0xff]  }
 0x561   :  { %11067 = vmatpush1.bf16.msra.mxu0 %v16509_v20  ;;  %11395 = vmatpush1.bf16.msra.mxu1 %v16512_v11  ;;  %v16586_v20 = vld [vmem:[#allocation11 + $0x6e8] ss:$16 sps:$4 sm:$0xff]   ;;  %v16591_v11 = vld [vmem:[#allocation11 + $0x704] ss:$16 sps:$4 sm:$0xff]  }
 0x562   :  { %11068 = vmatprep.subr.bf16.mxu0 %v16517_v21  ;;  %11396 = vmatprep.subr.bf16.mxu1 %v16520_v22  ;;  %v16594_v21 = vld [vmem:[#allocation11 + $0x70c] ss:$16 sps:$4 sm:$0xff]   ;;  %v16589_v22 = vld [vmem:[#allocation11 + $0x700] ss:$16 sps:$4 sm:$0xff]  }
 0x565   :  { %11069 = vmatpush1.bf16.msra.mxu0 %v16515_v14  ;;  %11397 = vmatpush1.bf16.msra.mxu1 %v16518_v23  ;;  %v16592_v14 = vld [vmem:[#allocation11 + $0x708] ss:$16 sps:$4 sm:$0xff]   ;;  %v16597_v23 = vld [vmem:[#allocation11 + $0x724] ss:$16 sps:$4 sm:$0xff]  }
 0x566   :  { %11070 = vmatprep.subr.bf16.mxu0 %v16523_v17  ;;  %11398 = vmatprep.subr.bf16.mxu1 %v16526_v26  ;;  %v16600_v17 = vld [vmem:[#allocation11 + $0x72c] ss:$16 sps:$4 sm:$0xff]   ;;  %v16595_v26 = vld [vmem:[#allocation11 + $0x720] ss:$16 sps:$4 sm:$0xff]  }
 0x569   :  { %11071 = vmatpush1.bf16.msra.mxu0 %v16521_v27  ;;  %11399 = vmatpush1.bf16.msra.mxu1 %v16524_v19  ;;  %v16598_v27 = vld [vmem:[#allocation11 + $0x728] ss:$16 sps:$4 sm:$0xff]   ;;  %v16603_v19 = vld [vmem:[#allocation11 + $0x744] ss:$16 sps:$4 sm:$0xff]  }
 0x56a   :  { %11072 = vmatprep.subr.bf16.mxu0 %v16529_v29  ;;  %11400 = vmatprep.subr.bf16.mxu1 %v16532_v30  ;;  %v16606_v29 = vld [vmem:[#allocation11 + $0x74c] ss:$16 sps:$4 sm:$0xff]   ;;  %v16601_v30 = vld [vmem:[#allocation11 + $0x740] ss:$16 sps:$4 sm:$0xff]  }
 0x56d   :  { %11073 = vmatpush1.bf16.msra.mxu0 %v16527_v24  ;;  %11401 = vmatpush1.bf16.msra.mxu1 %v16530_v32  ;;  %v16604_v24 = vld [vmem:[#allocation11 + $0x748] ss:$16 sps:$4 sm:$0xff]   ;;  %v16609_v32 = vld [vmem:[#allocation11 + $0x764] ss:$16 sps:$4 sm:$0xff]  }
 0x56e   :  { %11074 = vmatprep.subr.bf16.mxu0 %v16535_v33  ;;  %11402 = vmatprep.subr.bf16.mxu1 %v16538_v25  ;;  %v16612_v33 = vld [vmem:[#allocation11 + $0x76c] ss:$16 sps:$4 sm:$0xff]   ;;  %v16607_v25 = vld [vmem:[#allocation11 + $0x760] ss:$16 sps:$4 sm:$0xff]  }
 0x571   :  { %11075 = vmatpush1.bf16.msra.mxu0 %v16533_v35  ;;  %11403 = vmatpush1.bf16.msra.mxu1 %v16536_v36  ;;  %v16610_v35 = vld [vmem:[#allocation11 + $0x768] ss:$16 sps:$4 sm:$0xff]   ;;  %v16615_v36 = vld [vmem:[#allocation11 + $0x784] ss:$16 sps:$4 sm:$0xff]  }
 0x572   :  { %11085 = vmatprep.subr.bf16.mxu0 %v16543_v28  ;;  %11413 = vmatprep.subr.bf16.mxu1 %v16546_v38  ;;  %v16618_v28 = vld [vmem:[#allocation11 + $0x78c] ss:$16 sps:$4 sm:$0xff]   ;;  %v16613_v38 = vld [vmem:[#allocation11 + $0x780] ss:$16 sps:$4 sm:$0xff]  }
 0x574   :  { %11077 = vmatmul.mubr.bf16.vlgmr.msra.gmra.mrb[8].mxu0 %v13733_v39  ;;  %11405 = vmatmul.mubr.bf16.vlgmr.msra.gmra.mrb[8].mxu1 %v13733_v39  ;;  %v16616_v39 = vld [vmem:[#allocation11 + $0x788] ss:$16 sps:$4 sm:$0xff]  }
 0x575   :  { %11086 = vmatpush1.bf16.msra.mxu0 %v16541_v40  ;;  %11414 = vmatpush1.bf16.msra.mxu1 %v16544_v31  ;;  %v16621_v40 = vld [vmem:[#allocation11 + $0x7a4] ss:$16 sps:$4 sm:$0xff]   ;;  %v16624_v31 = vld [vmem:[#allocation11 + $0x7ac] ss:$16 sps:$4 sm:$0xff]  }
 0x576   :  { %11087 = vmatprep.subr.bf16.mxu0 %v16549_v41  ;;  %11415 = vmatprep.subr.bf16.mxu1 %v16552_v42  ;;  %v16619_v41 = vld [vmem:[#allocation11 + $0x7a0] ss:$16 sps:$4 sm:$0xff]   ;;  %v16622_v42 = vld [vmem:[#allocation11 + $0x7a8] ss:$16 sps:$4 sm:$0xff]  }
 0x577   :  { %11117 = vmatprep.mubr.bf16.mxu0 %v13736_v43  ;;  %11445 = vmatprep.mubr.bf16.mxu1 %v13736_v43  ;;  %v16627_v43 = vld [vmem:[#allocation11 + $0x7c4] ss:$16 sps:$4 sm:$0xff]  }
 0x579   :  { %11088 = vmatpush1.bf16.msra.mxu0 %v16547_v34  ;;  %11416 = vmatpush1.bf16.msra.mxu1 %v16550_v44  ;;  %v16630_v34 = vld [vmem:[#allocation11 + $0x7cc] ss:$16 sps:$4 sm:$0xff]   ;;  %v16625_v44 = vld [vmem:[#allocation11 + $0x7c0] ss:$16 sps:$4 sm:$0xff]  }
 0x57a   :  { %11089 = vmatprep.subr.bf16.mxu0 %v16555_v3  ;;  %11417 = vmatprep.subr.bf16.mxu1 %v16558_v45  ;;  %v16628_v3 = vld [vmem:[#allocation11 + $0x7c8] ss:$16 sps:$4 sm:$0xff]   ;;  %v16633_v45 = vld [vmem:[#allocation11 + $0x7e4] ss:$16 sps:$4 sm:$0xff]  }
 0x57d   :  { %11090 = vmatpush1.bf16.msra.mxu0 %v16553_v47  ;;  %11418 = vmatpush1.bf16.msra.mxu1 %v16556_v48  ;;  %v16636_v47 = vld [vmem:[#allocation11 + $0x7ec] ss:$16 sps:$4 sm:$0xff]   ;;  %v16631_v48 = vld [vmem:[#allocation11 + $0x7e0] ss:$16 sps:$4 sm:$0xff]  }
 0x57e   :  { %11091 = vmatprep.subr.bf16.mxu0 %v16561_v49  ;;  %11419 = vmatprep.subr.bf16.mxu1 %v16564_v50  ;;  %v16634_v49 = vld [vmem:[#allocation11 + $0x7e8] ss:$16 sps:$4 sm:$0xff]   ;;  %v16641_v50 = vld [vmem:[#allocation11 + $0x804] ss:$16 sps:$4 sm:$0xff]  }
 0x581   :  { %11092 = vmatpush1.bf16.msra.mxu0 %v16559_v51  ;;  %11420 = vmatpush1.bf16.msra.mxu1 %v16562_v52  ;;  %v16644_v51 = vld [vmem:[#allocation11 + $0x80c] ss:$16 sps:$4 sm:$0xff]   ;;  %v13735_v52 = vcombine.low %v17718_v54, %v17718_v54  ;;  %v16653_v54 = vld [vmem:[#allocation11 + $0x844] ss:$16 sps:$4 sm:$0xff]  }
 0x582   :  { %11093 = vmatprep.subr.bf16.mxu0 %v16567_v53  ;;  %11421 = vmatprep.subr.bf16.mxu1 %v16570_v37  ;;  %v17732_v53 = vld [vmem:[#allocation7 + $0x20] sm:$0xff] }
 0x583   :  { %v16639_v37 = vld [vmem:[#allocation11 + $0x800] ss:$16 sps:$4 sm:$0xff]  }
 0x585   :  { %11094 = vmatpush1.bf16.msra.mxu0 %v16565_v55  ;;  %11422 = vmatpush1.bf16.msra.mxu1 %v16568_v56  ;;  %v16642_v55 = vld [vmem:[#allocation11 + $0x808] ss:$16 sps:$4 sm:$0xff]   ;;  %v16647_v56 = vld [vmem:[#allocation11 + $0x824] ss:$16 sps:$4 sm:$0xff]  }
 0x586   :  { %11095 = vmatprep.subr.bf16.mxu0 %v16573_v57  ;;  %11423 = vmatprep.subr.bf16.mxu1 %v16576_v58  ;;  %v16650_v57 = vld [vmem:[#allocation11 + $0x82c] ss:$16 sps:$4 sm:$0xff]   ;;  %v13738_v58 = vcombine.high %v17732_v53, %v17732_v53 }
 0x587   :  { %v17722_v2 = vpop.f32.mrb[4].mxu0  ;;  %v17724_v4 = vpop.f32.mrb[4].mxu1 }
 0x588   :  { %v17726_v5 = vpop.f32.mrb[5].mxu0  ;;  %v17728_v6 = vpop.f32.mrb[5].mxu1 }
 0x589   :  { %v7477_v7 = vpop.f32.mrb[6].mxu0  ;;  %v7805_v8 = vpop.f32.mrb[6].mxu1  ;;  %11096 = vmatpush1.bf16.msra.mxu0 %v16571_v59  ;;  %11424 = vmatpush1.bf16.msra.mxu1 %v16574_v60  ;;  %v16645_v59 = vld [vmem:[#allocation11 + $0x820] ss:$16 sps:$4 sm:$0xff]   ;;  %v16648_v60 = vld [vmem:[#allocation11 + $0x828] ss:$16 sps:$4 sm:$0xff]  }
 0x58a   :  { %v7478_v12 = vpop.f32.mrb[7].mxu0  ;;  %v7806_v13 = vpop.f32.mrb[7].mxu1  ;;  %11097 = vmatprep.subr.bf16.mxu0 %v16579_v1  ;;  %11425 = vmatprep.subr.bf16.mxu1 %v16582_v46  ;;  %v16656_v1 = vld [vmem:[#allocation11 + $0x84c] ss:$16 sps:$4 sm:$0xff]   ;;  %v16651_v46 = vld [vmem:[#allocation11 + $0x840] ss:$16 sps:$4 sm:$0xff]  }
 0x58b   :  { %v16654_v7 = vld [vmem:[#allocation11 + $0x848] ss:$16 sps:$4 sm:$0xff]   ;;  %v16659_v8 = vld [vmem:[#allocation11 + $0x864] ss:$16 sps:$4 sm:$0xff]  }
 0x58c   :  { %v16660_v12 = vld [vmem:[#allocation11 + $0x868] ss:$16 sps:$4 sm:$0xff]   ;;  %v16665_v13 = vld [vmem:[#allocation11 + $0x884] ss:$16 sps:$4 sm:$0xff]  }
 0x58d   :  { %11098 = vmatpush1.bf16.msra.mxu0 %v16577_v9  ;;  %11426 = vmatpush1.bf16.msra.mxu1 %v16580_v10  ;;  %v16662_v9 = vld [vmem:[#allocation11 + $0x86c] ss:$16 sps:$4 sm:$0xff]   ;;  %v16657_v10 = vld [vmem:[#allocation11 + $0x860] ss:$16 sps:$4 sm:$0xff]  }
 0x58e   :  { %11099 = vmatprep.subr.bf16.mxu0 %v16585_v15  ;;  %11427 = vmatprep.subr.bf16.mxu1 %v16588_v16  ;;  %v16668_v15 = vld [vmem:[#allocation11 + $0x88c] ss:$16 sps:$4 sm:$0xff]   ;;  %v16663_v16 = vld [vmem:[#allocation11 + $0x880] ss:$16 sps:$4 sm:$0xff]  }
 0x591   :  { %11100 = vmatpush1.bf16.msra.mxu0 %v16583_v18  ;;  %11428 = vmatpush1.bf16.msra.mxu1 %v16586_v20  ;;  %v16666_v18 = vld [vmem:[#allocation11 + $0x888] ss:$16 sps:$4 sm:$0xff]   ;;  %v16671_v20 = vld [vmem:[#allocation11 + $0x8a4] ss:$16 sps:$4 sm:$0xff]  }
 0x592   :  { %11101 = vmatprep.subr.bf16.mxu0 %v16591_v11  ;;  %11429 = vmatprep.subr.bf16.mxu1 %v16594_v21  ;;  %v16674_v11 = vld [vmem:[#allocation11 + $0x8ac] ss:$16 sps:$4 sm:$0xff]   ;;  %v16669_v21 = vld [vmem:[#allocation11 + $0x8a0] ss:$16 sps:$4 sm:$0xff]  }
 0x595   :  { %11102 = vmatpush1.bf16.msra.mxu0 %v16589_v22  ;;  %11430 = vmatpush1.bf16.msra.mxu1 %v16592_v14  ;;  %v16672_v22 = vld [vmem:[#allocation11 + $0x8a8] ss:$16 sps:$4 sm:$0xff]   ;;  %v16677_v14 = vld [vmem:[#allocation11 + $0x8c4] ss:$16 sps:$4 sm:$0xff]  }
 0x596   :  { %11103 = vmatprep.subr.bf16.mxu0 %v16597_v23  ;;  %11431 = vmatprep.subr.bf16.mxu1 %v16600_v17  ;;  %v16680_v23 = vld [vmem:[#allocation11 + $0x8cc] ss:$16 sps:$4 sm:$0xff]   ;;  %v16675_v17 = vld [vmem:[#allocation11 + $0x8c0] ss:$16 sps:$4 sm:$0xff]  }
 0x599   :  { %11104 = vmatpush1.bf16.msra.mxu0 %v16595_v26  ;;  %11432 = vmatpush1.bf16.msra.mxu1 %v16598_v27  ;;  %v16678_v26 = vld [vmem:[#allocation11 + $0x8c8] ss:$16 sps:$4 sm:$0xff]   ;;  %v16683_v27 = vld [vmem:[#allocation11 + $0x8e4] ss:$16 sps:$4 sm:$0xff]  }
 0x59a   :  { %11105 = vmatprep.subr.bf16.mxu0 %v16603_v19  ;;  %11433 = vmatprep.subr.bf16.mxu1 %v16606_v29  ;;  %v16686_v19 = vld [vmem:[#allocation11 + $0x8ec] ss:$16 sps:$4 sm:$0xff]   ;;  %v16681_v29 = vld [vmem:[#allocation11 + $0x8e0] ss:$16 sps:$4 sm:$0xff]  }
 0x59d   :  { %11106 = vmatpush1.bf16.msra.mxu0 %v16601_v30  ;;  %11434 = vmatpush1.bf16.msra.mxu1 %v16604_v24  ;;  %v16684_v30 = vld [vmem:[#allocation11 + $0x8e8] ss:$16 sps:$4 sm:$0xff]   ;;  %v16689_v24 = vld [vmem:[#allocation11 + $0x904] ss:$16 sps:$4 sm:$0xff]  }
 0x59e   :  { %11107 = vmatprep.subr.bf16.mxu0 %v16609_v32  ;;  %11435 = vmatprep.subr.bf16.mxu1 %v16612_v33  ;;  %v16692_v32 = vld [vmem:[#allocation11 + $0x90c] ss:$16 sps:$4 sm:$0xff]   ;;  %v16687_v33 = vld [vmem:[#allocation11 + $0x900] ss:$16 sps:$4 sm:$0xff]  }
 0x5a1   :  { %11108 = vmatpush1.bf16.msra.mxu0 %v16607_v25  ;;  %11436 = vmatpush1.bf16.msra.mxu1 %v16610_v35  ;;  %v16690_v25 = vld [vmem:[#allocation11 + $0x908] ss:$16 sps:$4 sm:$0xff]   ;;  %v16695_v35 = vld [vmem:[#allocation11 + $0x924] ss:$16 sps:$4 sm:$0xff]  }
 0x5a2   :  { %11109 = vmatprep.subr.bf16.mxu0 %v16615_v36  ;;  %11437 = vmatprep.subr.bf16.mxu1 %v16618_v28  ;;  %v16698_v36 = vld [vmem:[#allocation11 + $0x92c] ss:$16 sps:$4 sm:$0xff]   ;;  %v16693_v28 = vld [vmem:[#allocation11 + $0x920] ss:$16 sps:$4 sm:$0xff]  }
 0x5a5   :  { %11110 = vmatpush1.bf16.msra.mxu0 %v16613_v38  ;;  %11438 = vmatpush1.bf16.msra.mxu1 %v16616_v39  ;;  %v16696_v38 = vld [vmem:[#allocation11 + $0x928] ss:$16 sps:$4 sm:$0xff]   ;;  %v16701_v39 = vld [vmem:[#allocation11 + $0x944] ss:$16 sps:$4 sm:$0xff]  }
 0x5a6   :  { %11111 = vmatprep.subr.bf16.mxu0 %v16621_v40  ;;  %11439 = vmatprep.subr.bf16.mxu1 %v16624_v31  ;;  %v16704_v40 = vld [vmem:[#allocation11 + $0x94c] ss:$16 sps:$4 sm:$0xff]   ;;  %v16699_v31 = vld [vmem:[#allocation11 + $0x940] ss:$16 sps:$4 sm:$0xff]  }
 0x5a9   :  { %11112 = vmatpush1.bf16.msra.mxu0 %v16619_v41  ;;  %11440 = vmatpush1.bf16.msra.mxu1 %v16622_v42  ;;  %v16702_v41 = vld [vmem:[#allocation11 + $0x948] ss:$16 sps:$4 sm:$0xff]   ;;  %v16707_v42 = vld [vmem:[#allocation11 + $0x964] ss:$16 sps:$4 sm:$0xff]  }
 0x5aa   :  { %11113 = vmatprep.subr.bf16.mxu0 %v16627_v43  ;;  %11441 = vmatprep.subr.bf16.mxu1 %v16630_v34  ;;  %v16710_v43 = vld [vmem:[#allocation11 + $0x96c] ss:$16 sps:$4 sm:$0xff]   ;;  %v16705_v34 = vld [vmem:[#allocation11 + $0x960] ss:$16 sps:$4 sm:$0xff]  }
 0x5ad   :  { %11114 = vmatpush1.bf16.msra.mxu0 %v16625_v44  ;;  %11442 = vmatpush1.bf16.msra.mxu1 %v16628_v3  ;;  %v16708_v44 = vld [vmem:[#allocation11 + $0x968] ss:$16 sps:$4 sm:$0xff]   ;;  %v16713_v3 = vld [vmem:[#allocation11 + $0x984] ss:$16 sps:$4 sm:$0xff]  }
 0x5ae   :  { %11115 = vmatprep.subr.bf16.mxu0 %v16633_v45  ;;  %11443 = vmatprep.subr.bf16.mxu1 %v16636_v47  ;;  %v16716_v45 = vld [vmem:[#allocation11 + $0x98c] ss:$16 sps:$4 sm:$0xff]   ;;  %v16711_v47 = vld [vmem:[#allocation11 + $0x980] ss:$16 sps:$4 sm:$0xff]  }
 0x5b1   :  { %11116 = vmatpush1.bf16.msra.mxu0 %v16631_v48  ;;  %11444 = vmatpush1.bf16.msra.mxu1 %v16634_v49  ;;  %v16714_v48 = vld [vmem:[#allocation11 + $0x988] ss:$16 sps:$4 sm:$0xff]   ;;  %v16719_v49 = vld [vmem:[#allocation11 + $0x9a4] ss:$16 sps:$4 sm:$0xff]  }
 0x5b2   :  { %11126 = vmatprep.subr.bf16.mxu0 %v16641_v50  ;;  %11454 = vmatprep.subr.bf16.mxu1 %v16644_v51  ;;  %v16722_v50 = vld [vmem:[#allocation11 + $0x9ac] ss:$16 sps:$4 sm:$0xff]   ;;  %v16717_v51 = vld [vmem:[#allocation11 + $0x9a0] ss:$16 sps:$4 sm:$0xff]  }
 0x5b4   :  { %11118 = vmatmul.mubr.bf16.vlgmr.msra.gmra.mrb[8].mxu0 %v13735_v52  ;;  %11446 = vmatmul.mubr.bf16.vlgmr.msra.gmra.mrb[8].mxu1 %v13735_v52  ;;  %v16720_v52 = vld [vmem:[#allocation11 + $0x9a8] ss:$16 sps:$4 sm:$0xff]  }
 0x5b5   :  { %11127 = vmatpush1.bf16.msra.mxu0 %v16639_v37  ;;  %11455 = vmatpush1.bf16.msra.mxu1 %v16642_v55  ;;  %v16725_v37 = vld [vmem:[#allocation11 + $0x9c4] ss:$16 sps:$4 sm:$0xff]   ;;  %v16728_v55 = vld [vmem:[#allocation11 + $0x9cc] ss:$16 sps:$4 sm:$0xff]  }
 0x5b6   :  { %11128 = vmatprep.subr.bf16.mxu0 %v16647_v56  ;;  %11456 = vmatprep.subr.bf16.mxu1 %v16650_v57  ;;  %v16723_v56 = vld [vmem:[#allocation11 + $0x9c0] ss:$16 sps:$4 sm:$0xff]   ;;  %v16726_v57 = vld [vmem:[#allocation11 + $0x9c8] ss:$16 sps:$4 sm:$0xff]  }
 0x5b7   :  { %11158 = vmatprep.mubr.bf16.mxu0 %v13738_v58  ;;  %11486 = vmatprep.mubr.bf16.mxu1 %v13738_v58  ;;  %v16731_v58 = vld [vmem:[#allocation11 + $0x9e4] ss:$16 sps:$4 sm:$0xff]  }
 0x5b9   :  { %11129 = vmatpush1.bf16.msra.mxu0 %v16645_v59  ;;  %11457 = vmatpush1.bf16.msra.mxu1 %v16648_v60  ;;  %v16734_v59 = vld [vmem:[#allocation11 + $0x9ec] ss:$16 sps:$4 sm:$0xff]   ;;  %v16729_v60 = vld [vmem:[#allocation11 + $0x9e0] ss:$16 sps:$4 sm:$0xff]  }
 0x5ba   :  { %11130 = vmatprep.subr.bf16.mxu0 %v16653_v54  ;;  %11458 = vmatprep.subr.bf16.mxu1 %v16656_v1  ;;  %v16732_v54 = vld [vmem:[#allocation11 + $0x9e8] ss:$16 sps:$4 sm:$0xff]   ;;  %v16739_v1 = vld [vmem:[#allocation11 + $0xa04] ss:$16 sps:$4 sm:$0xff]  }
 0x5bd   :  { %11131 = vmatpush1.bf16.msra.mxu0 %v16651_v46  ;;  %11459 = vmatpush1.bf16.msra.mxu1 %v16654_v7  ;;  %v16742_v46 = vld [vmem:[#allocation11 + $0xa0c] ss:$16 sps:$4 sm:$0xff]   ;;  %v13737_v7 = vcombine.low %v17732_v53, %v17732_v53  ;;  %v16751_v53 = vld [vmem:[#allocation11 + $0xa44] ss:$16 sps:$4 sm:$0xff]  }
 0x5be   :  { %11132 = vmatprep.subr.bf16.mxu0 %v16659_v8  ;;  %11460 = vmatprep.subr.bf16.mxu1 %v16662_v9  ;;  %v17738_v8 = vld [vmem:[#allocation7 + $0x28] sm:$0xff]  ;;  %v16737_v9 = vld [vmem:[#allocation11 + $0xa00] ss:$16 sps:$4 sm:$0xff]  }
 0x5c1   :  { %11133 = vmatpush1.bf16.msra.mxu0 %v16657_v10  ;;  %11461 = vmatpush1.bf16.msra.mxu1 %v16660_v12  ;;  %v16740_v10 = vld [vmem:[#allocation11 + $0xa08] ss:$16 sps:$4 sm:$0xff]   ;;  %v16745_v12 = vld [vmem:[#allocation11 + $0xa24] ss:$16 sps:$4 sm:$0xff]  }
 0x5c2   :  { %11134 = vmatprep.subr.bf16.mxu0 %v16665_v13  ;;  %11462 = vmatprep.subr.bf16.mxu1 %v16668_v15  ;;  %v16748_v13 = vld [vmem:[#allocation11 + $0xa2c] ss:$16 sps:$4 sm:$0xff]   ;;  %v13740_v15 = vcombine.high %v17738_v8, %v17738_v8 }
 0x5c5   :  { %11135 = vmatpush1.bf16.msra.mxu0 %v16663_v16  ;;  %11463 = vmatpush1.bf16.msra.mxu1 %v16666_v18  ;;  %v16743_v16 = vld [vmem:[#allocation11 + $0xa20] ss:$16 sps:$4 sm:$0xff]   ;;  %v16746_v18 = vld [vmem:[#allocation11 + $0xa28] ss:$16 sps:$4 sm:$0xff]  }
 0x5c6   :  { %11136 = vmatprep.subr.bf16.mxu0 %v16671_v20  ;;  %11464 = vmatprep.subr.bf16.mxu1 %v16674_v11  ;;  %v16754_v20 = vld [vmem:[#allocation11 + $0xa4c] ss:$16 sps:$4 sm:$0xff]   ;;  %v16749_v11 = vld [vmem:[#allocation11 + $0xa40] ss:$16 sps:$4 sm:$0xff]  }
 0x5c9   :  { %11137 = vmatpush1.bf16.msra.mxu0 %v16669_v21  ;;  %11465 = vmatpush1.bf16.msra.mxu1 %v16672_v22  ;;  %v16752_v21 = vld [vmem:[#allocation11 + $0xa48] ss:$16 sps:$4 sm:$0xff]   ;;  %v16757_v22 = vld [vmem:[#allocation11 + $0xa64] ss:$16 sps:$4 sm:$0xff]  }
 0x5ca   :  { %11138 = vmatprep.subr.bf16.mxu0 %v16677_v14  ;;  %11466 = vmatprep.subr.bf16.mxu1 %v16680_v23  ;;  %v16760_v14 = vld [vmem:[#allocation11 + $0xa6c] ss:$16 sps:$4 sm:$0xff]   ;;  %v16755_v23 = vld [vmem:[#allocation11 + $0xa60] ss:$16 sps:$4 sm:$0xff]  }
 0x5cd   :  { %11139 = vmatpush1.bf16.msra.mxu0 %v16675_v17  ;;  %11467 = vmatpush1.bf16.msra.mxu1 %v16678_v26  ;;  %v16758_v17 = vld [vmem:[#allocation11 + $0xa68] ss:$16 sps:$4 sm:$0xff]   ;;  %v16763_v26 = vld [vmem:[#allocation11 + $0xa84] ss:$16 sps:$4 sm:$0xff]  }
 0x5ce   :  { %11140 = vmatprep.subr.bf16.mxu0 %v16683_v27  ;;  %11468 = vmatprep.subr.bf16.mxu1 %v16686_v19  ;;  %v16766_v27 = vld [vmem:[#allocation11 + $0xa8c] ss:$16 sps:$4 sm:$0xff]   ;;  %v16761_v19 = vld [vmem:[#allocation11 + $0xa80] ss:$16 sps:$4 sm:$0xff]  }
 0x5d1   :  { %11141 = vmatpush1.bf16.msra.mxu0 %v16681_v29  ;;  %11469 = vmatpush1.bf16.msra.mxu1 %v16684_v30  ;;  %v16764_v29 = vld [vmem:[#allocation11 + $0xa88] ss:$16 sps:$4 sm:$0xff]   ;;  %v16769_v30 = vld [vmem:[#allocation11 + $0xaa4] ss:$16 sps:$4 sm:$0xff]  }
 0x5d2   :  { %11142 = vmatprep.subr.bf16.mxu0 %v16689_v24  ;;  %11470 = vmatprep.subr.bf16.mxu1 %v16692_v32  ;;  %v16772_v24 = vld [vmem:[#allocation11 + $0xaac] ss:$16 sps:$4 sm:$0xff]   ;;  %v16767_v32 = vld [vmem:[#allocation11 + $0xaa0] ss:$16 sps:$4 sm:$0xff]  }
 0x5d5   :  { %11143 = vmatpush1.bf16.msra.mxu0 %v16687_v33  ;;  %11471 = vmatpush1.bf16.msra.mxu1 %v16690_v25  ;;  %v16770_v33 = vld [vmem:[#allocation11 + $0xaa8] ss:$16 sps:$4 sm:$0xff]   ;;  %v16775_v25 = vld [vmem:[#allocation11 + $0xac4] ss:$16 sps:$4 sm:$0xff]  }
 0x5d6   :  { %11144 = vmatprep.subr.bf16.mxu0 %v16695_v35  ;;  %11472 = vmatprep.subr.bf16.mxu1 %v16698_v36  ;;  %v16778_v35 = vld [vmem:[#allocation11 + $0xacc] ss:$16 sps:$4 sm:$0xff]   ;;  %v16773_v36 = vld [vmem:[#allocation11 + $0xac0] ss:$16 sps:$4 sm:$0xff]  }
 0x5d9   :  { %11145 = vmatpush1.bf16.msra.mxu0 %v16693_v28  ;;  %11473 = vmatpush1.bf16.msra.mxu1 %v16696_v38  ;;  %v16776_v28 = vld [vmem:[#allocation11 + $0xac8] ss:$16 sps:$4 sm:$0xff]   ;;  %v16781_v38 = vld [vmem:[#allocation11 + $0xae4] ss:$16 sps:$4 sm:$0xff]  }
 0x5da   :  { %11146 = vmatprep.subr.bf16.mxu0 %v16701_v39  ;;  %11474 = vmatprep.subr.bf16.mxu1 %v16704_v40  ;;  %v16784_v39 = vld [vmem:[#allocation11 + $0xaec] ss:$16 sps:$4 sm:$0xff]   ;;  %v16779_v40 = vld [vmem:[#allocation11 + $0xae0] ss:$16 sps:$4 sm:$0xff]  }
 0x5dd   :  { %11147 = vmatpush1.bf16.msra.mxu0 %v16699_v31  ;;  %11475 = vmatpush1.bf16.msra.mxu1 %v16702_v41  ;;  %v16782_v31 = vld [vmem:[#allocation11 + $0xae8] ss:$16 sps:$4 sm:$0xff]   ;;  %v16787_v41 = vld [vmem:[#allocation11 + $0xb04] ss:$16 sps:$4 sm:$0xff]  }
 0x5de   :  { %11148 = vmatprep.subr.bf16.mxu0 %v16707_v42  ;;  %11476 = vmatprep.subr.bf16.mxu1 %v16710_v43  ;;  %v16790_v42 = vld [vmem:[#allocation11 + $0xb0c] ss:$16 sps:$4 sm:$0xff]   ;;  %v16785_v43 = vld [vmem:[#allocation11 + $0xb00] ss:$16 sps:$4 sm:$0xff]  }
 0x5e1   :  { %11149 = vmatpush1.bf16.msra.mxu0 %v16705_v34  ;;  %11477 = vmatpush1.bf16.msra.mxu1 %v16708_v44  ;;  %v16788_v34 = vld [vmem:[#allocation11 + $0xb08] ss:$16 sps:$4 sm:$0xff]   ;;  %v16793_v44 = vld [vmem:[#allocation11 + $0xb24] ss:$16 sps:$4 sm:$0xff]  }
 0x5e2   :  { %11150 = vmatprep.subr.bf16.mxu0 %v16713_v3  ;;  %11478 = vmatprep.subr.bf16.mxu1 %v16716_v45  ;;  %v16796_v3 = vld [vmem:[#allocation11 + $0xb2c] ss:$16 sps:$4 sm:$0xff]   ;;  %v16791_v45 = vld [vmem:[#allocation11 + $0xb20] ss:$16 sps:$4 sm:$0xff]  }
 0x5e5   :  { %11151 = vmatpush1.bf16.msra.mxu0 %v16711_v47  ;;  %11479 = vmatpush1.bf16.msra.mxu1 %v16714_v48  ;;  %v16794_v47 = vld [vmem:[#allocation11 + $0xb28] ss:$16 sps:$4 sm:$0xff]   ;;  %v16799_v48 = vld [vmem:[#allocation11 + $0xb44] ss:$16 sps:$4 sm:$0xff]  }
 0x5e6   :  { %11152 = vmatprep.subr.bf16.mxu0 %v16719_v49  ;;  %11480 = vmatprep.subr.bf16.mxu1 %v16722_v50  ;;  %v16802_v49 = vld [vmem:[#allocation11 + $0xb4c] ss:$16 sps:$4 sm:$0xff]   ;;  %v16797_v50 = vld [vmem:[#allocation11 + $0xb40] ss:$16 sps:$4 sm:$0xff]  }
 0x5e9   :  { %11153 = vmatpush1.bf16.msra.mxu0 %v16717_v51  ;;  %11481 = vmatpush1.bf16.msra.mxu1 %v16720_v52  ;;  %v16800_v51 = vld [vmem:[#allocation11 + $0xb48] ss:$16 sps:$4 sm:$0xff]   ;;  %v16805_v52 = vld [vmem:[#allocation11 + $0xb64] ss:$16 sps:$4 sm:$0xff]  }
 0x5ea   :  { %11154 = vmatprep.subr.bf16.mxu0 %v16725_v37  ;;  %11482 = vmatprep.subr.bf16.mxu1 %v16728_v55  ;;  %v16808_v37 = vld [vmem:[#allocation11 + $0xb6c] ss:$16 sps:$4 sm:$0xff]   ;;  %v16803_v55 = vld [vmem:[#allocation11 + $0xb60] ss:$16 sps:$4 sm:$0xff]  }
 0x5ed   :  { %11155 = vmatpush1.bf16.msra.mxu0 %v16723_v56  ;;  %11483 = vmatpush1.bf16.msra.mxu1 %v16726_v57  ;;  %v16806_v56 = vld [vmem:[#allocation11 + $0xb68] ss:$16 sps:$4 sm:$0xff]   ;;  %v16811_v57 = vld [vmem:[#allocation11 + $0xb84] ss:$16 sps:$4 sm:$0xff]  }
 0x5ee   :  { %11156 = vmatprep.subr.bf16.mxu0 %v16731_v58  ;;  %11484 = vmatprep.subr.bf16.mxu1 %v16734_v59  ;;  %v16814_v58 = vld [vmem:[#allocation11 + $0xb8c] ss:$16 sps:$4 sm:$0xff]   ;;  %v16809_v59 = vld [vmem:[#allocation11 + $0xb80] ss:$16 sps:$4 sm:$0xff]  }
 0x5f1   :  { %11157 = vmatpush1.bf16.msra.mxu0 %v16729_v60  ;;  %11485 = vmatpush1.bf16.msra.mxu1 %v16732_v54  ;;  %v16812_v60 = vld [vmem:[#allocation11 + $0xb88] ss:$16 sps:$4 sm:$0xff]   ;;  %v16817_v54 = vld [vmem:[#allocation11 + $0xba4] ss:$16 sps:$4 sm:$0xff]  }
 0x5f2   :  { %11167 = vmatprep.subr.bf16.mxu0 %v16739_v1  ;;  %11495 = vmatprep.subr.bf16.mxu1 %v16742_v46  ;;  %v16820_v1 = vld [vmem:[#allocation11 + $0xbac] ss:$16 sps:$4 sm:$0xff]   ;;  %v16815_v46 = vld [vmem:[#allocation11 + $0xba0] ss:$16 sps:$4 sm:$0xff]  }
 0x5f4   :  { %11159 = vmatmul.mubr.bf16.vlgmr.msra.gmra.mrb[8].mxu0 %v13737_v7  ;;  %11487 = vmatmul.mubr.bf16.vlgmr.msra.gmra.mrb[8].mxu1 %v13737_v7  ;;  %v16818_v7 = vld [vmem:[#allocation11 + $0xba8] ss:$16 sps:$4 sm:$0xff]  }
 0x5f5   :  { %11168 = vmatpush1.bf16.msra.mxu0 %v16737_v9  ;;  %11496 = vmatpush1.bf16.msra.mxu1 %v16740_v10  ;;  %v16823_v9 = vld [vmem:[#allocation11 + $0xbc4] ss:$16 sps:$4 sm:$0xff]   ;;  %v16826_v10 = vld [vmem:[#allocation11 + $0xbcc] ss:$16 sps:$4 sm:$0xff]  }
 0x5f6   :  { %11169 = vmatprep.subr.bf16.mxu0 %v16745_v12  ;;  %11497 = vmatprep.subr.bf16.mxu1 %v16748_v13  ;;  %v16821_v12 = vld [vmem:[#allocation11 + $0xbc0] ss:$16 sps:$4 sm:$0xff]   ;;  %v16824_v13 = vld [vmem:[#allocation11 + $0xbc8] ss:$16 sps:$4 sm:$0xff]  }
 0x5f7   :  { %11199 = vmatprep.mubr.bf16.mxu0 %v13740_v15  ;;  %11527 = vmatprep.mubr.bf16.mxu1 %v13740_v15  ;;  %v16829_v15 = vld [vmem:[#allocation11 + $0xbe4] ss:$16 sps:$4 sm:$0xff]  }
 0x5f9   :  { %11170 = vmatpush1.bf16.msra.mxu0 %v16743_v16  ;;  %11498 = vmatpush1.bf16.msra.mxu1 %v16746_v18  ;;  %v16832_v16 = vld [vmem:[#allocation11 + $0xbec] ss:$16 sps:$4 sm:$0xff]   ;;  %v16827_v18 = vld [vmem:[#allocation11 + $0xbe0] ss:$16 sps:$4 sm:$0xff]  }
 0x5fa   :  { %11171 = vmatprep.subr.bf16.mxu0 %v16751_v53  ;;  %11499 = vmatprep.subr.bf16.mxu1 %v16754_v20  ;;  %v16830_v53 = vld [vmem:[#allocation11 + $0xbe8] ss:$16 sps:$4 sm:$0xff]   ;;  %v16837_v20 = vld [vmem:[#allocation11 + $0xc04] ss:$16 sps:$4 sm:$0xff]  }
 0x5fd   :  { %11172 = vmatpush1.bf16.msra.mxu0 %v16749_v11  ;;  %11500 = vmatpush1.bf16.msra.mxu1 %v16752_v21  ;;  %v16840_v11 = vld [vmem:[#allocation11 + $0xc0c] ss:$16 sps:$4 sm:$0xff]   ;;  %v13739_v21 = vcombine.low %v17738_v8, %v17738_v8  ;;  %v16849_v8 = vld [vmem:[#allocation11 + $0xc44] ss:$16 sps:$4 sm:$0xff]  }
 0x5fe   :  { %11173 = vmatprep.subr.bf16.mxu0 %v16757_v22  ;;  %11501 = vmatprep.subr.bf16.mxu1 %v16760_v14  ;;  %v17744_v22 = vld [vmem:[#allocation7 + $0x30] sm:$0xff] }
 0x5ff   :  { %v16835_v14 = vld [vmem:[#allocation11 + $0xc00] ss:$16 sps:$4 sm:$0xff]  }
 0x601   :  { %11174 = vmatpush1.bf16.msra.mxu0 %v16755_v23  ;;  %11502 = vmatpush1.bf16.msra.mxu1 %v16758_v17  ;;  %v16838_v23 = vld [vmem:[#allocation11 + $0xc08] ss:$16 sps:$4 sm:$0xff]   ;;  %v16843_v17 = vld [vmem:[#allocation11 + $0xc24] ss:$16 sps:$4 sm:$0xff]  }
 0x602   :  { %11175 = vmatprep.subr.bf16.mxu0 %v16763_v26  ;;  %11503 = vmatprep.subr.bf16.mxu1 %v16766_v27  ;;  %v16846_v26 = vld [vmem:[#allocation11 + $0xc2c] ss:$16 sps:$4 sm:$0xff]   ;;  %v13742_v27 = vcombine.high %v17744_v22, %v17744_v22 }
 0x605   :  { %11176 = vmatpush1.bf16.msra.mxu0 %v16761_v19  ;;  %11504 = vmatpush1.bf16.msra.mxu1 %v16764_v29  ;;  %v16841_v19 = vld [vmem:[#allocation11 + $0xc20] ss:$16 sps:$4 sm:$0xff]   ;;  %v16844_v29 = vld [vmem:[#allocation11 + $0xc28] ss:$16 sps:$4 sm:$0xff]  }
 0x606   :  { %11177 = vmatprep.subr.bf16.mxu0 %v16769_v30  ;;  %11505 = vmatprep.subr.bf16.mxu1 %v16772_v24  ;;  %v16852_v30 = vld [vmem:[#allocation11 + $0xc4c] ss:$16 sps:$4 sm:$0xff]   ;;  %v16847_v24 = vld [vmem:[#allocation11 + $0xc40] ss:$16 sps:$4 sm:$0xff]  }
 0x609   :  { %11178 = vmatpush1.bf16.msra.mxu0 %v16767_v32  ;;  %11506 = vmatpush1.bf16.msra.mxu1 %v16770_v33  ;;  %v16850_v32 = vld [vmem:[#allocation11 + $0xc48] ss:$16 sps:$4 sm:$0xff]   ;;  %v16855_v33 = vld [vmem:[#allocation11 + $0xc64] ss:$16 sps:$4 sm:$0xff]  }
 0x60a   :  { %11179 = vmatprep.subr.bf16.mxu0 %v16775_v25  ;;  %11507 = vmatprep.subr.bf16.mxu1 %v16778_v35  ;;  %v16858_v25 = vld [vmem:[#allocation11 + $0xc6c] ss:$16 sps:$4 sm:$0xff]   ;;  %v16853_v35 = vld [vmem:[#allocation11 + $0xc60] ss:$16 sps:$4 sm:$0xff]  }
 0x60d   :  { %11180 = vmatpush1.bf16.msra.mxu0 %v16773_v36  ;;  %11508 = vmatpush1.bf16.msra.mxu1 %v16776_v28  ;;  %v16856_v36 = vld [vmem:[#allocation11 + $0xc68] ss:$16 sps:$4 sm:$0xff]   ;;  %v16861_v28 = vld [vmem:[#allocation11 + $0xc84] ss:$16 sps:$4 sm:$0xff]  }
 0x60e   :  { %11181 = vmatprep.subr.bf16.mxu0 %v16781_v38  ;;  %11509 = vmatprep.subr.bf16.mxu1 %v16784_v39  ;;  %v16864_v38 = vld [vmem:[#allocation11 + $0xc8c] ss:$16 sps:$4 sm:$0xff]   ;;  %v16859_v39 = vld [vmem:[#allocation11 + $0xc80] ss:$16 sps:$4 sm:$0xff]  }
 0x611   :  { %11182 = vmatpush1.bf16.msra.mxu0 %v16779_v40  ;;  %11510 = vmatpush1.bf16.msra.mxu1 %v16782_v31  ;;  %v16862_v40 = vld [vmem:[#allocation11 + $0xc88] ss:$16 sps:$4 sm:$0xff]   ;;  %v16867_v31 = vld [vmem:[#allocation11 + $0xca4] ss:$16 sps:$4 sm:$0xff]  }
 0x612   :  { %11183 = vmatprep.subr.bf16.mxu0 %v16787_v41  ;;  %11511 = vmatprep.subr.bf16.mxu1 %v16790_v42  ;;  %v16870_v41 = vld [vmem:[#allocation11 + $0xcac] ss:$16 sps:$4 sm:$0xff]   ;;  %v16865_v42 = vld [vmem:[#allocation11 + $0xca0] ss:$16 sps:$4 sm:$0xff]  }
 0x615   :  { %11184 = vmatpush1.bf16.msra.mxu0 %v16785_v43  ;;  %11512 = vmatpush1.bf16.msra.mxu1 %v16788_v34  ;;  %v16868_v43 = vld [vmem:[#allocation11 + $0xca8] ss:$16 sps:$4 sm:$0xff]   ;;  %v16873_v34 = vld [vmem:[#allocation11 + $0xcc4] ss:$16 sps:$4 sm:$0xff]  }
 0x616   :  { %11185 = vmatprep.subr.bf16.mxu0 %v16793_v44  ;;  %11513 = vmatprep.subr.bf16.mxu1 %v16796_v3  ;;  %v16876_v44 = vld [vmem:[#allocation11 + $0xccc] ss:$16 sps:$4 sm:$0xff]   ;;  %v16871_v3 = vld [vmem:[#allocation11 + $0xcc0] ss:$16 sps:$4 sm:$0xff]  }
 0x619   :  { %11186 = vmatpush1.bf16.msra.mxu0 %v16791_v45  ;;  %11514 = vmatpush1.bf16.msra.mxu1 %v16794_v47  ;;  %v16874_v45 = vld [vmem:[#allocation11 + $0xcc8] ss:$16 sps:$4 sm:$0xff]   ;;  %v16879_v47 = vld [vmem:[#allocation11 + $0xce4] ss:$16 sps:$4 sm:$0xff]  }
 0x61a   :  { %11187 = vmatprep.subr.bf16.mxu0 %v16799_v48  ;;  %11515 = vmatprep.subr.bf16.mxu1 %v16802_v49  ;;  %v16882_v48 = vld [vmem:[#allocation11 + $0xcec] ss:$16 sps:$4 sm:$0xff]   ;;  %v16877_v49 = vld [vmem:[#allocation11 + $0xce0] ss:$16 sps:$4 sm:$0xff]  }
 0x61d   :  { %11188 = vmatpush1.bf16.msra.mxu0 %v16797_v50  ;;  %11516 = vmatpush1.bf16.msra.mxu1 %v16800_v51  ;;  %v16880_v50 = vld [vmem:[#allocation11 + $0xce8] ss:$16 sps:$4 sm:$0xff]   ;;  %v16885_v51 = vld [vmem:[#allocation11 + $0xd04] ss:$16 sps:$4 sm:$0xff]  }
 0x61e   :  { %11189 = vmatprep.subr.bf16.mxu0 %v16805_v52  ;;  %11517 = vmatprep.subr.bf16.mxu1 %v16808_v37  ;;  %v16888_v52 = vld [vmem:[#allocation11 + $0xd0c] ss:$16 sps:$4 sm:$0xff]   ;;  %v16883_v37 = vld [vmem:[#allocation11 + $0xd00] ss:$16 sps:$4 sm:$0xff]  }
 0x621   :  { %11190 = vmatpush1.bf16.msra.mxu0 %v16803_v55  ;;  %11518 = vmatpush1.bf16.msra.mxu1 %v16806_v56  ;;  %v16886_v55 = vld [vmem:[#allocation11 + $0xd08] ss:$16 sps:$4 sm:$0xff]   ;;  %v16891_v56 = vld [vmem:[#allocation11 + $0xd24] ss:$16 sps:$4 sm:$0xff]  }
 0x622   :  { %11191 = vmatprep.subr.bf16.mxu0 %v16811_v57  ;;  %11519 = vmatprep.subr.bf16.mxu1 %v16814_v58  ;;  %v16894_v57 = vld [vmem:[#allocation11 + $0xd2c] ss:$16 sps:$4 sm:$0xff]   ;;  %v16889_v58 = vld [vmem:[#allocation11 + $0xd20] ss:$16 sps:$4 sm:$0xff]  }
 0x625   :  { %11192 = vmatpush1.bf16.msra.mxu0 %v16809_v59  ;;  %11520 = vmatpush1.bf16.msra.mxu1 %v16812_v60  ;;  %v16892_v59 = vld [vmem:[#allocation11 + $0xd28] ss:$16 sps:$4 sm:$0xff]   ;;  %v16897_v60 = vld [vmem:[#allocation11 + $0xd44] ss:$16 sps:$4 sm:$0xff]  }
 0x626   :  { %11193 = vmatprep.subr.bf16.mxu0 %v16817_v54  ;;  %11521 = vmatprep.subr.bf16.mxu1 %v16820_v1  ;;  %v16900_v54 = vld [vmem:[#allocation11 + $0xd4c] ss:$16 sps:$4 sm:$0xff]   ;;  %v16895_v1 = vld [vmem:[#allocation11 + $0xd40] ss:$16 sps:$4 sm:$0xff]  }
 0x629   :  { %11194 = vmatpush1.bf16.msra.mxu0 %v16815_v46  ;;  %11522 = vmatpush1.bf16.msra.mxu1 %v16818_v7  ;;  %v16898_v46 = vld [vmem:[#allocation11 + $0xd48] ss:$16 sps:$4 sm:$0xff]   ;;  %v16903_v7 = vld [vmem:[#allocation11 + $0xd64] ss:$16 sps:$4 sm:$0xff]  }
 0x62a   :  { %11195 = vmatprep.subr.bf16.mxu0 %v16823_v9  ;;  %11523 = vmatprep.subr.bf16.mxu1 %v16826_v10  ;;  %v16906_v9 = vld [vmem:[#allocation11 + $0xd6c] ss:$16 sps:$4 sm:$0xff]   ;;  %v16901_v10 = vld [vmem:[#allocation11 + $0xd60] ss:$16 sps:$4 sm:$0xff]  }
 0x62d   :  { %11196 = vmatpush1.bf16.msra.mxu0 %v16821_v12  ;;  %11524 = vmatpush1.bf16.msra.mxu1 %v16824_v13  ;;  %v16904_v12 = vld [vmem:[#allocation11 + $0xd68] ss:$16 sps:$4 sm:$0xff]   ;;  %v16909_v13 = vld [vmem:[#allocation11 + $0xd84] ss:$16 sps:$4 sm:$0xff]  }
 0x62e   :  { %11197 = vmatprep.subr.bf16.mxu0 %v16829_v15  ;;  %11525 = vmatprep.subr.bf16.mxu1 %v16832_v16  ;;  %v16912_v15 = vld [vmem:[#allocation11 + $0xd8c] ss:$16 sps:$4 sm:$0xff]   ;;  %v16907_v16 = vld [vmem:[#allocation11 + $0xd80] ss:$16 sps:$4 sm:$0xff]  }
 0x631   :  { %11198 = vmatpush1.bf16.msra.mxu0 %v16827_v18  ;;  %11526 = vmatpush1.bf16.msra.mxu1 %v16830_v53  ;;  %v16910_v18 = vld [vmem:[#allocation11 + $0xd88] ss:$16 sps:$4 sm:$0xff]   ;;  %v16915_v53 = vld [vmem:[#allocation11 + $0xda4] ss:$16 sps:$4 sm:$0xff]  }
 0x632   :  { %11208 = vmatprep.subr.bf16.mxu0 %v16837_v20  ;;  %11536 = vmatprep.subr.bf16.mxu1 %v16840_v11  ;;  %v16918_v20 = vld [vmem:[#allocation11 + $0xdac] ss:$16 sps:$4 sm:$0xff]   ;;  %v16913_v11 = vld [vmem:[#allocation11 + $0xda0] ss:$16 sps:$4 sm:$0xff]  }
 0x634   :  { %11200 = vmatmul.mubr.bf16.vlgmr.msra.gmra.mrb[8].mxu0 %v13739_v21  ;;  %11528 = vmatmul.mubr.bf16.vlgmr.msra.gmra.mrb[8].mxu1 %v13739_v21  ;;  %v16916_v21 = vld [vmem:[#allocation11 + $0xda8] ss:$16 sps:$4 sm:$0xff]  }
 0x635   :  { %11209 = vmatpush1.bf16.msra.mxu0 %v16835_v14  ;;  %11537 = vmatpush1.bf16.msra.mxu1 %v16838_v23  ;;  %v16921_v14 = vld [vmem:[#allocation11 + $0xdc4] ss:$16 sps:$4 sm:$0xff]   ;;  %v16924_v23 = vld [vmem:[#allocation11 + $0xdcc] ss:$16 sps:$4 sm:$0xff]  }
 0x636   :  { %11210 = vmatprep.subr.bf16.mxu0 %v16843_v17  ;;  %11538 = vmatprep.subr.bf16.mxu1 %v16846_v26  ;;  %v16919_v17 = vld [vmem:[#allocation11 + $0xdc0] ss:$16 sps:$4 sm:$0xff]   ;;  %v16922_v26 = vld [vmem:[#allocation11 + $0xdc8] ss:$16 sps:$4 sm:$0xff]  }
 0x637   :  { %11240 = vmatprep.mubr.bf16.mxu0 %v13742_v27  ;;  %11568 = vmatprep.mubr.bf16.mxu1 %v13742_v27  ;;  %v16927_v27 = vld [vmem:[#allocation11 + $0xde4] ss:$16 sps:$4 sm:$0xff]  }
 0x639   :  { %11211 = vmatpush1.bf16.msra.mxu0 %v16841_v19  ;;  %11539 = vmatpush1.bf16.msra.mxu1 %v16844_v29  ;;  %v16930_v19 = vld [vmem:[#allocation11 + $0xdec] ss:$16 sps:$4 sm:$0xff]   ;;  %v16925_v29 = vld [vmem:[#allocation11 + $0xde0] ss:$16 sps:$4 sm:$0xff]  }
 0x63a   :  { %11212 = vmatprep.subr.bf16.mxu0 %v16849_v8  ;;  %11540 = vmatprep.subr.bf16.mxu1 %v16852_v30  ;;  %v16928_v8 = vld [vmem:[#allocation11 + $0xde8] ss:$16 sps:$4 sm:$0xff]   ;;  %v16935_v30 = vld [vmem:[#allocation11 + $0xe04] ss:$16 sps:$4 sm:$0xff]  }
 0x63d   :  { %11213 = vmatpush1.bf16.msra.mxu0 %v16847_v24  ;;  %11541 = vmatpush1.bf16.msra.mxu1 %v16850_v32  ;;  %v16938_v24 = vld [vmem:[#allocation11 + $0xe0c] ss:$16 sps:$4 sm:$0xff]   ;;  %v13741_v32 = vcombine.low %v17744_v22, %v17744_v22  ;;  %v16947_v22 = vld [vmem:[#allocation11 + $0xe44] ss:$16 sps:$4 sm:$0xff]  }
 0x63e   :  { %11214 = vmatprep.subr.bf16.mxu0 %v16855_v33  ;;  %11542 = vmatprep.subr.bf16.mxu1 %v16858_v25  ;;  %v17750_v33 = vld [vmem:[#allocation7 + $0x38] sm:$0xff]  ;;  %v16933_v25 = vld [vmem:[#allocation11 + $0xe00] ss:$16 sps:$4 sm:$0xff]  }
 0x641   :  { %11215 = vmatpush1.bf16.msra.mxu0 %v16853_v35  ;;  %11543 = vmatpush1.bf16.msra.mxu1 %v16856_v36  ;;  %v16936_v35 = vld [vmem:[#allocation11 + $0xe08] ss:$16 sps:$4 sm:$0xff]   ;;  %v16941_v36 = vld [vmem:[#allocation11 + $0xe24] ss:$16 sps:$4 sm:$0xff]  }
 0x642   :  { %11216 = vmatprep.subr.bf16.mxu0 %v16861_v28  ;;  %11544 = vmatprep.subr.bf16.mxu1 %v16864_v38  ;;  %v16944_v28 = vld [vmem:[#allocation11 + $0xe2c] ss:$16 sps:$4 sm:$0xff]   ;;  %v13744_v38 = vcombine.high %v17750_v33, %v17750_v33 }
 0x645   :  { %11217 = vmatpush1.bf16.msra.mxu0 %v16859_v39  ;;  %11545 = vmatpush1.bf16.msra.mxu1 %v16862_v40  ;;  %v16939_v39 = vld [vmem:[#allocation11 + $0xe20] ss:$16 sps:$4 sm:$0xff]   ;;  %v16942_v40 = vld [vmem:[#allocation11 + $0xe28] ss:$16 sps:$4 sm:$0xff]  }
 0x646   :  { %11218 = vmatprep.subr.bf16.mxu0 %v16867_v31  ;;  %11546 = vmatprep.subr.bf16.mxu1 %v16870_v41  ;;  %v16950_v31 = vld [vmem:[#allocation11 + $0xe4c] ss:$16 sps:$4 sm:$0xff]   ;;  %v16945_v41 = vld [vmem:[#allocation11 + $0xe40] ss:$16 sps:$4 sm:$0xff]  }
 0x649   :  { %11219 = vmatpush1.bf16.msra.mxu0 %v16865_v42  ;;  %11547 = vmatpush1.bf16.msra.mxu1 %v16868_v43  ;;  %v16948_v42 = vld [vmem:[#allocation11 + $0xe48] ss:$16 sps:$4 sm:$0xff]   ;;  %v16953_v43 = vld [vmem:[#allocation11 + $0xe64] ss:$16 sps:$4 sm:$0xff]  }
 0x64a   :  { %11220 = vmatprep.subr.bf16.mxu0 %v16873_v34  ;;  %11548 = vmatprep.subr.bf16.mxu1 %v16876_v44  ;;  %v16956_v34 = vld [vmem:[#allocation11 + $0xe6c] ss:$16 sps:$4 sm:$0xff]   ;;  %v16951_v44 = vld [vmem:[#allocation11 + $0xe60] ss:$16 sps:$4 sm:$0xff]  }
 0x64d   :  { %11221 = vmatpush1.bf16.msra.mxu0 %v16871_v3  ;;  %11549 = vmatpush1.bf16.msra.mxu1 %v16874_v45  ;;  %v16954_v3 = vld [vmem:[#allocation11 + $0xe68] ss:$16 sps:$4 sm:$0xff]   ;;  %v16959_v45 = vld [vmem:[#allocation11 + $0xe84] ss:$16 sps:$4 sm:$0xff]  }
 0x64e   :  { %11222 = vmatprep.subr.bf16.mxu0 %v16879_v47  ;;  %11550 = vmatprep.subr.bf16.mxu1 %v16882_v48  ;;  %v16962_v47 = vld [vmem:[#allocation11 + $0xe8c] ss:$16 sps:$4 sm:$0xff]   ;;  %v16957_v48 = vld [vmem:[#allocation11 + $0xe80] ss:$16 sps:$4 sm:$0xff]  }
 0x651   :  { %11223 = vmatpush1.bf16.msra.mxu0 %v16877_v49  ;;  %11551 = vmatpush1.bf16.msra.mxu1 %v16880_v50  ;;  %v16960_v49 = vld [vmem:[#allocation11 + $0xe88] ss:$16 sps:$4 sm:$0xff]   ;;  %v16965_v50 = vld [vmem:[#allocation11 + $0xea4] ss:$16 sps:$4 sm:$0xff]  }
 0x652   :  { %11224 = vmatprep.subr.bf16.mxu0 %v16885_v51  ;;  %11552 = vmatprep.subr.bf16.mxu1 %v16888_v52  ;;  %v16968_v51 = vld [vmem:[#allocation11 + $0xeac] ss:$16 sps:$4 sm:$0xff]   ;;  %v16963_v52 = vld [vmem:[#allocation11 + $0xea0] ss:$16 sps:$4 sm:$0xff]  }
 0x655   :  { %11225 = vmatpush1.bf16.msra.mxu0 %v16883_v37  ;;  %11553 = vmatpush1.bf16.msra.mxu1 %v16886_v55  ;;  %v16966_v37 = vld [vmem:[#allocation11 + $0xea8] ss:$16 sps:$4 sm:$0xff]   ;;  %v16971_v55 = vld [vmem:[#allocation11 + $0xec4] ss:$16 sps:$4 sm:$0xff]  }
 0x656   :  { %11226 = vmatprep.subr.bf16.mxu0 %v16891_v56  ;;  %11554 = vmatprep.subr.bf16.mxu1 %v16894_v57  ;;  %v16974_v56 = vld [vmem:[#allocation11 + $0xecc] ss:$16 sps:$4 sm:$0xff]   ;;  %v16969_v57 = vld [vmem:[#allocation11 + $0xec0] ss:$16 sps:$4 sm:$0xff]  }
 0x659   :  { %11227 = vmatpush1.bf16.msra.mxu0 %v16889_v58  ;;  %11555 = vmatpush1.bf16.msra.mxu1 %v16892_v59  ;;  %v16972_v58 = vld [vmem:[#allocation11 + $0xec8] ss:$16 sps:$4 sm:$0xff]   ;;  %v16977_v59 = vld [vmem:[#allocation11 + $0xee4] ss:$16 sps:$4 sm:$0xff]  }
 0x65a   :  { %11228 = vmatprep.subr.bf16.mxu0 %v16897_v60  ;;  %11556 = vmatprep.subr.bf16.mxu1 %v16900_v54  ;;  %v16980_v60 = vld [vmem:[#allocation11 + $0xeec] ss:$16 sps:$4 sm:$0xff]   ;;  %v16975_v54 = vld [vmem:[#allocation11 + $0xee0] ss:$16 sps:$4 sm:$0xff]  }
 0x65d   :  { %11229 = vmatpush1.bf16.msra.mxu0 %v16895_v1  ;;  %11557 = vmatpush1.bf16.msra.mxu1 %v16898_v46  ;;  %v16978_v1 = vld [vmem:[#allocation11 + $0xee8] ss:$16 sps:$4 sm:$0xff]   ;;  %v16983_v46 = vld [vmem:[#allocation11 + $0xf04] ss:$16 sps:$4 sm:$0xff]  }
 0x65e   :  { %11230 = vmatprep.subr.bf16.mxu0 %v16903_v7  ;;  %11558 = vmatprep.subr.bf16.mxu1 %v16906_v9  ;;  %v16986_v7 = vld [vmem:[#allocation11 + $0xf0c] ss:$16 sps:$4 sm:$0xff]   ;;  %v16981_v9 = vld [vmem:[#allocation11 + $0xf00] ss:$16 sps:$4 sm:$0xff]  }
 0x661   :  { %11231 = vmatpush1.bf16.msra.mxu0 %v16901_v10  ;;  %11559 = vmatpush1.bf16.msra.mxu1 %v16904_v12  ;;  %v16984_v10 = vld [vmem:[#allocation11 + $0xf08] ss:$16 sps:$4 sm:$0xff]   ;;  %v16989_v12 = vld [vmem:[#allocation11 + $0xf24] ss:$16 sps:$4 sm:$0xff]  }
 0x662   :  { %11232 = vmatprep.subr.bf16.mxu0 %v16909_v13  ;;  %11560 = vmatprep.subr.bf16.mxu1 %v16912_v15  ;;  %v16992_v13 = vld [vmem:[#allocation11 + $0xf2c] ss:$16 sps:$4 sm:$0xff]   ;;  %v16987_v15 = vld [vmem:[#allocation11 + $0xf20] ss:$16 sps:$4 sm:$0xff]  }
 0x665   :  { %11233 = vmatpush1.bf16.msra.mxu0 %v16907_v16  ;;  %11561 = vmatpush1.bf16.msra.mxu1 %v16910_v18  ;;  %v16990_v16 = vld [vmem:[#allocation11 + $0xf28] ss:$16 sps:$4 sm:$0xff]   ;;  %v16995_v18 = vld [vmem:[#allocation11 + $0xf44] ss:$16 sps:$4 sm:$0xff]  }
 0x666   :  { %11234 = vmatprep.subr.bf16.mxu0 %v16915_v53  ;;  %11562 = vmatprep.subr.bf16.mxu1 %v16918_v20  ;;  %v16998_v53 = vld [vmem:[#allocation11 + $0xf4c] ss:$16 sps:$4 sm:$0xff]   ;;  %v16993_v20 = vld [vmem:[#allocation11 + $0xf40] ss:$16 sps:$4 sm:$0xff]  }
 0x669   :  { %11235 = vmatpush1.bf16.msra.mxu0 %v16913_v11  ;;  %11563 = vmatpush1.bf16.msra.mxu1 %v16916_v21  ;;  %v16996_v11 = vld [vmem:[#allocation11 + $0xf48] ss:$16 sps:$4 sm:$0xff]   ;;  %v17001_v21 = vld [vmem:[#allocation11 + $0xf64] ss:$16 sps:$4 sm:$0xff]  }
 0x66a   :  { %11236 = vmatprep.subr.bf16.mxu0 %v16921_v14  ;;  %11564 = vmatprep.subr.bf16.mxu1 %v16924_v23  ;;  %v17004_v14 = vld [vmem:[#allocation11 + $0xf6c] ss:$16 sps:$4 sm:$0xff]   ;;  %v706_v23 = vlaneseq }
 0x66d   :  { %11237 = vmatpush1.bf16.msra.mxu0 %v16919_v17  ;;  %11565 = vmatpush1.bf16.msra.mxu1 %v16922_v26  ;;  %v16999_v17 = vld [vmem:[#allocation11 + $0xf60] ss:$16 sps:$4 sm:$0xff]   ;;  %v17002_v26 = vld [vmem:[#allocation11 + $0xf68] ss:$16 sps:$4 sm:$0xff]  }
 0x66e   :  { %11238 = vmatprep.subr.bf16.mxu0 %v16927_v27  ;;  %11566 = vmatprep.subr.bf16.mxu1 %v16930_v19  ;;  %v17007_v27 = vld [vmem:[#allocation11 + $0xf84] ss:$16 sps:$4 sm:$0xff]   ;;  %v17010_v19 = vld [vmem:[#allocation11 + $0xf8c] ss:$16 sps:$4 sm:$0xff]  }
 0x671   :  { %11239 = vmatpush1.bf16.msra.mxu0 %v16925_v29  ;;  %11567 = vmatpush1.bf16.msra.mxu1 %v16928_v8  ;;  %v17754_v29 = vshrl.u32 %v706_v23, 7  ;;  %v17005_v8 = vld [vmem:[#allocation11 + $0xf80] ss:$16 sps:$4 sm:$0xff]  }
 0x672   :  { %11249 = vmatprep.subr.bf16.mxu0 %v16935_v30  ;;  %11577 = vmatprep.subr.bf16.mxu1 %v16938_v24  ;;  %v17008_v30 = vld [vmem:[#allocation11 + $0xf88] ss:$16 sps:$4 sm:$0xff]   ;;  %v17013_v24 = vld [vmem:[#allocation11 + $0xfa4] ss:$16 sps:$4 sm:$0xff]  }
 0x674   :  { %11241 = vmatmul.mubr.bf16.vlgmr.msra.gmra.mrb[8].mxu0 %v13741_v32  ;;  %11569 = vmatmul.mubr.bf16.vlgmr.msra.gmra.mrb[8].mxu1 %v13741_v32  ;;  %v17016_v32 = vld [vmem:[#allocation11 + $0xfac] ss:$16 sps:$4 sm:$0xff]  }
 0x675   :  { %11250 = vmatpush1.bf16.msra.mxu0 %v16933_v25  ;;  %11578 = vmatpush1.bf16.msra.mxu1 %v16936_v35  ;;  %v17756_v25 = vld [vmem:[#allocation14] sm:$0xf]  ;;  %v17759_v35 = vsub.s32 1, %v17754_v29 }
 0x676   :  { %11251 = vmatprep.subr.bf16.mxu0 %v16941_v36  ;;  %11579 = vmatprep.subr.bf16.mxu1 %v16944_v28  ;;  %v17011_v36 = vld [vmem:[#allocation11 + $0xfa0] ss:$16 sps:$4 sm:$0xff]   ;;  %v17014_v28 = vld [vmem:[#allocation11 + $0xfa8] ss:$16 sps:$4 sm:$0xff]  }
 0x677   :  { %11281 = vmatprep.mubr.bf16.mxu0 %v13744_v38  ;;  %11609 = vmatprep.mubr.bf16.mxu1 %v13744_v38  ;;  %v17762_v38 = vsub.s32 3, %v17754_v29 }
 0x679   :  { %11252 = vmatpush1.bf16.msra.mxu0 %v16939_v39  ;;  %11580 = vmatpush1.bf16.msra.mxu1 %v16942_v40  ;;  %v17019_v39 = vld [vmem:[#allocation11 + $0xfc4] ss:$16 sps:$4 sm:$0xff]   ;;  %v17022_v40 = vld [vmem:[#allocation11 + $0xfcc] ss:$16 sps:$4 sm:$0xff]  }
 0x67a   :  { %11253 = vmatprep.subr.bf16.mxu0 %v16947_v22  ;;  %11581 = vmatprep.subr.bf16.mxu1 %v16950_v31  ;;  %v4523_v22 = vrot.slane %v17756_v25, %v17759_v35  ;;  %v4531_v31 = vrot.slane %v17756_v25, %v17762_v38 }
 0x67d   :  { %11254 = vmatpush1.bf16.msra.mxu0 %v16945_v41  ;;  %11582 = vmatpush1.bf16.msra.mxu1 %v16948_v42  ;;  %v17017_v41 = vld [vmem:[#allocation11 + $0xfc0] ss:$16 sps:$4 sm:$0xff]   ;;  %v17020_v42 = vld [vmem:[#allocation11 + $0xfc8] ss:$16 sps:$4 sm:$0xff]  }
 0x67e   :  { %11255 = vmatprep.subr.bf16.mxu0 %v16953_v43  ;;  %11583 = vmatprep.subr.bf16.mxu1 %v16956_v34  ;;  %v17025_v43 = vld [vmem:[#allocation11 + $0xfe4] ss:$16 sps:$4 sm:$0xff]   ;;  %v17028_v34 = vld [vmem:[#allocation11 + $0xfec] ss:$16 sps:$4 sm:$0xff]  }
 0x681   :  { %11256 = vmatpush1.bf16.msra.mxu0 %v16951_v44  ;;  %11584 = vmatpush1.bf16.msra.mxu1 %v16954_v3  ;;  %v14491_v44 = vadd.f32 %v17726_v5, %v4523_v22  ;;  %v14493_v3 = vadd.f32 %v17728_v6, %v4531_v31  ;;  %v13743_v5 = vcombine.low %v17750_v33, %v17750_v33  ;;  %v17033_v6 = vld [vmem:[%s18112_s10] sm:$0xff]   ;;  %v17036_v33 = vld [vmem:[%s18112_s10 + $0xc8] sm:$0xff]  }
 0x682   :  { %11257 = vmatprep.subr.bf16.mxu0 %v16959_v45  ;;  %11585 = vmatprep.subr.bf16.mxu1 %v16962_v47  ;;  %v17023_v45 = vld [vmem:[#allocation11 + $0xfe0] ss:$16 sps:$4 sm:$0xff]   ;;  %v17026_v47 = vld [vmem:[#allocation11 + $0xfe8] ss:$16 sps:$4 sm:$0xff]  }
 0x683   :  { %v17063_v31 = vld [vmem:[%s18111_s9 + $0x40] sm:$0xff]  }
 0x685   :  { %11258 = vmatpush1.bf16.msra.mxu0 %v16957_v48  ;;  %11586 = vmatpush1.bf16.msra.mxu1 %v16960_v49  ;;  %v17031_v48 = vld [vmem:[%s18112_s10 + $0x40] sm:$0xff]  }
 0x686   :  { %11259 = vmatprep.subr.bf16.mxu0 %v16965_v50  ;;  %11587 = vmatprep.subr.bf16.mxu1 %v16968_v51  ;;  %v17032_v49 = vld [vmem:[%s18112_s10 + $0xc0] sm:$0xff]   ;;  %v7809_v50 = vmax.f32 %v14491_v44, 0.0  ;;  %v7811_v51 = vmax.f32 %v14493_v3, 0.0 }
 0x687   :  { %v17066_v44 = vld [vmem:[%s18111_s9 + $0x80] sm:$0xff]  }
 0x689   :  { %11260 = vmatpush1.bf16.msra.mxu0 %v16963_v52  ;;  %11588 = vmatpush1.bf16.msra.mxu1 %v16966_v37  ;;  %v17034_v52 = vld [vmem:[%s18112_s10 + $0x80] sm:$0xff]   ;;  %v11691_v37 = vpack.c.bf16 %v7809_v50, %v7809_v50  ;;  %v17069_v50 = vld [vmem:[%s18111_s9 + $0x8] sm:$0xff]  }
 0x68a   :  { %11261 = vmatprep.subr.bf16.mxu0 %v16971_v55  ;;  %11589 = vmatprep.subr.bf16.mxu1 %v16974_v56  ;;  %v17035_v55 = vld [vmem:[%s18112_s10 + $0x48] sm:$0xff]   ;;  %v11693_v56 = vpack.c.bf16 %v7811_v51, %v7811_v51 }
 0x68b   :  { %v17070_v51 = vld [vmem:[%s18111_s9 + $0x88] sm:$0xff]  }
 0x68d   :  { %11262 = vmatpush1.bf16.msra.mxu0 %v16969_v57  ;;  %11590 = vmatpush1.bf16.msra.mxu1 %v16972_v58  ;;  %v17037_v57 = vld [vmem:[%s18112_s10 + $0x8] sm:$0xff]  }
 0x68e   :  { %11263 = vmatprep.subr.bf16.mxu0 %v16977_v59  ;;  %11591 = vmatprep.subr.bf16.mxu1 %v16980_v60  ;;  %v17038_v58 = vld [vmem:[%s18112_s10 + $0x88] sm:$0xff]   ;;  %v17039_v59 = vld [vmem:[%s18112_s10 + $0x50] sm:$0xff]  }
 0x68f   :  { %v17040_v60 = vld [vmem:[%s18112_s10 + $0xd0] sm:$0xff]  }
 0x691   :  { %11264 = vmatpush1.bf16.msra.mxu0 %v16975_v54  ;;  %11592 = vmatpush1.bf16.msra.mxu1 %v16978_v1  ;;  %v17041_v54 = vld [vmem:[%s18112_s10 + $0x10] sm:$0xff]  }
 0x692   :  { %11265 = vmatprep.subr.bf16.mxu0 %v16983_v46  ;;  %11593 = vmatprep.subr.bf16.mxu1 %v16986_v7  ;;  %v17042_v1 = vld [vmem:[%s18112_s10 + $0x90] sm:$0xff]   ;;  %v17043_v46 = vld [vmem:[%s18112_s10 + $0x58] sm:$0xff]  }
 0x693   :  { %v17044_v7 = vld [vmem:[%s18112_s10 + $0xd8] sm:$0xff]  }
 0x695   :  { %11266 = vmatpush1.bf16.msra.mxu0 %v16981_v9  ;;  %11594 = vmatpush1.bf16.msra.mxu1 %v16984_v10  ;;  %v17045_v9 = vld [vmem:[%s18112_s10 + $0x18] sm:$0xff]  }
 0x696   :  { %11267 = vmatprep.subr.bf16.mxu0 %v16989_v12  ;;  %11595 = vmatprep.subr.bf16.mxu1 %v16992_v13  ;;  %v17046_v10 = vld [vmem:[%s18112_s10 + $0x98] sm:$0xff]   ;;  %v17047_v12 = vld [vmem:[%s18112_s10 + $0x60] sm:$0xff]  }
 0x697   :  { %v17048_v13 = vld [vmem:[%s18112_s10 + $0xe0] sm:$0xff]  }
 0x699   :  { %11268 = vmatpush1.bf16.msra.mxu0 %v16987_v15  ;;  %11596 = vmatpush1.bf16.msra.mxu1 %v16990_v16  ;;  %v17049_v15 = vld [vmem:[%s18112_s10 + $0x20] sm:$0xff]  }
 0x69a   :  { %11269 = vmatprep.subr.bf16.mxu0 %v16995_v18  ;;  %11597 = vmatprep.subr.bf16.mxu1 %v16998_v53  ;;  %v17050_v16 = vld [vmem:[%s18112_s10 + $0xa0] sm:$0xff]   ;;  %v17051_v18 = vld [vmem:[%s18112_s10 + $0x68] sm:$0xff]  }
 0x69b   :  { %v17052_v53 = vld [vmem:[%s18112_s10 + $0xe8] sm:$0xff]  }
 0x69d   :  { %11270 = vmatpush1.bf16.msra.mxu0 %v16993_v20  ;;  %11598 = vmatpush1.bf16.msra.mxu1 %v16996_v11  ;;  %v17839_v20 = vsub.s32 0, %v17754_v29  ;;  %v17841_v11 = vld [vmem:[#allocation13] sm:$0xf] }
 0x69e   :  { %11271 = vmatprep.subr.bf16.mxu0 %v17001_v21  ;;  %11599 = vmatprep.subr.bf16.mxu1 %v17004_v14  ;;  %v17844_v21 = vsub.s32 2, %v17754_v29  ;;  %v17053_v14 = vld [vmem:[%s18112_s10 + $0x28] sm:$0xff]   ;;  %v713_v29 = vrot.slane %v17841_v11, %v17759_v35 }
 0x69f   :  { %v4519_v23 = vrot.slane %v17756_v25, %v17839_v20 }
 0x6a1   :  { %11272 = vmatpush1.bf16.msra.mxu0 %v16999_v17  ;;  %11600 = vmatpush1.bf16.msra.mxu1 %v17002_v26  ;;  %v17054_v17 = vld [vmem:[%s18112_s10 + $0xa8] sm:$0xff]   ;;  %v17055_v26 = vld [vmem:[%s18112_s10 + $0x70] sm:$0xff]  }
 0x6a2   :  { %11273 = vmatprep.subr.bf16.mxu0 %v17007_v27  ;;  %11601 = vmatprep.subr.bf16.mxu1 %v17010_v19  ;;  %v4527_v27 = vrot.slane %v17756_v25, %v17844_v21  ;;  %v17056_v19 = vld [vmem:[%s18112_s10 + $0xf0] sm:$0xff]   ;;  %v17059_v25 = vld [vmem:[%s18112_s10 + $0x78] sm:$0xff]  }
 0x6a5   :  { %11274 = vmatpush1.bf16.msra.mxu0 %v17005_v8  ;;  %11602 = vmatpush1.bf16.msra.mxu1 %v17008_v30  ;;  %v721_v8 = vrot.slane %v17841_v11, %v17762_v38  ;;  %v17057_v30 = vld [vmem:[%s18112_s10 + $0x30] sm:$0xff]  }
 0x6a6   :  { %11275 = vmatprep.subr.bf16.mxu0 %v17013_v24  ;;  %11603 = vmatprep.subr.bf16.mxu1 %v17016_v32  ;;  %v14490_v24 = vadd.f32 %v17722_v2, %v4519_v23  ;;  %v17058_v32 = vld [vmem:[%s18112_s10 + $0xb0] sm:$0xff]   ;;  %v17092_v23 = vld [vmem:[%s18111_s9 + $0xf8] sm:$0xff]  }
 0x6a7   :  { %v14489_v2 = vadd.f32 %v17672_v0, %v721_v8 }
 0x6a8   :  { %v7808_v22 = vmax.f32 %v14490_v24, 0.0  ;;  %v17099_v24 = vld [vmem:[%s18113_s11 + $0x48] sm:$0xff]  }
 0x6a9   :  { %11276 = vmatpush1.bf16.msra.mxu0 %v17011_v36  ;;  %11604 = vmatpush1.bf16.msra.mxu1 %v17014_v28  ;;  %v14492_v36 = vadd.f32 %v17724_v4, %v4527_v27  ;;  %v17060_v28 = vld [vmem:[%s18112_s10 + $0xf8] sm:$0xff]  }
 0x6aa   :  { %11277 = vmatprep.subr.bf16.mxu0 %v17019_v39  ;;  %11605 = vmatprep.subr.bf16.mxu1 %v17022_v40  ;;  %v14487_v39 = vadd.f32 %v17670_v63, %v713_v29  ;;  %v17061_v40 = vld [vmem:[%s18112_s10 + $0x38] sm:$0xff]   ;;  %v17064_v63 = vld [vmem:[%s18111_s9 + $0xc0] sm:$0xff]  }
 0x6ab   :  { %v17062_v4 = vld [vmem:[%s18112_s10 + $0xb8] sm:$0xff]   ;;  %v17097_v29 = vld [vmem:[%s18113_s11] sm:$0xff]  }
 0x6ac   :  { %v3999_v0 = vmax.f32 %v14487_v39, 0.0  ;;  %v17103_v39 = vld [vmem:[%s18113_s11 + $0x50] sm:$0xff]  }
 0x6ad   :  { %11278 = vmatpush1.bf16.msra.mxu0 %v17017_v41  ;;  %11606 = vmatpush1.bf16.msra.mxu1 %v17020_v42  ;;  %v7810_v41 = vmax.f32 %v14492_v36, 0.0  ;;  %v4001_v42 = vmax.f32 %v14489_v2, 0.0  ;;  %v17101_v36 = vld [vmem:[%s18113_s11 + $0x8] sm:$0xff]   ;;  %v17104_v2 = vld [vmem:[%s18113_s11 + $0xd0] sm:$0xff]  }
 0x6ae   :  { %11279 = vmatprep.subr.bf16.mxu0 %v17025_v43  ;;  %11607 = vmatprep.subr.bf16.mxu1 %v17028_v34  ;;  %v17065_v43 = vld [vmem:[%s18111_s9] sm:$0xff]   ;;  %v11690_v34 = vpack.c.bf16 %v7808_v22, %v7808_v22  ;;  %v17106_v22 = vld [vmem:[%s18113_s11 + $0x90] sm:$0xff]  }
 0x6af   :  { %v11692_v3 = vpack.c.bf16 %v7810_v41, %v7810_v41  ;;  %v17109_v41 = vld [vmem:[%s18113_s11 + $0x18] sm:$0xff]  }
 0x6b1   :  { %11280 = vmatpush1.bf16.msra.mxu0 %v17023_v45  ;;  %11608 = vmatpush1.bf16.msra.mxu1 %v17026_v47  ;;  %v17067_v45 = vld [vmem:[%s18111_s9 + $0x48] sm:$0xff]   ;;  %v11623_v47 = vpack.c.bf16 %v3999_v0, %v3999_v0  ;;  %v17111_v0 = vld [vmem:[%s18113_s11 + $0x60] sm:$0xff]  }
 0x6b2   :  { %14354 = vmatprep.subr.bf16.mxu0 %v17031_v48  ;;  %14376 = vmatprep.subr.bf16.mxu1 %v17032_v49  ;;  %v17068_v48 = vld [vmem:[%s18111_s9 + $0xc8] sm:$0xff]   ;;  %v11625_v49 = vpack.c.bf16 %v4001_v42, %v4001_v42  ;;  %v17112_v42 = vld [vmem:[%s18113_s11 + $0xe0] sm:$0xff]  }
 0x6b4   :  { %11282 = vmatmul.mubr.bf16.vlgmr.msra.gmra.mrb[8].mxu0 %v13743_v5  ;;  %11610 = vmatmul.mubr.bf16.vlgmr.msra.gmra.mrb[8].mxu1 %v13743_v5  ;;  %v17071_v5 = vld [vmem:[%s18111_s9 + $0x50] sm:$0xff]  }
 0x6b5   :  { %14355 = vmatpush3.bf16.msra.mxu0 %v17033_v6  ;;  %11982 = vmatprep.mubr.bf16.mxu0 %v11691_v37  ;;  %v17072_v6 = vld [vmem:[%s18111_s9 + $0xd0] sm:$0xff]  }
 0x6b6   :  { %14377 = vmatpush3.bf16.msra.mxu1 %v17034_v52  ;;  %12022 = vmatprep.mubr.bf16.mxu1 %v11693_v56  ;;  %v17073_v52 = vld [vmem:[%s18111_s9 + $0x10] sm:$0xff]   ;;  %v17077_v56 = vld [vmem:[%s18111_s9 + $0x18] sm:$0xff]  }
 0x6b7   :  { %14356 = vmatprep.subr.bf16.mxu0 %v17035_v55  ;;  %14378 = vmatprep.subr.bf16.mxu1 %v17036_v33  ;;  %v17074_v37 = vld [vmem:[%s18111_s9 + $0x90] sm:$0xff]   ;;  %v17075_v55 = vld [vmem:[%s18111_s9 + $0x58] sm:$0xff]  }
 0x6b8   :  { %v17076_v33 = vld [vmem:[%s18111_s9 + $0xd8] sm:$0xff]  }
 0x6b9   :  { %14357 = vmatpush3.bf16.msra.mxu0 %v17037_v57  ;;  %v17078_v57 = vld [vmem:[%s18111_s9 + $0x98] sm:$0xff]  }
 0x6ba   :  { %14379 = vmatpush3.bf16.msra.mxu1 %v17038_v58  ;;  %14358 = vmatprep.subr.bf16.mxu0 %v17039_v59  ;;  %v17079_v58 = vld [vmem:[%s18111_s9 + $0x60] sm:$0xff]  }
 0x6bb   :  { %14380 = vmatprep.subr.bf16.mxu1 %v17040_v60  ;;  %v17080_v59 = vld [vmem:[%s18111_s9 + $0xe0] sm:$0xff]  }
 0x6bc   :  { %v17081_v60 = vld [vmem:[%s18111_s9 + $0x20] sm:$0xff]  }
 0x6bd   :  { %14359 = vmatpush3.bf16.msra.mxu0 %v17041_v54  ;;  %v17082_v54 = vld [vmem:[%s18111_s9 + $0xa0] sm:$0xff]  }
 0x6be   :  { %14381 = vmatpush3.bf16.msra.mxu1 %v17042_v1  ;;  %14360 = vmatprep.subr.bf16.mxu0 %v17043_v46  ;;  %v17083_v1 = vld [vmem:[%s18111_s9 + $0x68] sm:$0xff]  }
 0x6bf   :  { %14382 = vmatprep.subr.bf16.mxu1 %v17044_v7  ;;  %v17084_v46 = vld [vmem:[%s18111_s9 + $0xe8] sm:$0xff]  }
 0x6c0   :  { %v17085_v7 = vld [vmem:[%s18111_s9 + $0x28] sm:$0xff]  }
 0x6c1   :  { %14361 = vmatpush3.bf16.msra.mxu0 %v17045_v9  ;;  %v709_v9 = vrot.slane %v17841_v11, %v17839_v20 }
 0x6c2   :  { %14383 = vmatpush3.bf16.msra.mxu1 %v17046_v10  ;;  %14362 = vmatprep.subr.bf16.mxu0 %v17047_v12  ;;  %v17086_v10 = vld [vmem:[%s18111_s9 + $0xa8] sm:$0xff]   ;;  %v17087_v12 = vld [vmem:[%s18111_s9 + $0x70] sm:$0xff]  }
 0x6c3   :  { %14384 = vmatprep.subr.bf16.mxu1 %v17048_v13  ;;  %v717_v13 = vrot.slane %v17841_v11, %v17844_v21  ;;  %v17091_v11 = vld [vmem:[%s18111_s9 + $0x78] sm:$0xff]  }
 0x6c5   :  { %14363 = vmatpush3.bf16.msra.mxu0 %v17049_v15  ;;  %v17088_v15 = vld [vmem:[%s18111_s9 + $0xf0] sm:$0xff]  }
 0x6c6   :  { %14385 = vmatpush3.bf16.msra.mxu1 %v17050_v16  ;;  %14364 = vmatprep.subr.bf16.mxu0 %v17051_v18  ;;  %v17089_v16 = vld [vmem:[%s18111_s9 + $0x30] sm:$0xff]   ;;  %v14486_v18 = vadd.f32 %v17666_v61, %v709_v9  ;;  %v17093_v61 = vld [vmem:[%s18111_s9 + $0x38] sm:$0xff]  }
 0x6c7   :  { %14386 = vmatprep.subr.bf16.mxu1 %v17052_v53  ;;  %v17090_v53 = vld [vmem:[%s18111_s9 + $0xb0] sm:$0xff]  }
 0x6c9   :  { %14365 = vmatpush3.bf16.msra.mxu0 %v17053_v14  ;;  %v14488_v14 = vadd.f32 %v17668_v62, %v717_v13  ;;  %v17095_v62 = vld [vmem:[%s18113_s11 + $0x40] sm:$0xff]  }
 0x6ca   :  { %14387 = vmatpush3.bf16.msra.mxu1 %v17054_v17  ;;  %14366 = vmatprep.subr.bf16.mxu0 %v17055_v26  ;;  %v3998_v17 = vmax.f32 %v14486_v18, 0.0  ;;  %v17094_v26 = vld [vmem:[%s18111_s9 + $0xb8] sm:$0xff]  }
 0x6cb   :  { %14388 = vmatprep.subr.bf16.mxu1 %v17056_v19  ;;  %v4000_v27 = vmax.f32 %v14488_v14, 0.0  ;;  %v17096_v19 = vld [vmem:[%s18113_s11 + $0xc0] sm:$0xff]  }
 0x6cc   :  { %v11622_v8 = vpack.c.bf16 %v3998_v17, %v3998_v17 }
 0x6cd   :  { %14367 = vmatpush3.bf16.msra.mxu0 %v17057_v30  ;;  %v17098_v30 = vld [vmem:[%s18113_s11 + $0x80] sm:$0xff]  }
 0x6ce   :  { %14389 = vmatpush3.bf16.msra.mxu1 %v17058_v32  ;;  %14368 = vmatprep.subr.bf16.mxu0 %v17059_v25  ;;  %v11624_v32 = vpack.c.bf16 %v4000_v27, %v4000_v27  ;;  %v17100_v25 = vld [vmem:[%s18113_s11 + $0xc8] sm:$0xff]  }
 0x6cf   :  { %14390 = vmatprep.subr.bf16.mxu1 %v17060_v28  ;;  %v17102_v28 = vld [vmem:[%s18113_s11 + $0x88] sm:$0xff]  }
 0x6d1   :  { %14369 = vmatpush3.bf16.msra.mxu0 %v17061_v40  ;;  %v17105_v40 = vld [vmem:[%s18113_s11 + $0x10] sm:$0xff]  }
 0x6d2   :  { %14391 = vmatpush3.bf16.msra.mxu1 %v17062_v4  ;;  %14398 = vmatprep.subr.bf16.mxu0 %v17063_v31  ;;  %v17107_v4 = vld [vmem:[%s18113_s11 + $0x58] sm:$0xff]  }
 0x6d3   :  { %14420 = vmatprep.subr.bf16.mxu1 %v17064_v63  ;;  %v17108_v31 = vld [vmem:[%s18113_s11 + $0xd8] sm:$0xff]  }
 0x6d4   :  { %11983 = vmatmul.mubr.bf16.vlgmr.msra.gmra.mrb[12].mxu0 %v11690_v34  ;;  %v17110_v63 = vld [vmem:[%s18113_s11 + $0x98] sm:$0xff]   ;;  %v17114_v34 = vld [vmem:[%s18113_s11 + $0xa0] sm:$0xff]  }
 0x6d5   :  { %12023 = vmatmul.mubr.bf16.vlgmr.msra.gmra.mrb[12].mxu1 %v11692_v3  ;;  %14399 = vmatpush3.bf16.msra.mxu0 %v17065_v43  ;;  %v17113_v43 = vld [vmem:[%s18113_s11 + $0x20] sm:$0xff]   ;;  %v17116_v3 = vld [vmem:[%s18113_s11 + $0xe8] sm:$0xff]  }
 0x6d6   :  { %12254 = vmatprep.mubr.bf16.mxu0 %v11623_v47  ;;  %14421 = vmatpush3.bf16.msra.mxu1 %v17066_v44  ;;  %v17115_v44 = vld [vmem:[%s18113_s11 + $0x68] sm:$0xff]  }
 0x6d7   :  { %12294 = vmatprep.mubr.bf16.mxu1 %v11625_v49  ;;  %14400 = vmatprep.subr.bf16.mxu0 %v17067_v45  ;;  %v17117_v45 = vld [vmem:[%s18113_s11 + $0x28] sm:$0xff]   ;;  %v17120_v49 = vld [vmem:[%s18113_s11 + $0xf0] sm:$0xff]  }
 0x6d8   :  { %14422 = vmatprep.subr.bf16.mxu1 %v17068_v48  ;;  %v17118_v47 = vld [vmem:[%s18113_s11 + $0xa8] sm:$0xff]   ;;  %v17119_v48 = vld [vmem:[%s18113_s11 + $0x70] sm:$0xff]  }
 0x6d9   :  { %14401 = vmatpush3.bf16.msra.mxu0 %v17069_v50  ;;  %v17121_v50 = vld [vmem:[%s18113_s11 + $0x30] sm:$0xff]  }
 0x6da   :  { %14423 = vmatpush3.bf16.msra.mxu1 %v17070_v51  ;;  %14402 = vmatprep.subr.bf16.mxu0 %v17071_v5  ;;  %v17122_v51 = vld [vmem:[%s18113_s11 + $0xb0] sm:$0xff]   ;;  %v17123_v5 = vld [vmem:[%s18113_s11 + $0x78] sm:$0xff]  }
 0x6db   :  { %14424 = vmatprep.subr.bf16.mxu1 %v17072_v6  ;;  %v17124_v6 = vld [vmem:[%s18113_s11 + $0xf8] sm:$0xff]  }
 0x6dd   :  { %14403 = vmatpush3.bf16.msra.mxu0 %v17073_v52  ;;  %v17125_v52 = vld [vmem:[%s18113_s11 + $0x38] sm:$0xff]  }
 0x6de   :  { %14425 = vmatpush3.bf16.msra.mxu1 %v17074_v37  ;;  %14404 = vmatprep.subr.bf16.mxu0 %v17075_v55  ;;  %v17126_v37 = vld [vmem:[%s18113_s11 + $0xb8] sm:$0xff]   ;;  %v8324_v55 = vld [vmem:[#allocation16] sm:$0xf]  ;;  %s17395_s11 = smov [#allocation19]  }
 0x6df   :  { %14426 = vmatprep.subr.bf16.mxu1 %v17076_v33  ;;  %v8329_v33 = vrot.slane %v8324_v55, %v17839_v20  ;;  %s12659_s25 = sshll.u32 %s17395_s11, 4  ;;  %s12660_s25 = int_to_ptr.vmem [resolvable:$true] %s12659_s25 }
 0x6e0   :  { %s17347_s9 = scalar_lea.vmem %s12660_s25, 128  ;;  %p17352_p11 = scmp.lt.s32.totalorder %s12660_s25, %s12660_s25 }
 0x6e1   :  { %14405 = vmatpush3.bf16.msra.mxu0 %v17077_v56  ;;  %v8337_v56 = vrot.slane %v8324_v55, %v17844_v21  ;;  %p17348_p10 = scmp.ne.s32.totalorder %s12660_s25, %s17347_s9  ;;  %p17353_p12 = scmp.lt.s32.totalorder %s17347_s9, %s17347_s9 }
 0x6e2   :  { %14427 = vmatpush3.bf16.msra.mxu1 %v17078_v57  ;;  %14406 = vmatprep.subr.bf16.mxu0 %v17079_v58  ;;  %v8333_v57 = vrot.slane %v8324_v55, %v17759_v35  ;;  %v8341_v58 = vrot.slane %v8324_v55, %v17762_v38 }
 0x6e3   :  { %14428 = vmatprep.subr.bf16.mxu1 %v17080_v59  ;;  %p17354_p13 = por %p17353_p12, %p17352_p11 }
 0x6e5   :  { %14407 = vmatpush3.bf16.msra.mxu0 %v17081_v60  ;;  %p17355_p0 = pnand %p17354_p13, %p17348_p10 }
 0x6e6   :  { %14429 = vmatpush3.bf16.msra.mxu1 %v17082_v54  ;;  %14408 = vmatprep.subr.bf16.mxu0 %v17083_v1 }
 0x6e7   :  { %14430 = vmatprep.subr.bf16.mxu1 %v17084_v46 }
 0x6e9   :  { %14409 = vmatpush3.bf16.msra.mxu0 %v17085_v7 }
 0x6ea   :  { %14431 = vmatpush3.bf16.msra.mxu1 %v17086_v10  ;;  %14410 = vmatprep.subr.bf16.mxu0 %v17087_v12 }
 0x6eb   :  { %14432 = vmatprep.subr.bf16.mxu1 %v17088_v15 }
 0x6ed   :  { %14411 = vmatpush3.bf16.msra.mxu0 %v17089_v16 }
 0x6ee   :  { %14433 = vmatpush3.bf16.msra.mxu1 %v17090_v53  ;;  %14412 = vmatprep.subr.bf16.mxu0 %v17091_v11 }
 0x6ef   :  { %14434 = vmatprep.subr.bf16.mxu1 %v17092_v23 }
 0x6f1   :  { %14413 = vmatpush3.bf16.msra.mxu0 %v17093_v61 }
 0x6f2   :  { %14435 = vmatpush3.bf16.msra.mxu1 %v17094_v26  ;;  %14442 = vmatprep.subr.bf16.mxu0 %v17095_v62 }
 0x6f3   :  { %14464 = vmatprep.subr.bf16.mxu1 %v17096_v19 }
 0x6f4   :  { %12255 = vmatmul.mubr.bf16.vlgmr.msra.gmra.mrb[16].mxu0 %v11622_v8 }
 0x6f5   :  { %12295 = vmatmul.mubr.bf16.vlgmr.msra.gmra.mrb[16].mxu1 %v11624_v32  ;;  %14443 = vmatpush3.bf16.msra.mxu0 %v17097_v29 }
 0x6f6   :  { %14465 = vmatpush3.bf16.msra.mxu1 %v17098_v30  ;;  %14444 = vmatprep.subr.bf16.mxu0 %v17099_v24 }
 0x6f7   :  { %14466 = vmatprep.subr.bf16.mxu1 %v17100_v25 }
 0x6f9   :  { %14445 = vmatpush3.bf16.msra.mxu0 %v17101_v36 }
 0x6fa   :  { %14467 = vmatpush3.bf16.msra.mxu1 %v17102_v28  ;;  %14446 = vmatprep.subr.bf16.mxu0 %v17103_v39 }
 0x6fb   :  { %14468 = vmatprep.subr.bf16.mxu1 %v17104_v2 }
 0x6fd   :  { %14447 = vmatpush3.bf16.msra.mxu0 %v17105_v40 }
 0x6fe   :  { %14469 = vmatpush3.bf16.msra.mxu1 %v17106_v22  ;;  %14448 = vmatprep.subr.bf16.mxu0 %v17107_v4 }
 0x6ff   :  { %14470 = vmatprep.subr.bf16.mxu1 %v17108_v31 }
 0x701   :  { %14449 = vmatpush3.bf16.msra.mxu0 %v17109_v41 }
 0x702   :  { %14471 = vmatpush3.bf16.msra.mxu1 %v17110_v63  ;;  %14450 = vmatprep.subr.bf16.mxu0 %v17111_v0 }
 0x703   :  { %14472 = vmatprep.subr.bf16.mxu1 %v17112_v42 }
 0x705   :  { %14451 = vmatpush3.bf16.msra.mxu0 %v17113_v43 }
 0x706   :  { %14473 = vmatpush3.bf16.msra.mxu1 %v17114_v34  ;;  %14452 = vmatprep.subr.bf16.mxu0 %v17115_v44 }
 0x707   :  { %14474 = vmatprep.subr.bf16.mxu1 %v17116_v3 }
 0x709   :  { %14453 = vmatpush3.bf16.msra.mxu0 %v17117_v45 }
 0x70a   :  { %14475 = vmatpush3.bf16.msra.mxu1 %v17118_v47  ;;  %14454 = vmatprep.subr.bf16.mxu0 %v17119_v48 }
 0x70b   :  { %14476 = vmatprep.subr.bf16.mxu1 %v17120_v49 }
 0x70d   :  { %14455 = vmatpush3.bf16.msra.mxu0 %v17121_v50 }
 0x70e   :  { %14477 = vmatpush3.bf16.msra.mxu1 %v17122_v51  ;;  %14456 = vmatprep.subr.bf16.mxu0 %v17123_v5  ;;  %v14353_v51 = vld [vmem:[#allocation17] ss:$0 sm:$0xff] }
 0x70f   :  { %14478 = vmatprep.subr.bf16.mxu1 %v17124_v6 }
 0x711   :  { %14457 = vmatpush3.bf16.msra.mxu0 %v17125_v52 }
 0x712   :  { %14479 = vmatpush3.bf16.msra.mxu1 %v17126_v37 }
 0x787   :  { %v11283_v59 = vpop.f32.mrb[8].mxu0  ;;  %v11611_v60 = vpop.f32.mrb[8].mxu1 }
 0x788   :  { %v14494_v54 = vadd.f32 %v11283_v59, %v8329_v33  ;;  %v14496_v1 = vadd.f32 %v11611_v60, %v8337_v56  ;;  %v11285_v46 = vpop.f32.mrb[9].mxu0  ;;  %v11613_v7 = vpop.f32.mrb[9].mxu1 }
 0x789   :  { %v14495_v9 = vadd.f32 %v11285_v46, %v8333_v57  ;;  %v14497_v10 = vadd.f32 %v11613_v7, %v8341_v58  ;;  %v11287_v12 = vpop.f32.mrb[10].mxu0  ;;  %v11615_v13 = vpop.f32.mrb[10].mxu1 }
 0x78a   :  { %v11618_v15 = vmax.f32 %v14494_v54, 0.0  ;;  %v11620_v16 = vmax.f32 %v14496_v1, 0.0  ;;  %v11288_v18 = vpop.f32.mrb[11].mxu0  ;;  %v11616_v20 = vpop.f32.mrb[11].mxu1 }
 0x78b   :  { %v11619_v53 = vmax.f32 %v14495_v9, 0.0  ;;  %v11621_v21 = vmax.f32 %v14497_v10, 0.0 }
 0x78c   :  { %v12302_v14 = vpack.c.bf16 %v11618_v15, %v11618_v15  ;;  %v12304_v38 = vpack.c.bf16 %v11620_v16, %v11620_v16 }
 0x78d   :  { %v12303_v11 = vpack.c.bf16 %v11619_v53, %v11619_v53  ;;  %v12305_v35 = vpack.c.bf16 %v11621_v21, %v11621_v21 }
 0x78f   :  { %12594 = vmatprep.mubr.bf16.mxu0 %v12303_v11  ;;  %12634 = vmatprep.mubr.bf16.mxu1 %v12305_v35 }
 0x790   :  { %12595 = vmatmul.mubr.bf16.vlgmr.msra.gmra.mrb[20].mxu0 %v12302_v14  ;;  %12635 = vmatmul.mubr.bf16.vlgmr.msra.gmra.mrb[20].mxu1 %v12304_v38 }
 0x7a7   :  { %v14370_v23 = vpop.f32.mrb[12].mxu0 }
 0x7a8   :  { %v14392_v61 = vpop.f32.mrb[12].mxu1  ;;  %v14371_v17 = vpop.f32.mrb[13].mxu0 }
 0x7a9   :  { %v14372_v26 = vadd.f32 %v14371_v17, %v14370_v23  ;;  %v14393_v62 = vpop.f32.mrb[13].mxu1  ;;  %v14373_v27 = vpop.f32.mrb[14].mxu0 }
 0x7aa   :  { %v14394_v19 = vadd.f32 %v14393_v62, %v14392_v61  ;;  %v14395_v29 = vpop.f32.mrb[14].mxu1  ;;  %v14374_v8 = vpop.f32.mrb[15].mxu0 }
 0x7ab   :  { %v14396_v30 = vpop.f32.mrb[15].mxu1 }
 0x7ac   :  { %v12025_v24 = vadd.f32 %v14394_v19, %v14372_v26 }
 0x7c7   :  { %v14414_v32 = vpop.f32.mrb[16].mxu0 }
 0x7c8   :  { %v14436_v25 = vpop.f32.mrb[16].mxu1  ;;  %v14415_v36 = vpop.f32.mrb[17].mxu0 }
 0x7c9   :  { %v14416_v28 = vadd.f32 %v14415_v36, %v14414_v32  ;;  %v14437_v39 = vpop.f32.mrb[17].mxu1  ;;  %v14417_v2 = vpop.f32.mrb[18].mxu0 }
 0x7ca   :  { %v14438_v40 = vadd.f32 %v14437_v39, %v14436_v25  ;;  %v14439_v22 = vpop.f32.mrb[18].mxu1  ;;  %v14418_v4 = vpop.f32.mrb[19].mxu0 }
 0x7cb   :  { %v12257_v31 = vadd.f32 %v14416_v28, %v12025_v24  ;;  %v14440_v41 = vpop.f32.mrb[19].mxu1 }
 0x7cd   :  { %v12297_v63 = vadd.f32 %v14438_v40, %v12257_v31 }
 0x863   :  { %v14458_v0 = vpop.f32.mrb[20].mxu0  ;;  %v14480_v42 = vpop.f32.mrb[20].mxu1 }
 0x864   :  { %v14459_v43 = vpop.f32.mrb[21].mxu0  ;;  %v14481_v34 = vpop.f32.mrb[21].mxu1 }
 0x865   :  { %v14460_v44 = vadd.f32 %v14459_v43, %v14458_v0  ;;  %v14482_v3 = vadd.f32 %v14481_v34, %v14480_v42  ;;  %v14461_v45 = vpop.f32.mrb[22].mxu0  ;;  %v14483_v47 = vpop.f32.mrb[22].mxu1 }
 0x866   :  { %v14462_v48 = vpop.f32.mrb[23].mxu0  ;;  %v14484_v49 = vpop.f32.mrb[23].mxu1 }
 0x867   :  { %v12637_v50 = vadd.f32 %v14482_v3, %v14460_v44 }
 0x869   :  { %v12642_v5 = vadd.f32 %v12637_v50, %v12297_v63 }
 0x86b   :  { %v12650_v6 = vadd.f32 %v14353_v51, %v12642_v5 }
 0x86d   :  { %12652 = vst.msk [vmem:[#allocation19] sm:$0xff] %vm12651_vm0, %v12650_v6 }
 0x86e   :  { %17358 = shalt.err (!%p17355_p0)
}
 0x86f   :  { %s17359_s4 = scalar_lea.hbm %s18115_s13, 128 }
 0x870   :  { %p17360_p1 = scmp.ne.s32.totalorder %s18115_s13, %s17359_s4  ;;  %p17363_p2 = scmp.lt.u32.totalorder %s17359_s4, %s18115_s13 }
 0x872   :  { %p17365_p3 = pnand %p17363_p2, %p17360_p1 }
 0x874   :  { %17368 = shalt.err (!%p17365_p3)
}
 0x875   :  { %12662 = dma.vmem_to_hbm [thread:$0]  %s12660_s25, 128, %s18115_s13, [#allocation4]  }
 0x876   :  { %17381 = dma.done.wait [#allocation4], 128  }
 0x877   :  { %17382 = vsyncadd [#allocation4], 4294967168 }
 0x878   :  { %12666 = vsyncpa [#allocation3], 1 }
 0x879   :  { %12667 = vsyncpa [#allocation6], 1 }
 0x87a   :  { %12668 = vsyncpa [#allocation9], 1 }
 0x87b   :  { %12669 = vsyncpa [#allocation12], 1 }
 0x87c   :  { %12670 = vsyncpa [#allocation15], 1 }
 0x87d   :  { %12671 = vsyncpa [#allocation18], 1 }
 0x87e   :  { %12672 = vsyncpa [#allocation4], 1 }

</bundles_post_ra>
